<compile_context>
chip_gen: v5e
topology: v5e:2x2
jax: 0.10.0
libtpu: 0.0.40
codegen_flags: <defaults>
</compile_context>

<pallas_src>
import functools
import math

import jax
import jax.numpy as jnp
from jax import lax
from jax.experimental import pallas as pl
from jax.experimental.pallas import tpu as pltpu


def _mlp_kernel(H, W, tile_h, approx_gelu,
                xt_ref, xc_ref, xb_ref,
                w1_ref, b1_ref, wdw_ref, bdw_ref, w2_ref, b2_ref,
                o_ref, h3_ref):
    """One (batch, row-tile) step: fc1 -> depthwise 3x3 -> GELU -> fc2."""
    del H  # static shape info only
    t = pl.program_id(1)
    n_tiles = pl.num_programs(1)
    TM = tile_h * W
    Chid = w1_ref.shape[1]

    # ---- fc1: tile + both 1-row halos fused into ONE large-M matmul ----
    # Concatenate in Cin-space (cheap), cast once, single MXU launch with
    # M = TM + 2W (instead of one M=TM and two badly under-filled M=W dots).
    x_ext = jnp.concatenate(
        [xt_ref[...], xc_ref[...], xb_ref[...]], axis=0).astype(jnp.bfloat16)
    h_ext = jnp.dot(x_ext, w1_ref[...],
                    preferred_element_type=jnp.float32) + b1_ref[...]
    # Extended image rows: row r of h3 = image row t*tile_h - 1 + r.
    h3_ref[...] = h_ext.reshape(tile_h + 2, W, Chid)

    # Halo rows that fall outside the image are the conv's zero padding:
    # zero them with guarded row writes (no full-tile multiplies).
    @pl.when(t == 0)
    def _():
        h3_ref[0] = jnp.zeros((W, Chid), jnp.float32)

    @pl.when(t == n_tiles - 1)
    def _():
        h3_ref[tile_h + 1] = jnp.zeros((W, Chid), jnp.float32)

    h3 = h3_ref[...]                                   # (tile_h+2, W, Chid)

    # ---- hoisted column shifts: 2 XLU rolls + 2 column zeroings ----
    col = lax.broadcasted_iota(jnp.int32, (1, W, 1), 1)
    # left neighbour (dx = -1): value at column c-1; column 0 has none.
    h3_l = pltpu.roll(h3, 1, axis=1) * (col >= 1).astype(jnp.float32)
    # right neighbour (dx = +1): value at column c+1; column W-1 has none.
    h3_r = pltpu.roll(h3, W - 1, axis=1) * (col <= W - 2).astype(jnp.float32)
    srcs = (h3_l, h3, h3_r)                            # indexed by kx

    # ---- depthwise 3x3 conv, padding=1 (f32 accumulation) ----
    wdw = wdw_ref[...]                                 # (9, Chid)
    acc = None
    for ky in range(3):
        for kx in range(3):
            # output row j reads extended row j + ky  (dy = ky - 1)
            term = srcs[kx][ky:ky + tile_h] * wdw[ky * 3 + kx]
            acc = term if acc is None else acc + term
    conv = acc + bdw_ref[...]                          # (tile_h, W, Chid)

    # ---- GELU ----
    if approx_gelu:
        # tanh approximation -> EUP slot (numerics-visible, opt-in)
        act = jax.nn.gelu(conv, approximate=True)
    else:
        # exact erf GELU, matching nn.GELU default
        act = 0.5 * conv * (1.0 + lax.erf(conv * (1.0 / math.sqrt(2.0))))

    # ---- fc2 (bf16 operands, f32 accumulation, lane-dense output) ----
    out = jnp.dot(act.reshape(TM, Chid).astype(jnp.bfloat16), w2_ref[...],
                  preferred_element_type=jnp.float32) + b2_ref[...]
    o_ref[...] = out.astype(o_ref.dtype)


def _vmem_capacity_bytes():
    """Physical VMEM per core; conservative (v7x) fallback if unknown."""
    try:
        info = pltpu.get_tpu_info()
        for name in ("vmem_capacity_bytes", "vmem_size_bytes", "vmem_bytes"):
            v = getattr(info, name, None)
            if v:
                return int(v)
    except Exception:
        pass
    return 64 * 1024 * 1024


def _pick_tile_h(H, W, B, Cin, Chid, Cout, in_itemsize, vmem_budget):
    """Largest divisor of H whose per-step working set fits `vmem_budget`,
    keeping at least 2 grid steps so both v7x TensorCores get work."""
    w_bytes = 2 * (Cin * Chid + Chid * Cout)              # bf16 weights
    bias_bytes = 4 * (11 * Chid + Cout)                   # f32 b1/bdw/taps/b2
    resident = 2 * (w_bytes + bias_bytes)                 # pipeline buffers

    def step_bytes(th):
        tm = th * W
        ext = tm + 2 * W
        live_f32 = (4 * ext + 2 * tm) * Chid * 4          # h3 + rolls + acc/act
        io = 2 * (ext * Cin + tm * Cout) * in_itemsize    # dbl-buffered blocks
        return resident + live_f32 + io + tm * Cout * 4

    best = 1
    for th in range(1, H + 1):
        if H % th != 0 or step_bytes(th) > vmem_budget:
            continue
        if th > 1 and B * (H // th) < 2:
            continue
        best = th
    return best


def mlp_pallas(x, params, H, W, tile_h=None, approx_gelu=False):
    """x: (B, N, Cin) with N == H*W, tokens row-major over (H, W).
    Output dtype follows x.dtype (pass bf16 activations to halve HBM traffic)."""
    w1, b1, wdw, bdw, w2, b2 = params
    B, N, Cin = x.shape
    assert N == H * W
    Chid = w1.shape[1]
    Cout = w2.shape[1]

    itemsize = jnp.dtype(x.dtype).itemsize
    if itemsize == 2:
        assert W % 16 == 0, "bf16 activations need W % 16 == 0 (sublane packing)"
    else:
        assert W % 8 == 0, "W must be a multiple of 8 (sublane tiling of halos)"

    # Lane-dense fc2 output: pad Cout up to a multiple of 128 (unmasked vst),
    # slice back in the wrapper.
    Cout_p = -(-Cout // 128) * 128
    if Cout_p != Cout:
        w2 = jnp.pad(w2, ((0, 0), (0, Cout_p - Cout)))
        b2 = jnp.pad(b2, ((0, 0), (0, Cout_p - Cout)))

    # VMEM-aware limits / tiling (v7x: 64 MiB -> ~48 MiB limit; v5e/v6e:
    # 128 MiB -> ~96 MiB limit and larger row tiles).
    vmem_cap = _vmem_capacity_bytes()
    vmem_limit = max(32 * 1024 * 1024,
                     min(vmem_cap * 3 // 4, 100 * 1024 * 1024))
    if tile_h is None:
        tile_h = _pick_tile_h(H, W, B, Cin, Chid, Cout_p, itemsize,
                              int(vmem_limit * 0.8))
    assert H % tile_h == 0
    TM = tile_h * W
    n_tiles = H // tile_h

    # MXU operands in bf16 (f32 accumulation in-kernel); biases and dwconv
    # taps stay f32 so the 9-tap accumulation keeps full precision.
    w1 = w1.astype(jnp.bfloat16)
    w2 = w2.astype(jnp.bfloat16)

    kernel = functools.partial(_mlp_kernel, H, W, tile_h, approx_gelu)

    flops = (2 * B * (N + 2 * n_tiles * W) * Cin * Chid
             + 2 * B * N * Chid * Cout_p
             + 2 * 9 * B * N * Chid)
    bytes_accessed = (
        B * (N + 2 * n_tiles * W) * Cin * itemsize       # x (+ halo refetch)
        + B * N * Cout_p * itemsize                      # output
        + (Cin * Chid + Chid * Cout_p) * 2               # bf16 weights
        + (2 * Chid + 9 * Chid + Cout_p) * 4)            # biases + dw taps
    cost = pl.CostEstimate(flops=flops, transcendentals=B * N * Chid,
                           bytes_accessed=bytes_accessed)

    out = pl.pallas_call(
        kernel,
        out_shape=jax.ShapeDtypeStruct((B, N, Cout_p), x.dtype),
        grid_spec=pltpu.PrefetchScalarGridSpec(
            num_scalar_prefetch=0,
            grid=(B, n_tiles),
            in_specs=[
                # top halo row (clamped at the image top; zeroed in-kernel)
                pl.BlockSpec((None, W, Cin),
                             lambda b, t: (b, jnp.maximum(t * tile_h - 1, 0), 0)),
                # the tile itself: tile_h image rows = TM tokens
                pl.BlockSpec((None, TM, Cin), lambda b, t: (b, t, 0)),
                # bottom halo row (clamped at the image bottom; zeroed in-kernel)
                pl.BlockSpec((None, W, Cin),
                             lambda b, t: (b, jnp.minimum((t + 1) * tile_h, H - 1), 0)),
                # weights / biases: constant index_maps -> resident in VMEM
                pl.BlockSpec((Cin, Chid), lambda b, t: (0, 0)),     # w1 (bf16)
                pl.BlockSpec((1, Chid), lambda b, t: (0, 0)),       # b1
                pl.BlockSpec((9, Chid), lambda b, t: (0, 0)),       # dw taps
                pl.BlockSpec((1, Chid), lambda b, t: (0, 0)),       # dw bias
                pl.BlockSpec((Chid, Cout_p), lambda b, t: (0, 0)),  # w2 (bf16)
                pl.BlockSpec((1, Cout_p), lambda b, t: (0, 0)),     # b2
            ],
            out_specs=pl.BlockSpec((None, TM, Cout_p), lambda b, t: (b, t, 0)),
            scratch_shapes=[pltpu.VMEM((tile_h + 2, W, Chid), jnp.float32)],
        ),
        compiler_params=pltpu.CompilerParams(
            dimension_semantics=("parallel", "parallel"),
            vmem_limit_bytes=int(vmem_limit)),
        cost_estimate=cost,
    )(x, x, x, w1, b1, wdw, bdw, w2, b2)

    if Cout_p != Cout:
        out = out[..., :Cout]
    return out


def mlp_reference(x, params, H, W, approx_gelu=False):
    """Pure-JAX reference mirroring the PyTorch forward pass, using the same
    bf16 operand quantization for the two linears as the kernel."""
    w1, b1, wdw, bdw, w2, b2 = params
    B, N, _ = x.shape
    Chid = w1.shape[1]
    h = jnp.dot(x.astype(jnp.bfloat16), w1.astype(jnp.bfloat16),
                preferred_element_type=jnp.float32) + b1              # (B,N,Chid)
    img = h.reshape(B, H, W, Chid)
    pad = jnp.pad(img, ((0, 0), (1, 1), (1, 1), (0, 0)))
    conv = jnp.zeros_like(img)
    for ky in range(3):
        for kx in range(3):
            conv = conv + pad[:, ky:ky + H, kx:kx + W, :] * wdw[ky * 3 + kx]
    conv = conv + bdw.reshape(1, 1, 1, Chid)
    if approx_gelu:
        act = jax.nn.gelu(conv, approximate=True)
    else:
        act = 0.5 * conv * (1.0 + lax.erf(conv / jnp.sqrt(2.0)))
    act = act.reshape(B, N, Chid)
    return jnp.dot(act.astype(jnp.bfloat16), w2.astype(jnp.bfloat16),
                   preferred_element_type=jnp.float32) + b2


def make_params(key, Cin, Chid, Cout):
    """Synthetic params with the same shapes/scales as the PyTorch module
    (linear weights stored pre-transposed: (in, out); depthwise conv weight
    (Chid, 1, 3, 3) stored as (9, Chid), index ky*3+kx)."""
    k1, k2, k3, k4, k5, k6 = jax.random.split(key, 6)
    w1 = 0.02 * jax.random.normal(k1, (Cin, Chid), jnp.float32)
    b1 = 0.1 * jax.random.normal(k4, (1, Chid), jnp.float32)
    wdw = jax.random.normal(k2, (9, Chid), jnp.float32) * math.sqrt(2.0 / 9.0)
    bdw = 0.1 * jax.random.normal(k5, (1, Chid), jnp.float32)
    w2 = 0.02 * jax.random.normal(k3, (Chid, Cout), jnp.float32)
    b2 = 0.1 * jax.random.normal(k6, (1, Cout), jnp.float32)
    return (w1, b1, wdw, bdw, w2, b2)


if __name__ == "__main__":
    # TODO(synk): only the Mlp sub-module is kernelized here; the Attention /
    # EAttention / OverlapPatchEmbed stages of MixVisionTransformer are not.
    key = jax.random.PRNGKey(0)
    kp, kx, kp2, kx2 = jax.random.split(key, 4)

    # --- Config A: lane-dense channels (MixViT stage-2-like), several tilings
    B, H, W = 2, 16, 16
    N = H * W
    Cin, Chid, Cout = 128, 256, 128
    params = make_params(kp, Cin, Chid, Cout)
    x = jax.random.normal(kx, (B, N, Cin), jnp.float32)

    ref = mlp_reference(x, params, H, W)
    for tile_h in (None, 16, 8, 4):          # auto-pick, single-tile, multi-tile
        out = jax.block_until_ready(mlp_pallas(x, params, H, W, tile_h=tile_h))
        assert out.shape == (B, N, Cout)
        err = float(jnp.max(jnp.abs(out - ref)))
        assert jnp.allclose(out, ref, atol=1e-3, rtol=1e-3), (
            f"tile_h={tile_h}: max abs err {err}")

    # approximate (tanh / EUP) GELU path vs a matching reference
    ref_a = mlp_reference(x, params, H, W, approx_gelu=True)
    out_a = jax.block_until_ready(
        mlp_pallas(x, params, H, W, tile_h=8, approx_gelu=True))
    err_a = float(jnp.max(jnp.abs(out_a - ref_a)))
    assert jnp.allclose(out_a, ref_a, atol=2e-3, rtol=2e-3), (
        f"approx-gelu max abs err {err_a}")

    # bf16 activation I/O path (halves HBM traffic; output dtype follows input)
    out_bf = jax.block_until_ready(
        mlp_pallas(x.astype(jnp.bfloat16), params, H, W, tile_h=8))
    assert out_bf.dtype == jnp.bfloat16
    err_bf = float(jnp.max(jnp.abs(out_bf.astype(jnp.float32) - ref)))
    assert err_bf < 3e-2, f"bf16 io max abs err {err_bf}"

    # --- Config B: Cout=64 (MixViT stage-1 width) -> lane-padding path
    B2, H2, W2 = 1, 16, 16
    Cin2, Chid2, Cout2 = 64, 256, 64
    params2 = make_params(kp2, Cin2, Chid2, Cout2)
    x2 = jax.random.normal(kx2, (B2, H2 * W2, Cin2), jnp.float32)
    ref2 = mlp_reference(x2, params2, H2, W2)
    out2 = jax.block_until_ready(mlp_pallas(x2, params2, H2, W2, tile_h=8))
    assert out2.shape == (B2, H2 * W2, Cout2)
    err2 = float(jnp.max(jnp.abs(out2 - ref2)))
    assert jnp.allclose(out2, ref2, atol=1e-3, rtol=1e-3), (
        f"padded-Cout max abs err {err2}")

    print("KERNEL_OK")
</pallas_src>

<mosaic_0001>
module attributes {stable_mosaic.version = 11 : i64} {
  func.func @_mlp_kernel(%arg0: i32, %arg1: i32, %arg2: memref<1x16x128xf32, #tpu.memory_space<vmem>>, %arg3: memref<1x256x128xf32, #tpu.memory_space<vmem>>, %arg4: memref<1x16x128xf32, #tpu.memory_space<vmem>>, %arg5: memref<128x256xbf16, #tpu.memory_space<vmem>>, %arg6: memref<1x256xf32, #tpu.memory_space<vmem>>, %arg7: memref<9x256xf32, #tpu.memory_space<vmem>>, %arg8: memref<1x256xf32, #tpu.memory_space<vmem>>, %arg9: memref<256x128xbf16, #tpu.memory_space<vmem>>, %arg10: memref<1x128xf32, #tpu.memory_space<vmem>>, %arg11: memref<1x256x128xf32, #tpu.memory_space<vmem>>, %arg12: memref<18x16x256xf32, #tpu.memory_space<vmem>>) attributes {dimension_semantics = [#tpu.dimension_semantics<parallel>, #tpu.dimension_semantics<parallel>], iteration_bounds = array<i64: 2, 1>, scalar_prefetch = 0 : i64, scratch_operands = 1 : i64, tpu.core_type = #tpu.core_type<tc>, window_params = [{transform_indices = @transform_0, window_bounds = array<i64: 1, 16, 128>}, {transform_indices = @transform_1, window_bounds = array<i64: 1, 256, 128>}, {transform_indices = @transform_2, window_bounds = array<i64: 1, 16, 128>}, {pipeline_mode = #tpu.pipeline_mode<synchronous>, transform_indices = @transform_3, window_bounds = array<i64: 128, 256>}, {pipeline_mode = #tpu.pipeline_mode<synchronous>, transform_indices = @transform_4, window_bounds = array<i64: 1, 256>}, {pipeline_mode = #tpu.pipeline_mode<synchronous>, transform_indices = @transform_5, window_bounds = array<i64: 9, 256>}, {pipeline_mode = #tpu.pipeline_mode<synchronous>, transform_indices = @transform_6, window_bounds = array<i64: 1, 256>}, {pipeline_mode = #tpu.pipeline_mode<synchronous>, transform_indices = @transform_7, window_bounds = array<i64: 256, 128>}, {pipeline_mode = #tpu.pipeline_mode<synchronous>, transform_indices = @transform_8, window_bounds = array<i64: 1, 128>}, {transform_indices = @transform_9, window_bounds = array<i64: 1, 256, 128>}]} {
    %c0 = arith.constant 0 : index
    %c0_0 = arith.constant 0 : index
    %c0_1 = arith.constant 0 : index
    %0 = vector.load %arg2[%c0, %c0_0, %c0_1] : memref<1x16x128xf32, #tpu.memory_space<vmem>>, vector<1x16x128xf32>
    %1 = vector.shape_cast %0 : vector<1x16x128xf32> to vector<16x128xf32>
    %c0_2 = arith.constant 0 : index
    %c0_3 = arith.constant 0 : index
    %c0_4 = arith.constant 0 : index
    %2 = vector.load %arg3[%c0_2, %c0_3, %c0_4] : memref<1x256x128xf32, #tpu.memory_space<vmem>>, vector<1x256x128xf32>
    %3 = vector.shape_cast %2 : vector<1x256x128xf32> to vector<256x128xf32>
    %c0_5 = arith.constant 0 : index
    %c0_6 = arith.constant 0 : index
    %c0_7 = arith.constant 0 : index
    %4 = vector.load %arg4[%c0_5, %c0_6, %c0_7] : memref<1x16x128xf32, #tpu.memory_space<vmem>>, vector<1x16x128xf32>
    %5 = vector.shape_cast %4 : vector<1x16x128xf32> to vector<16x128xf32>
    %6 = tpu.concatenate %1, %3, %5 in 0 : vector<16x128xf32>, vector<256x128xf32>, vector<16x128xf32> -> vector<288x128xf32>
    %7 = arith.truncf %6 : vector<288x128xf32> to vector<288x128xbf16>
    %c0_8 = arith.constant 0 : index
    %c0_9 = arith.constant 0 : index
    %8 = vector.load %arg5[%c0_8, %c0_9] : memref<128x256xbf16, #tpu.memory_space<vmem>>, vector<128x256xbf16>
    %cst = arith.constant dense<0.000000e+00> : vector<288x256xf32>
    %9 = tpu.matmul %7, %8, %cst {dimension_numbers = #tpu.dot_dimension_numbers<[1], [0], [0], [1], [0, 0, 1, 1], [], []>} : vector<288x128xbf16>, vector<128x256xbf16>, vector<288x256xf32> -> vector<288x256xf32>
    %c0_10 = arith.constant 0 : index
    %c0_11 = arith.constant 0 : index
    %10 = vector.load %arg6[%c0_10, %c0_11] : memref<1x256xf32, #tpu.memory_space<vmem>>, vector<1x256xf32>
    %11 = vector.broadcast %10 : vector<1x256xf32> to vector<288x256xf32>
    %12 = arith.addf %9, %11 : vector<288x256xf32>
    %13 = vector.shape_cast %12 : vector<288x256xf32> to vector<18x16x256xf32>
    %c0_12 = arith.constant 0 : index
    %c0_13 = arith.constant 0 : index
    %c0_14 = arith.constant 0 : index
    %14 = vector.load %arg12[%c0_12, %c0_13, %c0_14] : memref<18x16x256xf32, #tpu.memory_space<vmem>>, vector<18x16x256xf32>
    tpu.vector_store %arg12[%c0_12, %c0_13, %c0_14], %13 {strides = array<i32>} : memref<18x16x256xf32, #tpu.memory_space<vmem>>, vector<18x16x256xf32>,
    %c0_i32 = arith.constant 0 : i32
    %15 = arith.cmpi eq, %arg1, %c0_i32 : i32
    %16 = arith.extui %15 : i1 to i32
    %c0_i32_15 = arith.constant 0 : i32
    %17 = arith.cmpi ne, %16, %c0_i32_15 : i32
    scf.if %17 {
      %cst_37 = arith.constant 0.000000e+00 : f32
      %122 = vector.broadcast %cst_37 : f32 to vector<16x256xf32>
      %c0_38 = arith.constant 0 : index
      %c0_39 = arith.constant 0 : index
      %c0_40 = arith.constant 0 : index
      %123 = vector.load %arg12[%c0_38, %c0_39, %c0_40] : memref<18x16x256xf32, #tpu.memory_space<vmem>>, vector<1x16x256xf32>
      %124 = vector.shape_cast %123 : vector<1x16x256xf32> to vector<16x256xf32>
      %125 = vector.shape_cast %122 : vector<16x256xf32> to vector<1x16x256xf32>
      tpu.vector_store %arg12[%c0_38, %c0_39, %c0_40], %125 {strides = array<i32>} : memref<18x16x256xf32, #tpu.memory_space<vmem>>, vector<1x16x256xf32>,
    } else {
    }
    %c0_i32_16 = arith.constant 0 : i32
    %18 = arith.cmpi eq, %arg1, %c0_i32_16 : i32
    %19 = arith.extui %18 : i1 to i32
    %c0_i32_17 = arith.constant 0 : i32
    %20 = arith.cmpi ne, %19, %c0_i32_17 : i32
    scf.if %20 {
      %cst_37 = arith.constant 0.000000e+00 : f32
      %122 = vector.broadcast %cst_37 : f32 to vector<16x256xf32>
      %c17 = arith.constant 17 : index
      %c0_38 = arith.constant 0 : index
      %c0_39 = arith.constant 0 : index
      %123 = vector.load %arg12[%c17, %c0_38, %c0_39] : memref<18x16x256xf32, #tpu.memory_space<vmem>>, vector<1x16x256xf32>
      %124 = vector.shape_cast %123 : vector<1x16x256xf32> to vector<16x256xf32>
      %125 = vector.shape_cast %122 : vector<16x256xf32> to vector<1x16x256xf32>
      tpu.vector_store %arg12[%c17, %c0_38, %c0_39], %125 {strides = array<i32>} : memref<18x16x256xf32, #tpu.memory_space<vmem>>, vector<1x16x256xf32>,
    } else {
    }
    %c0_18 = arith.constant 0 : index
    %c0_19 = arith.constant 0 : index
    %c0_20 = arith.constant 0 : index
    %21 = vector.load %arg12[%c0_18, %c0_19, %c0_20] : memref<18x16x256xf32, #tpu.memory_space<vmem>>, vector<18x16x256xf32>
    %22 = tpu.iota {dimensions = array<i32: 1>} : vector<1x16x1xi32>
    %c1_i32 = arith.constant 1 : i32
    %23 = tpu.dynamic_rotate %21 by %c1_i32 dim 1 : vector<18x16x256xf32>, i32 -> vector<18x16x256xf32>
    %c1_i32_21 = arith.constant 1 : i32
    %24 = vector.broadcast %c1_i32_21 : i32 to vector<1x16x1xi32>
    %25 = arith.cmpi sge, %22, %24 : vector<1x16x1xi32>
    %26 = arith.extui %25 : vector<1x16x1xi1> to vector<1x16x1xi32>
    %27 = arith.sitofp %26 : vector<1x16x1xi32> to vector<1x16x1xf32>
    %28 = vector.broadcast %27 : vector<1x16x1xf32> to vector<18x16x256xf32>
    %29 = arith.mulf %23, %28 : vector<18x16x256xf32>
    %c15_i32 = arith.constant 15 : i32
    %30 = tpu.dynamic_rotate %21 by %c15_i32 dim 1 : vector<18x16x256xf32>, i32 -> vector<18x16x256xf32>
    %c14_i32 = arith.constant 14 : i32
    %31 = vector.broadcast %c14_i32 : i32 to vector<1x16x1xi32>
    %32 = arith.cmpi sle, %22, %31 : vector<1x16x1xi32>
    %33 = arith.extui %32 : vector<1x16x1xi1> to vector<1x16x1xi32>
    %34 = arith.sitofp %33 : vector<1x16x1xi32> to vector<1x16x1xf32>
    %35 = vector.broadcast %34 : vector<1x16x1xf32> to vector<18x16x256xf32>
    %36 = arith.mulf %30, %35 : vector<18x16x256xf32>
    %c0_22 = arith.constant 0 : index
    %c0_23 = arith.constant 0 : index
    %37 = vector.load %arg7[%c0_22, %c0_23] : memref<9x256xf32, #tpu.memory_space<vmem>>, vector<9x256xf32>
    %38 = vector.extract_strided_slice %29 {offsets = [0, 0, 0], sizes = [16, 16, 256], strides = [1, 1, 1]} : vector<18x16x256xf32> to vector<16x16x256xf32>
    %39 = vector.extract_strided_slice %37 {offsets = [0, 0], sizes = [1, 256], strides = [1, 1]} : vector<9x256xf32> to vector<1x256xf32>
    %40 = vector.shape_cast %39 : vector<1x256xf32> to vector<256xf32>
    %41 = vector.shape_cast %40 : vector<256xf32> to vector<1x1x256xf32>
    %42 = vector.broadcast %41 : vector<1x1x256xf32> to vector<16x16x256xf32>
    %43 = arith.mulf %38, %42 : vector<16x16x256xf32>
    %44 = vector.extract_strided_slice %21 {offsets = [0, 0, 0], sizes = [16, 16, 256], strides = [1, 1, 1]} : vector<18x16x256xf32> to vector<16x16x256xf32>
    %45 = vector.extract_strided_slice %37 {offsets = [1, 0], sizes = [1, 256], strides = [1, 1]} : vector<9x256xf32> to vector<1x256xf32>
    %46 = vector.shape_cast %45 : vector<1x256xf32> to vector<256xf32>
    %47 = vector.shape_cast %46 : vector<256xf32> to vector<1x1x256xf32>
    %48 = vector.broadcast %47 : vector<1x1x256xf32> to vector<16x16x256xf32>
    %49 = arith.mulf %44, %48 : vector<16x16x256xf32>
    %50 = arith.addf %43, %49 : vector<16x16x256xf32>
    %51 = vector.extract_strided_slice %36 {offsets = [0, 0, 0], sizes = [16, 16, 256], strides = [1, 1, 1]} : vector<18x16x256xf32> to vector<16x16x256xf32>
    %52 = vector.extract_strided_slice %37 {offsets = [2, 0], sizes = [1, 256], strides = [1, 1]} : vector<9x256xf32> to vector<1x256xf32>
    %53 = vector.shape_cast %52 : vector<1x256xf32> to vector<256xf32>
    %54 = vector.shape_cast %53 : vector<256xf32> to vector<1x1x256xf32>
    %55 = vector.broadcast %54 : vector<1x1x256xf32> to vector<16x16x256xf32>
    %56 = arith.mulf %51, %55 : vector<16x16x256xf32>
    %57 = arith.addf %50, %56 : vector<16x16x256xf32>
    %58 = vector.extract_strided_slice %29 {offsets = [1, 0, 0], sizes = [16, 16, 256], strides = [1, 1, 1]} : vector<18x16x256xf32> to vector<16x16x256xf32>
    %59 = vector.extract_strided_slice %37 {offsets = [3, 0], sizes = [1, 256], strides = [1, 1]} : vector<9x256xf32> to vector<1x256xf32>
    %60 = vector.shape_cast %59 : vector<1x256xf32> to vector<256xf32>
    %61 = vector.shape_cast %60 : vector<256xf32> to vector<1x1x256xf32>
    %62 = vector.broadcast %61 : vector<1x1x256xf32> to vector<16x16x256xf32>
    %63 = arith.mulf %58, %62 : vector<16x16x256xf32>
    %64 = arith.addf %57, %63 : vector<16x16x256xf32>
    %65 = vector.extract_strided_slice %21 {offsets = [1, 0, 0], sizes = [16, 16, 256], strides = [1, 1, 1]} : vector<18x16x256xf32> to vector<16x16x256xf32>
    %66 = vector.extract_strided_slice %37 {offsets = [4, 0], sizes = [1, 256], strides = [1, 1]} : vector<9x256xf32> to vector<1x256xf32>
    %67 = vector.shape_cast %66 : vector<1x256xf32> to vector<256xf32>
    %68 = vector.shape_cast %67 : vector<256xf32> to vector<1x1x256xf32>
    %69 = vector.broadcast %68 : vector<1x1x256xf32> to vector<16x16x256xf32>
    %70 = arith.mulf %65, %69 : vector<16x16x256xf32>
    %71 = arith.addf %64, %70 : vector<16x16x256xf32>
    %72 = vector.extract_strided_slice %36 {offsets = [1, 0, 0], sizes = [16, 16, 256], strides = [1, 1, 1]} : vector<18x16x256xf32> to vector<16x16x256xf32>
    %73 = vector.extract_strided_slice %37 {offsets = [5, 0], sizes = [1, 256], strides = [1, 1]} : vector<9x256xf32> to vector<1x256xf32>
    %74 = vector.shape_cast %73 : vector<1x256xf32> to vector<256xf32>
    %75 = vector.shape_cast %74 : vector<256xf32> to vector<1x1x256xf32>
    %76 = vector.broadcast %75 : vector<1x1x256xf32> to vector<16x16x256xf32>
    %77 = arith.mulf %72, %76 : vector<16x16x256xf32>
    %78 = arith.addf %71, %77 : vector<16x16x256xf32>
    %79 = vector.extract_strided_slice %29 {offsets = [2, 0, 0], sizes = [16, 16, 256], strides = [1, 1, 1]} : vector<18x16x256xf32> to vector<16x16x256xf32>
    %80 = vector.extract_strided_slice %37 {offsets = [6, 0], sizes = [1, 256], strides = [1, 1]} : vector<9x256xf32> to vector<1x256xf32>
    %81 = vector.shape_cast %80 : vector<1x256xf32> to vector<256xf32>
    %82 = vector.shape_cast %81 : vector<256xf32> to vector<1x1x256xf32>
    %83 = vector.broadcast %82 : vector<1x1x256xf32> to vector<16x16x256xf32>
    %84 = arith.mulf %79, %83 : vector<16x16x256xf32>
    %85 = arith.addf %78, %84 : vector<16x16x256xf32>
    %86 = vector.extract_strided_slice %21 {offsets = [2, 0, 0], sizes = [16, 16, 256], strides = [1, 1, 1]} : vector<18x16x256xf32> to vector<16x16x256xf32>
    %87 = vector.extract_strided_slice %37 {offsets = [7, 0], sizes = [1, 256], strides = [1, 1]} : vector<9x256xf32> to vector<1x256xf32>
    %88 = vector.shape_cast %87 : vector<1x256xf32> to vector<256xf32>
    %89 = vector.shape_cast %88 : vector<256xf32> to vector<1x1x256xf32>
    %90 = vector.broadcast %89 : vector<1x1x256xf32> to vector<16x16x256xf32>
    %91 = arith.mulf %86, %90 : vector<16x16x256xf32>
    %92 = arith.addf %85, %91 : vector<16x16x256xf32>
    %93 = vector.extract_strided_slice %36 {offsets = [2, 0, 0], sizes = [16, 16, 256], strides = [1, 1, 1]} : vector<18x16x256xf32> to vector<16x16x256xf32>
    %94 = vector.extract_strided_slice %37 {offsets = [8, 0], sizes = [1, 256], strides = [1, 1]} : vector<9x256xf32> to vector<1x256xf32>
    %95 = vector.shape_cast %94 : vector<1x256xf32> to vector<256xf32>
    %96 = vector.shape_cast %95 : vector<256xf32> to vector<1x1x256xf32>
    %97 = vector.broadcast %96 : vector<1x1x256xf32> to vector<16x16x256xf32>
    %98 = arith.mulf %93, %97 : vector<16x16x256xf32>
    %99 = arith.addf %92, %98 : vector<16x16x256xf32>
    %c0_24 = arith.constant 0 : index
    %c0_25 = arith.constant 0 : index
    %100 = vector.load %arg8[%c0_24, %c0_25] : memref<1x256xf32, #tpu.memory_space<vmem>>, vector<1x256xf32>
    %101 = vector.shape_cast %100 : vector<1x256xf32> to vector<1x1x256xf32>
    %102 = vector.broadcast %101 : vector<1x1x256xf32> to vector<16x16x256xf32>
    %103 = arith.addf %99, %102 : vector<16x16x256xf32>
    %cst_26 = arith.constant 5.000000e-01 : f32
    %104 = vector.broadcast %cst_26 : f32 to vector<16x16x256xf32>
    %105 = arith.mulf %104, %103 : vector<16x16x256xf32>
    %cst_27 = arith.constant 0.707106769 : f32
    %106 = vector.broadcast %cst_27 : f32 to vector<16x16x256xf32>
    %107 = arith.mulf %103, %106 : vector<16x16x256xf32>
    %108 = math.erf %107 : vector<16x16x256xf32>
    %cst_28 = arith.constant 1.000000e+00 : f32
    %109 = vector.broadcast %cst_28 : f32 to vector<16x16x256xf32>
    %110 = arith.addf %109, %108 : vector<16x16x256xf32>
    %111 = arith.mulf %105, %110 : vector<16x16x256xf32>
    %112 = vector.shape_cast %111 : vector<16x16x256xf32> to vector<256x256xf32>
    %113 = arith.truncf %112 : vector<256x256xf32> to vector<256x256xbf16>
    %c0_29 = arith.constant 0 : index
    %c0_30 = arith.constant 0 : index
    %114 = vector.load %arg9[%c0_29, %c0_30] : memref<256x128xbf16, #tpu.memory_space<vmem>>, vector<256x128xbf16>
    %cst_31 = arith.constant dense<0.000000e+00> : vector<256x128xf32>
    %115 = tpu.matmul %113, %114, %cst_31 {dimension_numbers = #tpu.dot_dimension_numbers<[1], [0], [0], [1], [0, 0, 1, 1], [], []>} : vector<256x256xbf16>, vector<256x128xbf16>, vector<256x128xf32> -> vector<256x128xf32>
    %c0_32 = arith.constant 0 : index
    %c0_33 = arith.constant 0 : index
    %116 = vector.load %arg10[%c0_32, %c0_33] : memref<1x128xf32, #tpu.memory_space<vmem>>, vector<1x128xf32>
    %117 = vector.broadcast %116 : vector<1x128xf32> to vector<256x128xf32>
    %118 = arith.addf %115, %117 : vector<256x128xf32>
    %c0_34 = arith.constant 0 : index
    %c0_35 = arith.constant 0 : index
    %c0_36 = arith.constant 0 : index
    %119 = vector.load %arg11[%c0_34, %c0_35, %c0_36] : memref<1x256x128xf32, #tpu.memory_space<vmem>>, vector<1x256x128xf32>
    %120 = vector.shape_cast %119 : vector<1x256x128xf32> to vector<256x128xf32>
    %121 = vector.shape_cast %118 : vector<256x128xf32> to vector<1x256x128xf32>
    tpu.vector_store %arg11[%c0_34, %c0_35, %c0_36], %121 {strides = array<i32>} : memref<1x256x128xf32, #tpu.memory_space<vmem>>, vector<1x256x128xf32>,
    return
  }
  func.func @transform_0(%arg0: i32, %arg1: i32) -> (i32, i32, i32) {
    %c16_i32 = arith.constant 16 : i32
    %0 = arith.muli %arg1, %c16_i32 : i32
    %c1_i32 = arith.constant 1 : i32
    %1 = arith.subi %0, %c1_i32 : i32
    %c0_i32 = arith.constant 0 : i32
    %2 = arith.maxsi %1, %c0_i32 : i32
    %c0_i32_0 = arith.constant 0 : i32
    %c0_i32_1 = arith.constant 0 : i32
    return %arg0, %2, %c0_i32_0 : i32, i32, i32
  }
  func.func @transform_1(%arg0: i32, %arg1: i32) -> (i32, i32, i32) {
    %c0_i32 = arith.constant 0 : i32
    %c0_i32_0 = arith.constant 0 : i32
    return %arg0, %arg1, %c0_i32 : i32, i32, i32
  }
  func.func @transform_2(%arg0: i32, %arg1: i32) -> (i32, i32, i32) {
    %c1_i32 = arith.constant 1 : i32
    %0 = arith.addi %arg1, %c1_i32 : i32
    %c16_i32 = arith.constant 16 : i32
    %1 = arith.muli %0, %c16_i32 : i32
    %c15_i32 = arith.constant 15 : i32
    %2 = arith.minsi %1, %c15_i32 : i32
    %c0_i32 = arith.constant 0 : i32
    %c0_i32_0 = arith.constant 0 : i32
    return %arg0, %2, %c0_i32 : i32, i32, i32
  }
  func.func @transform_3(%arg0: i32, %arg1: i32) -> (i32, i32) {
    %c0_i32 = arith.constant 0 : i32
    %c0_i32_0 = arith.constant 0 : i32
    %c0_i32_1 = arith.constant 0 : i32
    return %c0_i32, %c0_i32_0 : i32, i32
  }
  func.func @transform_4(%arg0: i32, %arg1: i32) -> (i32, i32) {
    %c0_i32 = arith.constant 0 : i32
    %c0_i32_0 = arith.constant 0 : i32
    %c0_i32_1 = arith.constant 0 : i32
    return %c0_i32, %c0_i32_0 : i32, i32
  }
  func.func @transform_5(%arg0: i32, %arg1: i32) -> (i32, i32) {
    %c0_i32 = arith.constant 0 : i32
    %c0_i32_0 = arith.constant 0 : i32
    %c0_i32_1 = arith.constant 0 : i32
    return %c0_i32, %c0_i32_0 : i32, i32
  }
  func.func @transform_6(%arg0: i32, %arg1: i32) -> (i32, i32) {
    %c0_i32 = arith.constant 0 : i32
    %c0_i32_0 = arith.constant 0 : i32
    %c0_i32_1 = arith.constant 0 : i32
    return %c0_i32, %c0_i32_0 : i32, i32
  }
  func.func @transform_7(%arg0: i32, %arg1: i32) -> (i32, i32) {
    %c0_i32 = arith.constant 0 : i32
    %c0_i32_0 = arith.constant 0 : i32
    %c0_i32_1 = arith.constant 0 : i32
    return %c0_i32, %c0_i32_0 : i32, i32
  }
  func.func @transform_8(%arg0: i32, %arg1: i32) -> (i32, i32) {
    %c0_i32 = arith.constant 0 : i32
    %c0_i32_0 = arith.constant 0 : i32
    %c0_i32_1 = arith.constant 0 : i32
    return %c0_i32, %c0_i32_0 : i32, i32
  }
  func.func @transform_9(%arg0: i32, %arg1: i32) -> (i32, i32, i32) {
    %c0_i32 = arith.constant 0 : i32
    %c0_i32_0 = arith.constant 0 : i32
    return %arg0, %arg1, %c0_i32 : i32, i32, i32
  }
}

</mosaic_0001>

<bundles_post_ra>
// kernel: tpu_custom_call.1
= control target key start
LH: loop header
LB: loop body
LE: loop exit
PB: predicated region body
PF: predicated region fallthrough
CT: control target
= control target key end

     0   :  { %s12903_s0 = inlined_call_operand.hbm [shape: f32[2,256,128], index: 0, kind: input, shape index: {}]   ;;  %s12904_s1 = inlined_call_operand.hbm [shape: f32[2,256,128], index: 1, kind: input, shape index: {}]   ;;  %s12905_s2 = inlined_call_operand.hbm [shape: f32[2,256,128], index: 2, kind: input, shape index: {}]   ;;  %s12906_s3 = inlined_call_operand.hbm [shape: bf16[128,256], index: 3, kind: input, shape index: {}]   ;;  %s12907_s4 = inlined_call_operand.vmem [shape: f32[1,256], index: 4, kind: input, shape index: {}]   ;;  %s12908_s5 = inlined_call_operand.hbm [shape: f32[9,256], index: 5, kind: input, shape index: {}]   ;;  %s12909_s6 = inlined_call_operand.vmem [shape: f32[1,256], index: 6, kind: input, shape index: {}]   ;;  %s12910_s7 = inlined_call_operand.hbm [shape: bf16[256,128], index: 7, kind: input, shape index: {}]   ;;  %s12911_s8 = inlined_call_operand.vmem [shape: f32[1,128], index: 8, kind: input, shape index: {}]   ;;  %s12912_s9 = inlined_call_operand.hbm [shape: f32[2,256,128], index: 9, kind: output, shape index: {}]  }
   0x1   :  { %13289 = sst [smem:[#allocation150_spill]] %s12904_s1 }
   0x2   :  { %13290 = sst [smem:[#allocation151_spill]] %s12906_s3 }
   0x3   :  { %13291 = sst [smem:[#allocation152_spill]] %s12908_s5 }
   0x4   :  { %13292 = sst [smem:[#allocation153_spill]] %s12910_s7 }
   0x5   :  { %13293 = sst [smem:[#allocation154_spill]] %s12912_s9 }
   0x6   :  { %14 = vsyncpa [#allocation4], 0 }
   0x7   :  { %16 = vsyncpa [#allocation4 + $0x1], 0 }
   0x8   :  { %17 = vsyncpa [#allocation7], 0 }
   0x9   :  { %19 = vsyncpa [#allocation7 + $0x1], 0 }
   0xa   :  { %20 = vsyncpa [#allocation10], 0 }
   0xb   :  { %21 = vsyncpa [#allocation13], 0 }
   0xc   :  { %22 = vsyncpa [#allocation5], 0 }
   0xd   :  { %24 = vsyncpa [#allocation5 + $0x1], 0  ;;  %s6916_s30 = smov 0   ;;  %s6918_s10 = smov 0  }
   0xe   :  { %s6920_s11 = smov 0   ;;  %s6922_s12 = smov 0  }
   0xf   :  { %s6924_s13 = smov 0   ;;  %s6926_s14 = smov 0  }
  0x10 LB: > { %13294 = sst [smem:[#allocation20_spill]] %s6832_s30  ;;  %s6947_s15 = sadd.s32 4294967295, %s6852_s14   ;;  %s6852_s14 = sphi %s6926_s14, %s30_s14   ;;  %s6848_s13 = sphi %s6924_s13, %s14399_s13   ;;  %s6844_s12 = sphi %s6922_s12, %s14398_s12   ;;  %s6840_s11 = sphi %s6920_s11, %s14397_s11   ;;  %s6836_s10 = sphi %s6918_s10, %s14401_s10   ;;  %s6832_s30 = sphi %s6916_s30, %s14400_s30  }
  0x11   : > { %13295 = sst [smem:[#allocation21_spill]] %s6840_s11  ;;  %s6060_s16 = sadd.s32 4294967294, %s6852_s14  }
  0x12   : > { %13296 = sst [smem:[#allocation22_spill]] %s6844_s12  ;;  %p72_p0 = scmp.ne.s32.totalorder %s6836_s10, %s6832_s30 }
  0x13   : > { %13297 = sst [smem:[#allocation23_spill]] %s6848_s13  ;;  %p73_p1 = scmp.eq.s32.totalorder %s6947_s15, 0 }
  0x14   : > { %13298 = sst [smem:[#allocation24_spill]] %s6852_s14  ;;  %p288_p2 = scmp.eq.s32.totalorder %s6947_s15, 1 }
  0x15   : > { %p294_p3 = scmp.eq.s32.totalorder %s6060_s16, 1  ;;  %p6956_p4 = por %p73_p1, %p72_p0 }
  0x16   : > { %p6061_p5 = scmp.ge.s32.totalorder %s6852_s14, 1  ;;  %p301_p7 = scmp.lt.s32.totalorder %s6852_s14, 3 }
  0x17   : > { %p6961_p6 = por %p294_p3, %p72_p0  ;;  %s13302_s3 = sld [smem:[#allocation151_spill]] }
  0x18   : > { %p6969_p8 = pnand %p6061_p5, %p301_p7  ;;  %s6854_s23 = smov [#allocation9]  }
  0x19   : > { %s13300_s18 = scalar_select %p6961_p6, 1, 0 }
  0x1a   : > { %p6340_p9 = pneg %p6969_p8  ;;  %s314_s24 = sshll.u32 %s6854_s23, 4  ;;  %s315_s24 = int_to_ptr.vmem [resolvable:$true] %s314_s24 }
  0x1b   : > { %13301 = sst [smem:[#allocation25_spill]] %s13300_s18  ;;  %s12913_s26 = smov 128  }
  0x1c   : > { %p6977_p10 = pnand %p6340_p9, %p73_p1  ;;  %s12915_s27 = smov 8  }
  0x1d   : > { %s312_s21 = sshll.u32 %s13302_s3, 4  ;;  %s42_s28 = sadd.s32 1, %s6848_s13  ;;  %s313_s21 = int_to_ptr.hbm [resolvable:$true] %s312_s21 }
  0x1e   : > { %6343 = dma.hbm_to_vmem [thread:$0]  (!%p6977_p10), %s313_s21, 2048, %s315_s24, [#allocation10], %s12913_s26, %s12913_s26, %s12915_s27  }
  0x1f   : > { %p44_p12 = scmp.ge.s32.totalorder %s42_s28, 2  ;;  %s59_s29 = sadd.s32 1, %s6840_s11 }
  0x20   : > { %p66_p13 = scmp.ne.s32.totalorder %s6840_s11, %s6836_s10  ;;  %p67_p0 = scmp.eq.s32.totalorder %s6852_s14, 0 }
  0x21   : > { %s14403_s28 = smov (%p44_p12, %s42_s28), 0  ;;  %p6367_p7 = scmp.lt.s32.totalorder %s6852_s14, 2 }
  0x22   : > { %13305 = sst [smem:[#allocation26_spill]] %s14403_s28  ;;  %p68_p3 = por %p67_p0, %p66_p13 }
  0x23   : > { %p6996_p5 = por %p288_p2, %p66_p13  ;;  %s54_s19 = ssub.s32 %s6848_s13, %s14403_s28 }
  0x24   : > { %p57_p9 = scmp.eq.s32.totalorder %s54_s19, 0  ;;  %s7004_s20 = sand.u32 1, %s6840_s11  }
  0x25   : > { %s13306_s16 = scalar_select %p6996_p5, 1, 0 }
  0x26   : > { %s7007_s21 = sshll.u32 %s6848_s13, 8  ;;  %p7009_p11 = pnand %p6367_p7, %p68_p3 }
  0x27   : > { %13307 = sst [smem:[#allocation27_spill]] %s13306_s16  ;;  %s393_s26 = sand.u32 1, %s6852_s14  }
  0x28   : > { %s7014_s24 = scalar_select %p57_p9, %s6840_s11, %s59_s29  }
  0x29   : > { %s6069_s27 = sshll.u32 %s7004_s20, 8  ;;  %s13310_s1 = sld [smem:[#allocation150_spill]] }
  0x2a   : > { %13309 = sst [smem:[#allocation28_spill]] %s7014_s24  ;;  %s397_s30 = scalar_lea.vmem [#allocation6], %s6069_s27 }
  0x2b   : > { %s407_s16 = sshll.u32 %s397_s30, 4  ;;  %s7022_s13 = scalar_lea.sflag [#allocation7], %s393_s26  ;;  %s408_s16 = int_to_ptr.vmem [resolvable:$true] %s407_s16 }
  0x2c   : > { %s13311_s9 = smov 8   ;;  %s13312_s12 = smov 128  }
  0x2d   : > { %s13313_s5 = sld [smem:[#allocation152_spill]]  ;;  %s6857_s18 = smov [#allocation11]  }
  0x2e   : > { %s331_s30 = sshll.u32 %s6857_s18, 4  ;;  %s13314_s7 = sld [smem:[#allocation153_spill]]  ;;  %s332_s30 = int_to_ptr.vmem [resolvable:$true] %s331_s30 }
  0x2f   : > { %s404_s28 = scalar_lea.hbm %s13310_s1, %s7007_s21  ;;  %s6858_s1 = smov 256  }
  0x30   : > { %s405_s19 = sshll.u32 %s404_s28, 4  ;;  %s6859_s11 = smov 16   ;;  %s406_s19 = int_to_ptr.hbm [resolvable:$true] %s405_s19 }
  0x31   : > { %6356 = dma.hbm_to_vmem [thread:$0]  (!%p7009_p11), %s406_s19, 4096, %s408_s16, %s7022_s13, %s13312_s12, %s13312_s12, %s13311_s9  }
  0x32   : > { %s6860_s16 = smov [#allocation12]   ;;  %s6861_s19 = smov 64  }
  0x33   : > { %s329_s3 = sshll.u32 %s13313_s5, 4  ;;  %s348_s24 = sshll.u32 %s6860_s16, 4  ;;  %s330_s3 = int_to_ptr.hbm [resolvable:$true] %s329_s3  ;;  %s349_s24 = int_to_ptr.vmem [resolvable:$true] %s348_s24 }
  0x34   : > { %s346_s28 = sshll.u32 %s13314_s7, 4  ;;  %s6862_s29 = smov 4   ;;  %s347_s28 = int_to_ptr.hbm [resolvable:$true] %s346_s28 }
  0x35   : > { %6346 = dma.hbm_to_vmem [thread:$0]  (!%p6977_p10), %s330_s3, 512, %s332_s30, [#allocation10], %s6858_s1, %s6858_s1, %s6859_s11  }
  0x36   : > { %6349 = dma.hbm_to_vmem [thread:$0]  (!%p6977_p10), %s347_s28, 2048, %s349_s24, [#allocation13], %s6861_s19, %s6861_s19, %s6862_s29  }
  0x37   : > { %s6066_s18 = sshll.u32 %s7004_s20, 4  ;;  %s380_s27 = scalar_lea.hbm %s12903_s0, %s7007_s21 }
  0x38   : > { %s381_s26 = sshll.u32 %s380_s27, 4  ;;  %s369_s7 = scalar_lea.vmem [#allocation3], %s6066_s18  ;;  %s382_s26 = int_to_ptr.hbm [resolvable:$true] %s381_s26 }
  0x39   : > { %s383_s1 = sshll.u32 %s369_s7, 4  ;;  %s366_s11 = scalar_lea.sflag [#allocation4], %s7004_s20  ;;  %s384_s1 = int_to_ptr.vmem [resolvable:$true] %s383_s1 }
  0x3a   : > { %6353 = dma.hbm_to_vmem [thread:$0]  (!%p7009_p11), %s382_s26, 256, %s384_s1, %s366_s11, %s13312_s12, %s13312_s12, %s13311_s9  }
  0x3b   : > { %s6285_s25 = sadd.s32 240, %s7007_s21  ;;  %s421_s3 = scalar_lea.vmem [#allocation8], %s6066_s18 }
  0x3c   : > { %s435_s30 = sshll.u32 %s421_s3, 4  ;;  %s432_s5 = scalar_lea.hbm %s12905_s2, %s6285_s25  ;;  %s436_s30 = int_to_ptr.vmem [resolvable:$true] %s435_s30 }
  0x3d   : > { %s433_s14 = sshll.u32 %s432_s5, 4  ;;  %447 = sbr.rel (%p6969_p8) target bundleno = 1545 (0x609), region = 56  ;;  %s434_s14 = int_to_ptr.hbm [resolvable:$true] %s433_s14 }
  0x3e   : > { %6359 = dma.hbm_to_vmem [thread:$0]  (!%p7009_p11), %s434_s14, 256, %s436_s30, %s7022_s13, %s13312_s12, %s13312_s12, %s13311_s9  }
  0x42   : > { %s7064_s7 = sand.u32 1, %s6836_s10  }
  0x43   : > { %s6076_s20 = sshll.u32 %s7064_s7, 4  ;;  %s450_s21 = scalar_lea.sflag [#allocation4], %s7064_s7 }
  0x44   : > { %s7068_s24 = scalar_lea.vmem [#allocation3], %s6076_s20 }
  0x45   : > { %6811 = dma.done.wait (%p6956_p4), %s450_s21, 256  }
  0x46   : > { %6813 = vsyncadd (%p6956_p4), %s450_s21, 4294967040  ;;  %s459_s9 = sand.u32 1, %s6947_s15   ;;  %s6077_s12 = sshll.u32 %s7064_s7, 8 }
  0x47   : > { %s460_s13 = scalar_lea.sflag [#allocation7], %s459_s9  ;;  %s7078_s22 = scalar_lea.vmem [#allocation6], %s6077_s12 }
  0x48   : > { %6815 = dma.done.wait (%p6956_p4), %s460_s13, 4352  }
  0x49   : > { %6817 = vsyncadd (%p6956_p4), %s460_s13, 4294962944  ;;  %s7084_s23 = scalar_lea.vmem [#allocation8], %s6076_s20 }
  0x4a   : > { %6819 = dma.done.wait (%p73_p1), [#allocation10], 2560  }
  0x4b   : > { %6821 = vsyncadd (%p73_p1), [#allocation10], 4294964736 }
  0x4c   : > { %6823 = dma.done.wait (%p73_p1), [#allocation13], 2048  }
  0x4d   : > { %6825 = vsyncadd (%p73_p1), [#allocation13], 4294965248  ;;  %v6141_v0 = vld [vmem:[#allocation9 + $0x70] sm:$0xf]  ;;  %v6301_v1 = vld [vmem:[#allocation9 + $0x74] sm:$0xf0] }
  0x4e   : > { %v6300_v2 = vld [vmem:[#allocation9 + $0x74] sm:$0xf]  ;;  %v6142_v3 = vor.u32 %v6301_v1, %v6141_v0  ;;  %v6143_v4 = vld [vmem:[#allocation9 + $0x78] sm:$0xf0]  ;;  %v6133_v5 = vld [vmem:[#allocation9 + $0x60] sm:$0xf] }
  0x4f   : > { %v6299_v6 = vld [vmem:[#allocation9 + $0x64] sm:$0xf0]  ;;  %v6146_v7 = vor.u32 %v6300_v2, %v6143_v4  ;;  %v6298_v8 = vld [vmem:[#allocation9 + $0x64] sm:$0xf]  ;;  %v6135_v9 = vld [vmem:[#allocation9 + $0x68] sm:$0xf0] }
  0x50   : > { %702 = vmatpush.bf16.msra.mxu0 %v6142_v3  ;;  %v6134_v10 = vor.u32 %v6299_v6, %v6133_v5  ;;  %v6138_v11 = vor.u32 %v6298_v8, %v6135_v9  ;;  %v6125_v12 = vld [vmem:[#allocation9 + $0x50] sm:$0xf]  ;;  %v6297_v13 = vld [vmem:[#allocation9 + $0x54] sm:$0xf0]  ;;  %v6296_v14 = vld [vmem:[#allocation9 + $0x54] sm:$0xf] }
  0x51   : > { %801 = vmatpush.bf16.msra.mxu1 %v6146_v7  ;;  %v6127_v15 = vld [vmem:[#allocation9 + $0x58] sm:$0xf0]  ;;  %v6126_v16 = vor.u32 %v6297_v13, %v6125_v12  ;;  %v6117_v18 = vld [vmem:[#allocation9 + $0x40] sm:$0xf]  ;;  %v6295_v19 = vld [vmem:[#allocation9 + $0x44] sm:$0xf0]  ;;  %v1057_v13 = vlaneseq }
  0x52   : > { %v6130_v17 = vor.u32 %v6296_v14, %v6127_v15  ;;  %v6294_v20 = vld [vmem:[#allocation9 + $0x44] sm:$0xf]  ;;  %v6119_v21 = vld [vmem:[#allocation9 + $0x48] sm:$0xf0]  ;;  %v6118_v22 = vor.u32 %v6295_v19, %v6117_v18  ;;  %v6109_v23 = vld [vmem:[#allocation9 + $0x30] sm:$0xf] }
  0x53   : > { %v6293_v24 = vld [vmem:[#allocation9 + $0x34] sm:$0xf0]  ;;  %v6122_v25 = vor.u32 %v6294_v20, %v6119_v21  ;;  %v6292_v26 = vld [vmem:[#allocation9 + $0x34] sm:$0xf]  ;;  %v6111_v27 = vld [vmem:[#allocation9 + $0x38] sm:$0xf0] }
  0x54   : > { %703 = vmatpush.bf16.msra.mxu0 %v6134_v10  ;;  %v6110_v28 = vor.u32 %v6293_v24, %v6109_v23  ;;  %v6114_v29 = vor.u32 %v6292_v26, %v6111_v27  ;;  %v6101_v30 = vld [vmem:[#allocation9 + $0x20] sm:$0xf]  ;;  %v6291_v31 = vld [vmem:[#allocation9 + $0x24] sm:$0xf0]  ;;  %v6290_v32 = vld [vmem:[#allocation9 + $0x24] sm:$0xf] }
  0x55   : > { %802 = vmatpush.bf16.msra.mxu1 %v6138_v11  ;;  %v6103_v33 = vld [vmem:[#allocation9 + $0x28] sm:$0xf0]  ;;  %v6102_v34 = vor.u32 %v6291_v31, %v6101_v30  ;;  %v6093_v36 = vld [vmem:[#allocation9 + $0x10] sm:$0xf]  ;;  %v6289_v37 = vld [vmem:[#allocation9 + $0x14] sm:$0xf0] }
  0x56   : > { %v6106_v35 = vor.u32 %v6290_v32, %v6103_v33  ;;  %v6288_v38 = vld [vmem:[#allocation9 + $0x14] sm:$0xf]  ;;  %v6095_v39 = vld [vmem:[#allocation9 + $0x18] sm:$0xf0]  ;;  %v6094_v40 = vor.u32 %v6289_v37, %v6093_v36  ;;  %v6085_v42 = vld [vmem:[#allocation9] sm:$0xf] }
  0x57   : > { %v6098_v41 = vor.u32 %v6288_v38, %v6095_v39  ;;  %v6287_v43 = vld [vmem:[#allocation9 + $0x4] sm:$0xf0]  ;;  %v6286_v44 = vld [vmem:[#allocation9 + $0x4] sm:$0xf]  ;;  %v6087_v45 = vld [vmem:[#allocation9 + $0x8] sm:$0xf0] }
  0x58   : > { %704 = vmatpush.bf16.msra.mxu0 %v6126_v16  ;;  %v6086_v46 = vor.u32 %v6287_v43, %v6085_v42  ;;  %v546_v47 = vld [vmem:[%s7068_s24] sm:$0xff]  ;;  %v547_v48 = vld [vmem:[%s7068_s24 + $0x8] sm:$0xff]  ;;  %v6090_v49 = vor.u32 %v6286_v44, %v6087_v45  ;;  %v7112_v16 = vshrl.u32 %v1057_v13, 7  ;;  %s11034_s26 = scalar_lea.vmem [#allocation14], %s6077_s12  ;;  %s14389_s16 = sld [smem:[#allocation22_spill]] }
  0x59   : > { %803 = vmatpush.bf16.msra.mxu1 %v6130_v17  ;;  %v582_v50 = vpack.c.bf16 %v547_v48, %v546_v47  ;;  %v548_v51 = vld [vmem:[%s7078_s22] sm:$0xff]  ;;  %v549_v52 = vld [vmem:[%s7078_s22 + $0x8] sm:$0xff]  ;;  %v550_v54 = vld [vmem:[%s7078_s22 + $0x10] sm:$0xff]  ;;  %s14390_s21 = sld [smem:[#allocation154_spill]]  ;;  %s5891_s12 = sshll.u32 %s11034_s26, 4  ;;  %s5892_s12 = int_to_ptr.vmem [resolvable:$true] %s5891_s12 }
  0x5a   : > { %v583_v53 = vpack.c.bf16 %v549_v52, %v548_v51  ;;  %v551_v55 = vld [vmem:[%s7078_s22 + $0x18] sm:$0xff]  ;;  %v552_v57 = vld [vmem:[%s7078_s22 + $0x20] sm:$0xff]  ;;  %v553_v58 = vld [vmem:[%s7078_s22 + $0x28] sm:$0xff]  ;;  %13315 = vst [vmem:[#allocation29_spill] sm:$0xff] %v7112_v16  ;;  %v1059_v20 = vadd.s32 8, %v7112_v16  ;;  %vm1205_vm0 = vcmp.ge.s32.totalorder %v7112_v16, 1 }
  0x5b   : > { %v584_v56 = vpack.c.bf16 %v551_v55, %v550_v54  ;;  %v585_v59 = vpack.c.bf16 %v553_v58, %v552_v57  ;;  %v554_v60 = vld [vmem:[%s7078_s22 + $0x30] sm:$0xff]  ;;  %v555_v61 = vld [vmem:[%s7078_s22 + $0x38] sm:$0xff]  ;;  %v556_v63 = vld [vmem:[%s7078_s22 + $0x40] sm:$0xff]  ;;  %vm1132_vm2 = vcmp.lt.s32.totalorder %v7112_v16, 1  ;;  %vm1355_vm3 = vcmp.lt.s32.totalorder %v7112_v16, 7 }
  0x5c   : > { %705 = vmatpush.bf16.msra.mxu0 %v6118_v22  ;;  %v586_v62 = vpack.c.bf16 %v555_v61, %v554_v60  ;;  %v557_v0 = vld [vmem:[%s7078_s22 + $0x48] sm:$0xff]  ;;  %v558_v2 = vld [vmem:[%s7078_s22 + $0x50] sm:$0xff]  ;;  %v559_v3 = vld [vmem:[%s7078_s22 + $0x58] sm:$0xff]  ;;  %vm1429_vm1 = vcmp.le.s32.totalorder %v1059_v20, 14 }
  0x5d   : > { %804 = vmatpush.bf16.msra.mxu1 %v6122_v25  ;;  %v587_v1 = vpack.c.bf16 %v557_v0, %v556_v63  ;;  %v588_v4 = vpack.c.bf16 %v559_v3, %v558_v2  ;;  %v560_v5 = vld [vmem:[%s7078_s22 + $0x60] sm:$0xff]  ;;  %v561_v6 = vld [vmem:[%s7078_s22 + $0x68] sm:$0xff]  ;;  %v562_v8 = vld [vmem:[%s7078_s22 + $0x70] sm:$0xff]  ;;  %v6863_v25 = vmov 0.0  }
  0x5e   : > { %v589_v7 = vpack.c.bf16 %v561_v6, %v560_v5  ;;  %v563_v9 = vld [vmem:[%s7078_s22 + $0x78] sm:$0xff]  ;;  %v564_v17 = vld [vmem:[%s7078_s22 + $0x80] sm:$0xff]  ;;  %v565_v18 = vld [vmem:[%s7078_s22 + $0x88] sm:$0xff]  ;;  %v7123_v26 = vrot.slane %v6863_v25, 7  ;;  %v7131_v30 = vsel %vm1205_vm0, 1.0, %v6863_v25  ;;  %v7133_v31 = vrot.slane %v6863_v25, 1 }
  0x5f   : > { %v590_v10 = vpack.c.bf16 %v563_v9, %v562_v8  ;;  %v591_v19 = vpack.c.bf16 %v565_v18, %v564_v17  ;;  %v616_v21 = vld [vmem:[%s12907_s4] sm:$0x3]  ;;  %13319 = vst [vmem:[#allocation33_spill] sm:$0xff] %v7131_v30  ;;  %v7135_v32 = vsel %vm1429_vm1, 1.0, %v6863_v25  ;;  %v566_v54 = vld [vmem:[%s7078_s22 + $0x90] sm:$0xff]  ;;  %v567_v55 = vld [vmem:[%s7078_s22 + $0x98] sm:$0xff] }
  0x60   : > { %706 = vmatpush.bf16.msra.mxu0 %v6110_v28  ;;  %v7121_v24 = vperm.slane %v616_v21, 0  ;;  %13317 = vst [vmem:[#allocation31_spill] sm:$0xff] %v7123_v26  ;;  %v7125_v27 = vld [vmem:[#allocation11] sm:$0xff]  ;;  %v7127_v28 = vperm.slane %v616_v21, 1  ;;  %v7151_v38 = vmul.f32 %v7131_v30, %v7123_v26  ;;  %v592_v3 = vpack.c.bf16 %v567_v55, %v566_v54  ;;  %s6318_s5 = sshll.u32 %s14389_s16, 8  ;;  %s6778_s29 = scalar_lea.hbm %s14390_s21, 512 }
  0x61   : > { %805 = vmatpush.bf16.msra.mxu1 %v6114_v29  ;;  %v7129_v29 = vld [vmem:[#allocation11 + $0x8] sm:$0xff]  ;;  %13320 = vst [vmem:[#allocation34_spill] sm:$0xff] %v7133_v31  ;;  %v7138_v33 = vperm.slane %v7125_v27, 0  ;;  %v7178_v51 = vperm.slane %v7125_v27, 2  ;;  %s5890_s9 = scalar_lea.hbm %s14390_s21, %s6318_s5 }
  0x62   : > { %13316 = vst [vmem:[#allocation30_spill] sm:$0xff] %v7121_v24  ;;  %v7147_v36 = vperm.slane %v7129_v29, 1  ;;  %s5893_s13 = sshll.u32 %s5890_s9, 4  ;;  %s5894_s13 = int_to_ptr.hbm [resolvable:$true] %s5893_s13 }
  0x63   : > { %13318 = vst [vmem:[#allocation32_spill] sm:$0xff] %v7127_v28  ;;  %v1514_v43 = vmul.f32 %v7138_v33, %v7123_v26 }
  0x64   : > { %707 = vmatpush.bf16.msra.mxu0 %v6102_v34  ;;  %13321 = vst [vmem:[#allocation35_spill] sm:$0xff] %v7135_v32 }
  0x65   : > { %806 = vmatpush.bf16.msra.mxu1 %v6106_v35  ;;  %13322 = vst [vmem:[#allocation36_spill] sm:$0xff] %v7138_v33  ;;  %v7144_v35 = vperm.slane %v7125_v27, 1 }
  0x66   : > { %13324 = vst [vmem:[#allocation38_spill] sm:$0xff] %v7147_v36 }
  0x67   : > { %13323 = vst [vmem:[#allocation37_spill] sm:$0xff] %v7144_v35  ;;  %v1578_v44 = vmul.f32 0.0, %v7144_v35 }
  0x68   : > { %708 = vmatpush.bf16.msra.mxu0 %v6094_v40  ;;  %13325 = vst [vmem:[#allocation39_spill] sm:$0xff] %v7151_v38 }
  0x69   : > { %807 = vmatpush.bf16.msra.mxu1 %v6098_v41  ;;  %v7162_v41 = vmul.f32 %v7135_v32, %v7133_v31  ;;  %13327 = vst [vmem:[#allocation41_spill] sm:$0xff] %v7178_v51 }
  0x6b   : > { %13326 = vst [vmem:[#allocation40_spill] sm:$0xff] %v7162_v41 }
  0x6c   : > { %709 = vmatpush.bf16.msra.mxu0 %v6086_v46 }
  0x6d   : > { %808 = vmatpush.bf16.msra.mxu1 %v6090_v49 }
  0x6f   : > { %710 = vmatmul.bf16.vlgmr.msra.gmra.mxu0 %v582_v50 }
  0x70   : > { %809 = vmatmul.bf16.vlgmr.msra.gmra.mxu1 %v582_v50  ;;  %v1512_v50 = vmul.f32 %v7138_v33, %v7151_v38 }
  0x72   : > { %v1642_v9 = vadd.f32 %v1578_v44, %v1512_v50  ;;  %v7252_v50 = vperm.slane %v7125_v27, 4 }
  0x74   : > { %13330 = vst [vmem:[#allocation44_spill] sm:$0xff] %v7252_v50 }
  0x7f   : > { %715 = vmatmul.bf16.gmra.mxu0 %v583_v53 }
  0x80   : > { %814 = vmatmul.bf16.gmra.mxu1 %v583_v53  ;;  %v7182_v53 = vperm.slane %v7129_v29, 0 }
  0x82   : > { %13328 = vst [vmem:[#allocation42_spill] sm:$0xff] %v7182_v53  ;;  %v1515_v20 = vmul.f32 %v7182_v53, %v7123_v26  ;;  %v7400_v26 = vld [vmem:[%s12909_s6] sm:$0x3] }
  0x8f   : > { %720 = vmatmul.bf16.gmra.mxu0 %v584_v56 }
  0x90   : > { %819 = vmatmul.bf16.gmra.mxu1 %v584_v56 }
  0x9f   : > { %725 = vmatmul.bf16.gmra.mxu0 %v585_v59 }
  0xa0   : > { %824 = vmatmul.bf16.gmra.mxu1 %v585_v59 }
  0xaf   : > { %730 = vmatmul.bf16.gmra.mxu0 %v586_v62 }
  0xb0   : > { %829 = vmatmul.bf16.gmra.mxu1 %v586_v62 }
  0xbf   : > { %735 = vmatmul.bf16.gmra.mxu0 %v587_v1 }
  0xc0   : > { %834 = vmatmul.bf16.gmra.mxu1 %v587_v1 }
  0xcf   : > { %740 = vmatmul.bf16.gmra.mxu0 %v588_v4 }
  0xd0   : > { %839 = vmatmul.bf16.gmra.mxu1 %v588_v4 }
  0xdf   : > { %745 = vmatmul.bf16.gmra.mxu0 %v589_v7 }
  0xe0   : > { %844 = vmatmul.bf16.gmra.mxu1 %v589_v7 }
  0xec   : > { %v711_v11 = vpop.f32.mrf.mxu0 }
  0xed   : > { %v810_v12 = vpop.f32.mrf.mxu1 }
  0xee   : > { %v1579_v12 = vmul.f32 0.0, %v7147_v36 }
  0xef   : > { %750 = vmatmul.bf16.gmra.mxu0 %v590_v10 }
  0xf0   : > { %849 = vmatmul.bf16.gmra.mxu1 %v590_v10  ;;  %v1708_v10 = vmul.f32 %v7178_v51, %v7133_v31 }
  0xf2   : > { %v1772_v54 = vadd.f32 %v1708_v10, %v1642_v9  ;;  %v7279_v9 = vperm.slane %v7129_v29, 5 }
  0xf4   : > { %v713_v14 = vpop.f32.mrf.mxu0  ;;  %13334 = vst [vmem:[#allocation48_spill] sm:$0xff] %v7279_v9 }
  0xf5   : > { %v812_v15 = vpop.f32.mrf.mxu1 }
  0xfc   : > { %v716_v22 = vpop.f32.mrf.mxu0 }
  0xfd   : > { %v815_v23 = vpop.f32.mrf.mxu1  ;;  %v7141_v34 = vadd.f32 %v716_v22, %v7121_v24  ;;  %v7230_v22 = vperm.slane %v7129_v29, 2 }
  0xfe   : > { %v7154_v39 = vadd.f32 %v815_v23, %v7127_v28 }
  0xff   : > { %755 = vmatmul.bf16.gmra.mxu0 %v591_v19  ;;  %v1062_v46 = vrot.slane %v7141_v34, 7  ;;  %v1285_v47 = vrot.slane %v7141_v34, 1  ;;  %v1582_v0 = vmul.f32 %v7144_v35, %v7141_v34 }
 0x100   : > { %854 = vmatmul.bf16.gmra.mxu1 %v591_v19  ;;  %v1063_v56 = vrot.slane %v7154_v39, 7  ;;  %v12929_v14 = vrot.slane %v7154_v39, 1  ;;  %v1583_v19 = vmul.f32 %v7147_v36, %v7154_v39 }
 0x104   : > { %v718_v37 = vpop.f32.mrf.mxu0 }
 0x105   : > { %v7157_v40 = vadd.f32 %v718_v37, %v7121_v24  ;;  %v817_v42 = vpop.f32.mrf.mxu1 }
 0x106   : > { %v7169_v45 = vadd.f32 %v817_v42, %v7127_v28  ;;  %v1513_v42 = vmul.f32 %v7182_v53, %v7151_v38  ;;  %v7386_v38 = vld [vmem:[#allocation11 + $0x10] ss:$0 sm:$0xff] }
 0x107   : > { %v1098_v48 = vrot.slane %v7157_v40, 7  ;;  %v1321_v49 = vrot.slane %v7157_v40, 1  ;;  %v1584_v63 = vmul.f32 %v7144_v35, %v7157_v40  ;;  %13343 = vst [vmem:[#allocation55_spill] sm:$0xff] %v7386_v38 }
 0x108   : > { %v1099_v52 = vrot.slane %v7169_v45, 7  ;;  %v12930_v7 = vrot.slane %v7169_v45, 1 }
 0x109   : > { %v1135_v57 = vsel %vm1132_vm2, %v1062_v46, %v1098_v48  ;;  %v1171_v58 = vsel %vm1132_vm2, %v1098_v48, %v1062_v46  ;;  %v1394_v59 = vsel %vm1355_vm3, %v1321_v49, %v1285_v47  ;;  %v7204_v1 = vsel %vm1355_vm3, %v1285_v47, %v1321_v49 }
 0x10a   : > { %v1215_v60 = vmul.f32 %v7131_v30, %v1171_v58  ;;  %v7195_v61 = vmul.f32 %v7135_v32, %v1394_v59  ;;  %v1518_v62 = vmul.f32 %v7138_v33, %v1135_v57  ;;  %v1172_v2 = vsel %vm1132_vm2, %v1099_v52, %v1063_v56 }
 0x10b   : > { %v7215_v11 = vmul.f32 %v7131_v30, %v1172_v2  ;;  %v1712_v17 = vmul.f32 %v7178_v51, %v7204_v1  ;;  %v1136_v25 = vsel %vm1132_vm2, %v1063_v56, %v1099_v52  ;;  %v1395_v37 = vsel %vm1355_vm3, %v12930_v7, %v12929_v14 }
 0x10c   : > { %v1516_v4 = vmul.f32 %v7138_v33, %v1215_v60  ;;  %v1648_v5 = vadd.f32 %v1584_v63, %v1518_v62  ;;  %v1714_v6 = vmul.f32 %v7178_v51, %v7195_v61  ;;  %v721_v8 = vpop.f32.mrf.mxu0  ;;  %v1644_v46 = vadd.f32 %v1578_v44, %v1514_v43 }
 0x10d   : > { %v820_v13 = vpop.f32.mrf.mxu1  ;;  %v1517_v21 = vmul.f32 %v7182_v53, %v7215_v11  ;;  %v1710_v47 = vmul.f32 %v7178_v51, %v7162_v41  ;;  %v7247_v48 = vperm.slane %v7125_v27, 3  ;;  %v7255_v52 = vperm.slane %v7129_v29, 4 }
 0x10e   : > { %v1646_v15 = vadd.f32 %v1582_v0, %v1516_v4  ;;  %v7221_v18 = vadd.f32 %v1714_v6, %v1648_v5  ;;  %v7259_v56 = vmul.f32 %v7135_v32, %v1395_v37  ;;  %v1519_v43 = vmul.f32 %v7182_v53, %v1136_v25 }
 0x10f   : > { %760 = vmatmul.bf16.gmra.mxu0 %v592_v3  ;;  %13329 = vst [vmem:[#allocation43_spill] sm:$0xff] %v7247_v48  ;;  %v7249_v49 = vadd.f32 %v1583_v19, %v1517_v21  ;;  %v1838_v55 = vmul.f32 %v7247_v48, %v1215_v60  ;;  %v1643_v44 = vadd.f32 %v1579_v12, %v1513_v42  ;;  %v7267_v2 = vperm.slane %v7125_v27, 5 }
 0x110   : > { %v7232_v23 = vadd.f32 %v1712_v17, %v1646_v15  ;;  %859 = vmatmul.bf16.gmra.mxu1 %v592_v3  ;;  %13331 = vst [vmem:[#allocation45_spill] sm:$0xff] %v7255_v52  ;;  %v1645_v58 = vadd.f32 %v1579_v12, %v1515_v20  ;;  %v1709_v59 = vmul.f32 %v7230_v22, %v7133_v31  ;;  %v7276_v6 = vperm.slane %v7129_v29, 3  ;;  %v568_v12 = vld [vmem:[%s7078_s22 + $0xa0] sm:$0xff]  ;;  %v569_v15 = vld [vmem:[%s7078_s22 + $0xa8] sm:$0xff] }
 0x111   : > { %v1711_v62 = vmul.f32 %v7230_v22, %v7162_v41  ;;  %v1774_v0 = vadd.f32 %v1710_v47, %v1644_v46  ;;  %13332 = vst [vmem:[#allocation46_spill] sm:$0xff] %v7267_v2  ;;  %v1585_v60 = vmul.f32 %v7147_v36, %v7169_v45  ;;  %v7272_v3 = vadd.f32 %v721_v8, %v7121_v24 }
 0x112   : > { %v1840_v5 = vmul.f32 %v7247_v48, %v1135_v57  ;;  %13333 = vst [vmem:[#allocation47_spill] sm:$0xff] %v7276_v6  ;;  %v7282_v10 = vadd.f32 %v820_v13, %v7127_v28  ;;  %v1902_v17 = vadd.f32 %v1838_v55, %v1772_v54  ;;  %v1715_v8 = vmul.f32 %v7230_v22, %v7259_v56 }
 0x113   : > { %v1649_v19 = vadd.f32 %v1585_v60, %v1519_v43  ;;  %v1968_v57 = vmul.f32 %v7252_v50, %v7141_v34  ;;  %v7293_v21 = vadd.f32 %v1709_v59, %v1643_v44  ;;  %v1775_v37 = vadd.f32 %v1711_v62, %v1645_v58 }
 0x114   : > { %v723_v63 = vpop.f32.mrf.mxu0  ;;  %v1970_v13 = vmul.f32 %v7252_v50, %v7157_v40  ;;  %v1064_v46 = vrot.slane %v7272_v3, 7  ;;  %v593_v54 = vpack.c.bf16 %v569_v15, %v568_v12  ;;  %v1904_v55 = vadd.f32 %v1840_v5, %v1774_v0 }
 0x115   : > { %v822_v4 = vpop.f32.mrf.mxu1  ;;  %v7289_v20 = vadd.f32 %v723_v63, %v7121_v24  ;;  %v1841_v43 = vmul.f32 %v7276_v6, %v1136_v25  ;;  %v12928_v63 = vrot.slane %v7282_v10, 7  ;;  %v1779_v44 = vadd.f32 %v1715_v8, %v1649_v19 }
 0x116   : > { %v7296_v42 = vadd.f32 %v822_v4, %v7127_v28  ;;  %v2032_v40 = vadd.f32 %v1968_v57, %v1902_v17 }
 0x117   : > { %v1100_v47 = vrot.slane %v7289_v20, 7  ;;  %v1588_v60 = vmul.f32 %v7144_v35, %v7289_v20  ;;  %v1323_v5 = vrot.slane %v7289_v20, 1 }
 0x118   : > { %v12927_v34 = vrot.slane %v7296_v42, 7  ;;  %v1589_v15 = vmul.f32 %v7147_v36, %v7296_v42  ;;  %v1975_v7 = vmul.f32 %v7255_v52, %v7296_v42 }
 0x119   : > { %v1137_v58 = vsel %vm1132_vm2, %v1064_v46, %v1100_v47  ;;  %v1173_v59 = vsel %vm1132_vm2, %v1100_v47, %v1064_v46  ;;  %v1974_v47 = vmul.f32 %v7252_v50, %v7289_v20 }
 0x11a   : > { %v1522_v62 = vmul.f32 %v7138_v33, %v1137_v58  ;;  %v1844_v0 = vmul.f32 %v7247_v48, %v1137_v58  ;;  %v7319_v25 = vsel %vm1132_vm2, %v12928_v63, %v12927_v34  ;;  %v7333_v8 = vmul.f32 %v7131_v30, %v1173_v59 }
 0x11b   : > { %v1523_v12 = vmul.f32 %v7182_v53, %v7319_v25  ;;  %v1845_v17 = vmul.f32 %v7276_v6, %v7319_v25  ;;  %v1287_v34 = vrot.slane %v7272_v3, 1  ;;  %v7347_v59 = vmul.f32 %v7255_v52, %v7154_v39 }
 0x11c   : > { %v7321_v4 = vpop.f32.mrf.mxu0  ;;  %v7335_v57 = vadd.f32 %v1588_v60, %v1522_v62  ;;  %v1908_v46 = vadd.f32 %v1844_v0, %v7221_v18  ;;  %v2098_v62 = vmul.f32 %v7267_v2, %v7204_v1  ;;  %v7354_v60 = vperm.slane %v7125_v27, 6 }
 0x11d   : > { %v7330_v19 = vpop.f32.mrf.mxu1  ;;  %v7341_v63 = vadd.f32 %v1589_v15, %v1523_v12  ;;  %v1909_v14 = vadd.f32 %v1845_v17, %v1779_v44  ;;  %v2034_v0 = vadd.f32 %v1970_v13, %v1904_v55  ;;  %v1839_v44 = vmul.f32 %v7276_v6, %v7215_v11  ;;  %v6309_v15 = vld [vmem:[#allocation12 + $0x38] sm:$0xff] }
 0x11e   : > { %13335 = vst [vmem:[#allocation49_spill] sm:$0xff] %v7335_v57  ;;  %v7351_v18 = vadd.f32 %v1974_v47, %v1908_v46  ;;  %v6317_v17 = vld [vmem:[#allocation12 + $0x78] sm:$0xff]  ;;  %v7362_v41 = vsel %vm1355_vm3, %v1287_v34, %v1323_v5  ;;  %v13340_v1 = vrot.slane %v7169_v45, 1  ;;  %v13341_v46 = vrot.slane %v7154_v39, 1  ;;  %5666 = vmatpush.bf16.msra.mxu2 %v6309_v15  ;;  %v6308_v39 = vld [vmem:[#allocation12 + $0x30] sm:$0xff] }
 0x11f   : > { %13336 = vst [vmem:[#allocation50_spill] sm:$0xff] %v7341_v63  ;;  %765 = vmatmul.bf16.gmra.mxu0 %v593_v54  ;;  %v7358_v12 = vadd.f32 %v1975_v7, %v1909_v14  ;;  %v1905_v47 = vadd.f32 %v1841_v43, %v1775_v37  ;;  %v1586_v13 = vmul.f32 %v7144_v35, %v7272_v3  ;;  %v7379_v55 = vperm.slane %v7125_v27, 7  ;;  %v6316_v37 = vld [vmem:[#allocation12 + $0x70] sm:$0xff] }
 0x120   : > { %13337 = vst [vmem:[#allocation51_spill] sm:$0xff] %v7351_v18  ;;  %864 = vmatmul.bf16.gmra.mxu1 %v593_v54  ;;  %v1359_v54 = vsel %vm1355_vm3, %v13341_v46, %v13340_v1  ;;  %v1520_v7 = vmul.f32 %v7138_v33, %v7333_v8  ;;  %v2100_v11 = vmul.f32 %v7267_v2, %v7195_v61  ;;  %v13347_v57 = vrot.slane %v7296_v42, 7 }
 0x121   : > { %13338 = vst [vmem:[#allocation52_spill] sm:$0xff] %v7354_v60  ;;  %v1971_v14 = vmul.f32 %v7255_v52, %v7169_v45  ;;  %5755 = vmatpush.bf16.msra.mxu3 %v6317_v17  ;;  %v2162_v43 = vadd.f32 %v2098_v62, %v2032_v40  ;;  %v1716_v31 = vmul.f32 %v7178_v51, %v7362_v41 }
 0x122   : > { %13339 = vst [vmem:[#allocation53_spill] sm:$0xff] %v7358_v12  ;;  %v1650_v46 = vadd.f32 %v1586_v13, %v1520_v7  ;;  %v2228_v61 = vmul.f32 %v7354_v60, %v7333_v8  ;;  %v2230_v45 = vmul.f32 %v7354_v60, %v1137_v58  ;;  %v2164_v27 = vadd.f32 %v2100_v11, %v2034_v0  ;;  %v570_v13 = vld [vmem:[%s7078_s22 + $0xb0] sm:$0xff]  ;;  %v571_v7 = vld [vmem:[%s7078_s22 + $0xb8] sm:$0xff] }
 0x123   : > { %13342 = vst [vmem:[#allocation54_spill] sm:$0xff] %v7379_v55  ;;  %v1713_v15 = vmul.f32 %v7230_v22, %v1359_v54  ;;  %v7390_v17 = vadd.f32 %v1839_v44, %v7293_v21  ;;  %v7393_v40 = vmul.f32 %v7279_v9, %v1359_v54  ;;  %v2035_v58 = vadd.f32 %v1971_v14, %v1905_v47 }
 0x124   : > { %v728_v1 = vpop.f32.mrf.mxu0  ;;  %v2101_v0 = vmul.f32 %v7279_v9, %v7259_v56  ;;  %v7404_v11 = vadd.f32 %v1716_v31, %v1650_v46  ;;  %v2292_v63 = vadd.f32 %v2228_v61, %v2162_v43  ;;  %v2358_v21 = vmul.f32 %v7379_v55, %v7272_v3  ;;  %5667 = vmatpush.bf16.msra.mxu2 %v6308_v39 }
 0x125   : > { %v827_v62 = vpop.f32.mrf.mxu1  ;;  %v7409_v44 = vperm.slane %v7129_v29, 7  ;;  %v13346_v54 = vrot.slane %v7282_v10, 7  ;;  %5756 = vmatpush.bf16.msra.mxu3 %v6316_v37  ;;  %v1396_v31 = vsel %vm1355_vm3, %v1323_v5, %v1287_v34  ;;  %v7420_v56 = vadd.f32 %v1713_v15, %v7249_v49  ;;  %v6307_v5 = vld [vmem:[#allocation12 + $0x28] sm:$0xff]  ;;  %v572_v15 = vld [vmem:[%s7078_s22 + $0xc0] sm:$0xff] }
 0x126   : > { %13344 = vst [vmem:[#allocation56_spill] sm:$0xff] %v7404_v11  ;;  %v594_v47 = vpack.c.bf16 %v571_v7, %v570_v13  ;;  %v2294_v14 = vadd.f32 %v2230_v45, %v2164_v27  ;;  %v7423_v43 = vperm.slane %v7400_v26, 0  ;;  %v7427_v46 = vadd.f32 %v7321_v4, %v7121_v24  ;;  %v6315_v37 = vld [vmem:[#allocation12 + $0x68] sm:$0xff] }
 0x127   : > { %13345 = vst [vmem:[#allocation57_spill] sm:$0xff] %v7409_v44  ;;  %v1174_v12 = vsel %vm1132_vm2, %v13347_v57, %v13346_v54  ;;  %v7430_v61 = vadd.f32 %v728_v1, %v7121_v24  ;;  %v2422_v57 = vadd.f32 %v2358_v21, %v2292_v63  ;;  %v2488_v39 = vmul.f32 %v7386_v38, %v7362_v41  ;;  %v573_v63 = vld [vmem:[%s7078_s22 + $0xc8] sm:$0xff] }
 0x128   : > { %13348 = vst [vmem:[#allocation58_spill] sm:$0xff] %v7420_v56  ;;  %v7436_v49 = vmul.f32 %v7252_v50, %v7272_v3  ;;  %v7439_v34 = vmul.f32 %v7131_v30, %v1174_v12  ;;  %v7442_v45 = vmul.f32 %v7135_v32, %v1396_v31  ;;  %v2360_v4 = vmul.f32 %v7379_v55, %v7289_v20  ;;  %v6306_v31 = vld [vmem:[#allocation12 + $0x20] sm:$0xff] }
 0x129   : > { %13349 = vst [vmem:[#allocation59_spill] sm:$0xff] %v7423_v43  ;;  %v7446_v1 = vadd.f32 %v2101_v0, %v2035_v58  ;;  %v7450_v27 = vadd.f32 %v827_v62, %v7127_v28  ;;  %v2552_v3 = vadd.f32 %v2488_v39, %v2422_v57  ;;  %v1587_v12 = vmul.f32 %v7147_v36, %v7282_v10 }
 0x12a   : > { %13350 = vst [vmem:[#allocation60_spill] sm:$0xff] %v7439_v34  ;;  %v7457_v13 = vadd.f32 %v7330_v19, %v7127_v28  ;;  %5668 = vmatpush.bf16.msra.mxu2 %v6307_v5  ;;  %5757 = vmatpush.bf16.msra.mxu3 %v6315_v37  ;;  %v2424_v20 = vadd.f32 %v2360_v4, %v2294_v14  ;;  %v1066_v0 = vrot.slane %v7427_v46, 7  ;;  %v1102_v19 = vrot.slane %v7430_v61, 7  ;;  %v6314_v14 = vld [vmem:[#allocation12 + $0x60] sm:$0xff] }
 0x12b   : > { %13351 = vst [vmem:[#allocation61_spill] sm:$0xff] %v7442_v45  ;;  %v7463_v62 = vmul.f32 %v7255_v52, %v7282_v10  ;;  %v7467_v58 = vmul.f32 %v7409_v44, %v7282_v10  ;;  %v2490_v57 = vmul.f32 %v7386_v38, %v7442_v45  ;;  %v7477_v39 = vadd.f32 %v7423_v43, %v2552_v3 }
 0x12c   : > { %13352 = vst [vmem:[#allocation62_spill] sm:$0xff] %v7450_v27  ;;  %v7459_v7 = vpop.f32.mrf.mxu0  ;;  %v1521_v5 = vmul.f32 %v7182_v53, %v7439_v34  ;;  %v7483_v37 = vmul.f32 %v7144_v35, %v7427_v46  ;;  %v7487_v4 = vmul.f32 %v7252_v50, %v7427_v46  ;;  %v1103_v54 = vrot.slane %v7450_v27, 7 }
 0x12d   : > { %13353 = vst [vmem:[#allocation63_spill] sm:$0xff] %v7457_v13  ;;  %v7471_v21 = vpop.f32.mrf.mxu1  ;;  %v13357_v11 = vrot.slane %v7296_v42, 1  ;;  %v13358_v3 = vrot.slane %v7282_v10, 1  ;;  %v7502_v56 = vmul.f32 %v7379_v55, %v7427_v46  ;;  %v1067_v38 = vrot.slane %v7457_v13, 7 }
 0x12e   : > { %13354 = vst [vmem:[#allocation64_spill] sm:$0xff] %v7463_v62  ;;  %5669 = vmatpush.bf16.msra.mxu2 %v6306_v31  ;;  %v2554_v18 = vadd.f32 %v2490_v57, %v2424_v20  ;;  %v7508_v60 = vmul.f32 %v7147_v36, %v7457_v13  ;;  %5758 = vmatpush.bf16.msra.mxu3 %v6314_v14  ;;  %v6313_v31 = vld [vmem:[#allocation12 + $0x58] sm:$0xff]  ;;  %v7525_v57 = vmul.f32 0.70710677, %v7477_v39 }
 0x12f   : > { %13355 = vst [vmem:[#allocation65_spill] sm:$0xff] %v7483_v37  ;;  %770 = vmatmul.bf16.gmra.mxu0 %v594_v47  ;;  %v7498_v62 = vsel %vm1355_vm3, %v13358_v3, %v13357_v11  ;;  %v7512_v37 = vmul.f32 %v7255_v52, %v7457_v13  ;;  %v7516_v11 = vmul.f32 %v7409_v44, %v7457_v13 }
 0x130   : > { %13356 = vst [vmem:[#allocation66_spill] sm:$0xff] %v7487_v4  ;;  %869 = vmatmul.bf16.gmra.mxu1 %v594_v47  ;;  %v7520_v3 = vsel %vm1132_vm2, %v1066_v0, %v1102_v19  ;;  %v6305_v47 = vld [vmem:[#allocation12 + $0x18] sm:$0xff]  ;;  %v7522_v20 = vpack.c.bf16 %v573_v63, %v572_v15  ;;  %v1651_v4 = vadd.f32 %v1587_v12, %v1521_v5  ;;  %v7540_v63 = vperm.slane %v7129_v29, 6  ;;  %v6304_v5 = vld [vmem:[#allocation12 + $0x10] sm:$0xff] }
 0x131   : > { %13359 = vst [vmem:[#allocation67_spill] sm:$0xff] %v7502_v56  ;;  %v7537_v14 = vmul.f32 %v7267_v2, %v7362_v41  ;;  %v1526_v15 = vmul.f32 %v7138_v33, %v7520_v3  ;;  %v7545_v13 = vadd.f32 %v7423_v43, %v2554_v18  ;;  %v1592_v29 = vmul.f32 %v7144_v35, %v7430_v61 }
 0x132   : > { %13360 = vst [vmem:[#allocation68_spill] sm:$0xff] %v7508_v60  ;;  %v1175_v60 = vsel %vm1132_vm2, %v1102_v19, %v1066_v0  ;;  %5670 = vmatpush.bf16.msra.mxu2 %v6305_v47  ;;  %v2814_v0 = vmul.f32 %v7525_v57, %v7525_v57  ;;  %v7556_v56 = vmul.f32 %v7252_v50, %v7430_v61  ;;  %v6312_v47 = vld [vmem:[#allocation12 + $0x50] sm:$0xff] }
 0x133   : > { %13361 = vst [vmem:[#allocation69_spill] sm:$0xff] %v7512_v37  ;;  %v1717_v37 = vmul.f32 %v7230_v22, %v7498_v62  ;;  %5759 = vmatpush.bf16.msra.mxu3 %v6313_v31  ;;  %v7560_v18 = vmul.f32 %v7178_v51, %v7442_v45  ;;  %v7570_v43 = vmul.f32 %v7131_v30, %v1175_v60 }
 0x134   : > { %13362 = vst [vmem:[#allocation70_spill] sm:$0xff] %v7516_v11  ;;  %v7533_v11 = vsel %vm1132_vm2, %v1067_v38, %v1103_v54  ;;  %v733_v12 = vpop.f32.mrf.mxu0  ;;  %v1593_v31 = vmul.f32 %v7147_v36, %v7450_v27 }
 0x135   : > { %13363 = vst [vmem:[#allocation71_spill] sm:$0xff] %v7520_v3  ;;  %v7549_v19 = vadd.f32 %v1717_v37, %v1651_v4  ;;  %v832_v2 = vpop.f32.mrf.mxu1  ;;  %v1176_v37 = vsel %vm1132_vm2, %v1103_v54, %v1067_v38  ;;  %v1527_v41 = vmul.f32 %v7182_v53, %v7533_v11  ;;  %v7580_v38 = vadd.f32 %v7459_v7, %v7121_v24 }
 0x136   : > { %13364 = vst [vmem:[#allocation72_spill] sm:$0xff] %v7533_v11  ;;  %v7582_v54 = vadd.f32 %v1592_v29, %v1526_v15  ;;  %v7590_v60 = vmul.f32 %v7276_v6, %v7533_v11  ;;  %5671 = vmatpush.bf16.msra.mxu2 %v6304_v5  ;;  %v7593_v4 = vmul.f32 0.70710677, %v7545_v13  ;;  %v7600_v7 = vadd.f32 %v7471_v21, %v7127_v28  ;;  %v6303_v5 = vld [vmem:[#allocation12 + $0x8] sm:$0xff] }
 0x137   : > { %13365 = vst [vmem:[#allocation73_spill] sm:$0xff] %v7540_v63  ;;  %5760 = vmatpush.bf16.msra.mxu3 %v6312_v47  ;;  %v7616_v47 = vperm.slane %v7400_v26, 1  ;;  %v7629_v11 = vadd.f32 %v832_v2, %v7127_v28  ;;  %v2033_v2 = vadd.f32 %v7347_v59, %v7390_v17  ;;  %v7662_v17 = vmul.f32 0.5, %v7477_v39 }
 0x138   : > { %13366 = vst [vmem:[#allocation74_spill] sm:$0xff] %v7549_v19  ;;  %v7567_v19 = vmin.f32 %v2814_v0, 16.0  ;;  %v7586_v0 = vmul.f32 %v7247_v48, %v7520_v3  ;;  %v6310_v3 = vld [vmem:[#allocation12 + $0x40] sm:$0xff]  ;;  %v7658_v59 = vmul.f32 %v7409_v44, %v7600_v7 }
 0x139   : > { %13367 = vst [vmem:[#allocation75_spill] sm:$0xff] %v7556_v56  ;;  %v7576_v56 = vmul.f32 %v7255_v52, %v7450_v27  ;;  %v6302_v27 = vld [vmem:[#allocation12] sm:$0xff] }
 0x13a   : > { %13368 = vst [vmem:[#allocation76_spill] sm:$0xff] %v7560_v18  ;;  %v2816_v15 = vmul.f32 2.1237322e-06, %v7567_v19  ;;  %v2827_v29 = vmul.f32 3.8918573e-05, %v7567_v19  ;;  %v13379_v18 = vrot.slane %v7296_v42, 1  ;;  %5672 = vmatpush.bf16.msra.mxu2 %v6303_v5  ;;  %v7648_v5 = vmul.f32 %v7147_v36, %v7600_v7 }
 0x13b   : > { %13369 = vst [vmem:[#allocation77_spill] sm:$0xff] %v7576_v56  ;;  %v7596_v56 = vmul.f32 %v7131_v30, %v1176_v37  ;;  %v13378_v37 = vrot.slane %v7282_v10, 1  ;;  %v7626_v10 = vmul.f32 %v7252_v50, %v7580_v38 }
 0x13c   : > { %13370 = vst [vmem:[#allocation78_spill] sm:$0xff] %v7580_v38  ;;  %v2828_v26 = vadd.f32 0.001143296, %v2827_v29  ;;  %v7665_v29 = vld [vmem:[#allocation11 + $0x18] ss:$0 sm:$0xff] }
 0x13d   : > { %13371 = vst [vmem:[#allocation79_spill] sm:$0xff] %v7582_v54  ;;  %v7604_v54 = vadd.f32 %v1593_v31, %v1527_v41  ;;  %v1397_v21 = vsel %vm1355_vm3, %v13379_v18, %v13378_v37  ;;  %v1068_v41 = vrot.slane %v7580_v38, 7  ;;  %v736_v18 = vpop.f32.mrf.mxu0  ;;  %v2894_v37 = vmul.f32 %v7593_v4, %v7593_v4 }
 0x13e   : > { %13372 = vst [vmem:[#allocation80_spill] sm:$0xff] %v7586_v0  ;;  %v6311_v0 = vld [vmem:[#allocation12 + $0x48] sm:$0xff]  ;;  %v7635_v31 = vmul.f32 %v7379_v55, %v7580_v38  ;;  %v2829_v45 = vmul.f32 %v2828_v26, %v7567_v19  ;;  %5673 = vmatpush.bf16.msra.mxu2 %v6302_v27 }
 0x13f   : > { %13373 = vst [vmem:[#allocation81_spill] sm:$0xff] %v7590_v60  ;;  %v7607_v60 = vadd.f32 %v733_v12, %v7121_v24  ;;  %v7622_v12 = vmul.f32 %v7144_v35, %v7580_v38  ;;  %5761 = vmatpush.bf16.msra.mxu3 %v6311_v0  ;;  %v7654_v0 = vmul.f32 %v7255_v52, %v7600_v7 }
 0x140   : > { %13374 = vst [vmem:[#allocation82_spill] sm:$0xff] %v7596_v56  ;;  %v575_v56 = vld [vmem:[%s7078_s22 + $0xd8] sm:$0xff]  ;;  %775 = vmatmul.bf16.gmra.mxu0 %v7522_v20  ;;  %874 = vmatmul.bf16.gmra.mxu1 %v7522_v20  ;;  %v2361_v20 = vmul.f32 %v7409_v44, %v7296_v42 }
 0x141   : > { %13375 = vst [vmem:[#allocation83_spill] sm:$0xff] %v7600_v7  ;;  %v1104_v38 = vrot.slane %v7607_v60, 7 }
 0x142   : > { %13376 = vst [vmem:[#allocation84_spill] sm:$0xff] %v7604_v54  ;;  %v2817_v54 = vadd.f32 0.00028619796, %v2816_v15  ;;  %v574_v15 = vld [vmem:[%s7078_s22 + $0xd0] sm:$0xff] }
 0x143   : > { %13377 = vst [vmem:[#allocation85_spill] sm:$0xff] %v7607_v60  ;;  %v7669_v26 = vpack.c.bf16 %v575_v56, %v574_v15  ;;  %5762 = vmatpush.bf16.msra.mxu3 %v6310_v3  ;;  %v2229_v56 = vmul.f32 %v7540_v63, %v7439_v34  ;;  %v7689_v27 = vsel %vm1132_vm2, %v1068_v41, %v1104_v38 }
 0x144   : > { %13380 = vst [vmem:[#allocation86_spill] sm:$0xff] %v7616_v47  ;;  %v2231_v3 = vmul.f32 %v7540_v63, %v7319_v25 }
 0x145   : > { %13381 = vst [vmem:[#allocation87_spill] sm:$0xff] %v7622_v12  ;;  %v1069_v12 = vrot.slane %v7600_v7, 7  ;;  %v2163_v7 = vadd.f32 %v7393_v40, %v2033_v2  ;;  %v7698_v40 = vmul.f32 %v7665_v29, %v7498_v62  ;;  %v1842_v2 = vmul.f32 %v7247_v48, %v7333_v8  ;;  %v738_v25 = vpop.f32.mrf.mxu0 }
 0x146   : > { %13382 = vst [vmem:[#allocation88_spill] sm:$0xff] %v7626_v10  ;;  %v7641_v10 = vmul.f32 %v7135_v32, %v1397_v21  ;;  %v2818_v21 = vmul.f32 %v2817_v54, %v7567_v19  ;;  %v7682_v54 = vmul.f32 %v7279_v9, %v7498_v62  ;;  %v1177_v62 = vsel %vm1132_vm2, %v1104_v38, %v1068_v41 }
 0x147   : > { %13383 = vst [vmem:[#allocation89_spill] sm:$0xff] %v7629_v11  ;;  %v1530_v8 = vmul.f32 %v7138_v33, %v7689_v27  ;;  %v1597_v41 = vmul.f32 %v7147_v36, %v7629_v11 }
 0x148   : > { %13384 = vst [vmem:[#allocation90_spill] sm:$0xff] %v7635_v31  ;;  %v835_v31 = vpop.f32.mrf.mxu1  ;;  %v7678_v39 = vmul.f32 %v7230_v22, %v7641_v10  ;;  %v2819_v15 = vadd.f32 0.0036580483, %v2818_v21 }
 0x149   : > { %13385 = vst [vmem:[#allocation91_spill] sm:$0xff] %v7641_v10 }
 0x14a   : > { %13386 = vst [vmem:[#allocation92_spill] sm:$0xff] %v7648_v5  ;;  %v1105_v5 = vrot.slane %v7629_v11, 7 }
 0x14b   : > { %13387 = vst [vmem:[#allocation93_spill] sm:$0xff] %v7654_v0  ;;  %v7672_v0 = vmul.f32 0.5, %v7545_v13  ;;  %v2830_v13 = vadd.f32 0.014752088, %v2829_v45  ;;  %v7706_v45 = vmul.f32 %v7252_v50, %v7607_v60 }
 0x14c   : > { %13388 = vst [vmem:[#allocation94_spill] sm:$0xff] %v7658_v59  ;;  %v7674_v59 = vmin.f32 %v2894_v37, 16.0  ;;  %v7710_v42 = vsel %vm1132_vm2, %v1069_v12, %v1105_v5 }
 0x14d   : > { %13389 = vst [vmem:[#allocation95_spill] sm:$0xff] %v7665_v29  ;;  %v2831_v63 = vmul.f32 %v2830_v13, %v7567_v19  ;;  %v1531_v38 = vmul.f32 %v7182_v53, %v7710_v42  ;;  %v7745_v13 = vadd.f32 %v736_v18, %v7121_v24 }
 0x14e   : > { %13390 = vst [vmem:[#allocation96_spill] sm:$0xff] %v7672_v0  ;;  %v2907_v21 = vmul.f32 3.8918573e-05, %v7674_v59  ;;  %v2896_v9 = vmul.f32 2.1237322e-06, %v7674_v59 }
 0x14f   : > { %13391 = vst [vmem:[#allocation97_spill] sm:$0xff] %v7678_v39  ;;  %v1596_v39 = vmul.f32 %v7144_v35, %v7607_v60  ;;  %v7724_v60 = vadd.f32 %v738_v25, %v7121_v24  ;;  %v7758_v18 = vadd.f32 %v1597_v41, %v1531_v38 }
 0x150   : > { %13392 = vst [vmem:[#allocation98_spill] sm:$0xff] %v7682_v54  ;;  %v7719_v54 = vadd.f32 %v1842_v2, %v7232_v23  ;;  %v7734_v23 = vmul.f32 %v7255_v52, %v7629_v11  ;;  %v2820_v2 = vmul.f32 %v2819_v15, %v7567_v19  ;;  %v837_v25 = vpop.f32.mrf.mxu1  ;;  %v2908_v37 = vadd.f32 0.001143296, %v2907_v21  ;;  %780 = vmatmul.bf16.gmra.mxu0 %v7669_v26 }
 0x151   : > { %13393 = vst [vmem:[#allocation99_spill] sm:$0xff] %v7689_v27  ;;  %v7747_v34 = vadd.f32 %v1596_v39, %v1530_v8  ;;  %v7754_v15 = vmul.f32 %v7276_v6, %v7710_v42  ;;  %v12970_v11 = vrot.slane %v7724_v60, 1  ;;  %v7761_v21 = vadd.f32 %v835_v31, %v7127_v28  ;;  %879 = vmatmul.bf16.gmra.mxu1 %v7669_v26 }
 0x152   : > { %13394 = vst [vmem:[#allocation100_spill] sm:$0xff] %v7706_v45  ;;  %v1178_v45 = vsel %vm1132_vm2, %v1105_v5, %v1069_v12  ;;  %v7738_v12 = vmul.f32 %v7131_v30, %v1177_v62  ;;  %v7742_v5 = vmul.f32 %v7247_v48, %v7689_v27  ;;  %v2293_v62 = vadd.f32 %v2229_v56, %v2163_v7 }
 0x153   : > { %13395 = vst [vmem:[#allocation101_spill] sm:$0xff] %v7710_v42  ;;  %v7750_v0 = vmul.f32 %v7131_v30, %v1178_v45  ;;  %v2897_v27 = vadd.f32 0.00028619796, %v2896_v9  ;;  %v7764_v39 = vadd.f32 %v837_v25, %v7127_v28  ;;  %v2821_v45 = vadd.f32 0.05243302, %v2820_v2 }
 0x154   : > { %13396 = vst [vmem:[#allocation102_spill] sm:$0xff] %v7724_v60  ;;  %v1070_v8 = vrot.slane %v7745_v13, 7  ;;  %v2909_v7 = vmul.f32 %v2908_v37, %v7674_v59  ;;  %v2295_v56 = vadd.f32 %v2231_v3, %v7446_v1  ;;  %v7772_v9 = vmul.f32 %v7144_v35, %v7745_v13 }
 0x155   : > { %13397 = vst [vmem:[#allocation103_spill] sm:$0xff] %v7734_v23  ;;  %v1106_v23 = vrot.slane %v7724_v60, 7  ;;  %v7780_v31 = vmul.f32 %v7379_v55, %v7745_v13  ;;  %v2423_v38 = vadd.f32 %v7467_v58, %v2293_v62  ;;  %v2898_v37 = vmul.f32 %v2897_v27, %v7674_v59 }
 0x156   : > { %13398 = vst [vmem:[#allocation104_spill] sm:$0xff] %v7738_v12  ;;  %v1071_v2 = vrot.slane %v7761_v21, 7  ;;  %v1107_v25 = vrot.slane %v7764_v39, 7  ;;  %v2822_v62 = vmul.f32 %v2821_v45, %v7567_v19  ;;  %v2910_v27 = vadd.f32 0.014752088, %v2909_v7 }
 0x157   : > { %13399 = vst [vmem:[#allocation105_spill] sm:$0xff] %v7742_v5  ;;  %v2832_v5 = vadd.f32 0.112945676, %v2831_v63  ;;  %v7776_v63 = vmul.f32 %v7252_v50, %v7745_v13  ;;  %v7785_v41 = vsel %vm1132_vm2, %v1070_v8, %v1106_v23  ;;  %v7812_v58 = vmul.f32 %v7409_v44, %v7761_v21 }
 0x158   : > { %13400 = vst [vmem:[#allocation106_spill] sm:$0xff] %v7745_v13  ;;  %v2491_v26 = vmul.f32 %v7665_v29, %v7641_v10  ;;  %v1600_v7 = vmul.f32 %v7144_v35, %v7724_v60  ;;  %v1180_v42 = vsel %vm1132_vm2, %v1107_v25, %v1071_v2 }
 0x159   : > { %13401 = vst [vmem:[#allocation107_spill] sm:$0xff] %v7747_v34  ;;  %v12969_v34 = vrot.slane %v7745_v13, 1  ;;  %v2833_v3 = vmul.f32 %v2832_v5, %v7567_v19  ;;  %v2425_v5 = vadd.f32 %v2361_v20, %v2295_v56  ;;  %v2553_v20 = vadd.f32 %v7698_v40, %v2423_v38 }
 0x15a   : > { %13402 = vst [vmem:[#allocation108_spill] sm:$0xff] %v7750_v0  ;;  %v7826_v56 = vsel %vm1132_vm2, %v1071_v2, %v1107_v25  ;;  %v7838_v40 = vmul.f32 %v7252_v50, %v7724_v60  ;;  %v2911_v38 = vmul.f32 %v2910_v27, %v7674_v59  ;;  %v7861_v2 = vmul.f32 %v7247_v48, %v7785_v41 }
 0x15b   : > { %13403 = vst [vmem:[#allocation109_spill] sm:$0xff] %v7754_v15  ;;  %v1402_v1 = vsel %vm1355_vm3, %v12970_v11, %v12969_v34  ;;  %v741_v34 = vpop.f32.mrf.mxu0  ;;  %v7808_v11 = vmul.f32 %v7255_v52, %v7761_v21  ;;  %v2834_v15 = vadd.f32 0.4994258, %v2833_v3 }
 0x15c   : > { %13404 = vst [vmem:[#allocation110_spill] sm:$0xff] %v7758_v18  ;;  %v7815_v45 = vmul.f32 %v7135_v32, %v1402_v1  ;;  %v1534_v18 = vmul.f32 %v7138_v33, %v7785_v41  ;;  %v13416_v1 = vrot.slane %v7761_v21, 1  ;;  %v7854_v27 = vadd.f32 %v741_v34, %v7121_v24 }
 0x15d   : > { %13405 = vst [vmem:[#allocation111_spill] sm:$0xff] %v7761_v21  ;;  %v2912_v34 = vadd.f32 0.112945676, %v2911_v38 }
 0x15e   : > { %13406 = vst [vmem:[#allocation112_spill] sm:$0xff] %v7764_v39  ;;  %v1664_v13 = vadd.f32 %v1600_v7, %v1534_v18 }
 0x15f   : > { %13407 = vst [vmem:[#allocation113_spill] sm:$0xff] %v7772_v9  ;;  %v2555_v9 = vadd.f32 %v2491_v26, %v2425_v5  ;;  %v7869_v5 = vmul.f32 %v7131_v30, %v1180_v42 }
 0x160   : > { %13408 = vst [vmem:[#allocation114_spill] sm:$0xff] %v7776_v63  ;;  %v7803_v63 = vmul.f32 %v7147_v36, %v7761_v21  ;;  %v1730_v21 = vmul.f32 %v7178_v51, %v7815_v45 }
 0x161   : > { %13409 = vst [vmem:[#allocation115_spill] sm:$0xff] %v7780_v31  ;;  %v1179_v31 = vsel %vm1132_vm2, %v1106_v23, %v1070_v8  ;;  %v1535_v23 = vmul.f32 %v7182_v53, %v7826_v56  ;;  %v1601_v8 = vmul.f32 %v7147_v36, %v7764_v39 }
 0x162   : > { %13410 = vst [vmem:[#allocation116_spill] sm:$0xff] %v7785_v41  ;;  %v7857_v18 = vmul.f32 %v7131_v30, %v1179_v31  ;;  %v2623_v31 = vadd.f32 %v7616_v47, %v2553_v20  ;;  %v7875_v7 = vadd.f32 %v1730_v21, %v1664_v13  ;;  %v7890_v13 = vmul.f32 %v7144_v35, %v7854_v27 }
 0x163   : > { %13411 = vst [vmem:[#allocation117_spill] sm:$0xff] %v7803_v63  ;;  %v2899_v63 = vadd.f32 0.0036580483, %v2898_v37  ;;  %v840_v37 = vpop.f32.mrf.mxu1  ;;  %v743_v38 = vpop.f32.mrf.mxu0  ;;  %v7894_v21 = vmul.f32 %v7252_v50, %v7854_v27 }
 0x164   : > { %13412 = vst [vmem:[#allocation118_spill] sm:$0xff] %v7808_v11  ;;  %v13417_v11 = vrot.slane %v7764_v39, 1  ;;  %v7872_v26 = vadd.f32 %v840_v37, %v7127_v28  ;;  %v7927_v37 = vmul.f32 0.5, %v2623_v31 }
 0x165   : > { %13413 = vst [vmem:[#allocation119_spill] sm:$0xff] %v7812_v58  ;;  %v2823_v58 = vadd.f32 0.18741608, %v2822_v62 }
 0x166   : > { %13414 = vst [vmem:[#allocation120_spill] sm:$0xff] %v7815_v45  ;;  %v1403_v3 = vsel %vm1355_vm3, %v13417_v11, %v13416_v1  ;;  %v2835_v11 = vmul.f32 %v2834_v15, %v7567_v19  ;;  %v7865_v15 = vmul.f32 %v7255_v52, %v7764_v39  ;;  %v7879_v1 = vmul.f32 %v7276_v6, %v7826_v56  ;;  %v13441_v45 = vld [vmem:[#allocation65_spill] sm:$0xff] }
 0x167   : > { %13415 = vst [vmem:[#allocation121_spill] sm:$0xff] %v7826_v56  ;;  %v7847_v62 = vmul.f32 %v7135_v32, %v1403_v3  ;;  %v2824_v25 = vmul.f32 %v2823_v58, %v7567_v19  ;;  %v1665_v19 = vadd.f32 %v1601_v8, %v1535_v23  ;;  %v2913_v23 = vmul.f32 %v2912_v34, %v7674_v59 }
 0x168   : > { %13418 = vst [vmem:[#allocation122_spill] sm:$0xff] %v7838_v40  ;;  %v7881_v3 = vadd.f32 1.0, %v2835_v11  ;;  %v2625_v8 = vadd.f32 %v7616_v47, %v2555_v9  ;;  %v7903_v58 = vmul.f32 0.70710677, %v2623_v31  ;;  %v7918_v9 = vmul.f32 %v7255_v52, %v7872_v26 }
 0x169   : > { %13419 = vst [vmem:[#allocation123_spill] sm:$0xff] %v7847_v62  ;;  %v1731_v42 = vmul.f32 %v7230_v22, %v7847_v62  ;;  %v2825_v20 = vadd.f32 1.1283791, %v2824_v25  ;;  %v7914_v25 = vmul.f32 %v7147_v36, %v7872_v26  ;;  %v7922_v34 = vmul.f32 %v7409_v44, %v7872_v26 }
 0x16a   : > { %13420 = vst [vmem:[#allocation124_spill] sm:$0xff] %v7854_v27  ;;  %6435 = vrcp.f32 %v7881_v3  ;;  %v2914_v31 = vadd.f32 0.4994258, %v2913_v23  ;;  %v2846_v62 = vand.u32 2147483647, %v7881_v3  ;;  %vm2842_vm5 = vweird.f32 %v7881_v3 }
 0x16b   : > { %13421 = vst [vmem:[#allocation125_spill] sm:$0xff] %v7857_v18  ;;  %v842_v40 = vpop.f32.mrf.mxu1  ;;  %v13442_v18 = vrot.slane %v7854_v27, 1 }
 0x16c   : > { %13422 = vst [vmem:[#allocation126_spill] sm:$0xff] %v7861_v2  ;;  %v7910_v2 = vadd.f32 %v1731_v42, %v1665_v19  ;;  %v13435_v19 = vrot.slane %v7427_v46, 1  ;;  %v2915_v23 = vmul.f32 %v2914_v31, %v7674_v59  ;;  %vm2847_vm7 = vcmp.eq.f32.partialorder %v2846_v62, 8.507059e+37 }
 0x16d   : > { %13423 = vst [vmem:[#allocation127_spill] sm:$0xff] %v7865_v15  ;;  %v2900_v15 = vmul.f32 %v2899_v63, %v7674_v59  ;;  %v7898_v63 = vmul.f32 %v7379_v55, %v7854_v27 }
 0x16e   : > { %13424 = vst [vmem:[#allocation128_spill] sm:$0xff] %v7869_v5  ;;  %v13436_v11 = vmov %v13435_v19  ;;  %v7981_v56 = vadd.f32 1.0, %v2915_v23  ;;  %v2848_v23 = vand.u32 2147483648, %v7881_v3 }
 0x16f   : > { %13425 = vst [vmem:[#allocation129_spill] sm:$0xff] %v7872_v26 }
 0x170   : > { %13426 = vst [vmem:[#allocation130_spill] sm:$0xff] %v7879_v1  ;;  %v7907_v1 = vadd.f32 %v743_v38, %v7121_v24  ;;  %v7925_v38 = vmul.f32 %v2825_v20, %v7525_v57  ;;  %v7946_v57 = vadd.f32 %v842_v40, %v7127_v28  ;;  %v7948_v20 = vmul.f32 0.5, %v2625_v8 }
 0x171   : > { %13427 = vst [vmem:[#allocation131_spill] sm:$0xff] %v7890_v13  ;;  %v6436_v13 = vpop.eup %6435  ;;  %6437 = vrcp.f32 %v7981_v56  ;;  %vm2922_vm9 = vweird.f32 %v7981_v56 }
 0x172   : > { %13428 = vst [vmem:[#allocation132_spill] sm:$0xff] %v7894_v21  ;;  %v2901_v21 = vadd.f32 0.05243302, %v2900_v15  ;;  %v13434_v15 = vrot.slane %v7430_v61, 1  ;;  %v7963_v40 = vmul.f32 %v7252_v50, %v7907_v1  ;;  %vm2843_vm4 = vweird.f32 %v6436_v13 }
 0x173   : > { %13429 = vst [vmem:[#allocation133_spill] sm:$0xff] %v7898_v63  ;;  %v7955_v63 = vmul.f32 0.70710677, %v2625_v8  ;;  %v1524_v8 = vmul.f32 %v7138_v33, %v7570_v43  ;;  %vm2844_vm6 = vmor %vm2842_vm5, %vm2843_vm4  ;;  %v1605_v62 = vmul.f32 %v7147_v36, %v7946_v57 }
 0x174   : > { %13430 = vst [vmem:[#allocation134_spill] sm:$0xff] %v7907_v1  ;;  %v7935_v42 = vsel %vm1355_vm3, %v13435_v19, %v13434_v15  ;;  %v2902_v46 = vmul.f32 %v2901_v21, %v7674_v59  ;;  %v2036_v19 = vadd.f32 %v7436_v49, %v7719_v54  ;;  %v13443_v49 = vrot.slane %v7907_v1, 1 }
 0x175   : > { %13431 = vst [vmem:[#allocation135_spill] sm:$0xff] %v7914_v25  ;;  %v2854_v25 = vmul.f32 %v7903_v58, %v7903_v58  ;;  %v2934_v21 = vmul.f32 %v7955_v63, %v7955_v63  ;;  %v1654_v41 = vadd.f32 %v13441_v45, %v1524_v8 }
 0x176   : > { %13432 = vst [vmem:[#allocation136_spill] sm:$0xff] %v7918_v9  ;;  %v13437_v9 = vmov %v13434_v15  ;;  %v7970_v15 = vmul.f32 %v7379_v55, %v7907_v1  ;;  %v1404_v54 = vsel %vm1355_vm3, %v13443_v49, %v13442_v18  ;;  %v2903_v18 = vadd.f32 0.18741608, %v2902_v46 }
 0x177   : > { %13433 = vst [vmem:[#allocation137_spill] sm:$0xff] %v7922_v34  ;;  %v7943_v34 = vsel %vm1355_vm3, %v13437_v9, %v13436_v11  ;;  %v7959_v11 = vmul.f32 %v7144_v35, %v7907_v1  ;;  %v7966_v9 = vmin.f32 %v2854_v25, 16.0  ;;  %v2838_v25 = vmul.f32 %v6436_v13, %v7881_v3 }
 0x178   : > { %13438 = vst [vmem:[#allocation138_spill] sm:$0xff] %v7946_v57  ;;  %v7985_v39 = vmin.f32 %v2934_v21, 16.0  ;;  %v1720_v21 = vmul.f32 %v7178_v51, %v7935_v42  ;;  %v8008_v10 = vadd.f32 %v7537_v14, %v2036_v19 }
 0x179   : > { %13439 = vst [vmem:[#allocation139_spill] sm:$0xff] %v7948_v20  ;;  %v2856_v5 = vmul.f32 2.1237322e-06, %v7966_v9  ;;  %v2839_v31 = vsub.f32 1.0, %v2838_v25  ;;  %v6438_v20 = vpop.eup %6437 }
 0x17a   : > { %13440 = vst [vmem:[#allocation140_spill] sm:$0xff] %v7970_v15  ;;  %v2867_v15 = vmul.f32 3.8918573e-05, %v7966_v9  ;;  %v2936_v0 = vmul.f32 2.1237322e-06, %v7985_v39  ;;  %v8003_v49 = vadd.f32 %v1720_v21, %v1654_v41  ;;  %vm2923_vm8 = vweird.f32 %v6438_v20 }
 0x17b   : > { %v2857_v60 = vadd.f32 0.00028619796, %v2856_v5  ;;  %v2840_v45 = vmul.f32 %v6436_v13, %v2839_v31  ;;  %v2947_v35 = vmul.f32 3.8918573e-05, %v7985_v39  ;;  %vm2924_vm10 = vmor %vm2922_vm9, %vm2923_vm8 }
 0x17c   : > { %v2868_v8 = vadd.f32 0.001143296, %v2867_v15  ;;  %13444 = vst [vmem:[#allocation65_spill] sm:$0xff] %v8003_v49  ;;  %v2937_v5 = vadd.f32 0.00028619796, %v2936_v0  ;;  %v2849_v15 = vor.u32 1.1754944e-38, %v2848_v23 }
 0x17d   : > { %v2858_v25 = vmul.f32 %v2857_v60, %v7966_v9  ;;  %v2841_v47 = vadd.f32 %v6436_v13, %v2840_v45  ;;  %v2948_v29 = vadd.f32 0.001143296, %v2947_v35  ;;  %v2904_v45 = vmul.f32 %v2903_v18, %v7674_v59 }
 0x17e   : > { %v2869_v12 = vmul.f32 %v2868_v8, %v7966_v9  ;;  %v2938_v60 = vmul.f32 %v2937_v5, %v7985_v39  ;;  %v2918_v35 = vmul.f32 %v6438_v20, %v7981_v56  ;;  %v8027_v59 = vmul.f32 %v7135_v32, %v1404_v54 }
 0x17f   : > { %v2859_v31 = vadd.f32 0.0036580483, %v2858_v25  ;;  %v2845_v3 = vsel %vm2844_vm6, %v6436_v13, %v2841_v47  ;;  %v2949_v41 = vmul.f32 %v2948_v29, %v7985_v39  ;;  %v13445_v47 = vrot.slane %v7907_v1, 7 }
 0x180   : > { %v2870_v46 = vadd.f32 0.014752088, %v2869_v12  ;;  %v2850_v21 = vsel %vm2847_vm7, %v2849_v15, %v2845_v3  ;;  %v2939_v19 = vadd.f32 0.0036580483, %v2938_v60  ;;  %v13446_v12 = vrot.slane %v7854_v27, 7  ;;  %13448 = vst [vmem:[#allocation142_spill] sm:$0xff] %v8027_v59 }
 0x181   : > { %v2860_v0 = vmul.f32 %v2859_v31, %v7966_v9  ;;  %v2950_v23 = vadd.f32 0.014752088, %v2949_v41  ;;  %v2851_v13 = vmul.f32 %v2850_v21, %v7925_v38  ;;  %v2919_v8 = vsub.f32 1.0, %v2918_v35 }
 0x182   : > { %v2871_v14 = vmul.f32 %v2870_v46, %v7966_v9  ;;  %v8024_v29 = vsel %vm1132_vm2, %v13446_v12, %v13445_v47  ;;  %v2928_v18 = vand.u32 2147483648, %v7981_v56  ;;  %v2905_v31 = vadd.f32 1.1283791, %v2904_v45 }
 0x183   : > { %13447 = vst [vmem:[#allocation141_spill] sm:$0xff] %v8024_v29  ;;  %v2861_v25 = vadd.f32 0.05243302, %v2860_v0  ;;  %v2951_v15 = vmul.f32 %v2950_v23, %v7985_v39  ;;  %v2920_v3 = vmul.f32 %v6438_v20, %v2919_v8  ;;  %v2926_v46 = vand.u32 2147483647, %v7981_v56 }
 0x184   : > { %v2872_v5 = vadd.f32 0.112945676, %v2871_v14  ;;  %v13449_v60 = vrot.slane %v7946_v57, 7  ;;  %v13450_v41 = vrot.slane %v7872_v26, 7  ;;  %v2940_v21 = vmul.f32 %v2939_v19, %v7985_v39 }
 0x185   : > { %v2952_v35 = vadd.f32 0.112945676, %v2951_v15  ;;  %v13452_v0 = vrot.slane %v7872_v26, 1  ;;  %v13453_v45 = vrot.slane %v7946_v57, 1  ;;  %v6149_v23 = vclamps-f32 %v2851_v13, 1.0 }
 0x186   : > { %v8039_v54 = vsel %vm1132_vm2, %v13450_v41, %v13449_v60  ;;  %v2873_v38 = vmul.f32 %v2872_v5, %v7966_v9  ;;  %v2921_v47 = vadd.f32 %v6438_v20, %v2920_v3  ;;  %v2929_v12 = vor.u32 1.1754944e-38, %v2928_v18 }
 0x187   : > { %13451 = vst [vmem:[#allocation143_spill] sm:$0xff] %v8039_v54  ;;  %v1405_v14 = vsel %vm1355_vm3, %v13453_v45, %v13452_v0  ;;  %v2862_v8 = vmul.f32 %v2861_v25, %v7966_v9  ;;  %v2953_v5 = vmul.f32 %v2952_v35, %v7985_v39  ;;  %v1538_v19 = vmul.f32 %v7138_v33, %v8024_v29 }
 0x188   : > { %v2874_v60 = vadd.f32 0.4994258, %v2873_v38  ;;  %v2906_v15 = vmul.f32 %v2905_v31, %v7593_v4  ;;  %v2925_v41 = vsel %vm2924_vm10, %v6438_v20, %v2921_v47  ;;  %vm2927_vm11 = vcmp.eq.f32.partialorder %v2926_v46, 8.507059e+37  ;;  %v746_v20 = vpop.f32.mrf.mxu0  ;;  %v845_v31 = vpop.f32.mrf.mxu1  ;;  %v13455_v46 = vld [vmem:[#allocation52_spill] sm:$0xff] }
 0x189   : > { %v2930_v49 = vsel %vm2927_vm11, %v2929_v12, %v2925_v41  ;;  %v2941_v3 = vadd.f32 0.05243302, %v2940_v21  ;;  %v2954_v0 = vadd.f32 0.4994258, %v2953_v5  ;;  %v8057_v56 = vmul.f32 %v7135_v32, %v1405_v14  ;;  %v13460_v5 = vld [vmem:[#allocation71_spill] sm:$0xff] }
 0x18a   : > { %v2875_v13 = vmul.f32 %v2874_v60, %v7966_v9  ;;  %v1539_v18 = vmul.f32 %v7182_v53, %v8039_v54  ;;  %v2931_v25 = vmul.f32 %v2930_v49, %v2906_v15  ;;  %v5374_v38 = vadd.f32 1.0, %v6149_v23  ;;  %v13458_v49 = vld [vmem:[#allocation61_spill] sm:$0xff]  ;;  %v13459_v23 = vld [vmem:[#allocation46_spill] sm:$0xff] }
 0x18b   : > { %13454 = vst [vmem:[#allocation144_spill] sm:$0xff] %v8057_v56  ;;  %v2863_v35 = vadd.f32 0.18741608, %v2862_v8  ;;  %v2955_v4 = vmul.f32 %v2954_v0, %v7985_v39  ;;  %v2232_v47 = vmul.f32 %v13455_v46, %v7570_v43  ;;  %v13456_v21 = vrot.slane %v7854_v27, 7 }
 0x18c   : > { %v8061_v45 = vadd.f32 1.0, %v2875_v13  ;;  %v13457_v14 = vrot.slane %v7907_v1, 7  ;;  %v6151_v60 = vclamps-f32 %v2931_v25, 1.0  ;;  %v2104_v8 = vmul.f32 %v13459_v23, %v13458_v49 }
 0x18d   : > { %v2234_v15 = vmul.f32 %v13455_v46, %v13460_v5  ;;  %v1668_v41 = vadd.f32 %v7959_v11, %v1538_v19  ;;  %v1734_v13 = vmul.f32 %v7178_v51, %v8027_v59  ;;  %v2942_v0 = vmul.f32 %v2941_v3, %v7985_v39 }
 0x18e   : > { %v1181_v12 = vsel %vm1132_vm2, %v13457_v14, %v13456_v21  ;;  %6439 = vrcp.f32 %v8061_v45  ;;  %v5376_v27 = vadd.f32 1.0, %v6151_v60  ;;  %v5438_v21 = vmul.f32 %v5374_v38, %v7662_v17  ;;  %v13461_v14 = vld [vmem:[#allocation51_spill] sm:$0xff]  ;;  %v13462_v60 = vld [vmem:[#allocation96_spill] sm:$0xff] }
 0x18f   : > { %v8082_v25 = vadd.f32 1.0, %v2955_v4  ;;  %v2168_v49 = vadd.f32 %v2104_v8, %v13461_v14  ;;  %v1669_v1 = vadd.f32 %v1605_v62, %v1539_v18  ;;  %v1735_v11 = vmul.f32 %v7230_v22, %v8057_v56  ;;  %v576_v18 = vld [vmem:[%s7078_s22 + $0xe0] sm:$0xff] }
 0x190   : > { %v2864_v19 = vmul.f32 %v2863_v35, %v7966_v9  ;;  %v2296_v5 = vadd.f32 %v2232_v47, %v8008_v10  ;;  %v8091_v3 = vmul.f32 %v7255_v52, %v7946_v57  ;;  %v5440_v59 = vmul.f32 %v5376_v27, %v13462_v60  ;;  %v577_v35 = vld [vmem:[%s7078_s22 + $0xe8] sm:$0xff]  ;;  %v847_v60 = vpop.f32.mrf.mxu1 }
 0x191   : > { %6441 = vrcp.f32 %v8082_v25  ;;  %v2298_v17 = vadd.f32 %v2234_v15, %v2168_v49  ;;  %v8096_v38 = vmul.f32 %v7131_v30, %v1181_v12  ;;  %v8100_v62 = vmul.f32 %v7247_v48, %v8024_v29  ;;  %v748_v49 = vpop.f32.mrf.mxu0 }
 0x192   : > { %v8104_v9 = vmul.f32 %v7276_v6, %v8039_v54  ;;  %v2943_v10 = vadd.f32 0.18741608, %v2942_v0  ;;  %v1798_v4 = vadd.f32 %v1734_v13, %v1668_v41  ;;  %v5502_v47 = vpack.c.bf16 %v5440_v59, %v5438_v21  ;;  %v13465_v0 = vld [vmem:[#allocation67_spill] sm:$0xff] }
 0x193   : > { %13463 = vst [vmem:[#allocation61_spill] sm:$0xff] %v8096_v38  ;;  %v8109_v27 = vadd.f32 %v746_v20, %v7121_v24  ;;  %v2364_v12 = vmul.f32 %v7379_v55, %v7430_v61  ;;  %v8113_v15 = vadd.f32 %v1735_v11, %v1669_v1  ;;  %v2865_v14 = vadd.f32 1.1283791, %v2864_v19 }
 0x194   : > { %v6440_v8 = vpop.eup %6439  ;;  %v8117_v56 = vmul.f32 %v7135_v32, %v7943_v34  ;;  %v2426_v54 = vadd.f32 %v13465_v0, %v2296_v5  ;;  %5674 = vmatmul.bf16.vlgmr.msra.gmra.mxu2 %v5502_v47  ;;  %v597_v20 = vpack.c.bf16 %v577_v35, %v576_v18  ;;  %v8122_v41 = vadd.f32 %v748_v49, %v7121_v24  ;;  %v13468_v34 = vld [vmem:[#allocation55_spill] sm:$0xff] }
 0x195   : > { %13464 = vst [vmem:[#allocation71_spill] sm:$0xff] %v8109_v27  ;;  %v2878_v59 = vmul.f32 %v6440_v8, %v8061_v45  ;;  %v2428_v61 = vadd.f32 %v2364_v12, %v2298_v17  ;;  %v2886_v1 = vand.u32 2147483647, %v8061_v45  ;;  %v2944_v13 = vmul.f32 %v2943_v10, %v7985_v39 }
 0x196   : > { %13466 = vst [vmem:[#allocation51_spill] sm:$0xff] %v8122_v41  ;;  %v8127_v21 = vadd.f32 %v845_v31, %v7127_v28  ;;  %v2492_v11 = vmul.f32 %v13468_v34, %v7935_v42  ;;  %v13003_v47 = vrot.slane %v8109_v27, 7  ;;  %785 = vmatmul.bf16.gmra.mxu0 %v597_v20  ;;  %884 = vmatmul.bf16.gmra.mxu1 %v597_v20  ;;  %v13002_v18 = vrot.slane %v8122_v41, 7 }
 0x197   : > { %v6442_v19 = vpop.eup %6441  ;;  %v2879_v5 = vsub.f32 1.0, %v2878_v59  ;;  %v8134_v17 = vadd.f32 %v847_v60, %v7127_v28  ;;  %v2866_v35 = vmul.f32 %v2865_v14, %v7903_v58  ;;  %v2888_v39 = vand.u32 2147483648, %v8061_v45 }
 0x198   : > { %13467 = vst [vmem:[#allocation96_spill] sm:$0xff] %v8127_v21  ;;  %v2958_v31 = vmul.f32 %v6442_v19, %v8082_v25  ;;  %v2494_v10 = vmul.f32 %v13468_v34, %v8117_v56  ;;  %vm2882_vm12 = vweird.f32 %v8061_v45  ;;  %vm2883_vm13 = vweird.f32 %v6440_v8 }
 0x199   : > { %13469 = vst [vmem:[#allocation67_spill] sm:$0xff] %v8134_v17  ;;  %v2880_v12 = vmul.f32 %v6440_v8, %v2879_v5  ;;  %v8148_v49 = vsel %vm1132_vm2, %v13003_v47, %v13002_v18  ;;  %vm8150_vm14 = vcmp.eq.f32.partialorder %v2886_v1, 8.507059e+37  ;;  %v2945_v14 = vadd.f32 1.1283791, %v2944_v13  ;;  %vm2884_vm15 = vmor %vm2882_vm12, %vm2883_vm13 }
 0x19a   : > { %13470 = vst [vmem:[#allocation55_spill] sm:$0xff] %v8148_v49  ;;  %v2959_v60 = vsub.f32 1.0, %v2958_v31  ;;  %v2968_v0 = vand.u32 2147483648, %v8082_v25  ;;  %v13009_v45 = vrot.slane %v8127_v21, 7  ;;  %v1864_v20 = vmul.f32 %v7247_v48, %v8148_v49 }
 0x19b   : > { %v2881_v59 = vadd.f32 %v6440_v8, %v2880_v12  ;;  %v13008_v34 = vrot.slane %v8134_v17, 7  ;;  %v2889_v5 = vor.u32 1.1754944e-38, %v2888_v39  ;;  %vm2963_vm0 = vweird.f32 %v6442_v19 }
 0x19c   : > { %v2960_v18 = vmul.f32 %v6442_v19, %v2959_v60  ;;  %v2966_v1 = vand.u32 2147483647, %v8082_v25  ;;  %v1928_v29 = vadd.f32 %v1864_v20, %v1798_v4  ;;  %v1994_v13 = vmul.f32 %v7252_v50, %v8122_v41 }
 0x19d   : > { %v2885_v47 = vsel %vm2884_vm15, %v6440_v8, %v2881_v59  ;;  %v8168_v31 = vsel %vm1132_vm2, %v13009_v45, %v13008_v34  ;;  %vm2962_vm1 = vweird.f32 %v8082_v25  ;;  %v2556_v60 = vadd.f32 %v2492_v11, %v2426_v54 }
 0x19e   : > { %13473 = vst [vmem:[#allocation145_spill] sm:$0xff] %v8168_v31  ;;  %v2890_v39 = vsel %vm8150_vm14, %v2889_v5, %v2885_v47  ;;  %v2961_v12 = vadd.f32 %v6442_v19, %v2960_v18  ;;  %vm2964_vm4 = vmor %vm2962_vm1, %vm2963_vm0  ;;  %v2969_v4 = vor.u32 1.1754944e-38, %v2968_v0  ;;  %v8173_v59 = vadd.f32 %v1994_v13, %v1928_v29  ;;  %v13480_v0 = vld [vmem:[#allocation63_spill] sm:$0xff] }
 0x19f   : > { %v2891_v8 = vmul.f32 %v2890_v39, %v2866_v35  ;;  %v2558_v20 = vadd.f32 %v2494_v10, %v2428_v61  ;;  %v2946_v38 = vmul.f32 %v2945_v14, %v7955_v63  ;;  %vm2967_vm5 = vcmp.eq.f32.partialorder %v2966_v1, 8.507059e+37  ;;  %v13477_v35 = vld [vmem:[#allocation59_spill] sm:$0xff] }
 0x1a0   : > { %13474 = vst [vmem:[#allocation146_spill] sm:$0xff] %v8173_v59  ;;  %v2965_v28 = vsel %vm2964_vm4, %v6442_v19, %v2961_v12  ;;  %v1865_v34 = vmul.f32 %v7276_v6, %v8168_v31  ;;  %v1924_v47 = vadd.f32 %v8100_v62, %v7875_v7  ;;  %v13475_v18 = vrot.slane %v7872_v26, 7  ;;  %v13478_v62 = vld [vmem:[#allocation62_spill] sm:$0xff] }
 0x1a1   : > { %v13476_v54 = vrot.slane %v7946_v57, 7  ;;  %v6150_v29 = vclamps-f32 %v2891_v8, 1.0  ;;  %v2970_v11 = vsel %vm2967_vm5, %v2969_v4, %v2965_v28  ;;  %v1995_v19 = vmul.f32 %v7255_v52, %v8134_v17  ;;  %v13504_v59 = vld [vmem:[#allocation98_spill] sm:$0xff] }
 0x1a2   : > { %v2971_v61 = vmul.f32 %v2970_v11, %v2946_v38  ;;  %v1929_v63 = vadd.f32 %v1865_v34, %v8113_v15  ;;  %v8190_v10 = vadd.f32 %v13477_v35, %v2556_v60  ;;  %v8193_v7 = vadd.f32 %v13477_v35, %v2558_v20  ;;  %v13483_v38 = vld [vmem:[#allocation82_spill] sm:$0xff] }
 0x1a3   : > { %v1182_v25 = vsel %vm1132_vm2, %v13476_v54, %v13475_v18  ;;  %v5375_v58 = vadd.f32 1.0, %v6150_v29  ;;  %v13479_v14 = vrot.slane %v13478_v62, 1  ;;  %v13481_v5 = vrot.slane %v13480_v0, 1  ;;  %v13489_v54 = vld [vmem:[#allocation68_spill] sm:$0xff] }
 0x1a4   : > { %v1525_v15 = vmul.f32 %v7182_v53, %v13483_v38  ;;  %v1925_v34 = vadd.f32 %v8104_v9, %v7910_v2  ;;  %v8209_v1 = vmul.f32 %v7409_v44, %v7946_v57  ;;  %v6152_v13 = vclamps-f32 %v2971_v61, 1.0 }
 0x1a5   : > { %v8201_v28 = vsel %vm1355_vm3, %v13481_v5, %v13479_v14  ;;  %v8211_v39 = vadd.f32 %v1995_v19, %v1929_v63  ;;  %v8214_v12 = vmul.f32 %v7131_v30, %v1182_v25  ;;  %v8217_v60 = vmul.f32 0.70710677, %v8190_v10  ;;  %v13491_v19 = vld [vmem:[#allocation60_spill] sm:$0xff] }
 0x1a6   : > { %13482 = vst [vmem:[#allocation62_spill] sm:$0xff] %v8201_v28  ;;  %v8220_v8 = vmul.f32 0.70710677, %v8193_v7  ;;  %v13487_v4 = vmov %v13481_v5  ;;  %v13488_v2 = vmov %v13479_v14  ;;  %v5377_v20 = vadd.f32 1.0, %v6152_v13  ;;  %v13496_v13 = vld [vmem:[#allocation48_spill] sm:$0xff] }
 0x1a7   : > { %13484 = vst [vmem:[#allocation63_spill] sm:$0xff] %v8209_v1  ;;  %v1399_v9 = vsel %vm1355_vm3, %v13488_v2, %v13487_v4  ;;  %v5439_v18 = vmul.f32 %v5375_v58, %v7927_v37  ;;  %v1655_v29 = vadd.f32 %v13489_v54, %v1525_v15  ;;  %v1721_v25 = vmul.f32 %v7230_v22, %v8201_v28  ;;  %v13493_v37 = vld [vmem:[#allocation139_spill] sm:$0xff]  ;;  %v13498_v54 = vld [vmem:[#allocation58_spill] sm:$0xff] }
 0x1a8   : > { %13485 = vst [vmem:[#allocation147_spill] sm:$0xff] %v8211_v39  ;;  %v8233_v11 = vadd.f32 %v7963_v40, %v1924_v47  ;;  %v2974_v61 = vmul.f32 %v8217_v60, %v8217_v60  ;;  %v3054_v63 = vmul.f32 %v8220_v8, %v8220_v8  ;;  %v1843_v14 = vmul.f32 %v7276_v6, %v13491_v19  ;;  %v13495_v15 = vld [vmem:[#allocation91_spill] sm:$0xff]  ;;  %v13499_v39 = vld [vmem:[#allocation53_spill] sm:$0xff] }
 0x1a9   : > { %13486 = vst [vmem:[#allocation148_spill] sm:$0xff] %v8214_v12  ;;  %v8242_v0 = vadd.f32 %v8091_v3, %v1925_v34  ;;  %v5441_v58 = vmul.f32 %v5377_v20, %v13493_v37  ;;  %v8245_v5 = vadd.f32 %v1721_v25, %v1655_v29  ;;  %v2105_v40 = vmul.f32 %v13496_v13, %v13495_v15  ;;  %v13500_v34 = vld [vmem:[#allocation73_spill] sm:$0xff]  ;;  %v13501_v29 = vld [vmem:[#allocation72_spill] sm:$0xff] }
 0x1aa   : > { %13490 = vst [vmem:[#allocation68_spill] sm:$0xff] %v8233_v11  ;;  %v8249_v47 = vmin.f32 %v2974_v61, 16.0  ;;  %v8251_v4 = vmin.f32 %v3054_v63, 16.0  ;;  %v8254_v2 = vmul.f32 %v7135_v32, %v1399_v9  ;;  %v1907_v45 = vadd.f32 %v1843_v14, %v13498_v54  ;;  %v13502_v15 = vld [vmem:[#allocation64_spill] sm:$0xff] }
 0x1ab   : > { %13492 = vst [vmem:[#allocation60_spill] sm:$0xff] %v8242_v0  ;;  %v5503_v19 = vpack.c.bf16 %v5441_v58, %v5439_v18  ;;  %v2169_v3 = vadd.f32 %v2105_v40, %v13499_v39  ;;  %v2233_v20 = vmul.f32 %v13500_v34, %v13483_v38  ;;  %v2235_v25 = vmul.f32 %v13500_v34, %v13501_v29 }
 0x1ac   : > { %13494 = vst [vmem:[#allocation139_spill] sm:$0xff] %v8245_v5  ;;  %v2976_v37 = vmul.f32 2.1237322e-06, %v8249_v47  ;;  %v2987_v61 = vmul.f32 3.8918573e-05, %v8249_v47  ;;  %v2037_v9 = vadd.f32 %v13502_v15, %v1907_v45  ;;  %v8268_v18 = vmul.f32 %v7178_v51, %v8117_v56  ;;  %v13505_v45 = vld [vmem:[#allocation95_spill] sm:$0xff] }
 0x1ad   : > { %13497 = vst [vmem:[#allocation91_spill] sm:$0xff] %v8254_v2  ;;  %v3056_v63 = vmul.f32 2.1237322e-06, %v8251_v4  ;;  %5763 = vmatmul.bf16.vlgmr.msra.gmra.mxu3 %v5503_v19  ;;  %v3067_v39 = vmul.f32 3.8918573e-05, %v8251_v4  ;;  %v2299_v14 = vadd.f32 %v2235_v25, %v2169_v3  ;;  %v2365_v58 = vmul.f32 %v7409_v44, %v13478_v62  ;;  %v13506_v15 = vld [vmem:[#allocation104_spill] sm:$0xff] }
 0x1ae   : > { %13503 = vst [vmem:[#allocation58_spill] sm:$0xff] %v8268_v18  ;;  %v2977_v40 = vadd.f32 0.00028619796, %v2976_v37  ;;  %v2988_v54 = vadd.f32 0.001143296, %v2987_v61  ;;  %v2167_v0 = vadd.f32 %v13504_v59, %v2037_v9  ;;  %v2495_v19 = vmul.f32 %v13505_v45, %v8254_v2  ;;  %v13511_v5 = vld [vmem:[#allocation70_spill] sm:$0xff] }
 0x1af   : > { %v3057_v29 = vadd.f32 0.00028619796, %v3056_v63  ;;  %v3068_v11 = vadd.f32 0.001143296, %v3067_v39  ;;  %v2429_v1 = vadd.f32 %v2365_v58, %v2299_v14  ;;  %v1528_v12 = vmul.f32 %v7138_v33, %v13506_v15  ;;  %v13507_v63 = vld [vmem:[#allocation85_spill] sm:$0xff]  ;;  %v13509_v39 = vld [vmem:[#allocation78_spill] sm:$0xff] }
 0x1b0   : > { %v2978_v26 = vmul.f32 %v2977_v40, %v8249_v47  ;;  %v2989_v3 = vmul.f32 %v2988_v54, %v8249_v47  ;;  %v2297_v62 = vadd.f32 %v2233_v20, %v2167_v0  ;;  %v2493_v59 = vmul.f32 %v13505_v45, %v8201_v28  ;;  %v13512_v20 = vld [vmem:[#allocation86_spill] sm:$0xff]  ;;  %v13514_v45 = vld [vmem:[#allocation87_spill] sm:$0xff] }
 0x1b1   : > { %v3058_v25 = vmul.f32 %v3057_v29, %v8251_v4  ;;  %v3069_v37 = vmul.f32 %v3068_v11, %v8251_v4  ;;  %v2559_v61 = vadd.f32 %v2495_v19, %v2429_v1  ;;  %v13508_v9 = vrot.slane %v13507_v63, 1 }
 0x1b2   : > { %v13510_v14 = vrot.slane %v13509_v39, 1  ;;  %v2979_v40 = vadd.f32 0.0036580483, %v2978_v26  ;;  %v2990_v57 = vadd.f32 0.014752088, %v2989_v3  ;;  %v2427_v29 = vadd.f32 %v13511_v5, %v2297_v62 }
 0x1b3   : > { %v3059_v54 = vadd.f32 0.0036580483, %v3058_v25  ;;  %v8295_v11 = vmul.f32 %v13459_v23, %v7935_v42  ;;  %v3070_v0 = vadd.f32 0.014752088, %v3069_v37  ;;  %v8298_v1 = vadd.f32 %v13512_v20, %v2559_v61 }
 0x1b4   : > { %v8290_v58 = vsel %vm1355_vm3, %v13510_v14, %v13508_v9  ;;  %v1658_v19 = vadd.f32 %v13514_v45, %v1528_v12  ;;  %v2980_v18 = vmul.f32 %v2979_v40, %v8249_v47  ;;  %v2991_v9 = vmul.f32 %v2990_v57, %v8249_v47 }
 0x1b5   : > { %13513 = vst [vmem:[#allocation53_spill] sm:$0xff] %v8298_v1  ;;  %v3060_v26 = vmul.f32 %v3059_v54, %v8251_v4  ;;  %v2557_v3 = vadd.f32 %v2493_v59, %v2427_v29  ;;  %v3071_v5 = vmul.f32 %v3070_v0, %v8251_v4  ;;  %v8307_v42 = vmul.f32 0.70710677, %v8298_v1 }
 0x1b6   : > { %v1724_v62 = vmul.f32 %v7178_v51, %v8290_v58  ;;  %v2981_v37 = vadd.f32 0.05243302, %v2980_v18  ;;  %v2992_v61 = vadd.f32 0.112945676, %v2991_v9  ;;  %v1846_v54 = vmul.f32 %v7247_v48, %v7570_v43 }
 0x1b7   : > { %v3061_v12 = vadd.f32 0.05243302, %v3060_v26  ;;  %v8312_v14 = vadd.f32 %v13512_v20, %v2557_v3  ;;  %v3072_v57 = vadd.f32 0.112945676, %v3071_v5  ;;  %v3094_v59 = vmul.f32 %v8307_v42, %v8307_v42 }
 0x1b8   : > { %v8316_v40 = vadd.f32 %v1724_v62, %v1658_v19  ;;  %v2982_v0 = vmul.f32 %v2981_v37, %v8249_v47  ;;  %v2993_v18 = vmul.f32 %v2992_v61, %v8249_v47  ;;  %v13516_v19 = vld [vmem:[#allocation56_spill] sm:$0xff]  ;;  %v13517_v62 = vld [vmem:[#allocation37_spill] sm:$0xff]  ;;  %v8337_v37 = vmul.f32 %v7252_v50, %v8109_v27 }
 0x1b9   : > { %v3062_v45 = vmul.f32 %v3061_v12, %v8251_v4  ;;  %v3073_v9 = vmul.f32 %v3072_v57, %v8251_v4  ;;  %v8326_v26 = vmul.f32 0.70710677, %v8312_v14  ;;  %v8328_v3 = vmin.f32 %v3094_v59, 16.0 }
 0x1ba   : > { %13515 = vst [vmem:[#allocation72_spill] sm:$0xff] %v8316_v40  ;;  %v1910_v5 = vadd.f32 %v1846_v54, %v13516_v19  ;;  %v8333_v43 = vmul.f32 %v13517_v62, %v8109_v27  ;;  %v2983_v61 = vadd.f32 0.18741608, %v2982_v0  ;;  %v2994_v29 = vadd.f32 0.4994258, %v2993_v18 }
 0x1bb   : > { %13519 = vst [vmem:[#allocation98_spill] sm:$0xff] %v8337_v37  ;;  %v3074_v12 = vadd.f32 0.4994258, %v3073_v9  ;;  %v3014_v57 = vmul.f32 %v8326_v26, %v8326_v26  ;;  %v3096_v25 = vmul.f32 2.1237322e-06, %v8328_v3  ;;  %v8345_v54 = vmul.f32 %v7379_v55, %v8109_v27  ;;  %v13523_v9 = vld [vmem:[#allocation66_spill] sm:$0xff] }
 0x1bc   : > { %13518 = vst [vmem:[#allocation64_spill] sm:$0xff] %v8333_v43  ;;  %v3107_v59 = vmul.f32 3.8918573e-05, %v8328_v3  ;;  %v13521_v19 = vrot.slane %v8109_v27, 1  ;;  %v13522_v43 = vrot.slane %v8122_v41, 1  ;;  %v2995_v18 = vmul.f32 %v2994_v29, %v8249_v47 }
 0x1bd   : > { %13520 = vst [vmem:[#allocation95_spill] sm:$0xff] %v8345_v54  ;;  %v8355_v37 = vadd.f32 %v13523_v9, %v1910_v5  ;;  %v3063_v40 = vadd.f32 0.18741608, %v3062_v45  ;;  %v3075_v20 = vmul.f32 %v3074_v12, %v8251_v4  ;;  %v8358_v34 = vmin.f32 %v3014_v57, 16.0 }
 0x1be   : > { %v1406_v0 = vsel %vm1355_vm3, %v13522_v43, %v13521_v19  ;;  %v3097_v13 = vadd.f32 0.00028619796, %v3096_v25  ;;  %v1542_v54 = vmul.f32 %v7138_v33, %v8148_v49  ;;  %v2984_v28 = vmul.f32 %v2983_v61, %v8249_v47 }
 0x1bf   : > { %v8363_v38 = vadd.f32 1.0, %v2995_v18  ;;  %v3108_v2 = vadd.f32 0.001143296, %v3107_v59  ;;  %v8365_v43 = vadd.f32 1.0, %v3075_v20  ;;  %v3016_v29 = vmul.f32 2.1237322e-06, %v8358_v34 }
 0x1c0   : > { %v3027_v5 = vmul.f32 3.8918573e-05, %v8358_v34  ;;  %v3098_v45 = vmul.f32 %v3097_v13, %v8328_v3  ;;  %v8372_v25 = vmul.f32 %v7135_v32, %v1406_v0  ;;  %v8378_v47 = vmul.f32 %v7147_v36, %v8127_v21 }
 0x1c1   : > { %6443 = vrcp.f32 %v8363_v38  ;;  %v1608_v20 = vmul.f32 %v13517_v62, %v8122_v41  ;;  %v3064_v61 = vmul.f32 %v3063_v40, %v8251_v4  ;;  %v8386_v13 = vmul.f32 %v7255_v52, %v8127_v21 }
 0x1c2   : > { %13524 = vst [vmem:[#allocation104_spill] sm:$0xff] %v8372_v25  ;;  %6445 = vrcp.f32 %v8365_v43  ;;  %v8390_v59 = vmul.f32 %v7409_v44, %v8127_v21  ;;  %v2985_v19 = vadd.f32 1.1283791, %v2984_v28  ;;  %v3017_v0 = vadd.f32 0.00028619796, %v3016_v29  ;;  %v13531_v29 = vld [vmem:[#allocation76_spill] sm:$0xff] }
 0x1c3   : > { %13525 = vst [vmem:[#allocation85_spill] sm:$0xff] %v8378_v47  ;;  %v8392_v18 = vadd.f32 %v1608_v20, %v1542_v54  ;;  %v3028_v9 = vadd.f32 0.001143296, %v3027_v5  ;;  %v3099_v57 = vadd.f32 0.0036580483, %v3098_v45  ;;  %v3109_v12 = vmul.f32 %v3108_v2, %v8328_v3  ;;  %v13530_v54 = vld [vmem:[#allocation49_spill] sm:$0xff] }
 0x1c4   : > { %13526 = vst [vmem:[#allocation78_spill] sm:$0xff] %v8386_v13  ;;  %v8397_v4 = vmul.f32 %v7178_v51, %v8372_v25  ;;  %v13528_v40 = vrot.slane %v8127_v21, 1  ;;  %v13529_v13 = vrot.slane %v8134_v17, 1  ;;  %v3018_v28 = vmul.f32 %v3017_v0, %v8358_v34 }
 0x1c5   : > { %13527 = vst [vmem:[#allocation70_spill] sm:$0xff] %v8390_v59  ;;  %v1782_v5 = vadd.f32 %v13531_v29, %v13530_v54  ;;  %v3065_v45 = vadd.f32 1.1283791, %v3064_v61  ;;  %v3029_v2 = vmul.f32 %v3028_v9, %v8358_v34  ;;  %v3100_v20 = vmul.f32 %v3099_v57, %v8328_v3 }
 0x1c6   : > { %v8405_v47 = vsel %vm1355_vm3, %v13529_v13, %v13528_v40  ;;  %v3110_v59 = vadd.f32 0.014752088, %v3109_v12  ;;  %v8413_v49 = vmul.f32 0.5, %v8190_v10  ;;  %v2986_v62 = vmul.f32 %v2985_v19, %v8217_v60  ;;  %v13532_v13 = vld [vmem:[#allocation80_spill] sm:$0xff] }
 0x1c7   : > { %v6444_v25 = vpop.eup %6443  ;;  %v3019_v33 = vadd.f32 0.0036580483, %v3018_v28  ;;  %v1912_v40 = vadd.f32 %v13532_v13, %v1782_v5  ;;  %vm3002_vm6 = vweird.f32 %v8363_v38  ;;  %v3030_v61 = vadd.f32 0.014752088, %v3029_v2 }
 0x1c8   : > { %v6446_v51 = vpop.eup %6445  ;;  %v2998_v0 = vmul.f32 %v6444_v25, %v8363_v38  ;;  %v3101_v54 = vadd.f32 0.05243302, %v3100_v20  ;;  %v3006_v9 = vand.u32 2147483647, %v8363_v38  ;;  %v3111_v10 = vmul.f32 %v3110_v59, %v8328_v3 }
 0x1c9   : > { %v3078_v12 = vmul.f32 %v6446_v51, %v8365_v43  ;;  %v3020_v57 = vmul.f32 %v3019_v33, %v8358_v34  ;;  %v3008_v60 = vand.u32 2147483648, %v8363_v38  ;;  %v3066_v19 = vmul.f32 %v3065_v45, %v8220_v8 }
 0x1ca   : > { %v2999_v29 = vsub.f32 1.0, %v2998_v0  ;;  %v3031_v28 = vmul.f32 %v3030_v61, %v8358_v34  ;;  %v3086_v13 = vand.u32 2147483647, %v8365_v43  ;;  %v3088_v2 = vand.u32 2147483648, %v8365_v43 }
 0x1cb   : > { %v3079_v5 = vsub.f32 1.0, %v3078_v12  ;;  %v3112_v20 = vadd.f32 0.112945676, %v3111_v10  ;;  %vm3003_vm7 = vweird.f32 %v6444_v25  ;;  %v3102_v33 = vmul.f32 %v3101_v54, %v8328_v3 }
 0x1cc   : > { %v3000_v44 = vmul.f32 %v6444_v25, %v2999_v29  ;;  %v3032_v30 = vadd.f32 0.112945676, %v3031_v28  ;;  %vm3083_vm8 = vweird.f32 %v6446_v51  ;;  %v3021_v59 = vadd.f32 0.05243302, %v3020_v57  ;;  %vm3004_vm11 = vmor %vm3002_vm6, %vm3003_vm7  ;;  %v751_v28 = vpop.f32.mrf.mxu0 }
 0x1cd   : > { %v3080_v35 = vmul.f32 %v6446_v51, %v3079_v5  ;;  %v3113_v0 = vmul.f32 %v3112_v20, %v8328_v3  ;;  %vm3007_vm9 = vcmp.eq.f32.partialorder %v3006_v9, 8.507059e+37  ;;  %vm3082_vm10 = vweird.f32 %v8365_v43  ;;  %v578_v5 = vld [vmem:[%s7078_s22 + $0xf0] sm:$0xff] }
 0x1ce   : > { %v3001_v1 = vadd.f32 %v6444_v25, %v3000_v44  ;;  %v3033_v8 = vmul.f32 %v3032_v30, %v8358_v34  ;;  %v3009_v45 = vor.u32 1.1754944e-38, %v3008_v60  ;;  %vm8434_vm12 = vcmp.eq.f32.partialorder %v3086_v13, 8.507059e+37  ;;  %vm3084_vm13 = vmor %vm3082_vm10, %vm3083_vm8  ;;  %v850_v60 = vpop.f32.mrf.mxu1 }
 0x1cf   : > { %v3081_v61 = vadd.f32 %v6446_v51, %v3080_v35  ;;  %v3114_v12 = vadd.f32 0.4994258, %v3113_v0  ;;  %v3089_v44 = vor.u32 1.1754944e-38, %v3088_v2  ;;  %v3103_v10 = vadd.f32 0.18741608, %v3102_v33  ;;  %v579_v35 = vld [vmem:[%s7078_s22 + $0xf8] sm:$0xff] }
 0x1d0   : > { %v3005_v57 = vsel %vm3004_vm11, %v6444_v25, %v3001_v1  ;;  %v3034_v9 = vadd.f32 0.4994258, %v3033_v8  ;;  %v3022_v30 = vmul.f32 %v3021_v59, %v8358_v34  ;;  %v13535_v25 = vld [vmem:[#allocation75_spill] sm:$0xff]  ;;  %v2236_v59 = vmul.f32 %v13455_v46, %v13506_v15  ;;  %s5877_s22 = scalar_lea.sflag [#allocation5], %s7064_s7 }
 0x1d1   : > { %v3010_v43 = vsel %vm3007_vm9, %v3009_v45, %v3005_v57  ;;  %v3085_v29 = vsel %vm3084_vm13, %v6446_v51, %v3081_v61  ;;  %v3115_v38 = vmul.f32 %v3114_v12, %v8328_v3  ;;  %v2042_v2 = vadd.f32 %v13535_v25, %v1912_v40  ;;  %v13536_v61 = vld [vmem:[#allocation99_spill] sm:$0xff] }
 0x1d2   : > { %v3011_v13 = vmul.f32 %v3010_v43, %v2986_v62  ;;  %v3090_v20 = vsel %vm8434_vm12, %v3089_v44, %v3085_v29  ;;  %v3035_v1 = vmul.f32 %v3034_v9, %v8358_v34  ;;  %v2108_v51 = vmul.f32 %v13459_v23, %v8117_v56 }
 0x1d3   : > { %v3091_v0 = vmul.f32 %v3090_v20, %v3066_v19  ;;  %v8446_v33 = vadd.f32 1.0, %v3115_v38  ;;  %v598_v62 = vpack.c.bf16 %v579_v35, %v578_v5  ;;  %v2238_v54 = vmul.f32 %v13455_v46, %v13536_v61 }
 0x1d4   : > { %v6153_v8 = vclamps-f32 %v3011_v13, 1.0  ;;  %v8452_v45 = vadd.f32 1.0, %v3035_v1  ;;  %v3023_v57 = vadd.f32 0.18741608, %v3022_v30  ;;  %v3104_v40 = vmul.f32 %v3103_v10, %v8328_v3 }
 0x1d5   : > { %v6155_v12 = vclamps-f32 %v3091_v0, 1.0  ;;  %6447 = vrcp.f32 %v8446_v33  ;;  %790 = vmatmul.bf16.gmra.mxu0 %v598_v62  ;;  %889 = vmatmul.bf16.gmra.mxu1 %v598_v62  ;;  %v2170_v56 = vadd.f32 %v8295_v11, %v8355_v37  ;;  %v2172_v44 = vadd.f32 %v2108_v51, %v2042_v2 }
 0x1d6   : > { %v5378_v19 = vadd.f32 1.0, %v6153_v8  ;;  %6449 = vrcp.f32 %v8452_v45  ;;  %v8463_v9 = vmul.f32 %v7135_v32, %v8405_v47  ;;  %v1543_v43 = vmul.f32 %v7182_v53, %v8168_v31  ;;  %v852_v25 = vpop.f32.mrf.mxu1 }
 0x1d7   : > { %v2692_v3 = vmul.f32 0.5, %v8193_v7  ;;  %v5380_v10 = vadd.f32 1.0, %v6155_v12  ;;  %v13538_v30 = vrot.slane %v13509_v39, 1  ;;  %v13539_v38 = vrot.slane %v13507_v63, 1  ;;  %v753_v7 = vpop.f32.mrf.mxu0 }
 0x1d8   : > { %13537 = vst [vmem:[#allocation87_spill] sm:$0xff] %v8463_v9  ;;  %v5442_v29 = vmul.f32 %v5378_v19, %v8413_v49  ;;  %v2300_v37 = vadd.f32 %v2236_v59, %v2170_v56  ;;  %v2302_v5 = vadd.f32 %v2238_v54, %v2172_v44  ;;  %v1609_v47 = vmul.f32 %v7147_v36, %v8134_v17 }
 0x1d9   : > { %v1400_v11 = vsel %vm1355_vm3, %v13539_v38, %v13538_v30  ;;  %v5444_v35 = vmul.f32 %v5380_v10, %v2692_v3  ;;  %v3024_v13 = vmul.f32 %v3023_v57, %v8358_v34  ;;  %v3105_v20 = vadd.f32 1.1283791, %v3104_v40  ;;  %v13544_v40 = vld [vmem:[#allocation32_spill] sm:$0xff] }
 0x1da   : > { %v1802_v49 = vadd.f32 %v8397_v4, %v8392_v18  ;;  %v8482_v39 = vmul.f32 %v7379_v55, %v8122_v41  ;;  %v8485_v1 = vadd.f32 %v751_v28, %v7121_v24  ;;  %v2368_v2 = vmul.f32 %v7379_v55, %v13507_v63  ;;  %v13543_v28 = vld [vmem:[#allocation90_spill] sm:$0xff] }
 0x1db   : > { %v6448_v0 = vpop.eup %6447  ;;  %v1673_v51 = vadd.f32 %v1609_v47, %v1543_v43  ;;  %v1739_v34 = vmul.f32 %v7230_v22, %v8463_v9  ;;  %v5504_v59 = vpack.c.bf16 %v5444_v35, %v5442_v29  ;;  %v8492_v8 = vmul.f32 %v7135_v32, %v1400_v11 }
 0x1dc   : > { %13540 = vst [vmem:[#allocation56_spill] sm:$0xff] %v8482_v39  ;;  %v6450_v18 = vpop.eup %6449  ;;  %v3118_v4 = vmul.f32 %v6448_v0, %v8446_v33  ;;  %v8496_v62 = vadd.f32 %v753_v7, %v7121_v24  ;;  %v2430_v61 = vadd.f32 %v13543_v28, %v2300_v37  ;;  %v2432_v54 = vadd.f32 %v2368_v2, %v2302_v5 }
 0x1dd   : > { %13541 = vst [vmem:[#allocation66_spill] sm:$0xff] %v8485_v1  ;;  %5679 = vmatmul.bf16.gmra.mxu2 %v5504_v59  ;;  %v3025_v63 = vadd.f32 1.1283791, %v3024_v13  ;;  %v3038_v12 = vmul.f32 %v6450_v18, %v8452_v45  ;;  %v3106_v57 = vmul.f32 %v3105_v20, %v8307_v42  ;;  %v8502_v19 = vadd.f32 %v852_v25, %v13544_v40 }
 0x1de   : > { %13542 = vst [vmem:[#allocation49_spill] sm:$0xff] %v8496_v62  ;;  %v3119_v56 = vsub.f32 1.0, %v3118_v4  ;;  %v13036_v44 = vrot.slane %v8485_v1, 7  ;;  %v8506_v43 = vadd.f32 %v850_v60, %v13544_v40  ;;  %v13035_v3 = vrot.slane %v8496_v62, 7 }
 0x1df   : > { %13545 = vst [vmem:[#allocation76_spill] sm:$0xff] %v8502_v19  ;;  %v3039_v10 = vsub.f32 1.0, %v3038_v12  ;;  %v3048_v29 = vand.u32 2147483648, %v8452_v45  ;;  %v3126_v30 = vand.u32 2147483647, %v8446_v33  ;;  %v3128_v38 = vand.u32 2147483648, %v8446_v33 }
 0x1e0   : > { %13546 = vst [vmem:[#allocation80_spill] sm:$0xff] %v8506_v43  ;;  %v3120_v11 = vmul.f32 %v6448_v0, %v3119_v56  ;;  %vm3123_vm14 = vweird.f32 %v6448_v0  ;;  %v8518_v42 = vsel %vm1132_vm2, %v13036_v44, %v13035_v3  ;;  %v13033_v60 = vrot.slane %v8502_v19, 7  ;;  %v13573_v44 = vld [vmem:[#allocation62_spill] sm:$0xff] }
 0x1e1   : > { %13547 = vst [vmem:[#allocation75_spill] sm:$0xff] %v8518_v42  ;;  %v3040_v37 = vmul.f32 %v6450_v18, %v3039_v10  ;;  %vm3043_vm15 = vweird.f32 %v6450_v18  ;;  %v3046_v5 = vand.u32 2147483647, %v8452_v45  ;;  %vm3122_vm0 = vweird.f32 %v8446_v33 }
 0x1e2   : > { %vm3042_vm1 = vweird.f32 %v8452_v45  ;;  %v3121_v47 = vadd.f32 %v6448_v0, %v3120_v11  ;;  %v13034_v35 = vrot.slane %v8506_v43, 7  ;;  %v1868_v13 = vmul.f32 %v7247_v48, %v8518_v42  ;;  %vm3124_vm4 = vmor %vm3122_vm0, %vm3123_vm14 }
 0x1e3   : > { %v3041_v20 = vadd.f32 %v6450_v18, %v3040_v37  ;;  %v3049_v7 = vor.u32 1.1754944e-38, %v3048_v29  ;;  %vm3127_vm5 = vcmp.eq.f32.partialorder %v3126_v30, 8.507059e+37  ;;  %v3129_v25 = vor.u32 1.1754944e-38, %v3128_v38  ;;  %vm3044_vm6 = vmor %vm3042_vm1, %vm3043_vm15 }
 0x1e4   : > { %v3125_v2 = vsel %vm3124_vm4, %v6448_v0, %v3121_v47  ;;  %v1932_v59 = vadd.f32 %v1868_v13, %v1802_v49  ;;  %v1998_v4 = vmul.f32 %v7252_v50, %v8496_v62  ;;  %v8535_v33 = vsel %vm1132_vm2, %v13034_v35, %v13033_v60  ;;  %v8540_v49 = vld [vmem:[#allocation11 + $0x10] ss:$0 sm:$0xff]  ;;  %v13572_v35 = vld [vmem:[#allocation82_spill] sm:$0xff] }
 0x1e5   : > { %13548 = vst [vmem:[#allocation99_spill] sm:$0xff] %v8535_v33  ;;  %v3026_v45 = vmul.f32 %v3025_v63, %v8326_v26  ;;  %v3045_v28 = vsel %vm3044_vm6, %v6450_v18, %v3041_v20  ;;  %vm3047_vm7 = vcmp.eq.f32.partialorder %v3046_v5, 8.507059e+37  ;;  %v3130_v12 = vsel %vm3127_vm5, %v3129_v25, %v3125_v2 }
 0x1e6   : > { %v3050_v56 = vsel %vm3047_vm7, %v3049_v7, %v3045_v28  ;;  %v3131_v10 = vmul.f32 %v3130_v12, %v3106_v57  ;;  %v8538_v0 = vadd.f32 %v1998_v4, %v1932_v59  ;;  %v2496_v29 = vmul.f32 %v8540_v49, %v8290_v58  ;;  %v13554_v59 = vld [vmem:[#allocation53_spill] sm:$0xff]  ;;  %v13555_v28 = vld [vmem:[#allocation59_spill] sm:$0xff] }
 0x1e7   : > { %v1803_v30 = vadd.f32 %v1739_v34, %v1673_v51  ;;  %v3051_v38 = vmul.f32 %v3050_v56, %v3026_v45  ;;  %v1869_v11 = vmul.f32 %v7276_v6, %v8535_v33  ;;  %v2498_v26 = vmul.f32 %v8540_v49, %v8492_v8 }
 0x1e8   : > { %13549 = vst [vmem:[#allocation90_spill] sm:$0xff] %v8538_v0  ;;  %v13550_v18 = vrot.slane %v8109_v27, 7  ;;  %v13551_v63 = vrot.slane %v8122_v41, 7  ;;  %v13552_v37 = vrot.slane %v8127_v21, 7  ;;  %v13553_v5 = vrot.slane %v8134_v17, 7  ;;  %v13580_v21 = vld [vmem:[#allocation77_spill] sm:$0xff] }
 0x1e9   : > { %v6156_v34 = vclamps-f32 %v3131_v10, 1.0  ;;  %v2560_v47 = vadd.f32 %v2496_v29, %v2430_v61  ;;  %v6154_v13 = vclamps-f32 %v3051_v38, 1.0  ;;  %v1933_v20 = vadd.f32 %v1869_v11, %v1803_v30  ;;  %v13557_v61 = vld [vmem:[#allocation89_spill] sm:$0xff]  ;;  %v13559_v30 = vld [vmem:[#allocation83_spill] sm:$0xff] }
 0x1ea   : > { %v1183_v57 = vsel %vm1132_vm2, %v13551_v63, %v13550_v18  ;;  %v1184_v51 = vsel %vm1132_vm2, %v13553_v5, %v13552_v37  ;;  %v1999_v7 = vmul.f32 %v7255_v52, %v8502_v19  ;;  %v2562_v25 = vadd.f32 %v2498_v26, %v2432_v54  ;;  %v13564_v63 = vld [vmem:[#allocation57_spill] sm:$0xff] }
 0x1eb   : > { %v2691_v2 = vmul.f32 0.5, %v8312_v14  ;;  %v2693_v4 = vmul.f32 0.5, %v13554_v59  ;;  %v5381_v45 = vadd.f32 1.0, %v6156_v34  ;;  %v8565_v12 = vadd.f32 %v13555_v28, %v2560_v47  ;;  %v13561_v14 = vld [vmem:[#allocation33_spill] sm:$0xff] }
 0x1ec   : > { %v5379_v56 = vadd.f32 1.0, %v6154_v13  ;;  %v8567_v18 = vadd.f32 %v1999_v7, %v1933_v20  ;;  %v8570_v10 = vadd.f32 %v13555_v28, %v2562_v25  ;;  %v13558_v29 = vrot.slane %v13557_v61, 1  ;;  %v13566_v20 = vld [vmem:[#allocation108_spill] sm:$0xff] }
 0x1ed   : > { %v13560_v38 = vrot.slane %v13559_v30, 1  ;;  %v8581_v11 = vmul.f32 %v13561_v14, %v1183_v57  ;;  %v8584_v26 = vmul.f32 %v13561_v14, %v1184_v51  ;;  %v8588_v37 = vmul.f32 %v13564_v63, %v8134_v17  ;;  %v13567_v57 = vld [vmem:[#allocation91_spill] sm:$0xff] }
 0x1ee   : > { %13556 = vst [vmem:[#allocation53_spill] sm:$0xff] %v8567_v18  ;;  %v8591_v5 = vmul.f32 0.70710677, %v8565_v12  ;;  %v5443_v34 = vmul.f32 %v5379_v56, %v2691_v2  ;;  %v5445_v47 = vmul.f32 %v5381_v45, %v2693_v4  ;;  %v8594_v13 = vmul.f32 0.70710677, %v8570_v10  ;;  %v13571_v56 = vld [vmem:[#allocation92_spill] sm:$0xff] }
 0x1ef   : > { %v8578_v54 = vsel %vm1355_vm3, %v13560_v38, %v13558_v29  ;;  %13562 = vst [vmem:[#allocation89_spill] sm:$0xff] %v8581_v11  ;;  %v1529_v7 = vmul.f32 %v7182_v53, %v13566_v20  ;;  %v8600_v25 = vmul.f32 %v7230_v22, %v13567_v57  ;;  %v13569_v29 = vld [vmem:[#allocation50_spill] sm:$0xff]  ;;  %v13570_v38 = vld [vmem:[#allocation97_spill] sm:$0xff]  ;;  %v1847_v3 = vmul.f32 %v7276_v6, %v13572_v35  ;;  %v13574_v18 = vld [vmem:[#allocation48_spill] sm:$0xff] }
 0x1f0   : > { %13563 = vst [vmem:[#allocation83_spill] sm:$0xff] %v8584_v26  ;;  %v3134_v51 = vmul.f32 %v8591_v5, %v8591_v5  ;;  %v1725_v59 = vmul.f32 %v7230_v22, %v8578_v54  ;;  %v1783_v2 = vadd.f32 %v13570_v38, %v13569_v29  ;;  %v5505_v4 = vpack.c.bf16 %v5445_v47, %v5443_v34  ;;  %v13577_v47 = vld [vmem:[#allocation81_spill] sm:$0xff]  ;;  %v13579_v35 = vld [vmem:[#allocation74_spill] sm:$0xff]  ;;  %v13601_v14 = vld [vmem:[#allocation79_spill] sm:$0xff] }
 0x1f1   : > { %13565 = vst [vmem:[#allocation149_spill] sm:$0xff] %v8588_v37  ;;  %v3214_v45 = vmul.f32 %v8594_v13, %v8594_v13  ;;  %v1659_v60 = vadd.f32 %v13571_v56, %v1529_v7  ;;  %v2107_v0 = vmul.f32 %v13574_v18, %v13573_v44  ;;  %v13575_v9 = vrot.slane %v13559_v30, 1  ;;  %v13581_v26 = vld [vmem:[#allocation101_spill] sm:$0xff] }
 0x1f2   : > { %13568 = vst [vmem:[#allocation91_spill] sm:$0xff] %v8600_v25  ;;  %v8615_v37 = vmin.f32 %v3134_v51, 16.0  ;;  %v13576_v31 = vrot.slane %v13557_v61, 1  ;;  %v1913_v29 = vadd.f32 %v13577_v47, %v1783_v2  ;;  %5768 = vmatmul.bf16.gmra.mxu3 %v5505_v4  ;;  %v1911_v56 = vadd.f32 %v1847_v3, %v13579_v35 }
 0x1f3   : > { %v8624_v38 = vmin.f32 %v3214_v45, 16.0  ;;  %v8626_v7 = vadd.f32 %v1725_v59, %v1659_v60  ;;  %v2109_v44 = vmul.f32 %v13574_v18, %v13567_v57  ;;  %v13583_v60 = vld [vmem:[#allocation69_spill] sm:$0xff] }
 0x1f4   : > { %v1401_v34 = vsel %vm1355_vm3, %v13576_v31, %v13575_v9  ;;  %v3136_v51 = vmul.f32 2.1237322e-06, %v8615_v37  ;;  %v3147_v30 = vmul.f32 3.8918573e-05, %v8615_v37  ;;  %v2043_v17 = vadd.f32 %v13580_v21, %v1913_v29  ;;  %v13582_v31 = vld [vmem:[#allocation73_spill] sm:$0xff] }
 0x1f5   : > { %13578 = vst [vmem:[#allocation50_spill] sm:$0xff] %v8626_v7  ;;  %v2239_v9 = vmul.f32 %v13582_v31, %v13581_v26  ;;  %v3216_v2 = vmul.f32 2.1237322e-06, %v8624_v38  ;;  %v3227_v4 = vmul.f32 3.8918573e-05, %v8624_v38  ;;  %v2041_v59 = vadd.f32 %v13583_v60, %v1911_v56  ;;  %v13585_v21 = vld [vmem:[#allocation41_spill] sm:$0xff] }
 0x1f6   : > { %v2237_v3 = vmul.f32 %v13582_v31, %v13566_v20  ;;  %v3137_v45 = vadd.f32 0.00028619796, %v3136_v51  ;;  %v3148_v57 = vadd.f32 0.001143296, %v3147_v30  ;;  %v8642_v47 = vmul.f32 %v7135_v32, %v1401_v34 }
 0x1f7   : > { %v2173_v35 = vadd.f32 %v2109_v44, %v2043_v17  ;;  %v8646_v29 = vmul.f32 %v13585_v21, %v8492_v8  ;;  %v3217_v26 = vadd.f32 0.00028619796, %v3216_v2  ;;  %v3228_v39 = vadd.f32 0.001143296, %v3227_v4 }
 0x1f8   : > { %13584 = vst [vmem:[#allocation97_spill] sm:$0xff] %v8642_v47  ;;  %v2171_v11 = vadd.f32 %v2107_v0, %v2041_v59  ;;  %v3138_v27 = vmul.f32 %v3137_v45, %v8615_v37  ;;  %v3149_v56 = vmul.f32 %v3148_v57, %v8615_v37  ;;  %v2369_v51 = vmul.f32 %v13564_v63, %v13557_v61  ;;  %v8656_v0 = vld [vmem:[#allocation11 + $0x18] ss:$0 sm:$0xff]  ;;  %v13588_v57 = vld [vmem:[#allocation94_spill] sm:$0xff] }
 0x1f9   : > { %13586 = vst [vmem:[#allocation92_spill] sm:$0xff] %v8646_v29  ;;  %v2303_v60 = vadd.f32 %v2239_v9, %v2173_v35  ;;  %v3218_v30 = vmul.f32 %v3217_v26, %v8624_v38  ;;  %v3229_v34 = vmul.f32 %v3228_v39, %v8624_v38  ;;  %v1850_v44 = vmul.f32 %v7247_v48, %v13506_v15  ;;  %v13591_v26 = vld [vmem:[#allocation106_spill] sm:$0xff] }
 0x1fa   : > { %v2301_v17 = vadd.f32 %v2237_v3, %v2171_v11  ;;  %v3139_v41 = vadd.f32 0.0036580483, %v3138_v27  ;;  %v3150_v2 = vadd.f32 0.014752088, %v3149_v56  ;;  %13587 = vst [vmem:[#allocation82_spill] sm:$0xff] %v8656_v0  ;;  %v2499_v59 = vmul.f32 %v8656_v0, %v8642_v47  ;;  %v13589_v27 = vld [vmem:[#allocation102_spill] sm:$0xff] }
 0x1fb   : > { %v2433_v4 = vadd.f32 %v2369_v51, %v2303_v60  ;;  %v3219_v9 = vadd.f32 0.0036580483, %v3218_v30  ;;  %v3230_v45 = vadd.f32 0.014752088, %v3229_v34  ;;  %v2497_v35 = vmul.f32 %v8656_v0, %v8578_v54  ;;  %v13594_v29 = vld [vmem:[#allocation86_spill] sm:$0xff] }
 0x1fc   : > { %v2431_v61 = vadd.f32 %v13588_v57, %v2301_v17  ;;  %v3140_v39 = vmul.f32 %v3139_v41, %v8615_v37  ;;  %v3151_v11 = vmul.f32 %v3150_v2, %v8615_v37  ;;  %v13590_v3 = vrot.slane %v13589_v27, 1  ;;  %v13593_v17 = vld [vmem:[#allocation65_spill] sm:$0xff]  ;;  %v13602_v47 = vld [vmem:[#allocation58_spill] sm:$0xff] }
 0x1fd   : > { %v2563_v15 = vadd.f32 %v2499_v59, %v2433_v4  ;;  %v13592_v56 = vrot.slane %v13591_v26, 1  ;;  %v3220_v51 = vmul.f32 %v3219_v9, %v8624_v38  ;;  %v3231_v30 = vmul.f32 %v3230_v45, %v8624_v38  ;;  %v13596_v4 = vld [vmem:[#allocation125_spill] sm:$0xff]  ;;  %v13597_v59 = vld [vmem:[#allocation36_spill] sm:$0xff] }
 0x1fe   : > { %v2561_v34 = vadd.f32 %v2497_v35, %v2431_v61  ;;  %v1914_v57 = vadd.f32 %v1850_v44, %v13593_v17  ;;  %v3141_v7 = vadd.f32 0.05243302, %v3140_v39  ;;  %v3152_v41 = vadd.f32 0.112945676, %v3151_v11  ;;  %v13600_v17 = vld [vmem:[#allocation113_spill] sm:$0xff] }
 0x1ff   : > { %v8671_v60 = vsel %vm1355_vm3, %v13592_v56, %v13590_v3  ;;  %v8677_v2 = vadd.f32 %v13594_v29, %v2563_v15  ;;  %v1532_v0 = vmul.f32 %v13597_v59, %v13596_v4  ;;  %v3221_v26 = vadd.f32 0.05243302, %v3220_v51  ;;  %v13599_v56 = vld [vmem:[#allocation88_spill] sm:$0xff] }
 0x200   : > { %v3232_v31 = vadd.f32 0.112945676, %v3231_v30  ;;  %v8682_v3 = vadd.f32 %v13594_v29, %v2561_v34  ;;  %v2044_v9 = vadd.f32 %v13599_v56, %v1914_v57  ;;  %v3142_v61 = vmul.f32 %v3141_v7, %v8615_v37 }
 0x201   : > { %13595 = vst [vmem:[#allocation62_spill] sm:$0xff] %v8677_v2  ;;  %v3153_v44 = vmul.f32 %v3152_v41, %v8615_v37  ;;  %v8689_v35 = vmul.f32 0.70710677, %v8677_v2  ;;  %v3222_v39 = vmul.f32 %v3221_v26, %v8624_v38  ;;  %v1728_v51 = vmul.f32 %v13585_v21, %v8671_v60 }
 0x202   : > { %13598 = vst [vmem:[#allocation81_spill] sm:$0xff] %v8682_v3  ;;  %v3233_v11 = vmul.f32 %v3232_v31, %v8624_v38  ;;  %v8694_v15 = vmul.f32 0.70710677, %v8682_v3  ;;  %v3143_v30 = vadd.f32 0.18741608, %v3142_v61  ;;  %v1662_v57 = vadd.f32 %v13600_v17, %v1532_v0 }
 0x203   : > { %v3154_v34 = vadd.f32 0.4994258, %v3153_v44  ;;  %v3254_v7 = vmul.f32 %v8689_v35, %v8689_v35  ;;  %v13054_v41 = vrot.slane %v8485_v1, 1  ;;  %v3223_v56 = vadd.f32 0.18741608, %v3222_v39 }
 0x204   : > { %v3234_v45 = vadd.f32 0.4994258, %v3233_v11  ;;  %v3174_v31 = vmul.f32 %v8694_v15, %v8694_v15  ;;  %v1786_v61 = vadd.f32 %v13602_v47, %v13601_v14  ;;  %v8709_v44 = vadd.f32 %v1728_v51, %v1662_v57  ;;  %v13605_v51 = vld [vmem:[#allocation105_spill] sm:$0xff] }
 0x205   : > { %v3155_v26 = vmul.f32 %v3154_v34, %v8615_v37  ;;  %v8705_v29 = vmin.f32 %v3254_v7, 16.0  ;;  %v13604_v0 = vrot.slane %v8496_v62, 1  ;;  %v3144_v11 = vmul.f32 %v3143_v30, %v8615_v37  ;;  %v13606_v30 = vld [vmem:[#allocation37_spill] sm:$0xff] }
 0x206   : > { %13603 = vst [vmem:[#allocation74_spill] sm:$0xff] %v8709_v44  ;;  %v3235_v17 = vmul.f32 %v3234_v45, %v8624_v38  ;;  %v8719_v20 = vmin.f32 %v3174_v31, 16.0  ;;  %v1546_v34 = vmul.f32 %v13597_v59, %v8518_v42  ;;  %v13059_v14 = vrot.slane %v8502_v19, 1 }
 0x207   : > { %v1408_v39 = vsel %vm1355_vm3, %v13604_v0, %v13054_v41  ;;  %v8724_v47 = vadd.f32 1.0, %v3155_v26  ;;  %v1916_v7 = vadd.f32 %v13605_v51, %v1786_v61  ;;  %v3224_v57 = vmul.f32 %v3223_v56, %v8624_v38 }
 0x208   : > { %v8728_v44 = vadd.f32 1.0, %v3235_v17  ;;  %v3176_v0 = vmul.f32 2.1237322e-06, %v8719_v20  ;;  %v3256_v37 = vmul.f32 2.1237322e-06, %v8705_v29  ;;  %v13058_v45 = vrot.slane %v8506_v43, 1 }
 0x209   : > { %v1612_v31 = vmul.f32 %v13606_v30, %v8496_v62  ;;  %v2110_v41 = vmul.f32 %v13459_v23, %v8290_v58  ;;  %6451 = vrcp.f32 %v8724_v47  ;;  %v8740_v26 = vmul.f32 %v13606_v30, %v8485_v1 }
 0x20a   : > { %v8743_v38 = vmul.f32 %v7135_v32, %v1408_v39  ;;  %v3145_v56 = vadd.f32 1.1283791, %v3144_v11  ;;  %6453 = vrcp.f32 %v8728_v44  ;;  %v8754_v58 = vsel %vm1355_vm3, %v13059_v14, %v13058_v45 }
 0x20b   : > { %13607 = vst [vmem:[#allocation77_spill] sm:$0xff] %v8740_v26  ;;  %v8746_v61 = vadd.f32 %v1612_v31, %v1546_v34  ;;  %v8758_v17 = vmul.f32 %v7182_v53, %v8535_v33  ;;  %v3177_v51 = vadd.f32 0.00028619796, %v3176_v0  ;;  %v3225_v39 = vadd.f32 1.1283791, %v3224_v57  ;;  %v13609_v26 = vld [vmem:[#allocation100_spill] sm:$0xff] }
 0x20c   : > { %13608 = vst [vmem:[#allocation101_spill] sm:$0xff] %v8743_v38  ;;  %v3187_v11 = vmul.f32 3.8918573e-05, %v8719_v20  ;;  %v3257_v42 = vadd.f32 0.00028619796, %v3256_v37  ;;  %v2046_v34 = vadd.f32 %v13609_v26, %v1916_v7  ;;  %v2112_v59 = vmul.f32 %v13459_v23, %v8492_v8 }
 0x20d   : > { %v3178_v31 = vmul.f32 %v3177_v51, %v8719_v20  ;;  %v3267_v30 = vmul.f32 3.8918573e-05, %v8705_v29  ;;  %v2174_v45 = vadd.f32 %v2110_v41, %v2044_v9  ;;  %v3146_v14 = vmul.f32 %v3145_v56, %v8591_v5 }
 0x20e   : > { %v3166_v33 = vand.u32 2147483647, %v8724_v47  ;;  %v3188_v25 = vadd.f32 0.001143296, %v3187_v11  ;;  %v3258_v57 = vmul.f32 %v3257_v42, %v8705_v29  ;;  %vm3162_vm8 = vweird.f32 %v8724_v47 }
 0x20f   : > { %v6452_v0 = vpop.eup %6451  ;;  %v3168_v7 = vand.u32 2147483648, %v8724_v47  ;;  %v3179_v37 = vadd.f32 0.0036580483, %v3178_v31  ;;  %v3268_v26 = vadd.f32 0.001143296, %v3267_v30  ;;  %v3226_v8 = vmul.f32 %v3225_v39, %v8594_v13 }
 0x210   : > { %v6454_v51 = vpop.eup %6453  ;;  %v3158_v53 = vmul.f32 %v6452_v0, %v8724_v47  ;;  %v3189_v9 = vmul.f32 %v3188_v25, %v8719_v20  ;;  %v3259_v5 = vadd.f32 0.0036580483, %v3258_v57  ;;  %vm3242_vm9 = vweird.f32 %v8728_v44 }
 0x211   : > { %v3238_v41 = vmul.f32 %v6454_v51, %v8728_v44  ;;  %v3180_v42 = vmul.f32 %v3179_v37, %v8719_v20  ;;  %v3269_v56 = vmul.f32 %v3268_v26, %v8705_v29  ;;  %v3246_v31 = vand.u32 2147483647, %v8728_v44 }
 0x212   : > { %v3159_v11 = vsub.f32 1.0, %v3158_v53  ;;  %v3190_v30 = vadd.f32 0.014752088, %v3189_v9  ;;  %v3260_v23 = vmul.f32 %v3259_v5, %v8705_v29  ;;  %vm8780_vm10 = vcmp.eq.f32.partialorder %v3166_v33, 8.507059e+37 }
 0x213   : > { %v3239_v13 = vsub.f32 1.0, %v3238_v41  ;;  %v3248_v25 = vand.u32 2147483648, %v8728_v44  ;;  %v3270_v39 = vadd.f32 0.014752088, %v3269_v56  ;;  %vm3163_vm11 = vweird.f32 %v6452_v0 }
 0x214   : > { %v3160_v57 = vmul.f32 %v6452_v0, %v3159_v11  ;;  %v3181_v2 = vadd.f32 0.05243302, %v3180_v42  ;;  %v3191_v37 = vmul.f32 %v3190_v30, %v8719_v20  ;;  %vm3243_vm12 = vweird.f32 %v6454_v51  ;;  %vm3164_vm14 = vmor %vm3162_vm8, %vm3163_vm11 }
 0x215   : > { %v3240_v26 = vmul.f32 %v6454_v51, %v3239_v13  ;;  %v3261_v53 = vadd.f32 0.05243302, %v3260_v23  ;;  %v3271_v9 = vmul.f32 %v3270_v39, %v8705_v29  ;;  %v3169_v5 = vor.u32 1.1754944e-38, %v3168_v7  ;;  %vm3244_vm15 = vmor %vm3242_vm9, %vm3243_vm12 }
 0x216   : > { %v3161_v18 = vadd.f32 %v6452_v0, %v3160_v57  ;;  %vm8787_vm13 = vcmp.eq.f32.partialorder %v3246_v31, 8.507059e+37  ;;  %v3192_v41 = vadd.f32 0.112945676, %v3191_v37  ;;  %v3249_v11 = vor.u32 1.1754944e-38, %v3248_v25  ;;  %v13614_v31 = vld [vmem:[#allocation116_spill] sm:$0xff] }
 0x217   : > { %v3241_v56 = vadd.f32 %v6454_v51, %v3240_v26  ;;  %v3272_v42 = vadd.f32 0.112945676, %v3271_v9  ;;  %v2240_v30 = vmul.f32 %v13455_v46, %v13596_v4  ;;  %v3182_v23 = vmul.f32 %v3181_v2, %v8719_v20 }
 0x218   : > { %v3165_v13 = vsel %vm3164_vm14, %v6452_v0, %v3161_v18  ;;  %v3193_v7 = vmul.f32 %v3192_v41, %v8719_v20  ;;  %v2242_v39 = vmul.f32 %v13455_v46, %v13614_v31  ;;  %v3262_v25 = vmul.f32 %v3261_v53, %v8705_v29  ;;  %v855_v53 = vpop.f32.mrf.mxu1 }
 0x219   : > { %v3170_v47 = vsel %vm8780_vm10, %v3169_v5, %v3165_v13  ;;  %v3245_v57 = vsel %vm3244_vm15, %v6454_v51, %v3241_v56  ;;  %v3273_v37 = vmul.f32 %v3272_v42, %v8705_v29  ;;  %v2176_v0 = vadd.f32 %v2112_v59, %v2046_v34  ;;  %v756_v5 = vpop.f32.mrf.mxu0 }
 0x21a   : > { %v3171_v26 = vmul.f32 %v3170_v47, %v3146_v14  ;;  %v3250_v18 = vsel %vm8787_vm13, %v3249_v11, %v3245_v57  ;;  %v3194_v44 = vadd.f32 0.4994258, %v3193_v7  ;;  %v1613_v2 = vmul.f32 %v7147_v36, %v8502_v19  ;;  %v13616_v7 = vld [vmem:[#allocation115_spill] sm:$0xff] }
 0x21b   : > { %v3251_v9 = vmul.f32 %v3250_v18, %v3226_v8  ;;  %v3274_v41 = vadd.f32 0.4994258, %v3273_v37  ;;  %v2304_v31 = vadd.f32 %v2240_v30, %v2174_v45  ;;  %v3183_v3 = vadd.f32 0.18741608, %v3182_v23 }
 0x21c   : > { %v6157_v46 = vclamps-f32 %v3171_v26, 1.0  ;;  %v3195_v51 = vmul.f32 %v3194_v44, %v8719_v20  ;;  %v2306_v56 = vadd.f32 %v2242_v39, %v2176_v0  ;;  %v8812_v14 = vmul.f32 %v7135_v32, %v8754_v58 }
 0x21d   : > { %v6159_v33 = vclamps-f32 %v3251_v9, 1.0  ;;  %v3263_v11 = vadd.f32 0.18741608, %v3262_v25  ;;  %v3275_v59 = vmul.f32 %v3274_v41, %v8705_v29  ;;  %v2694_v34 = vmul.f32 0.5, %v8565_v12 }
 0x21e   : > { %13615 = vst [vmem:[#allocation69_spill] sm:$0xff] %v8812_v14  ;;  %v5382_v8 = vadd.f32 1.0, %v6157_v46  ;;  %v8816_v42 = vadd.f32 1.0, %v3195_v51  ;;  %v2372_v45 = vmul.f32 %v7379_v55, %v13589_v27  ;;  %v2696_v30 = vmul.f32 0.5, %v8570_v10 }
 0x21f   : > { %v5384_v13 = vadd.f32 1.0, %v6159_v33  ;;  %v8821_v23 = vadd.f32 1.0, %v3275_v59  ;;  %v2434_v58 = vadd.f32 %v13616_v7, %v2304_v31  ;;  %v3184_v47 = vmul.f32 %v3183_v3, %v8719_v20  ;;  %v13617_v20 = vld [vmem:[#allocation120_spill] sm:$0xff] }
 0x220   : > { %v5446_v39 = vmul.f32 %v5382_v8, %v2694_v34  ;;  %6455 = vrcp.f32 %v8816_v42  ;;  %v2436_v57 = vadd.f32 %v2372_v45, %v2306_v56  ;;  %v1742_v46 = vmul.f32 %v13585_v21, %v8743_v38  ;;  %v857_v41 = vpop.f32.mrf.mxu1  ;;  %v13650_v38 = vld [vmem:[#allocation109_spill] sm:$0xff] }
 0x221   : > { %v5448_v12 = vmul.f32 %v5384_v13, %v2696_v30  ;;  %v3264_v25 = vmul.f32 %v3263_v11, %v8705_v29  ;;  %6457 = vrcp.f32 %v8821_v23  ;;  %v1677_v10 = vadd.f32 %v1613_v2, %v8758_v17  ;;  %v758_v9 = vpop.f32.mrf.mxu0 }
 0x222   : > { %v1743_v27 = vmul.f32 %v7230_v22, %v8812_v14  ;;  %v2500_v37 = vmul.f32 %v8540_v49, %v8671_v60  ;;  %v2502_v26 = vmul.f32 %v8540_v49, %v13617_v20  ;;  %v8839_v18 = vmul.f32 %v7252_v50, %v8485_v1 }
 0x223   : > { %v8843_v29 = vmul.f32 %v7379_v55, %v8485_v1  ;;  %v5506_v44 = vpack.c.bf16 %v5448_v12, %v5446_v39  ;;  %v8846_v17 = vadd.f32 %v756_v5, %v7121_v24  ;;  %v8850_v0 = vmul.f32 %v7147_v36, %v8506_v43 }
 0x224   : > { %13618 = vst [vmem:[#allocation94_spill] sm:$0xff] %v8839_v18  ;;  %v3185_v2 = vadd.f32 1.1283791, %v3184_v47  ;;  %v2564_v49 = vadd.f32 %v2500_v37, %v2434_v58  ;;  %v2566_v31 = vadd.f32 %v2502_v26, %v2436_v57  ;;  %v8854_v3 = vmul.f32 %v7255_v52, %v8506_v43 }
 0x225   : > { %13619 = vst [vmem:[#allocation102_spill] sm:$0xff] %v8843_v29  ;;  %v8858_v51 = vmul.f32 %v13564_v63, %v8506_v43  ;;  %5684 = vmatmul.bf16.gmra.mxu2 %v5506_v44  ;;  %v3265_v5 = vadd.f32 1.1283791, %v3264_v25  ;;  %v8861_v56 = vadd.f32 %v758_v9, %v7121_v24  ;;  %v1806_v11 = vadd.f32 %v1742_v46, %v8746_v61  ;;  %v13652_v29 = vld [vmem:[#allocation93_spill] sm:$0xff] }
 0x226   : > { %13620 = vst [vmem:[#allocation106_spill] sm:$0xff] %v8846_v17  ;;  %v6456_v33 = vpop.eup %6455  ;;  %v8866_v59 = vmul.f32 %v7379_v55, %v8496_v62  ;;  %v1807_v34 = vadd.f32 %v1743_v27, %v1677_v10  ;;  %v8869_v8 = vadd.f32 %v855_v53, %v13544_v40  ;;  %v13071_v13 = vrot.slane %v8846_v17, 7 }
 0x227   : > { %13621 = vst [vmem:[#allocation65_spill] sm:$0xff] %v8850_v0  ;;  %v6458_v45 = vpop.eup %6457  ;;  %v3198_v30 = vmul.f32 %v6456_v33, %v8816_v42  ;;  %v13070_v7 = vrot.slane %v8861_v56, 7  ;;  %v8875_v58 = vadd.f32 %v857_v41, %v13544_v40  ;;  %v3186_v61 = vmul.f32 %v3185_v2, %v8694_v15  ;;  %v13649_v0 = vld [vmem:[#allocation139_spill] sm:$0xff] }
 0x228   : > { %13622 = vst [vmem:[#allocation125_spill] sm:$0xff] %v8854_v3  ;;  %v3278_v39 = vmul.f32 %v6458_v45, %v8821_v23  ;;  %v8880_v47 = vadd.f32 %v13555_v28, %v2564_v49  ;;  %v8883_v53 = vadd.f32 %v13555_v28, %v2566_v31  ;;  %v3206_v46 = vand.u32 2147483647, %v8816_v42  ;;  %v13645_v3 = vld [vmem:[#allocation84_spill] sm:$0xff] }
 0x229   : > { %13623 = vst [vmem:[#allocation88_spill] sm:$0xff] %v8858_v51  ;;  %v3199_v57 = vsub.f32 1.0, %v3198_v30  ;;  %v3266_v12 = vmul.f32 %v3265_v5, %v8689_v35  ;;  %v8893_v15 = vsel %vm1132_vm2, %v13071_v13, %v13070_v7  ;;  %v3208_v25 = vand.u32 2147483648, %v8816_v42  ;;  %v13637_v7 = vld [vmem:[#allocation111_spill] sm:$0xff] }
 0x22a   : > { %13624 = vst [vmem:[#allocation113_spill] sm:$0xff] %v8861_v56  ;;  %v3279_v10 = vsub.f32 1.0, %v3278_v39  ;;  %v3288_v27 = vand.u32 2147483648, %v8821_v23  ;;  %v13069_v37 = vrot.slane %v8869_v8, 7  ;;  %vm3203_vm0 = vweird.f32 %v6456_v33 }
 0x22b   : > { %13625 = vst [vmem:[#allocation79_spill] sm:$0xff] %v8866_v59  ;;  %v3200_v26 = vmul.f32 %v6456_v33, %v3199_v57  ;;  %v1872_v35 = vmul.f32 %v7247_v48, %v8893_v15  ;;  %v13068_v44 = vrot.slane %v8875_v58, 7  ;;  %vm3202_vm1 = vweird.f32 %v8816_v42 }
 0x22c   : > { %13626 = vst [vmem:[#allocation58_spill] sm:$0xff] %v8869_v8  ;;  %v3280_v2 = vmul.f32 %v6458_v45, %v3279_v10  ;;  %vm3283_vm4 = vweird.f32 %v6458_v45  ;;  %v3286_v9 = vand.u32 2147483647, %v8821_v23  ;;  %v2002_v31 = vmul.f32 %v7252_v50, %v8861_v56  ;;  %vm3204_vm5 = vmor %vm3202_vm1, %vm3203_vm0 }
 0x22d   : > { %13627 = vst [vmem:[#allocation105_spill] sm:$0xff] %v8875_v58  ;;  %v3201_v41 = vadd.f32 %v6456_v33, %v3200_v26  ;;  %v1936_v49 = vadd.f32 %v1872_v35, %v1806_v11  ;;  %v8911_v5 = vsel %vm1132_vm2, %v13069_v37, %v13068_v44  ;;  %vm3207_vm6 = vcmp.eq.f32.partialorder %v3206_v46, 8.507059e+37 }
 0x22e   : > { %13628 = vst [vmem:[#allocation100_spill] sm:$0xff] %v8893_v15  ;;  %v3209_v42 = vor.u32 1.1754944e-38, %v3208_v25  ;;  %v3281_v30 = vadd.f32 %v6458_v45, %v3280_v2  ;;  %vm3282_vm7 = vweird.f32 %v8821_v23  ;;  %v3289_v11 = vor.u32 1.1754944e-38, %v3288_v27 }
 0x22f   : > { %13629 = vst [vmem:[#allocation116_spill] sm:$0xff] %v8911_v5  ;;  %v3205_v39 = vsel %vm3204_vm5, %v6456_v33, %v3201_v41  ;;  %vm3284_vm8 = vmor %vm3282_vm7, %vm3283_vm4  ;;  %v8914_v57 = vadd.f32 %v2002_v31, %v1936_v49  ;;  %v8917_v10 = vmul.f32 0.70710677, %v8880_v47  ;;  %vm3287_vm9 = vcmp.eq.f32.partialorder %v3286_v9, 8.507059e+37  ;;  %v13633_v33 = vld [vmem:[#allocation48_spill] sm:$0xff]  ;;  %v13634_v49 = vld [vmem:[#allocation62_spill] sm:$0xff] }
 0x230   : > { %v3210_v26 = vsel %vm3207_vm6, %v3209_v42, %v3205_v39  ;;  %v3285_v35 = vsel %vm3284_vm8, %v6458_v45, %v3281_v30  ;;  %v1873_v44 = vmul.f32 %v7276_v6, %v8911_v5  ;;  %v13631_v46 = vrot.slane %v8485_v1, 7  ;;  %v13653_v1 = vld [vmem:[#allocation103_spill] sm:$0xff] }
 0x231   : > { %13630 = vst [vmem:[#allocation115_spill] sm:$0xff] %v8914_v57  ;;  %v13632_v25 = vrot.slane %v8496_v62, 7  ;;  %v2111_v27 = vmul.f32 %v13633_v33, %v8578_v54  ;;  %v3211_v2 = vmul.f32 %v3210_v26, %v3186_v61  ;;  %v3290_v41 = vsel %vm3287_vm9, %v3289_v11, %v3285_v35  ;;  %v13642_v26 = vld [vmem:[#allocation128_spill] sm:$0xff]  ;;  %v13643_v35 = vld [vmem:[#allocation42_spill] sm:$0xff] }
 0x232   : > { %v2697_v31 = vmul.f32 0.5, %v13634_v49  ;;  %v3291_v42 = vmul.f32 %v3290_v41, %v3266_v12  ;;  %v1937_v45 = vadd.f32 %v1873_v44, %v1807_v34  ;;  %v2003_v9 = vmul.f32 %v7255_v52, %v8875_v58  ;;  %v13640_v12 = vld [vmem:[#allocation81_spill] sm:$0xff] }
 0x233   : > { %v1185_v23 = vsel %vm1132_vm2, %v13632_v25, %v13631_v46  ;;  %v6158_v30 = vclamps-f32 %v3211_v2, 1.0  ;;  %v8933_v39 = vmul.f32 0.70710677, %v8883_v53  ;;  %v3294_v37 = vmul.f32 %v8917_v10, %v8917_v10  ;;  %v13635_v46 = vld [vmem:[#allocation112_spill] sm:$0xff] }
 0x234   : > { %v13636_v25 = vrot.slane %v13635_v46, 1  ;;  %v13638_v54 = vrot.slane %v13637_v7, 1  ;;  %v2695_v34 = vmul.f32 0.5, %v13640_v12  ;;  %v6160_v44 = vclamps-f32 %v3291_v42, 1.0  ;;  %v13646_v12 = vld [vmem:[#allocation91_spill] sm:$0xff] }
 0x235   : > { %v8946_v11 = vadd.f32 %v2003_v9, %v1937_v45  ;;  %v1533_v2 = vmul.f32 %v13643_v35, %v13642_v26  ;;  %v5383_v41 = vadd.f32 1.0, %v6158_v30  ;;  %v8950_v49 = vmin.f32 %v3294_v37, 16.0  ;;  %v13647_v45 = vld [vmem:[#allocation108_spill] sm:$0xff] }
 0x236   : > { %v8943_v61 = vsel %vm1355_vm3, %v13638_v54, %v13636_v25  ;;  %v3374_v13 = vmul.f32 %v8933_v39, %v8933_v39  ;;  %v5385_v57 = vadd.f32 1.0, %v6160_v44  ;;  %v13644_v25 = vld [vmem:[#allocation117_spill] sm:$0xff]  ;;  %v1787_v42 = vadd.f32 %v13646_v12, %v13645_v3 }
 0x237   : > { %13639 = vst [vmem:[#allocation120_spill] sm:$0xff] %v8943_v61  ;;  %v1729_v7 = vmul.f32 %v7230_v22, %v8943_v61  ;;  %v1663_v54 = vadd.f32 %v13644_v25, %v1533_v2  ;;  %v1851_v9 = vmul.f32 %v7276_v6, %v13647_v45  ;;  %v3296_v30 = vmul.f32 2.1237322e-06, %v8950_v49  ;;  %v13651_v12 = vld [vmem:[#allocation97_spill] sm:$0xff] }
 0x238   : > { %13641 = vst [vmem:[#allocation62_spill] sm:$0xff] %v8946_v11  ;;  %v5447_v11 = vmul.f32 %v5383_v41, %v2695_v34  ;;  %v3307_v37 = vmul.f32 3.8918573e-05, %v8950_v49  ;;  %v8963_v18 = vmin.f32 %v3374_v13, 16.0  ;;  %v5449_v51 = vmul.f32 %v5385_v57, %v2697_v31  ;;  %v13654_v31 = vld [vmem:[#allocation33_spill] sm:$0xff] }
 0x239   : > { %v8965_v14 = vadd.f32 %v1729_v7, %v1663_v54  ;;  %v1915_v44 = vadd.f32 %v1851_v9, %v13649_v0  ;;  %v1917_v2 = vadd.f32 %v13650_v38, %v1787_v42  ;;  %v3297_v25 = vadd.f32 0.00028619796, %v3296_v30 }
 0x23a   : > { %v3308_v59 = vadd.f32 0.001143296, %v3307_v37  ;;  %v3376_v3 = vmul.f32 2.1237322e-06, %v8963_v18  ;;  %v2113_v34 = vmul.f32 %v13633_v33, %v13651_v12  ;;  %v5507_v41 = vpack.c.bf16 %v5449_v51, %v5447_v11  ;;  %v13656_v51 = vld [vmem:[#allocation73_spill] sm:$0xff]  ;;  %v13687_v33 = vld [vmem:[#allocation126_spill] sm:$0xff] }
 0x23b   : > { %13648 = vst [vmem:[#allocation112_spill] sm:$0xff] %v8965_v14  ;;  %v3387_v45 = vmul.f32 3.8918573e-05, %v8963_v18  ;;  %v2045_v13 = vadd.f32 %v13652_v29, %v1915_v44  ;;  %v2047_v57 = vadd.f32 %v13653_v1, %v1917_v2  ;;  %v8976_v7 = vmul.f32 %v13654_v31, %v1185_v23  ;;  %v13657_v1 = vld [vmem:[#allocation121_spill] sm:$0xff] }
 0x23c   : > { %v3298_v0 = vmul.f32 %v3297_v25, %v8950_v49  ;;  %v3309_v38 = vmul.f32 %v3308_v59, %v8950_v49  ;;  %v3377_v54 = vadd.f32 0.00028619796, %v3376_v3  ;;  %5773 = vmatmul.bf16.gmra.mxu3 %v5507_v41  ;;  %v2241_v11 = vmul.f32 %v13656_v51, %v13642_v26 }
 0x23d   : > { %13655 = vst [vmem:[#allocation111_spill] sm:$0xff] %v8976_v7  ;;  %v3388_v42 = vadd.f32 0.001143296, %v3387_v45  ;;  %v2175_v9 = vadd.f32 %v2111_v27, %v2045_v13  ;;  %v2177_v30 = vadd.f32 %v2113_v34, %v2047_v57  ;;  %v2243_v23 = vmul.f32 %v13656_v51, %v13657_v1  ;;  %v13678_v7 = vld [vmem:[#allocation37_spill] sm:$0xff] }
 0x23e   : > { %v3299_v37 = vadd.f32 0.0036580483, %v3298_v0  ;;  %v3310_v62 = vadd.f32 0.014752088, %v3309_v38  ;;  %v3378_v29 = vmul.f32 %v3377_v54, %v8963_v18  ;;  %v13658_v44 = vrot.slane %v8506_v43, 7  ;;  %v13660_v0 = vld [vmem:[#allocation119_spill] sm:$0xff] }
 0x23f   : > { %v13659_v2 = vrot.slane %v8502_v19, 7  ;;  %v3389_v27 = vmul.f32 %v3388_v42, %v8963_v18  ;;  %v2305_v25 = vadd.f32 %v2241_v11, %v2175_v9  ;;  %v2373_v3 = vmul.f32 %v13564_v63, %v13635_v46  ;;  %v13661_v54 = vld [vmem:[#allocation82_spill] sm:$0xff]  ;;  %v13662_v43 = vld [vmem:[#allocation123_spill] sm:$0xff] }
 0x240   : > { %v3300_v34 = vmul.f32 %v3299_v37, %v8950_v49  ;;  %v3311_v41 = vmul.f32 %v3310_v62, %v8950_v49  ;;  %v3379_v45 = vadd.f32 0.0036580483, %v3378_v29  ;;  %v2307_v13 = vadd.f32 %v2243_v23, %v2177_v30  ;;  %v13664_v29 = vld [vmem:[#allocation134_spill] sm:$0xff] }
 0x241   : > { %v1186_v59 = vsel %vm1132_vm2, %v13659_v2, %v13658_v44  ;;  %v3390_v57 = vadd.f32 0.014752088, %v3389_v27  ;;  %v2435_v38 = vadd.f32 %v13660_v0, %v2305_v25  ;;  %v2501_v1 = vmul.f32 %v13661_v54, %v8943_v61  ;;  %v13666_v2 = vld [vmem:[#allocation124_spill] sm:$0xff] }
 0x242   : > { %v2503_v44 = vmul.f32 %v13661_v54, %v13662_v43  ;;  %v3301_v42 = vadd.f32 0.05243302, %v3300_v34  ;;  %v3312_v9 = vadd.f32 0.112945676, %v3311_v41  ;;  %v3380_v11 = vmul.f32 %v3379_v45, %v8963_v18 }
 0x243   : > { %v2437_v46 = vadd.f32 %v2373_v3, %v2307_v13  ;;  %v9003_v37 = vmul.f32 %v13654_v31, %v1186_v59  ;;  %v3391_v62 = vmul.f32 %v3390_v57, %v8963_v18  ;;  %v2565_v30 = vadd.f32 %v2501_v1, %v2435_v38  ;;  %v13668_v59 = vld [vmem:[#allocation86_spill] sm:$0xff]  ;;  %v13670_v57 = vld [vmem:[#allocation61_spill] sm:$0xff]  ;;  %v13671_v38 = vld [vmem:[#allocation36_spill] sm:$0xff] }
 0x244   : > { %v13665_v23 = vrot.slane %v13664_v29, 1  ;;  %v13667_v27 = vrot.slane %v13666_v2, 1  ;;  %v3302_v34 = vmul.f32 %v3301_v42, %v8950_v49  ;;  %v3313_v41 = vmul.f32 %v3312_v9, %v8950_v49 }
 0x245   : > { %13663 = vst [vmem:[#allocation81_spill] sm:$0xff] %v9003_v37  ;;  %v3381_v45 = vadd.f32 0.05243302, %v3380_v11  ;;  %v2567_v3 = vadd.f32 %v2503_v44, %v2437_v46  ;;  %v3392_v13 = vadd.f32 0.112945676, %v3391_v62  ;;  %v9017_v0 = vadd.f32 %v13668_v59, %v2565_v30  ;;  %v13673_v46 = vld [vmem:[#allocation131_spill] sm:$0xff] }
 0x246   : > { %v9012_v25 = vsel %vm1355_vm3, %v13667_v27, %v13665_v23  ;;  %v1536_v54 = vmul.f32 %v13671_v38, %v13670_v57  ;;  %v1854_v1 = vmul.f32 %v7247_v48, %v13596_v4  ;;  %v3314_v29 = vadd.f32 0.4994258, %v3313_v41 }
 0x247   : > { %13669 = vst [vmem:[#allocation42_spill] sm:$0xff] %v9017_v0  ;;  %v3382_v23 = vmul.f32 %v3381_v45, %v8963_v18  ;;  %v9025_v2 = vadd.f32 %v13668_v59, %v2567_v3  ;;  %v1732_v42 = vmul.f32 %v13585_v21, %v9012_v25  ;;  %v3303_v44 = vadd.f32 0.18741608, %v3302_v34 }
 0x248   : > { %v3393_v9 = vmul.f32 %v3392_v13, %v8963_v18  ;;  %v9031_v11 = vmul.f32 0.70710677, %v9017_v0  ;;  %v1666_v62 = vadd.f32 %v13673_v46, %v1536_v54  ;;  %v9036_v4 = vmul.f32 %v13564_v63, %v8502_v19 }
 0x249   : > { %13672 = vst [vmem:[#allocation117_spill] sm:$0xff] %v9025_v2  ;;  %v9040_v30 = vmul.f32 %v7230_v22, %v13651_v12  ;;  %v3315_v41 = vmul.f32 %v3314_v29, %v8950_v49  ;;  %v9045_v45 = vmul.f32 0.70710677, %v9025_v2  ;;  %v13082_v54 = vrot.slane %v8846_v17, 1  ;;  %v13677_v12 = vld [vmem:[#allocation72_spill] sm:$0xff] }
 0x24a   : > { %13674 = vst [vmem:[#allocation84_spill] sm:$0xff] %v9036_v4  ;;  %v3394_v34 = vadd.f32 0.4994258, %v3393_v9  ;;  %v3334_v3 = vmul.f32 %v9031_v11, %v9031_v11  ;;  %v9049_v13 = vadd.f32 %v1732_v42, %v1666_v62  ;;  %v3383_v4 = vadd.f32 0.18741608, %v3382_v23  ;;  %v13681_v23 = vld [vmem:[#allocation46_spill] sm:$0xff] }
 0x24b   : > { %13675 = vst [vmem:[#allocation91_spill] sm:$0xff] %v9040_v30  ;;  %v9052_v46 = vadd.f32 1.0, %v3315_v41  ;;  %v1918_v37 = vadd.f32 %v1854_v1, %v13677_v12  ;;  %v3304_v27 = vmul.f32 %v3303_v44, %v8950_v49  ;;  %v3414_v19 = vmul.f32 %v9045_v45, %v9045_v45 }
 0x24c   : > { %13676 = vst [vmem:[#allocation108_spill] sm:$0xff] %v9049_v13  ;;  %v3395_v29 = vmul.f32 %v3394_v34, %v8963_v18  ;;  %v9057_v9 = vmin.f32 %v3334_v3, 16.0  ;;  %v9063_v42 = vmul.f32 %v13678_v7, %v8846_v17  ;;  %v9067_v62 = vmul.f32 %v7252_v50, %v8846_v17 }
 0x24d   : > { %v9071_v1 = vmul.f32 %v13681_v23, %v8671_v60  ;;  %6459 = vrcp.f32 %v9052_v46  ;;  %v13682_v44 = vrot.slane %v8861_v56, 1  ;;  %v3384_v12 = vmul.f32 %v3383_v4, %v8963_v18 }
 0x24e   : > { %13679 = vst [vmem:[#allocation139_spill] sm:$0xff] %v9063_v42  ;;  %v9081_v34 = vadd.f32 1.0, %v3395_v29  ;;  %v3336_v3 = vmul.f32 2.1237322e-06, %v9057_v9  ;;  %v3347_v60 = vmul.f32 3.8918573e-05, %v9057_v9  ;;  %vm3322_vm10 = vweird.f32 %v9052_v46 }
 0x24f   : > { %13680 = vst [vmem:[#allocation109_spill] sm:$0xff] %v9067_v62  ;;  %v1410_v41 = vsel %vm1355_vm3, %v13682_v44, %v13082_v54  ;;  %v9086_v62 = vmin.f32 %v3414_v19, 16.0  ;;  %v13683_v42 = vld [vmem:[#allocation114_spill] sm:$0xff]  ;;  %v9092_v49 = vmul.f32 0.5, %v8880_v47  ;;  %v9095_v14 = vmul.f32 0.5, %v8883_v53  ;;  %v13684_v54 = vld [vmem:[#allocation107_spill] sm:$0xff] }
 0x250   : > { %v9089_v13 = vadd.f32 %v13683_v42, %v1918_v37  ;;  %v3305_v44 = vadd.f32 1.1283791, %v3304_v27  ;;  %6461 = vrcp.f32 %v9081_v34  ;;  %v3326_v29 = vand.u32 2147483647, %v9052_v46  ;;  %v13685_v19 = vld [vmem:[#allocation92_spill] sm:$0xff] }
 0x251   : > { %v3328_v18 = vand.u32 2147483648, %v9052_v46  ;;  %v3337_v4 = vadd.f32 0.00028619796, %v3336_v3  ;;  %v1790_v59 = vadd.f32 %v13685_v19, %v13684_v54  ;;  %v9103_v37 = vmul.f32 %v7135_v32, %v1410_v41 }
 0x252   : > { %v3348_v42 = vadd.f32 0.001143296, %v3347_v60  ;;  %v3416_v47 = vmul.f32 2.1237322e-06, %v9086_v62  ;;  %v3427_v53 = vmul.f32 3.8918573e-05, %v9086_v62  ;;  %v3306_v3 = vmul.f32 %v3305_v44, %v8917_v10 }
 0x253   : > { %13686 = vst [vmem:[#allocation97_spill] sm:$0xff] %v9103_v37  ;;  %v6460_v51 = vpop.eup %6459  ;;  %v3385_v43 = vadd.f32 1.1283791, %v3384_v12  ;;  %v3338_v26 = vmul.f32 %v3337_v4, %v9057_v9  ;;  %v1920_v61 = vadd.f32 %v13687_v33, %v1790_v59  ;;  %vm9114_vm11 = vcmp.eq.f32.partialorder %v3326_v29, 8.507059e+37 }
 0x254   : > { %v3318_v54 = vmul.f32 %v6460_v51, %v9052_v46  ;;  %v3349_v41 = vmul.f32 %v3348_v42, %v9057_v9  ;;  %v3417_v19 = vadd.f32 0.00028619796, %v3416_v47  ;;  %v3428_v27 = vadd.f32 0.001143296, %v3427_v53 }
 0x255   : > { %v3339_v30 = vadd.f32 0.0036580483, %v3338_v26  ;;  %v3329_v4 = vor.u32 1.1754944e-38, %v3328_v18  ;;  %v3386_v10 = vmul.f32 %v3385_v43, %v8933_v39  ;;  %vm3323_vm12 = vweird.f32 %v6460_v51 }
 0x256   : > { %v6462_v12 = vpop.eup %6461  ;;  %v3319_v2 = vsub.f32 1.0, %v3318_v54  ;;  %v3350_v0 = vadd.f32 0.014752088, %v3349_v41  ;;  %v3418_v33 = vmul.f32 %v3417_v19, %v9086_v62  ;;  %v3429_v42 = vmul.f32 %v3428_v27, %v9086_v62  ;;  %vm3324_vm14 = vmor %vm3322_vm10, %vm3323_vm12 }
 0x257   : > { %v3398_v59 = vmul.f32 %v6462_v12, %v9081_v34  ;;  %v3340_v44 = vmul.f32 %v3339_v30, %v9057_v9  ;;  %vm3402_vm13 = vweird.f32 %v9081_v34  ;;  %v3406_v19 = vand.u32 2147483647, %v9081_v34 }
 0x258   : > { %v3320_v29 = vmul.f32 %v6460_v51, %v3319_v2  ;;  %v3351_v47 = vmul.f32 %v3350_v0, %v9057_v9  ;;  %v3419_v26 = vadd.f32 0.0036580483, %v3418_v33  ;;  %v3430_v54 = vadd.f32 0.014752088, %v3429_v42  ;;  %v13690_v0 = vld [vmem:[#allocation122_spill] sm:$0xff] }
 0x259   : > { %v3399_v53 = vsub.f32 1.0, %v3398_v59  ;;  %v3341_v18 = vadd.f32 0.05243302, %v3340_v44  ;;  %v3408_v43 = vand.u32 2147483648, %v9081_v34  ;;  %vm3403_vm15 = vweird.f32 %v6462_v12 }
 0x25a   : > { %v3321_v41 = vadd.f32 %v6460_v51, %v3320_v29  ;;  %v3352_v39 = vadd.f32 0.112945676, %v3351_v47  ;;  %v3431_v2 = vmul.f32 %v3430_v54, %v9086_v62  ;;  %v2050_v27 = vadd.f32 %v13690_v0, %v1920_v61  ;;  %vm3404_vm0 = vmor %vm3402_vm13, %vm3403_vm15 }
 0x25b   : > { %v3400_v30 = vmul.f32 %v6462_v12, %v3399_v53  ;;  %v3420_v44 = vmul.f32 %v3419_v26, %v9086_v62  ;;  %v2116_v42 = vmul.f32 %v13681_v23, %v13617_v20  ;;  %v3342_v46 = vmul.f32 %v3341_v18, %v9057_v9 }
 0x25c   : > { %v3325_v33 = vsel %vm3324_vm14, %v6460_v51, %v3321_v41  ;;  %v3353_v59 = vmul.f32 %v3352_v39, %v9057_v9  ;;  %v3432_v53 = vadd.f32 0.112945676, %v3431_v2  ;;  %vm3407_vm1 = vcmp.eq.f32.partialorder %v3406_v19, 8.507059e+37  ;;  %v13691_v41 = vld [vmem:[#allocation52_spill] sm:$0xff]  ;;  %v13692_v39 = vld [vmem:[#allocation141_spill] sm:$0xff] }
 0x25d   : > { %v3330_v29 = vsel %vm9114_vm11, %v3329_v4, %v3325_v33  ;;  %v3401_v47 = vadd.f32 %v6462_v12, %v3400_v30  ;;  %v3409_v61 = vor.u32 1.1754944e-38, %v3408_v43  ;;  %v2244_v20 = vmul.f32 %v13691_v41, %v13670_v57  ;;  %v761_v33 = vpop.f32.mrf.mxu0 }
 0x25e   : > { %v3331_v31 = vmul.f32 %v3330_v29, %v3306_v3  ;;  %v3354_v51 = vadd.f32 0.4994258, %v3353_v59  ;;  %v3433_v26 = vmul.f32 %v3432_v53, %v9086_v62  ;;  %v2246_v60 = vmul.f32 %v13691_v41, %v13692_v39  ;;  %v860_v59 = vpop.f32.mrf.mxu1 }
 0x25f   : > { %v3405_v54 = vsel %vm3404_vm0, %v6462_v12, %v3401_v47  ;;  %v3421_v3 = vadd.f32 0.05243302, %v3420_v44  ;;  %v1550_v34 = vmul.f32 %v13671_v38, %v8893_v15  ;;  %v3343_v43 = vadd.f32 0.18741608, %v3342_v46 }
 0x260   : > { %v6161_v4 = vclamps-f32 %v3331_v31, 1.0  ;;  %v3410_v30 = vsel %vm3407_vm1, %v3409_v61, %v3405_v54  ;;  %v3355_v18 = vmul.f32 %v3354_v51, %v9057_v9  ;;  %v3434_v2 = vadd.f32 0.4994258, %v3433_v26 }
 0x261   : > { %v3411_v19 = vmul.f32 %v3410_v30, %v3386_v10  ;;  %v2178_v29 = vadd.f32 %v9071_v1, %v9089_v13  ;;  %v2180_v47 = vadd.f32 %v2116_v42, %v2050_v27  ;;  %v1616_v31 = vmul.f32 %v13678_v7, %v8861_v56 }
 0x262   : > { %v5386_v12 = vadd.f32 1.0, %v6161_v4  ;;  %v9148_v0 = vadd.f32 1.0, %v3355_v18  ;;  %v13693_v44 = vrot.slane %v8869_v8, 1  ;;  %v13694_v53 = vrot.slane %v8875_v58, 1 }
 0x263   : > { %v6163_v46 = vclamps-f32 %v3411_v19, 1.0  ;;  %v3435_v61 = vmul.f32 %v3434_v2, %v9086_v62  ;;  %v3422_v51 = vmul.f32 %v3421_v3, %v9086_v62  ;;  %v2308_v54 = vadd.f32 %v2244_v20, %v2178_v29  ;;  %v13700_v19 = vld [vmem:[#allocation133_spill] sm:$0xff] }
 0x264   : > { %v1411_v10 = vsel %vm1355_vm3, %v13694_v53, %v13693_v44  ;;  %6463 = vrcp.f32 %v9148_v0  ;;  %v2310_v13 = vadd.f32 %v2246_v60, %v2180_v47  ;;  %v5450_v27 = vmul.f32 %v5386_v12, %v9092_v49  ;;  %v13701_v47 = vld [vmem:[#allocation140_spill] sm:$0xff] }
 0x265   : > { %v5388_v1 = vadd.f32 1.0, %v6163_v46  ;;  %v3344_v42 = vmul.f32 %v3343_v43, %v9057_v9  ;;  %v9165_v26 = vadd.f32 1.0, %v3435_v61  ;;  %v9169_v39 = vmul.f32 %v7379_v55, %v8846_v17 }
 0x266   : > { %v9173_v4 = vmul.f32 %v7147_v36, %v8869_v8  ;;  %v1680_v30 = vadd.f32 %v1616_v31, %v1550_v34  ;;  %v1746_v20 = vmul.f32 %v13585_v21, %v9103_v37  ;;  %v9178_v60 = vmul.f32 %v7135_v32, %v1411_v10 }
 0x267   : > { %13695 = vst [vmem:[#allocation93_spill] sm:$0xff] %v9169_v39  ;;  %v1551_v9 = vmul.f32 %v13643_v35, %v8911_v5  ;;  %v5452_v49 = vmul.f32 %v5388_v1, %v9095_v14  ;;  %6465 = vrcp.f32 %v9165_v26  ;;  %v9186_v18 = vmul.f32 %v7255_v52, %v8869_v8 }
 0x268   : > { %13696 = vst [vmem:[#allocation103_spill] sm:$0xff] %v9173_v4  ;;  %v9190_v3 = vmul.f32 %v13564_v63, %v8869_v8  ;;  %v3423_v34 = vadd.f32 0.18741608, %v3422_v51  ;;  %v2438_v43 = vadd.f32 %v13700_v19, %v2308_v54  ;;  %v1617_v2 = vmul.f32 %v7147_v36, %v8875_v58  ;;  %v763_v51 = vpop.f32.mrf.mxu0  ;;  %v9207_v54 = vld [vmem:[#allocation11 + $0x10] ss:$0 sm:$0xff]  ;;  %v13705_v19 = vld [vmem:[#allocation142_spill] sm:$0xff] }
 0x269   : > { %13697 = vst [vmem:[#allocation121_spill] sm:$0xff] %v9178_v60  ;;  %v5508_v12 = vpack.c.bf16 %v5452_v49, %v5450_v27  ;;  %v3345_v29 = vadd.f32 1.1283791, %v3344_v42  ;;  %v2440_v14 = vadd.f32 %v13701_v47, %v2310_v13  ;;  %v13702_v44 = vrot.slane %v8846_v17, 7  ;;  %v862_v49 = vpop.f32.mrf.mxu1  ;;  %v13727_v4 = vld [vmem:[#allocation48_spill] sm:$0xff] }
 0x26a   : > { %13698 = vst [vmem:[#allocation119_spill] sm:$0xff] %v9186_v18  ;;  %v6464_v31 = vpop.eup %6463  ;;  %v13703_v53 = vrot.slane %v8861_v56, 7  ;;  %v1810_v46 = vadd.f32 %v1746_v20, %v1680_v30  ;;  %v9205_v61 = vadd.f32 %v761_v33, %v7121_v24  ;;  %v2504_v1 = vmul.f32 %v9207_v54, %v9012_v25 }
 0x26b   : > { %13699 = vst [vmem:[#allocation82_spill] sm:$0xff] %v9190_v3  ;;  %v1681_v13 = vadd.f32 %v1617_v2, %v1551_v9  ;;  %v1747_v27 = vmul.f32 %v7230_v22, %v9178_v60  ;;  %5689 = vmatmul.bf16.gmra.mxu2 %v5508_v12  ;;  %v3358_v42 = vmul.f32 %v6464_v31, %v9148_v0  ;;  %v3368_v33 = vand.u32 2147483648, %v9148_v0 }
 0x26c   : > { %v9202_v10 = vsel %vm1132_vm2, %v13703_v53, %v13702_v44  ;;  %13704 = vst [vmem:[#allocation134_spill] sm:$0xff] %v9205_v61  ;;  %v2506_v30 = vmul.f32 %v9207_v54, %v13705_v19  ;;  %v3424_v20 = vmul.f32 %v3423_v34, %v9086_v62  ;;  %v9219_v47 = vadd.f32 %v763_v51, %v7121_v24 }
 0x26d   : > { %v2568_v44 = vadd.f32 %v2504_v1, %v2438_v43  ;;  %v6466_v53 = vpop.eup %6465  ;;  %v3346_v9 = vmul.f32 %v3345_v29, %v9031_v11  ;;  %v3359_v2 = vsub.f32 1.0, %v3358_v42  ;;  %v9223_v12 = vadd.f32 %v860_v59, %v13544_v40 }
 0x26e   : > { %13706 = vst [vmem:[#allocation124_spill] sm:$0xff] %v9219_v47  ;;  %v2570_v18 = vadd.f32 %v2506_v30, %v2440_v14  ;;  %v3438_v3 = vmul.f32 %v6466_v53, %v9165_v26  ;;  %v13095_v60 = vrot.slane %v9205_v61, 7  ;;  %v13094_v5 = vrot.slane %v9219_v47, 7 }
 0x26f   : > { %13707 = vst [vmem:[#allocation61_spill] sm:$0xff] %v9223_v12  ;;  %v9229_v62 = vadd.f32 %v862_v49, %v13544_v40  ;;  %v3360_v34 = vmul.f32 %v6464_v31, %v3359_v2  ;;  %vm3362_vm4 = vweird.f32 %v9148_v0  ;;  %vm3363_vm5 = vweird.f32 %v6464_v31 }
 0x270   : > { %v3366_v11 = vand.u32 2147483647, %v9148_v0  ;;  %v3369_v43 = vor.u32 1.1754944e-38, %v3368_v33  ;;  %v3425_v29 = vadd.f32 1.1283791, %v3424_v20  ;;  %v3439_v59 = vsub.f32 1.0, %v3438_v3  ;;  %vm3364_vm6 = vmor %vm3362_vm4, %vm3363_vm5 }
 0x271   : > { %13708 = vst [vmem:[#allocation131_spill] sm:$0xff] %v9229_v62  ;;  %v9239_v14 = vsel %vm1132_vm2, %v13095_v60, %v13094_v5  ;;  %v3361_v51 = vadd.f32 %v6464_v31, %v3360_v34  ;;  %v3446_v1 = vand.u32 2147483647, %v9165_v26  ;;  %v3448_v42 = vand.u32 2147483648, %v9165_v26 }
 0x272   : > { %13709 = vst [vmem:[#allocation72_spill] sm:$0xff] %v9239_v14  ;;  %v13097_v49 = vrot.slane %v9223_v12, 7  ;;  %v3440_v0 = vmul.f32 %v6466_v53, %v3439_v59  ;;  %vm3443_vm7 = vweird.f32 %v6466_v53  ;;  %v1876_v3 = vmul.f32 %v7247_v48, %v9239_v14 }
 0x273   : > { %v13096_v30 = vrot.slane %v9229_v62, 7  ;;  %v3365_v33 = vsel %vm3364_vm6, %v6464_v31, %v3361_v51  ;;  %vm3367_vm8 = vcmp.eq.f32.partialorder %v3366_v11, 8.507059e+37  ;;  %vm3442_vm9 = vweird.f32 %v9165_v26 }
 0x274   : > { %v2006_v20 = vmul.f32 %v7252_v50, %v9219_v47  ;;  %v3370_v2 = vsel %vm3367_vm8, %v3369_v43, %v3365_v33  ;;  %v3441_v34 = vadd.f32 %v6466_v53, %v3440_v0  ;;  %v1940_v5 = vadd.f32 %v1876_v3, %v1810_v46  ;;  %vm3444_vm10 = vmor %vm3442_vm9, %vm3443_vm7 }
 0x275   : > { %v9256_v59 = vsel %vm1132_vm2, %v13097_v49, %v13096_v30  ;;  %v3371_v60 = vmul.f32 %v3370_v2, %v3346_v9  ;;  %v3426_v31 = vmul.f32 %v3425_v29, %v9045_v45  ;;  %v3449_v11 = vor.u32 1.1754944e-38, %v3448_v42  ;;  %v13712_v45 = vld [vmem:[#allocation33_spill] sm:$0xff]  ;;  %v13714_v42 = vld [vmem:[#allocation42_spill] sm:$0xff]  ;;  %v13725_v30 = vld [vmem:[#allocation91_spill] sm:$0xff] }
 0x276   : > { %13710 = vst [vmem:[#allocation114_spill] sm:$0xff] %v9256_v59  ;;  %v9260_v26 = vadd.f32 %v13555_v28, %v2568_v44  ;;  %v3445_v51 = vsel %vm3444_vm10, %v6466_v53, %v3441_v34  ;;  %vm3447_vm11 = vcmp.eq.f32.partialorder %v3446_v1, 8.507059e+37  ;;  %v9262_v43 = vadd.f32 %v2006_v20, %v1940_v5  ;;  %v13715_v53 = vld [vmem:[#allocation138_spill] sm:$0xff]  ;;  %v13717_v5 = vld [vmem:[#allocation129_spill] sm:$0xff] }
 0x277   : > { %v9265_v46 = vadd.f32 %v13555_v28, %v2570_v18  ;;  %v1811_v0 = vadd.f32 %v1747_v27, %v1681_v13  ;;  %v6162_v3 = vclamps-f32 %v3371_v60, 1.0  ;;  %v3450_v33 = vsel %vm3447_vm11, %v3449_v11, %v3445_v51 }
 0x278   : > { %13711 = vst [vmem:[#allocation107_spill] sm:$0xff] %v9262_v43  ;;  %v1877_v9 = vmul.f32 %v7276_v6, %v9256_v59  ;;  %v9271_v29 = vmul.f32 %v13712_v45, %v9202_v10  ;;  %v2699_v44 = vmul.f32 0.5, %v13714_v42  ;;  %v3451_v2 = vmul.f32 %v3450_v33, %v3426_v31  ;;  %v13720_v10 = vld [vmem:[#allocation117_spill] sm:$0xff]  ;;  %v13721_v33 = vld [vmem:[#allocation148_spill] sm:$0xff] }
 0x279   : > { %v13716_v1 = vrot.slane %v13715_v53, 1  ;;  %v13718_v20 = vrot.slane %v13717_v5, 1  ;;  %v5387_v60 = vadd.f32 1.0, %v6162_v3  ;;  %v2007_v27 = vmul.f32 %v7255_v52, %v9229_v62  ;;  %v13726_v43 = vld [vmem:[#allocation120_spill] sm:$0xff] }
 0x27a   : > { %13713 = vst [vmem:[#allocation92_spill] sm:$0xff] %v9271_v29  ;;  %v1941_v13 = vadd.f32 %v1877_v9, %v1811_v0  ;;  %v9285_v34 = vmul.f32 0.70710677, %v9260_v26  ;;  %v2701_v11 = vmul.f32 0.5, %v13720_v10  ;;  %v6164_v51 = vclamps-f32 %v3451_v2, 1.0  ;;  %v13723_v2 = vld [vmem:[#allocation135_spill] sm:$0xff] }
 0x27b   : > { %v9280_v18 = vsel %vm1355_vm3, %v13718_v20, %v13716_v1  ;;  %v9289_v31 = vmul.f32 0.70710677, %v9265_v46  ;;  %v1537_v42 = vmul.f32 %v13643_v35, %v13721_v33  ;;  %v5451_v53 = vmul.f32 %v5387_v60, %v2699_v44  ;;  %v13724_v10 = vld [vmem:[#allocation110_spill] sm:$0xff]  ;;  %v13733_v29 = vld [vmem:[#allocation73_spill] sm:$0xff] }
 0x27c   : > { %13719 = vst [vmem:[#allocation126_spill] sm:$0xff] %v9280_v18  ;;  %v9293_v1 = vadd.f32 %v2007_v27, %v1941_v13  ;;  %v3454_v0 = vmul.f32 %v9285_v34, %v9285_v34  ;;  %v1733_v3 = vmul.f32 %v7230_v22, %v9280_v18  ;;  %v5389_v9 = vadd.f32 1.0, %v6164_v51  ;;  %v13728_v13 = vld [vmem:[#allocation128_spill] sm:$0xff] }
 0x27d   : > { %v3534_v5 = vmul.f32 %v9289_v31, %v9289_v31  ;;  %v1667_v20 = vadd.f32 %v13723_v2, %v1537_v42  ;;  %v1791_v49 = vadd.f32 %v13725_v30, %v13724_v10  ;;  %v2115_v44 = vmul.f32 %v13727_v4, %v13726_v43  ;;  %v13731_v42 = vld [vmem:[#allocation130_spill] sm:$0xff] }
 0x27e   : > { %13722 = vst [vmem:[#allocation122_spill] sm:$0xff] %v9293_v1  ;;  %v9306_v60 = vmin.f32 %v3454_v0, 16.0  ;;  %v1855_v27 = vmul.f32 %v7276_v6, %v13728_v13  ;;  %v13729_v1 = vld [vmem:[#allocation123_spill] sm:$0xff]  ;;  %v5453_v51 = vmul.f32 %v5389_v9, %v2701_v11  ;;  %v13732_v43 = vld [vmem:[#allocation50_spill] sm:$0xff]  ;;  %v2245_v17 = vmul.f32 %v13733_v29, %v13721_v33 }
 0x27f   : > { %v2117_v37 = vmul.f32 %v13727_v4, %v13729_v1  ;;  %v9312_v39 = vmin.f32 %v3534_v5, 16.0  ;;  %v9314_v15 = vadd.f32 %v1733_v3, %v1667_v20  ;;  %v1921_v2 = vadd.f32 %v13731_v42, %v1791_v49  ;;  %v13734_v1 = vld [vmem:[#allocation127_spill] sm:$0xff]  ;;  %v13735_v20 = vld [vmem:[#allocation118_spill] sm:$0xff] }
 0x280   : > { %v3456_v30 = vmul.f32 2.1237322e-06, %v9306_v60  ;;  %v3467_v10 = vmul.f32 3.8918573e-05, %v9306_v60  ;;  %v1919_v0 = vadd.f32 %v1855_v27, %v13732_v43  ;;  %v5509_v13 = vpack.c.bf16 %v5453_v51, %v5451_v53  ;;  %v13736_v42 = vld [vmem:[#allocation143_spill] sm:$0xff] }
 0x281   : > { %13730 = vst [vmem:[#allocation141_spill] sm:$0xff] %v9314_v15  ;;  %v3536_v6 = vmul.f32 2.1237322e-06, %v9312_v39  ;;  %v3547_v11 = vmul.f32 3.8918573e-05, %v9312_v39  ;;  %v2051_v9 = vadd.f32 %v13734_v1, %v1921_v2  ;;  %v2247_v15 = vmul.f32 %v13733_v29, %v13736_v42 }
 0x282   : > { %v3457_v3 = vadd.f32 0.00028619796, %v3456_v30  ;;  %v3468_v5 = vadd.f32 0.001143296, %v3467_v10  ;;  %v2049_v49 = vadd.f32 %v13735_v20, %v1919_v0  ;;  %v9330_v27 = vmul.f32 %v7379_v55, %v8861_v56  ;;  %5778 = vmatmul.bf16.gmra.mxu3 %v5509_v13  ;;  %v9344_v42 = vld [vmem:[#allocation11 + $0x18] ss:$0 sm:$0xff] }
 0x283   : > { %v3537_v43 = vadd.f32 0.00028619796, %v3536_v6  ;;  %v3548_v53 = vadd.f32 0.001143296, %v3547_v11  ;;  %v2181_v51 = vadd.f32 %v2117_v37, %v2051_v9  ;;  %v13738_v4 = vrot.slane %v8869_v8, 7  ;;  %13740 = vst [vmem:[#allocation140_spill] sm:$0xff] %v9344_v42 }
 0x284   : > { %13737 = vst [vmem:[#allocation133_spill] sm:$0xff] %v9330_v27  ;;  %v13739_v33 = vrot.slane %v8875_v58, 7  ;;  %v3458_v30 = vmul.f32 %v3457_v3, %v9306_v60  ;;  %v3469_v10 = vmul.f32 %v3468_v5, %v9306_v60  ;;  %v2179_v0 = vadd.f32 %v2115_v44, %v2049_v49  ;;  %v13741_v8 = vld [vmem:[#allocation144_spill] sm:$0xff]  ;;  %v13742_v5 = vld [vmem:[#allocation63_spill] sm:$0xff]  ;;  %v13743_v49 = vld [vmem:[#allocation74_spill] sm:$0xff] }
 0x285   : > { %v3538_v1 = vmul.f32 %v3537_v43, %v9312_v39  ;;  %v3549_v20 = vmul.f32 %v3548_v53, %v9312_v39  ;;  %v2311_v13 = vadd.f32 %v2247_v15, %v2181_v51  ;;  %v1858_v6 = vmul.f32 %v7247_v48, %v13670_v57  ;;  %v13744_v51 = vld [vmem:[#allocation137_spill] sm:$0xff]  ;;  %v13747_v27 = vld [vmem:[#allocation71_spill] sm:$0xff] }
 0x286   : > { %v1188_v2 = vsel %vm1132_vm2, %v13739_v33, %v13738_v4  ;;  %v3459_v37 = vadd.f32 0.0036580483, %v3458_v30  ;;  %v3470_v11 = vadd.f32 0.014752088, %v3469_v10  ;;  %v2309_v9 = vadd.f32 %v2245_v17, %v2179_v0 }
 0x287   : > { %v2507_v4 = vmul.f32 %v9344_v42, %v13741_v8  ;;  %v3539_v33 = vadd.f32 0.0036580483, %v3538_v1  ;;  %v3550_v3 = vadd.f32 0.014752088, %v3549_v20  ;;  %v2441_v44 = vadd.f32 %v13742_v5, %v2311_v13  ;;  %v13745_v1 = vld [vmem:[#allocation51_spill] sm:$0xff] }
 0x288   : > { %v1922_v43 = vadd.f32 %v1858_v6, %v13743_v49  ;;  %v3460_v53 = vmul.f32 %v3459_v37, %v9306_v60  ;;  %v3471_v15 = vmul.f32 %v3470_v11, %v9306_v60  ;;  %v2439_v57 = vadd.f32 %v13744_v51, %v2309_v9  ;;  %v13749_v9 = vld [vmem:[#allocation132_spill] sm:$0xff] }
 0x289   : > { %v2505_v17 = vmul.f32 %v9344_v42, %v9280_v18  ;;  %v3540_v30 = vmul.f32 %v3539_v33, %v9312_v39  ;;  %v3551_v10 = vmul.f32 %v3550_v3, %v9312_v39  ;;  %v2571_v0 = vadd.f32 %v2507_v4, %v2441_v44  ;;  %v13750_v42 = vld [vmem:[#allocation86_spill] sm:$0xff]  ;;  %v13752_v3 = vld [vmem:[#allocation89_spill] sm:$0xff] }
 0x28a   : > { %v13746_v20 = vrot.slane %v13745_v1, 1  ;;  %v13748_v13 = vrot.slane %v13747_v27, 1  ;;  %v3461_v37 = vadd.f32 0.05243302, %v3460_v53  ;;  %v3472_v11 = vadd.f32 0.112945676, %v3471_v15 }
 0x28b   : > { %v2569_v5 = vadd.f32 %v2505_v17, %v2439_v57  ;;  %v2052_v49 = vadd.f32 %v13749_v9, %v1922_v43  ;;  %v3541_v51 = vadd.f32 0.05243302, %v3540_v30  ;;  %v3552_v56 = vadd.f32 0.112945676, %v3551_v10 }
 0x28c   : > { %v9363_v6 = vsel %vm1355_vm3, %v13748_v13, %v13746_v20  ;;  %v9367_v33 = vadd.f32 %v13750_v42, %v2571_v0  ;;  %v1540_v4 = vmul.f32 %v13671_v38, %v13752_v3  ;;  %v9372_v44 = vmul.f32 %v13712_v45, %v1188_v2  ;;  %v13755_v2 = vld [vmem:[#allocation64_spill] sm:$0xff] }
 0x28d   : > { %v3462_v27 = vmul.f32 %v3461_v37, %v9306_v60  ;;  %v3473_v1 = vmul.f32 %v3472_v11, %v9306_v60  ;;  %v9377_v53 = vadd.f32 %v13750_v42, %v2569_v5  ;;  %v13113_v43 = vrot.slane %v9219_v47, 1 }
 0x28e   : > { %13751 = vst [vmem:[#allocation142_spill] sm:$0xff] %v9367_v33  ;;  %v3542_v15 = vmul.f32 %v3541_v51, %v9312_v39  ;;  %v3553_v57 = vmul.f32 %v3552_v56, %v9312_v39  ;;  %v9383_v17 = vmul.f32 0.70710677, %v9367_v33  ;;  %v1670_v0 = vadd.f32 %v13755_v2, %v1540_v4 }
 0x28f   : > { %13753 = vst [vmem:[#allocation42_spill] sm:$0xff] %v9372_v44  ;;  %v3463_v30 = vadd.f32 0.18741608, %v3462_v27  ;;  %v3474_v10 = vadd.f32 0.4994258, %v3473_v1  ;;  %v1736_v20 = vmul.f32 %v13585_v21, %v9363_v6  ;;  %v13112_v56 = vrot.slane %v9205_v61, 1 }
 0x290   : > { %13754 = vst [vmem:[#allocation138_spill] sm:$0xff] %v9377_v53  ;;  %v3543_v13 = vadd.f32 0.18741608, %v3542_v15  ;;  %v3554_v37 = vadd.f32 0.4994258, %v3553_v57  ;;  %v3574_v5 = vmul.f32 %v9383_v17, %v9383_v17  ;;  %v2118_v4 = vmul.f32 %v13681_v23, %v9012_v25 }
 0x291   : > { %v9389_v11 = vmul.f32 0.70710677, %v9377_v53  ;;  %v3464_v9 = vmul.f32 %v3463_v30, %v9306_v60  ;;  %v3475_v51 = vmul.f32 %v3474_v10, %v9306_v60  ;;  %v9396_v27 = vadd.f32 %v1736_v20, %v1670_v0 }
 0x292   : > { %v3555_v1 = vmul.f32 %v3554_v37, %v9312_v39  ;;  %v9403_v57 = vmin.f32 %v3574_v5, 16.0  ;;  %v1412_v30 = vsel %vm1355_vm3, %v13113_v43, %v13112_v56  ;;  %v13118_v60 = vrot.slane %v9229_v62, 1 }
 0x293   : > { %13756 = vst [vmem:[#allocation129_spill] sm:$0xff] %v9396_v27  ;;  %v3494_v15 = vmul.f32 %v9389_v11, %v9389_v11  ;;  %v9412_v10 = vadd.f32 1.0, %v3475_v51  ;;  %v3544_v25 = vmul.f32 %v3543_v13, %v9312_v39  ;;  %v13117_v2 = vrot.slane %v9223_v12, 1  ;;  %v13758_v27 = vld [vmem:[#allocation68_spill] sm:$0xff] }
 0x294   : > { %v9416_v0 = vadd.f32 1.0, %v3555_v1  ;;  %v3576_v37 = vmul.f32 2.1237322e-06, %v9403_v57  ;;  %v9422_v5 = vmul.f32 0.5, %v9260_v26  ;;  %v9425_v44 = vmul.f32 0.5, %v9265_v46 }
 0x295   : > { %v9418_v20 = vmin.f32 %v3494_v15, 16.0  ;;  %v3465_v56 = vadd.f32 1.1283791, %v3464_v9  ;;  %6467 = vrcp.f32 %v9412_v10  ;;  %v9429_v51 = vmul.f32 %v7135_v32, %v1412_v30 }
 0x296   : > { %v9433_v39 = vmul.f32 %v13678_v7, %v9219_v47  ;;  %6469 = vrcp.f32 %v9416_v0  ;;  %v2120_v13 = vmul.f32 %v13681_v23, %v13705_v19  ;;  %v9444_v26 = vsel %vm1355_vm3, %v13118_v60, %v13117_v2  ;;  %v13761_v47 = vld [vmem:[#allocation55_spill] sm:$0xff] }
 0x297   : > { %13757 = vst [vmem:[#allocation117_spill] sm:$0xff] %v9429_v51  ;;  %v3545_v46 = vadd.f32 1.1283791, %v3544_v25  ;;  %v3496_v9 = vmul.f32 2.1237322e-06, %v9418_v20  ;;  %v2182_v1 = vadd.f32 %v2118_v4, %v2052_v49  ;;  %v3466_v19 = vmul.f32 %v3465_v56, %v9285_v34 }
 0x298   : > { %v3486_v15 = vand.u32 2147483647, %v9412_v10  ;;  %v3507_v30 = vmul.f32 3.8918573e-05, %v9418_v20  ;;  %v3577_v43 = vadd.f32 0.00028619796, %v3576_v37  ;;  %v2184_v42 = vadd.f32 %v2120_v13, %v13758_v27 }
 0x299   : > { %v3497_v23 = vadd.f32 0.00028619796, %v3496_v9  ;;  %v3587_v45 = vmul.f32 3.8918573e-05, %v9403_v57  ;;  %v2248_v2 = vmul.f32 %v13691_v41, %v13752_v3  ;;  %vm3482_vm12 = vweird.f32 %v9412_v10 }
 0x29a   : > { %v3488_v25 = vand.u32 2147483648, %v9412_v10  ;;  %v3508_v49 = vadd.f32 0.001143296, %v3507_v30  ;;  %v3578_v4 = vmul.f32 %v3577_v43, %v9403_v57  ;;  %v3546_v37 = vmul.f32 %v3545_v46, %v9289_v31 }
 0x29b   : > { %v6468_v60 = vpop.eup %6467  ;;  %vm3562_vm13 = vweird.f32 %v9416_v0  ;;  %v3498_v34 = vmul.f32 %v3497_v23, %v9418_v20  ;;  %v3588_v56 = vadd.f32 0.001143296, %v3587_v45  ;;  %vm9461_vm14 = vcmp.eq.f32.partialorder %v3486_v15, 8.507059e+37 }
 0x29c   : > { %v6470_v27 = vpop.eup %6469  ;;  %v3478_v13 = vmul.f32 %v6468_v60, %v9412_v10  ;;  %v3509_v3 = vmul.f32 %v3508_v49, %v9418_v20  ;;  %v3579_v30 = vadd.f32 0.0036580483, %v3578_v4  ;;  %v3566_v29 = vand.u32 2147483647, %v9416_v0 }
 0x29d   : > { %v3558_v43 = vmul.f32 %v6470_v27, %v9416_v0  ;;  %v3499_v31 = vadd.f32 0.0036580483, %v3498_v34  ;;  %v3589_v46 = vmul.f32 %v3588_v56, %v9403_v57  ;;  %v3568_v23 = vand.u32 2147483648, %v9416_v0 }
 0x29e   : > { %v3479_v18 = vsub.f32 1.0, %v3478_v13  ;;  %v3510_v45 = vadd.f32 0.014752088, %v3509_v3  ;;  %v3580_v8 = vmul.f32 %v3579_v30, %v9403_v57  ;;  %v2250_v49 = vmul.f32 %v13691_v41, %v13761_v47 }
 0x29f   : > { %v3559_v15 = vsub.f32 1.0, %v3558_v43  ;;  %v3500_v53 = vmul.f32 %v3499_v31, %v9418_v20  ;;  %v3590_v33 = vadd.f32 0.014752088, %v3589_v46  ;;  %vm3483_vm15 = vweird.f32 %v6468_v60 }
 0x2a0   : > { %v3480_v4 = vmul.f32 %v6468_v60, %v3479_v18  ;;  %v3511_v48 = vmul.f32 %v3510_v45, %v9418_v20  ;;  %v3581_v34 = vadd.f32 0.05243302, %v3580_v8  ;;  %vm3563_vm0 = vweird.f32 %v6470_v27  ;;  %vm3484_vm1 = vmor %vm3482_vm12, %vm3483_vm15 }
 0x2a1   : > { %v3560_v16 = vmul.f32 %v6470_v27, %v3559_v15  ;;  %v3501_v56 = vadd.f32 0.05243302, %v3500_v53  ;;  %v3591_v13 = vmul.f32 %v3590_v33, %v9403_v57  ;;  %v3489_v40 = vor.u32 1.1754944e-38, %v3488_v25  ;;  %vm3564_vm4 = vmor %vm3562_vm13, %vm3563_vm0  ;;  %v13762_v15 = vld [vmem:[#allocation95_spill] sm:$0xff] }
 0x2a2   : > { %v3481_v3 = vadd.f32 %v6468_v60, %v3480_v4  ;;  %v3512_v30 = vadd.f32 0.112945676, %v3511_v48  ;;  %v2312_v43 = vadd.f32 %v2248_v2, %v2182_v1  ;;  %v3582_v18 = vmul.f32 %v3581_v34, %v9403_v57 }
 0x2a3   : > { %v3561_v31 = vadd.f32 %v6470_v27, %v3560_v16  ;;  %v3502_v47 = vmul.f32 %v3501_v56, %v9418_v20  ;;  %v3592_v46 = vadd.f32 0.112945676, %v3591_v13  ;;  %vm3567_vm5 = vcmp.eq.f32.partialorder %v3566_v29, 8.507059e+37 }
 0x2a4   : > { %v3485_v45 = vsel %vm3484_vm1, %v6468_v60, %v3481_v3  ;;  %v3569_v8 = vor.u32 1.1754944e-38, %v3568_v23  ;;  %v3513_v33 = vmul.f32 %v3512_v30, %v9418_v20  ;;  %v2314_v16 = vadd.f32 %v2250_v49, %v2184_v42 }
 0x2a5   : > { %v3490_v48 = vsel %vm9461_vm14, %v3489_v40, %v3485_v45  ;;  %v3565_v53 = vsel %vm3564_vm4, %v6470_v27, %v3561_v31  ;;  %v3593_v10 = vmul.f32 %v3592_v46, %v9403_v57  ;;  %v2442_v4 = vadd.f32 %v13762_v15, %v2312_v43  ;;  %v766_v40 = vpop.f32.mrf.mxu0  ;;  %v865_v27 = vpop.f32.mrf.mxu1  ;;  %v13764_v43 = vld [vmem:[#allocation56_spill] sm:$0xff] }
 0x2a6   : > { %v3491_v2 = vmul.f32 %v3490_v48, %v3466_v19  ;;  %v3570_v1 = vsel %vm3567_vm5, %v3569_v8, %v3565_v53  ;;  %v3514_v25 = vadd.f32 0.4994258, %v3513_v33  ;;  %v3503_v34 = vadd.f32 0.18741608, %v3502_v47  ;;  %v13765_v48 = vld [vmem:[#allocation104_spill] sm:$0xff] }
 0x2a7   : > { %v3571_v60 = vmul.f32 %v3570_v1, %v3546_v37  ;;  %v3583_v0 = vadd.f32 0.18741608, %v3582_v18  ;;  %v3594_v56 = vadd.f32 0.4994258, %v3593_v10  ;;  %v1554_v29 = vmul.f32 %v13671_v38, %v9239_v14  ;;  %v13802_v14 = vld [vmem:[#allocation48_spill] sm:$0xff] }
 0x2a8   : > { %v6165_v23 = vclamps-f32 %v3491_v2, 1.0  ;;  %v3515_v9 = vmul.f32 %v3514_v25, %v9418_v20  ;;  %v2508_v42 = vmul.f32 %v9207_v54, %v9363_v6  ;;  %v9494_v19 = vmul.f32 %v7135_v32, %v9444_v26 }
 0x2a9   : > { %v1555_v37 = vmul.f32 %v13643_v35, %v9256_v59  ;;  %v6167_v49 = vclamps-f32 %v3571_v60, 1.0  ;;  %v3595_v13 = vmul.f32 %v3594_v56, %v9403_v57  ;;  %v2444_v31 = vadd.f32 %v13764_v43, %v2314_v16 }
 0x2aa   : > { %13763 = vst [vmem:[#allocation135_spill] sm:$0xff] %v9494_v19  ;;  %v5390_v3 = vadd.f32 1.0, %v6165_v23  ;;  %v9499_v30 = vadd.f32 1.0, %v3515_v9  ;;  %v2572_v47 = vadd.f32 %v2508_v42, %v2442_v4  ;;  %v3504_v46 = vmul.f32 %v3503_v34, %v9418_v20 }
 0x2ab   : > { %v5392_v18 = vadd.f32 1.0, %v6167_v49  ;;  %v3584_v45 = vmul.f32 %v3583_v0, %v9403_v57  ;;  %v9504_v8 = vadd.f32 1.0, %v3595_v13  ;;  %v1621_v26 = vmul.f32 %v7147_v36, %v9229_v62 }
 0x2ac   : > { %v5454_v33 = vmul.f32 %v5390_v3, %v9422_v5  ;;  %6471 = vrcp.f32 %v9499_v30  ;;  %v2510_v53 = vmul.f32 %v9207_v54, %v13765_v48  ;;  %v1684_v10 = vadd.f32 %v9433_v39, %v1554_v29 }
 0x2ad   : > { %v1750_v16 = vmul.f32 %v13585_v21, %v9429_v51  ;;  %v5456_v20 = vmul.f32 %v5392_v18, %v9425_v44  ;;  %6473 = vrcp.f32 %v9504_v8  ;;  %v1685_v57 = vadd.f32 %v1621_v26, %v1555_v37  ;;  %v768_v0 = vpop.f32.mrf.mxu0  ;;  %v867_v42 = vpop.f32.mrf.mxu1 }
 0x2ae   : > { %v1751_v2 = vmul.f32 %v7230_v22, %v9494_v19  ;;  %v2574_v1 = vadd.f32 %v2510_v53, %v2444_v31  ;;  %v9520_v5 = vadd.f32 %v13555_v28, %v2572_v47  ;;  %v9524_v54 = vmul.f32 %v13564_v63, %v8875_v58  ;;  %v13789_v19 = vld [vmem:[#allocation96_spill] sm:$0xff]  ;;  %v13813_v58 = vld [vmem:[#allocation49_spill] sm:$0xff] }
 0x2af   : > { %v5510_v39 = vpack.c.bf16 %v5456_v20, %v5454_v33  ;;  %v3505_v25 = vadd.f32 1.1283791, %v3504_v46  ;;  %v3585_v15 = vadd.f32 1.1283791, %v3584_v45  ;;  %v9528_v44 = vmul.f32 %v13678_v7, %v9205_v61  ;;  %v13775_v46 = vld [vmem:[#allocation32_spill] sm:$0xff] }
 0x2b0   : > { %13766 = vst [vmem:[#allocation110_spill] sm:$0xff] %v9524_v54  ;;  %v9532_v4 = vmul.f32 %v7252_v50, %v9205_v61  ;;  %v9536_v60 = vmul.f32 %v7379_v55, %v9205_v61  ;;  %v9539_v34 = vadd.f32 %v766_v40, %v7121_v24  ;;  %v9543_v56 = vmul.f32 %v7147_v36, %v9223_v12 }
 0x2b1   : > { %13767 = vst [vmem:[#allocation91_spill] sm:$0xff] %v9528_v44  ;;  %v9547_v29 = vmul.f32 %v7255_v52, %v9223_v12  ;;  %v9551_v23 = vmul.f32 %v13564_v63, %v9223_v12  ;;  %v1814_v9 = vadd.f32 %v1750_v16, %v1684_v10  ;;  %5694 = vmatmul.bf16.gmra.mxu2 %v5510_v39  ;;  %v9560_v3 = vmul.f32 0.70710677, %v9520_v5 }
 0x2b2   : > { %13768 = vst [vmem:[#allocation120_spill] sm:$0xff] %v9532_v4  ;;  %v6472_v37 = vpop.eup %6471  ;;  %v1815_v49 = vadd.f32 %v1751_v2, %v1685_v57  ;;  %v9554_v40 = vadd.f32 %v768_v0, %v7121_v24  ;;  %v9557_v13 = vadd.f32 %v13555_v28, %v2574_v1  ;;  %v3506_v31 = vmul.f32 %v3505_v25, %v9389_v11  ;;  %v13780_v0 = vld [vmem:[#allocation43_spill] sm:$0xff] }
 0x2b3   : > { %13769 = vst [vmem:[#allocation128_spill] sm:$0xff] %v9536_v60  ;;  %v6474_v43 = vpop.eup %6473  ;;  %v3518_v47 = vmul.f32 %v6472_v37, %v9499_v30  ;;  %v3586_v18 = vmul.f32 %v3585_v15, %v9383_v17  ;;  %v9566_v45 = vadd.f32 %v865_v27, %v13775_v46  ;;  %v13132_v33 = vrot.slane %v9539_v34, 7  ;;  %v13801_v60 = vld [vmem:[#allocation144_spill] sm:$0xff] }
 0x2b4   : > { %13770 = vst [vmem:[#allocation123_spill] sm:$0xff] %v9539_v34  ;;  %v3598_v26 = vmul.f32 %v6474_v43, %v9504_v8  ;;  %v13131_v53 = vrot.slane %v9554_v40, 7  ;;  %v9572_v10 = vadd.f32 %v867_v42, %v13775_v46  ;;  %v3526_v20 = vand.u32 2147483647, %v9499_v30 }
 0x2b5   : > { %13771 = vst [vmem:[#allocation130_spill] sm:$0xff] %v9543_v56  ;;  %v3519_v16 = vsub.f32 1.0, %v3518_v47  ;;  %v3528_v11 = vand.u32 2147483648, %v9499_v30  ;;  %v3606_v57 = vand.u32 2147483647, %v9504_v8  ;;  %vm3522_vm6 = vweird.f32 %v9499_v30  ;;  %v13797_v56 = vld [vmem:[#allocation138_spill] sm:$0xff] }
 0x2b6   : > { %13772 = vst [vmem:[#allocation50_spill] sm:$0xff] %v9547_v29  ;;  %v3599_v17 = vsub.f32 1.0, %v3598_v26  ;;  %vm3602_vm7 = vweird.f32 %v9504_v8  ;;  %v9585_v2 = vsel %vm1132_vm2, %v13132_v33, %v13131_v53  ;;  %vm3523_vm8 = vweird.f32 %v6472_v37  ;;  %v13785_v33 = vld [vmem:[#allocation83_spill] sm:$0xff] }
 0x2b7   : > { %13773 = vst [vmem:[#allocation127_spill] sm:$0xff] %v9551_v23  ;;  %v3520_v1 = vmul.f32 %v6472_v37, %v3519_v16  ;;  %v3608_v39 = vand.u32 2147483648, %v9504_v8  ;;  %v13134_v25 = vrot.slane %v9566_v45, 7  ;;  %vm3603_vm9 = vweird.f32 %v6474_v43  ;;  %vm3524_vm12 = vmor %vm3522_vm6, %vm3523_vm8  ;;  %v13786_v8 = vld [vmem:[#allocation47_spill] sm:$0xff] }
 0x2b8   : > { %13774 = vst [vmem:[#allocation118_spill] sm:$0xff] %v9554_v40  ;;  %v3600_v15 = vmul.f32 %v6474_v43, %v3599_v17  ;;  %v1880_v42 = vmul.f32 %v13780_v0, %v9585_v2  ;;  %v13133_v47 = vrot.slane %v9572_v10, 7  ;;  %vm3527_vm10 = vcmp.eq.f32.partialorder %v3526_v20, 8.507059e+37  ;;  %vm3604_vm13 = vmor %vm3602_vm7, %vm3603_vm9 }
 0x2b9   : > { %13776 = vst [vmem:[#allocation143_spill] sm:$0xff] %v9566_v45  ;;  %v3521_v26 = vadd.f32 %v6472_v37, %v3520_v1  ;;  %v3529_v29 = vor.u32 1.1754944e-38, %v3528_v11  ;;  %vm9592_vm11 = vcmp.eq.f32.partialorder %v3606_v57, 8.507059e+37  ;;  %v2010_v17 = vmul.f32 %v7252_v50, %v9554_v40 }
 0x2ba   : > { %13777 = vst [vmem:[#allocation63_spill] sm:$0xff] %v9572_v10  ;;  %v3601_v16 = vadd.f32 %v6474_v43, %v3600_v15  ;;  %v1944_v53 = vadd.f32 %v1880_v42, %v1814_v9  ;;  %v9606_v20 = vsel %vm1132_vm2, %v13134_v25, %v13133_v47  ;;  %v3609_v57 = vor.u32 1.1754944e-38, %v3608_v39 }
 0x2bb   : > { %13779 = vst [vmem:[#allocation74_spill] sm:$0xff] %v9585_v2  ;;  %v3525_v11 = vsel %vm3524_vm12, %v6472_v37, %v3521_v26  ;;  %v9611_v30 = vmul.f32 0.70710677, %v9557_v13  ;;  %v3614_v9 = vmul.f32 %v9560_v3, %v9560_v3  ;;  %v1541_v23 = vmul.f32 %v13643_v35, %v13785_v33  ;;  %v13787_v26 = vld [vmem:[#allocation67_spill] sm:$0xff] }
 0x2bc   : > { %13783 = vst [vmem:[#allocation137_spill] sm:$0xff] %v9606_v20  ;;  %v3530_v1 = vsel %vm3527_vm10, %v3529_v29, %v3525_v11  ;;  %v3605_v15 = vsel %vm3604_vm13, %v6474_v43, %v3601_v16  ;;  %v9615_v42 = vadd.f32 %v2010_v17, %v1944_v53  ;;  %v1881_v39 = vmul.f32 %v13786_v8, %v9606_v20  ;;  %v13792_v53 = vld [vmem:[#allocation124_spill] sm:$0xff]  ;;  %v13795_v17 = vld [vmem:[#allocation142_spill] sm:$0xff] }
 0x2bd   : > { %v3531_v47 = vmul.f32 %v3530_v1, %v3506_v31  ;;  %v3610_v37 = vsel %vm9592_vm11, %v3609_v57, %v3605_v15  ;;  %v13788_v25 = vrot.slane %v13787_v26, 1  ;;  %v13790_v59 = vrot.slane %v13789_v19, 1 }
 0x2be   : > { %13784 = vst [vmem:[#allocation51_spill] sm:$0xff] %v9615_v42  ;;  %v13791_v43 = vrot.slane %v9205_v61, 7  ;;  %v13793_v16 = vrot.slane %v13792_v53, 7  ;;  %v9641_v4 = vmul.f32 %v7379_v55, %v13792_v53  ;;  %v2705_v11 = vmul.f32 0.5, %v13795_v17  ;;  %v13807_v61 = vld [vmem:[#allocation73_spill] sm:$0xff] }
 0x2bf   : > { %v9629_v29 = vsel %vm1355_vm3, %v13790_v59, %v13788_v25  ;;  %v3611_v57 = vmul.f32 %v3610_v37, %v3586_v18  ;;  %v6166_v19 = vclamps-f32 %v3531_v47, 1.0  ;;  %v1945_v1 = vadd.f32 %v1881_v39, %v1815_v49 }
 0x2c0   : > { %v9637_v31 = vsel %vm1132_vm2, %v13793_v16, %v13791_v43  ;;  %13794 = vst [vmem:[#allocation71_spill] sm:$0xff] %v9641_v4  ;;  %v2011_v59 = vmul.f32 %v7255_v52, %v9572_v10  ;;  %v9646_v25 = vmin.f32 %v3614_v9, 16.0  ;;  %v3694_v26 = vmul.f32 %v9611_v30, %v9611_v30  ;;  %v13796_v43 = vld [vmem:[#allocation85_spill] sm:$0xff] }
 0x2c1   : > { %v6168_v15 = vclamps-f32 %v3611_v57, 1.0  ;;  %v1671_v16 = vadd.f32 %v13796_v43, %v1541_v23  ;;  %v1737_v42 = vmul.f32 %v7230_v22, %v9629_v29  ;;  %v2703_v51 = vmul.f32 0.5, %v13797_v56  ;;  %v13800_v23 = vld [vmem:[#allocation148_spill] sm:$0xff] }
 0x2c2   : > { %v5391_v17 = vadd.f32 1.0, %v6166_v19  ;;  %v9654_v18 = vadd.f32 %v2011_v59, %v1945_v1  ;;  %v3616_v49 = vmul.f32 2.1237322e-06, %v9646_v25  ;;  %v3627_v9 = vmul.f32 3.8918573e-05, %v9646_v25 }
 0x2c3   : > { %v5393_v47 = vadd.f32 1.0, %v6168_v15  ;;  %v9658_v37 = vmin.f32 %v3694_v26, 16.0  ;;  %v9660_v39 = vadd.f32 %v1737_v42, %v1671_v16  ;;  %v1859_v43 = vmul.f32 %v13786_v8, %v13800_v23  ;;  %v13804_v16 = vld [vmem:[#allocation112_spill] sm:$0xff] }
 0x2c4   : > { %13798 = vst [vmem:[#allocation132_spill] sm:$0xff] %v9654_v18  ;;  %v5455_v57 = vmul.f32 %v5391_v17, %v2703_v51  ;;  %v3617_v4 = vadd.f32 0.00028619796, %v3616_v49  ;;  %v2121_v56 = vmul.f32 %v13802_v14, %v13801_v60  ;;  %v3628_v1 = vadd.f32 0.001143296, %v3627_v9  ;;  %v13803_v18 = vld [vmem:[#allocation126_spill] sm:$0xff] }
 0x2c5   : > { %13799 = vst [vmem:[#allocation64_spill] sm:$0xff] %v9660_v39  ;;  %v5457_v19 = vmul.f32 %v5393_v47, %v2705_v11  ;;  %v3696_v59 = vmul.f32 2.1237322e-06, %v9658_v37  ;;  %v3707_v15 = vmul.f32 3.8918573e-05, %v9658_v37  ;;  %v2119_v26 = vmul.f32 %v13802_v14, %v13803_v18  ;;  %v13805_v17 = vld [vmem:[#allocation60_spill] sm:$0xff] }
 0x2c6   : > { %v3618_v42 = vmul.f32 %v3617_v4, %v9646_v25  ;;  %v1923_v51 = vadd.f32 %v1859_v43, %v13804_v16  ;;  %v2185_v49 = vadd.f32 %v2121_v56, %v13805_v17  ;;  %v3629_v23 = vmul.f32 %v3628_v1, %v9646_v25  ;;  %v13806_v47 = vld [vmem:[#allocation136_spill] sm:$0xff]  ;;  %v13808_v39 = vld [vmem:[#allocation145_spill] sm:$0xff]  ;;  %v13811_v16 = vld [vmem:[#allocation87_spill] sm:$0xff] }
 0x2c7   : > { %v5511_v44 = vpack.c.bf16 %v5457_v19, %v5455_v57  ;;  %v3697_v54 = vadd.f32 0.00028619796, %v3696_v59  ;;  %v3708_v60 = vadd.f32 0.001143296, %v3707_v15  ;;  %v2249_v53 = vmul.f32 %v13807_v61, %v13785_v33 }
 0x2c8   : > { %v3619_v11 = vadd.f32 0.0036580483, %v3618_v42  ;;  %v2053_v9 = vadd.f32 %v13806_v47, %v1923_v51  ;;  %v2251_v18 = vmul.f32 %v13807_v61, %v13808_v39  ;;  %v13809_v4 = vrot.slane %v9223_v12, 7  ;;  %v13812_v51 = vld [vmem:[#allocation140_spill] sm:$0xff] }
 0x2c9   : > { %v13810_v43 = vrot.slane %v9229_v62, 7  ;;  %5783 = vmatmul.bf16.gmra.mxu3 %v5511_v44  ;;  %v3630_v56 = vadd.f32 0.014752088, %v3629_v23  ;;  %v3698_v19 = vmul.f32 %v3697_v54, %v9658_v37  ;;  %v3709_v1 = vmul.f32 %v3708_v60, %v9658_v37 }
 0x2ca   : > { %v3620_v59 = vmul.f32 %v3619_v11, %v9646_v25  ;;  %v2183_v15 = vadd.f32 %v2119_v26, %v2053_v9  ;;  %v2315_v42 = vadd.f32 %v2251_v18, %v2185_v49  ;;  %v2511_v39 = vmul.f32 %v13812_v51, %v13811_v16  ;;  %v13817_v11 = vld [vmem:[#allocation149_spill] sm:$0xff]  ;;  %v13818_v49 = vld [vmem:[#allocation111_spill] sm:$0xff] }
 0x2cb   : > { %v1190_v57 = vsel %vm1132_vm2, %v13810_v43, %v13809_v4  ;;  %v3631_v17 = vmul.f32 %v3630_v56, %v9646_v25  ;;  %v3699_v47 = vadd.f32 0.0036580483, %v3698_v19  ;;  %v3710_v12 = vadd.f32 0.014752088, %v3709_v1  ;;  %v13815_v4 = vld [vmem:[#allocation66_spill] sm:$0xff] }
 0x2cc   : > { %v13814_v61 = vrot.slane %v13813_v58, 1  ;;  %v13816_v44 = vrot.slane %v13815_v4, 1  ;;  %v3621_v23 = vadd.f32 0.05243302, %v3620_v59  ;;  %v2313_v60 = vadd.f32 %v2249_v53, %v2183_v15  ;;  %v13819_v19 = vld [vmem:[#allocation70_spill] sm:$0xff] }
 0x2cd   : > { %v2445_v26 = vadd.f32 %v13817_v11, %v2315_v42  ;;  %v1544_v9 = vmul.f32 %v13671_v38, %v13818_v49  ;;  %v3632_v18 = vadd.f32 0.112945676, %v3631_v17  ;;  %v3700_v43 = vmul.f32 %v3699_v47, %v9658_v37  ;;  %v13821_v17 = vld [vmem:[#allocation89_spill] sm:$0xff] }
 0x2ce   : > { %v9697_v54 = vsel %vm1355_vm3, %v13816_v44, %v13814_v61  ;;  %v3711_v56 = vmul.f32 %v3710_v12, %v9658_v37  ;;  %v2509_v58 = vmul.f32 %v13812_v51, %v9629_v29  ;;  %v2443_v1 = vadd.f32 %v13819_v19, %v2313_v60  ;;  %v13820_v61 = vld [vmem:[#allocation77_spill] sm:$0xff]  ;;  %v13824_v60 = vld [vmem:[#allocation86_spill] sm:$0xff] }
 0x2cf   : > { %v2575_v4 = vadd.f32 %v2511_v39, %v2445_v26  ;;  %v1674_v44 = vadd.f32 %v13820_v61, %v1544_v9  ;;  %v1740_v53 = vmul.f32 %v13585_v21, %v9697_v54  ;;  %v3622_v59 = vmul.f32 %v3621_v23, %v9646_v25  ;;  %v13822_v12 = vld [vmem:[#allocation33_spill] sm:$0xff]  ;;  %v13826_v61 = vld [vmem:[#allocation108_spill] sm:$0xff] }
 0x2d0   : > { %v3633_v15 = vmul.f32 %v3632_v18, %v9646_v25  ;;  %v3712_v42 = vadd.f32 0.112945676, %v3711_v56  ;;  %v1862_v47 = vmul.f32 %v13780_v0, %v13821_v17  ;;  %v9716_v11 = vmul.f32 %v13822_v12, %v9637_v31 }
 0x2d1   : > { %v2573_v51 = vadd.f32 %v2509_v58, %v2443_v1  ;;  %v9719_v39 = vadd.f32 %v13824_v60, %v2575_v4  ;;  %v9721_v26 = vadd.f32 %v1740_v53, %v1674_v44  ;;  %v3701_v19 = vadd.f32 0.05243302, %v3700_v43  ;;  %v13829_v44 = vld [vmem:[#allocation98_spill] sm:$0xff] }
 0x2d2   : > { %13823 = vst [vmem:[#allocation68_spill] sm:$0xff] %v9716_v11  ;;  %v3634_v9 = vadd.f32 0.4994258, %v3633_v15  ;;  %v3713_v23 = vmul.f32 %v3712_v42, %v9658_v37  ;;  %v1926_v18 = vadd.f32 %v1862_v47, %v13826_v61  ;;  %v9726_v56 = vmul.f32 %v13822_v12, %v1190_v57  ;;  %v13830_v57 = vld [vmem:[#allocation46_spill] sm:$0xff] }
 0x2d3   : > { %13825 = vst [vmem:[#allocation55_spill] sm:$0xff] %v9721_v26  ;;  %v9730_v17 = vmul.f32 %v13564_v63, %v9229_v62  ;;  %v9733_v31 = vadd.f32 %v13824_v60, %v2573_v51  ;;  %v9736_v58 = vmul.f32 0.70710677, %v9719_v39  ;;  %v3623_v1 = vadd.f32 0.18741608, %v3622_v59 }
 0x2d4   : > { %13827 = vst [vmem:[#allocation95_spill] sm:$0xff] %v9726_v56  ;;  %v3635_v43 = vmul.f32 %v3634_v9, %v9646_v25  ;;  %v3714_v4 = vadd.f32 0.4994258, %v3713_v23  ;;  %v9740_v53 = vadd.f32 %v13829_v44, %v1926_v18  ;;  %v9744_v15 = vmul.f32 %v13830_v57, %v9363_v6 }
 0x2d5   : > { %13828 = vst [vmem:[#allocation56_spill] sm:$0xff] %v9730_v17  ;;  %v9747_v42 = vmul.f32 0.5, %v9520_v5  ;;  %v9750_v47 = vmul.f32 0.70710677, %v9733_v31  ;;  %v3734_v51 = vmul.f32 %v9736_v58, %v9736_v58  ;;  %v3702_v23 = vmul.f32 %v3701_v19, %v9658_v37 }
 0x2d6   : > { %v9755_v9 = vadd.f32 1.0, %v3635_v43  ;;  %v3715_v61 = vmul.f32 %v3714_v4, %v9658_v37  ;;  %v9761_v18 = vmul.f32 0.5, %v9557_v13  ;;  %v9769_v17 = vmul.f32 %v13678_v7, %v9539_v34 }
 0x2d7   : > { %13831 = vst [vmem:[#allocation104_spill] sm:$0xff] %v9750_v47  ;;  %v3654_v5 = vmul.f32 %v9750_v47, %v9750_v47  ;;  %v9765_v44 = vmin.f32 %v3734_v51, 16.0  ;;  %v3624_v19 = vmul.f32 %v3623_v1, %v9646_v25  ;;  %v9776_v4 = vmul.f32 %v7252_v50, %v9539_v34 }
 0x2d8   : > { %13832 = vst [vmem:[#allocation67_spill] sm:$0xff] %v9769_v17  ;;  %6475 = vrcp.f32 %v9755_v9  ;;  %v9778_v13 = vadd.f32 1.0, %v3715_v61  ;;  %v13834_v17 = vrot.slane %v9539_v34, 1  ;;  %v13835_v43 = vrot.slane %v9554_v40, 1 }
 0x2d9   : > { %13833 = vst [vmem:[#allocation96_spill] sm:$0xff] %v9776_v4  ;;  %v9780_v59 = vmin.f32 %v3654_v5, 16.0  ;;  %v3736_v51 = vmul.f32 2.1237322e-06, %v9765_v44  ;;  %v3703_v1 = vadd.f32 0.18741608, %v3702_v23  ;;  %v9793_v61 = vmul.f32 %v7379_v55, %v9539_v34 }
 0x2da   : > { %v1414_v25 = vsel %vm1355_vm3, %v13835_v43, %v13834_v17  ;;  %v3747_v56 = vmul.f32 3.8918573e-05, %v9765_v44  ;;  %v9797_v5 = vmul.f32 %v7147_v36, %v9566_v45  ;;  %v9801_v6 = vmul.f32 %v13678_v7, %v9554_v40 }
 0x2db   : > { %13836 = vst [vmem:[#allocation142_spill] sm:$0xff] %v9793_v61  ;;  %6477 = vrcp.f32 %v9778_v13  ;;  %v13838_v4 = vrot.slane %v9566_v45, 1  ;;  %v13839_v17 = vrot.slane %v9572_v10, 1  ;;  %v3625_v43 = vadd.f32 1.1283791, %v3624_v19 }
 0x2dc   : > { %13837 = vst [vmem:[#allocation85_spill] sm:$0xff] %v9797_v5  ;;  %v3656_v61 = vmul.f32 2.1237322e-06, %v9780_v59  ;;  %v3667_v62 = vmul.f32 3.8918573e-05, %v9780_v59  ;;  %v9813_v5 = vmul.f32 %v7135_v32, %v1414_v25  ;;  %v9817_v26 = vmul.f32 %v13671_v38, %v9585_v2 }
 0x2dd   : > { %v1415_v23 = vsel %vm1355_vm3, %v13839_v17, %v13838_v4  ;;  %v3737_v11 = vadd.f32 0.00028619796, %v3736_v51  ;;  %v3748_v60 = vadd.f32 0.001143296, %v3747_v56  ;;  %v3646_v16 = vand.u32 2147483647, %v9755_v9 }
 0x2de   : > { %13840 = vst [vmem:[#allocation138_spill] sm:$0xff] %v9813_v5  ;;  %v6476_v0 = vpop.eup %6475  ;;  %v3704_v8 = vmul.f32 %v3703_v1, %v9658_v37  ;;  %v3657_v4 = vadd.f32 0.00028619796, %v3656_v61  ;;  %v3668_v19 = vadd.f32 0.001143296, %v3667_v62  ;;  %v9822_v17 = vmul.f32 %v7135_v32, %v1415_v23 }
 0x2df   : > { %v3638_v33 = vmul.f32 %v6476_v0, %v9755_v9  ;;  %v3738_v25 = vmul.f32 %v3737_v11, %v9765_v44  ;;  %v3749_v50 = vmul.f32 %v3748_v60, %v9765_v44  ;;  %v3626_v2 = vmul.f32 %v3625_v43, %v9560_v3 }
 0x2e0   : > { %13841 = vst [vmem:[#allocation148_spill] sm:$0xff] %v9822_v17  ;;  %v3648_v56 = vand.u32 2147483648, %v9755_v9  ;;  %v3658_v51 = vmul.f32 %v3657_v4, %v9780_v59  ;;  %v3669_v38 = vmul.f32 %v3668_v19, %v9780_v59  ;;  %vm3642_vm14 = vweird.f32 %v9755_v9 }
 0x2e1   : > { %v6478_v37 = vpop.eup %6477  ;;  %v3639_v1 = vsub.f32 1.0, %v3638_v33  ;;  %v3739_v62 = vadd.f32 0.0036580483, %v3738_v25  ;;  %v3750_v61 = vadd.f32 0.014752088, %v3749_v50  ;;  %vm9832_vm15 = vcmp.eq.f32.partialorder %v3646_v16, 8.507059e+37 }
 0x2e2   : > { %v3705_v11 = vadd.f32 1.1283791, %v3704_v8  ;;  %v3718_v60 = vmul.f32 %v6478_v37, %v9778_v13  ;;  %v3670_v3 = vadd.f32 0.014752088, %v3669_v38  ;;  %vm3643_vm0 = vweird.f32 %v6476_v0 }
 0x2e3   : > { %v3640_v43 = vmul.f32 %v6476_v0, %v3639_v1  ;;  %v3659_v32 = vadd.f32 0.0036580483, %v3658_v51  ;;  %v3751_v4 = vmul.f32 %v3750_v61, %v9765_v44  ;;  %v3649_v19 = vor.u32 1.1754944e-38, %v3648_v56  ;;  %vm3644_vm1 = vmor %vm3642_vm14, %vm3643_vm0 }
 0x2e4   : > { %v3719_v7 = vsub.f32 1.0, %v3718_v60  ;;  %v3671_v33 = vmul.f32 %v3670_v3, %v9780_v59  ;;  %v2186_v50 = vadd.f32 %v9744_v15, %v9740_v53  ;;  %v3728_v25 = vand.u32 2147483648, %v9778_v13 }
 0x2e5   : > { %v3641_v16 = vadd.f32 %v6476_v0, %v3640_v43  ;;  %v3740_v8 = vmul.f32 %v3739_v62, %v9765_v44  ;;  %v3752_v47 = vadd.f32 0.112945676, %v3751_v4  ;;  %vm3723_vm4 = vweird.f32 %v6478_v37 }
 0x2e6   : > { %v3720_v38 = vmul.f32 %v6478_v37, %v3719_v7  ;;  %v3726_v51 = vand.u32 2147483647, %v9778_v13  ;;  %v3672_v56 = vadd.f32 0.112945676, %v3671_v33  ;;  %vm3722_vm5 = vweird.f32 %v9778_v13 }
 0x2e7   : > { %v3645_v1 = vsel %vm3644_vm1, %v6476_v0, %v3641_v16  ;;  %v3660_v61 = vmul.f32 %v3659_v32, %v9780_v59  ;;  %v3753_v53 = vmul.f32 %v3752_v47, %v9765_v44  ;;  %v2252_v7 = vmul.f32 %v13691_v41, %v13818_v49  ;;  %vm3724_vm6 = vmor %vm3722_vm5, %vm3723_vm4 }
 0x2e8   : > { %v3650_v15 = vsel %vm9832_vm15, %v3649_v19, %v3645_v1  ;;  %v3721_v62 = vadd.f32 %v6478_v37, %v3720_v38  ;;  %v3673_v60 = vmul.f32 %v3672_v56, %v9780_v59  ;;  %v3729_v3 = vor.u32 1.1754944e-38, %v3728_v25  ;;  %v13844_v56 = vld [vmem:[#allocation75_spill] sm:$0xff] }
 0x2e9   : > { %v3651_v9 = vmul.f32 %v3650_v15, %v3626_v2  ;;  %v3741_v43 = vadd.f32 0.05243302, %v3740_v8  ;;  %v3754_v0 = vadd.f32 0.4994258, %v3753_v53  ;;  %v3706_v13 = vmul.f32 %v3705_v11, %v9611_v30  ;;  %v13845_v53 = vld [vmem:[#allocation146_spill] sm:$0xff] }
 0x2ea   : > { %v3725_v4 = vsel %vm3724_vm6, %v6478_v37, %v3721_v62  ;;  %vm3727_vm7 = vcmp.eq.f32.partialorder %v3726_v51, 8.507059e+37  ;;  %v3674_v32 = vadd.f32 0.4994258, %v3673_v60  ;;  %v3661_v23 = vadd.f32 0.05243302, %v3660_v61 }
 0x2eb   : > { %v6169_v47 = vclamps-f32 %v3651_v9, 1.0  ;;  %v3730_v33 = vsel %vm3727_vm7, %v3729_v3, %v3725_v4  ;;  %v3755_v19 = vmul.f32 %v3754_v0, %v9765_v44  ;;  %v2124_v2 = vmul.f32 %v13830_v57, %v13765_v48 }
 0x2ec   : > { %v3731_v16 = vmul.f32 %v3730_v33, %v3706_v13  ;;  %v3675_v38 = vmul.f32 %v3674_v32, %v9780_v59  ;;  %v2254_v25 = vmul.f32 %v13691_v41, %v13844_v56  ;;  %v3742_v30 = vmul.f32 %v3741_v43, %v9765_v44  ;;  %v13848_v32 = vld [vmem:[#allocation102_spill] sm:$0xff]  ;;  %v771_v56 = vpop.f32.mrf.mxu0 }
 0x2ed   : > { %v5394_v8 = vadd.f32 1.0, %v6169_v47  ;;  %v9862_v37 = vadd.f32 1.0, %v3755_v19  ;;  %v2316_v11 = vadd.f32 %v2252_v7, %v2186_v50  ;;  %v1559_v51 = vmul.f32 %v13643_v35, %v9606_v20  ;;  %v13881_v20 = vld [vmem:[#allocation73_spill] sm:$0xff] }
 0x2ee   : > { %v6171_v1 = vclamps-f32 %v3731_v16, 1.0  ;;  %v9866_v61 = vadd.f32 1.0, %v3675_v38  ;;  %v2188_v15 = vadd.f32 %v2124_v2, %v13845_v53  ;;  %v13846_v62 = vrot.slane %v9539_v34, 7  ;;  %v13891_v34 = vld [vmem:[#allocation36_spill] sm:$0xff] }
 0x2ef   : > { %v13847_v48 = vrot.slane %v9554_v40, 7  ;;  %v1625_v9 = vmul.f32 %v7147_v36, %v9572_v10  ;;  %v3662_v50 = vmul.f32 %v3661_v23, %v9780_v59  ;;  %6479 = vrcp.f32 %v9862_v37 }
 0x2f0   : > { %v5396_v7 = vadd.f32 1.0, %v6171_v1  ;;  %v5458_v3 = vmul.f32 %v5394_v8, %v9747_v42  ;;  %6481 = vrcp.f32 %v9866_v61  ;;  %v2318_v43 = vadd.f32 %v2254_v25, %v2188_v15  ;;  %v9903_v25 = vld [vmem:[#allocation11 + $0x10] ss:$0 sm:$0xff] }
 0x2f1   : > { %v1191_v60 = vsel %vm1132_vm2, %v13847_v48, %v13846_v62  ;;  %v1688_v0 = vadd.f32 %v9801_v6, %v9817_v26  ;;  %v1754_v13 = vmul.f32 %v13585_v21, %v9813_v5  ;;  %v3743_v4 = vadd.f32 0.18741608, %v3742_v30 }
 0x2f2   : > { %v2446_v47 = vadd.f32 %v13848_v32, %v2316_v11  ;;  %v13849_v33 = vrot.slane %v9566_v45, 7  ;;  %v13850_v23 = vrot.slane %v9572_v10, 7  ;;  %v1689_v42 = vadd.f32 %v1625_v9, %v1559_v51  ;;  %v13855_v51 = vld [vmem:[#allocation79_spill] sm:$0xff] }
 0x2f3   : > { %v1755_v16 = vmul.f32 %v7230_v22, %v9822_v17  ;;  %v5460_v38 = vmul.f32 %v5396_v7, %v9761_v18  ;;  %v9897_v26 = vmul.f32 %v7255_v52, %v9566_v45  ;;  %v9901_v6 = vmul.f32 %v13564_v63, %v9566_v45 }
 0x2f4   : > { %v1192_v19 = vsel %vm1132_vm2, %v13850_v23, %v13849_v33  ;;  %v3663_v2 = vadd.f32 0.18741608, %v3662_v50  ;;  %v2512_v8 = vmul.f32 %v9903_v25, %v9697_v54  ;;  %v9908_v30 = vmul.f32 %v13822_v12, %v1191_v60 }
 0x2f5   : > { %13851 = vst [vmem:[#allocation144_spill] sm:$0xff] %v9897_v26  ;;  %v9912_v18 = vmul.f32 %v7379_v55, %v9554_v40  ;;  %v5512_v11 = vpack.c.bf16 %v5460_v38, %v5458_v3  ;;  %v2448_v1 = vadd.f32 %v13855_v51, %v2318_v43  ;;  %v6480_v53 = vpop.eup %6479  ;;  %v9915_v15 = vadd.f32 %v1754_v13, %v1688_v0  ;;  %v13858_v43 = vld [vmem:[#allocation101_spill] sm:$0xff]  ;;  %v13893_v40 = vld [vmem:[#allocation139_spill] sm:$0xff] }
 0x2f6   : > { %13852 = vst [vmem:[#allocation48_spill] sm:$0xff] %v9901_v6  ;;  %v9918_v62 = vmul.f32 %v13822_v12, %v1192_v19  ;;  %v3744_v48 = vmul.f32 %v3743_v4, %v9765_v44  ;;  %v2576_v9 = vadd.f32 %v2512_v8, %v2446_v47  ;;  %v6482_v50 = vpop.eup %6481  ;;  %v9921_v7 = vadd.f32 %v1755_v16, %v1689_v42  ;;  %v13876_v6 = vld [vmem:[#allocation47_spill] sm:$0xff] }
 0x2f7   : > { %13853 = vst [vmem:[#allocation126_spill] sm:$0xff] %v9908_v30  ;;  %v9925_v60 = vmul.f32 %v13564_v63, %v9572_v10  ;;  %5699 = vmatmul.bf16.gmra.mxu2 %v5512_v11  ;;  %v3758_v3 = vmul.f32 %v6480_v53, %v9862_v37  ;;  %v2514_v0 = vmul.f32 %v9903_v25, %v13858_v43  ;;  %v9935_v44 = vmul.f32 0.5, %v9719_v39 }
 0x2f8   : > { %13854 = vst [vmem:[#allocation112_spill] sm:$0xff] %v9912_v18  ;;  %v9932_v13 = vmul.f32 %v13802_v14, %v9629_v29  ;;  %v3664_v4 = vmul.f32 %v3663_v2, %v9780_v59  ;;  %v3678_v32 = vmul.f32 %v6482_v50, %v9866_v61  ;;  %v9940_v47 = vmul.f32 0.5, %v9733_v31  ;;  %v13888_v18 = vld [vmem:[#allocation106_spill] sm:$0xff] }
 0x2f9   : > { %13856 = vst [vmem:[#allocation60_spill] sm:$0xff] %v9918_v62  ;;  %v3759_v33 = vsub.f32 1.0, %v3758_v3  ;;  %v9944_v23 = vmul.f32 %v13830_v57, %v9697_v54  ;;  %v2578_v19 = vadd.f32 %v2514_v0, %v2448_v1  ;;  %v3745_v16 = vadd.f32 1.1283791, %v3744_v48  ;;  %v870_v1 = vpop.f32.mrf.mxu1 }
 0x2fa   : > { %13857 = vst [vmem:[#allocation136_spill] sm:$0xff] %v9925_v60  ;;  %v3679_v42 = vsub.f32 1.0, %v3678_v32  ;;  %v3768_v29 = vand.u32 2147483648, %v9862_v37  ;;  %v9948_v39 = vadd.f32 %v13555_v28, %v2576_v9  ;;  %v3688_v59 = vand.u32 2147483648, %v9866_v61  ;;  %v13880_v60 = vld [vmem:[#allocation147_spill] sm:$0xff] }
 0x2fb   : > { %v3760_v38 = vmul.f32 %v6480_v53, %v3759_v33  ;;  %vm3763_vm8 = vweird.f32 %v6480_v53  ;;  %v3766_v31 = vand.u32 2147483647, %v9862_v37  ;;  %v3665_v2 = vadd.f32 1.1283791, %v3664_v4  ;;  %v773_v4 = vpop.f32.mrf.mxu0 }
 0x2fc   : > { %v3680_v8 = vmul.f32 %v6482_v50, %v3679_v42  ;;  %vm3683_vm9 = vweird.f32 %v6482_v50  ;;  %v3686_v54 = vand.u32 2147483647, %v9866_v61  ;;  %vm3762_vm10 = vweird.f32 %v9862_v37 }
 0x2fd   : > { %v3761_v11 = vadd.f32 %v6480_v53, %v3760_v38  ;;  %v9955_v51 = vadd.f32 %v771_v56, %v7121_v24  ;;  %v9958_v48 = vadd.f32 %v13555_v28, %v2578_v19  ;;  %vm3682_vm11 = vweird.f32 %v9866_v61  ;;  %vm3764_vm12 = vmor %vm3762_vm10, %vm3763_vm8  ;;  %v13861_v56 = vld [vmem:[#allocation104_spill] sm:$0xff] }
 0x2fe   : > { %v3681_v9 = vadd.f32 %v6482_v50, %v3680_v8  ;;  %v3769_v3 = vor.u32 1.1754944e-38, %v3768_v29  ;;  %v9962_v0 = vadd.f32 %v870_v1, %v13775_v46  ;;  %vm3684_vm13 = vmor %vm3682_vm11, %vm3683_vm9  ;;  %v3689_v32 = vor.u32 1.1754944e-38, %v3688_v59  ;;  %v13863_v59 = vld [vmem:[#allocation37_spill] sm:$0xff] }
 0x2ff   : > { %13859 = vst [vmem:[#allocation145_spill] sm:$0xff] %v9955_v51  ;;  %v3746_v37 = vmul.f32 %v3745_v16, %v9736_v58  ;;  %v3765_v33 = vsel %vm3764_vm12, %v6480_v53, %v3761_v11  ;;  %vm3767_vm14 = vcmp.eq.f32.partialorder %v3766_v31, 8.507059e+37  ;;  %v3666_v42 = vmul.f32 %v3665_v2, %v13861_v56  ;;  %v13865_v53 = vld [vmem:[#allocation44_spill] sm:$0xff]  ;;  %v13875_v2 = vld [vmem:[#allocation83_spill] sm:$0xff] }
 0x300   : > { %13860 = vst [vmem:[#allocation140_spill] sm:$0xff] %v9962_v0  ;;  %v3685_v38 = vsel %vm3684_vm13, %v6482_v50, %v3681_v9  ;;  %vm3687_vm15 = vcmp.eq.f32.partialorder %v3686_v54, 8.507059e+37  ;;  %v3770_v19 = vsel %vm3767_vm14, %v3769_v3, %v3765_v33  ;;  %v9968_v29 = vadd.f32 %v773_v4, %v7121_v24  ;;  %v13868_v4 = vld [vmem:[#allocation76_spill] sm:$0xff] }
 0x301   : > { %v3690_v8 = vsel %vm3687_vm15, %v3689_v32, %v3685_v38  ;;  %v3771_v26 = vmul.f32 %v3770_v19, %v3746_v37  ;;  %v9973_v58 = vmul.f32 %v13863_v59, %v9955_v51  ;;  %v9977_v16 = vmul.f32 %v13865_v53, %v9955_v51  ;;  %v13870_v37 = vld [vmem:[#allocation80_spill] sm:$0xff]  ;;  %v13873_v19 = vld [vmem:[#allocation81_spill] sm:$0xff]  ;;  %v13877_v38 = vld [vmem:[#allocation87_spill] sm:$0xff] }
 0x302   : > { %13862 = vst [vmem:[#allocation49_spill] sm:$0xff] %v9968_v29  ;;  %v3691_v1 = vmul.f32 %v3690_v8, %v3666_v42  ;;  %v9981_v31 = vmul.f32 %v7379_v55, %v9955_v51  ;;  %v9986_v9 = vmul.f32 0.70710677, %v9948_v39  ;;  %v9989_v3 = vmul.f32 0.70710677, %v9958_v48 }
 0x303   : > { %13864 = vst [vmem:[#allocation66_spill] sm:$0xff] %v9973_v58  ;;  %v6172_v50 = vclamps-f32 %v3771_v26, 1.0  ;;  %v13869_v32 = vrot.slane %v13868_v4, 1  ;;  %v13871_v33 = vrot.slane %v13870_v37, 1  ;;  %v10001_v42 = vmul.f32 %v7147_v36, %v9962_v0  ;;  %v13874_v37 = vld [vmem:[#allocation65_spill] sm:$0xff] }
 0x304   : > { %13866 = vst [vmem:[#allocation149_spill] sm:$0xff] %v9977_v16  ;;  %v6170_v11 = vclamps-f32 %v3691_v1, 1.0  ;;  %v1545_v8 = vmul.f32 %v13643_v35, %v13873_v19  ;;  %v3774_v4 = vmul.f32 %v9986_v9, %v9986_v9  ;;  %v1863_v61 = vmul.f32 %v13876_v6, %v13875_v2 }
 0x305   : > { %13867 = vst [vmem:[#allocation111_spill] sm:$0xff] %v9981_v31  ;;  %v9997_v26 = vsel %vm1355_vm3, %v13871_v33, %v13869_v32  ;;  %v5397_v56 = vadd.f32 1.0, %v6172_v50  ;;  %v3854_v32 = vmul.f32 %v9989_v3, %v9989_v3  ;;  %v2125_v16 = vmul.f32 %v13802_v14, %v13877_v38 }
 0x306   : > { %13872 = vst [vmem:[#allocation70_spill] sm:$0xff] %v10001_v42  ;;  %v5395_v1 = vadd.f32 1.0, %v6170_v11  ;;  %v1675_v50 = vadd.f32 %v13874_v37, %v1545_v8  ;;  %v1741_v33 = vmul.f32 %v7230_v22, %v9997_v26  ;;  %v10020_v42 = vmin.f32 %v3774_v4, 16.0  ;;  %v13879_v8 = vld [vmem:[#allocation141_spill] sm:$0xff] }
 0x307   : > { %v5461_v54 = vmul.f32 %v5397_v56, %v9935_v44  ;;  %v10022_v31 = vmin.f32 %v3854_v32, 16.0  ;;  %v1927_v37 = vadd.f32 %v1863_v61, %v13879_v8  ;;  %v2189_v17 = vadd.f32 %v2125_v16, %v13880_v60  ;;  %v13883_v32 = vld [vmem:[#allocation99_spill] sm:$0xff]  ;;  %v10037_v61 = vld [vmem:[#allocation11 + $0x18] ss:$0 sm:$0xff] }
 0x308   : > { %v5459_v11 = vmul.f32 %v5395_v1, %v9940_v47  ;;  %v10024_v58 = vadd.f32 %v1741_v33, %v1675_v50  ;;  %v2253_v2 = vmul.f32 %v13881_v20, %v13873_v19  ;;  %v3776_v38 = vmul.f32 2.1237322e-06, %v10020_v42  ;;  %v13882_v1 = vld [vmem:[#allocation78_spill] sm:$0xff]  ;;  %13884 = vst [vmem:[#allocation89_spill] sm:$0xff] %v10037_v61 }
 0x309   : > { %v3787_v47 = vmul.f32 3.8918573e-05, %v10020_v42  ;;  %v3856_v44 = vmul.f32 2.1237322e-06, %v10022_v31  ;;  %v3867_v56 = vmul.f32 3.8918573e-05, %v10022_v31  ;;  %v2057_v4 = vadd.f32 %v13882_v1, %v1927_v37 }
 0x30a   : > { %13878 = vst [vmem:[#allocation77_spill] sm:$0xff] %v10024_v58  ;;  %v5513_v62 = vpack.c.bf16 %v5461_v54, %v5459_v11  ;;  %v2255_v50 = vmul.f32 %v13881_v20, %v13883_v32  ;;  %v2513_v60 = vmul.f32 %v10037_v61, %v9997_v26  ;;  %v3777_v16 = vadd.f32 0.00028619796, %v3776_v38  ;;  %v13885_v11 = vld [vmem:[#allocation69_spill] sm:$0xff]  ;;  %v13895_v20 = vld [vmem:[#allocation43_spill] sm:$0xff] }
 0x30b   : > { %v3788_v54 = vadd.f32 0.001143296, %v3787_v47  ;;  %v3857_v33 = vadd.f32 0.00028619796, %v3856_v44  ;;  %v2515_v8 = vmul.f32 %v10037_v61, %v13885_v11  ;;  %v3868_v45 = vadd.f32 0.001143296, %v3867_v56 }
 0x30c   : > { %5788 = vmatmul.bf16.gmra.mxu3 %v5513_v62  ;;  %v2187_v10 = vadd.f32 %v9932_v13, %v2057_v4  ;;  %v2319_v5 = vadd.f32 %v2255_v50, %v2189_v17  ;;  %v13886_v37 = vld [vmem:[#allocation113_spill] sm:$0xff]  ;;  %v13889_v32 = vrot.slane %v13888_v18, 1  ;;  %v3778_v62 = vmul.f32 %v3777_v16, %v10020_v42  ;;  %v13890_v44 = vld [vmem:[#allocation92_spill] sm:$0xff] }
 0x30d   : > { %v13887_v1 = vrot.slane %v13886_v37, 1  ;;  %v3789_v38 = vmul.f32 %v3788_v54, %v10020_v42  ;;  %v3858_v47 = vmul.f32 %v3857_v33, %v10022_v31  ;;  %v1548_v56 = vmul.f32 %v13891_v34, %v13890_v44  ;;  %v13892_v4 = vld [vmem:[#allocation84_spill] sm:$0xff] }
 0x30e   : > { %v3869_v13 = vmul.f32 %v3868_v45, %v10022_v31  ;;  %v2317_v17 = vadd.f32 %v2253_v2, %v2187_v10  ;;  %v2449_v50 = vadd.f32 %v13892_v4, %v2319_v5  ;;  %v3779_v37 = vadd.f32 0.0036580483, %v3778_v62  ;;  %v13894_v54 = vld [vmem:[#allocation88_spill] sm:$0xff] }
 0x30f   : > { %v10050_v30 = vsel %vm1355_vm3, %v13889_v32, %v13887_v1  ;;  %v3790_v1 = vadd.f32 0.014752088, %v3789_v38  ;;  %v3859_v32 = vadd.f32 0.0036580483, %v3858_v47  ;;  %v1678_v16 = vadd.f32 %v13893_v40, %v1548_v56  ;;  %v13897_v47 = vld [vmem:[#allocation86_spill] sm:$0xff]  ;;  %v13898_v56 = vld [vmem:[#allocation129_spill] sm:$0xff] }
 0x310   : > { %v1744_v18 = vmul.f32 %v13585_v21, %v10050_v30  ;;  %v3870_v58 = vadd.f32 0.014752088, %v3869_v13  ;;  %v2447_v61 = vadd.f32 %v13894_v54, %v2317_v17  ;;  %v2579_v33 = vadd.f32 %v2515_v8, %v2449_v50 }
 0x311   : > { %v1866_v11 = vmul.f32 %v13895_v20, %v13818_v49  ;;  %v3780_v45 = vmul.f32 %v3779_v37, %v10020_v42  ;;  %v3791_v10 = vmul.f32 %v3790_v1, %v10020_v42  ;;  %v3860_v5 = vmul.f32 %v3859_v32, %v10022_v31 }
 0x312   : > { %v10068_v2 = vadd.f32 %v1744_v18, %v1678_v16  ;;  %v3871_v62 = vmul.f32 %v3870_v58, %v10022_v31  ;;  %v2577_v38 = vadd.f32 %v2513_v60, %v2447_v61  ;;  %v10072_v40 = vadd.f32 %v13897_v47, %v2579_v33  ;;  %v872_v61 = vpop.f32.mrf.mxu1 }
 0x313   : > { %v1930_v13 = vadd.f32 %v1866_v11, %v13898_v56  ;;  %v10077_v8 = vmul.f32 %v7255_v52, %v9962_v0  ;;  %v3781_v49 = vadd.f32 0.05243302, %v3780_v45  ;;  %v3792_v17 = vadd.f32 0.112945676, %v3791_v10  ;;  %v13906_v45 = vld [vmem:[#allocation94_spill] sm:$0xff] }
 0x314   : > { %13896 = vst [vmem:[#allocation33_spill] sm:$0xff] %v10068_v2  ;;  %v3861_v4 = vadd.f32 0.05243302, %v3860_v5  ;;  %v13900_v50 = vrot.slane %v9968_v29, 7  ;;  %v13901_v18 = vrot.slane %v9955_v51, 7  ;;  %v10088_v37 = vadd.f32 %v13897_v47, %v2577_v38 }
 0x315   : > { %13899 = vst [vmem:[#allocation108_spill] sm:$0xff] %v10077_v8  ;;  %v3872_v60 = vadd.f32 0.112945676, %v3871_v62  ;;  %v10091_v11 = vmul.f32 0.70710677, %v10072_v40  ;;  %v13904_v1 = vrot.slane %v9955_v51, 1  ;;  %v3782_v54 = vmul.f32 %v3781_v49, %v10020_v42 }
 0x316   : > { %v10085_v58 = vsel %vm1132_vm2, %v13901_v18, %v13900_v50  ;;  %v13905_v32 = vrot.slane %v9968_v29, 1  ;;  %v3793_v33 = vmul.f32 %v3792_v17, %v10020_v42  ;;  %v2060_v10 = vadd.f32 %v13906_v45, %v1930_v13 }
 0x317   : > { %13902 = vst [vmem:[#allocation98_spill] sm:$0xff] %v10085_v58  ;;  %v3862_v5 = vmul.f32 %v3861_v4, %v10022_v31  ;;  %v3873_v62 = vmul.f32 %v3872_v60, %v10022_v31  ;;  %v10105_v38 = vmul.f32 0.70710677, %v10088_v37  ;;  %v3894_v56 = vmul.f32 %v10091_v11, %v10091_v11 }
 0x318   : > { %13903 = vst [vmem:[#allocation75_spill] sm:$0xff] %v10091_v11  ;;  %v1416_v16 = vsel %vm1355_vm3, %v13905_v32, %v13904_v1  ;;  %v10111_v50 = vmul.f32 %v13564_v63, %v9962_v0  ;;  %v10114_v49 = vadd.f32 %v872_v61, %v13775_v46  ;;  %v3783_v17 = vadd.f32 0.18741608, %v3782_v54  ;;  %v13910_v32 = vld [vmem:[#allocation35_spill] sm:$0xff] }
 0x319   : > { %13907 = vst [vmem:[#allocation146_spill] sm:$0xff] %v10105_v38  ;;  %v3794_v18 = vadd.f32 0.4994258, %v3793_v33  ;;  %v10117_v13 = vmul.f32 0.5, %v9948_v39  ;;  %v3874_v4 = vadd.f32 0.4994258, %v3873_v62  ;;  %v3814_v60 = vmul.f32 %v10105_v38, %v10105_v38 }
 0x31a   : > { %13908 = vst [vmem:[#allocation102_spill] sm:$0xff] %v10111_v50  ;;  %v10121_v1 = vmin.f32 %v3894_v56, 16.0  ;;  %v10124_v45 = vmul.f32 %v13910_v32, %v1416_v16  ;;  %v1562_v8 = vmul.f32 %v13891_v34, %v10085_v58  ;;  %v1628_v61 = vmul.f32 %v13863_v59, %v9968_v29 }
 0x31b   : > { %13909 = vst [vmem:[#allocation79_spill] sm:$0xff] %v10114_v49  ;;  %v3795_v54 = vmul.f32 %v3794_v18, %v10020_v42  ;;  %v1884_v39 = vmul.f32 %v13895_v20, %v10085_v58  ;;  %v3863_v33 = vadd.f32 0.18741608, %v3862_v5  ;;  %v3875_v62 = vmul.f32 %v3874_v4, %v10022_v31 }
 0x31c   : > { %13911 = vst [vmem:[#allocation101_spill] sm:$0xff] %v10124_v45  ;;  %v10134_v50 = vmin.f32 %v3814_v60, 16.0  ;;  %v1121_v56 = vrot.slane %v10114_v49, 7  ;;  %v3784_v16 = vmul.f32 %v3783_v17, %v10020_v42  ;;  %v3896_v47 = vmul.f32 2.1237322e-06, %v10121_v1 }
 0x31d   : > { %v10138_v2 = vadd.f32 1.0, %v3795_v54  ;;  %v13912_v34 = vrot.slane %v9955_v51, 7  ;;  %v13913_v18 = vrot.slane %v9968_v29, 7  ;;  %v10149_v5 = vadd.f32 1.0, %v3875_v62 }
 0x31e   : > { %v3816_v4 = vmul.f32 2.1237322e-06, %v10134_v50  ;;  %v3827_v60 = vmul.f32 3.8918573e-05, %v10134_v50  ;;  %v10153_v20 = vadd.f32 %v1628_v61, %v1562_v8  ;;  %v3907_v17 = vmul.f32 3.8918573e-05, %v10121_v1 }
 0x31f   : > { %v10147_v58 = vsel %vm1132_vm2, %v13913_v18, %v13912_v34  ;;  %6483 = vrcp.f32 %v10138_v2  ;;  %v10160_v54 = vmul.f32 %v13585_v21, %v10124_v45  ;;  %v10164_v34 = vmul.f32 %v7147_v36, %v10114_v49 }
 0x320   : > { %v3864_v62 = vmul.f32 %v3863_v33, %v10022_v31  ;;  %6485 = vrcp.f32 %v10149_v5  ;;  %v10169_v8 = vadd.f32 %v1884_v39, %v9915_v15  ;;  %v13914_v61 = vrot.slane %v9962_v0, 7 }
 0x321   : > { %v3785_v42 = vadd.f32 1.1283791, %v3784_v16  ;;  %v3817_v45 = vadd.f32 0.00028619796, %v3816_v4  ;;  %v3828_v31 = vadd.f32 0.001143296, %v3827_v60  ;;  %v2128_v15 = vmul.f32 %v13830_v57, %v13858_v43 }
 0x322   : > { %v10175_v18 = vsel %vm1132_vm2, %v13914_v61, %v1121_v56  ;;  %v13916_v51 = vmov %v13914_v61  ;;  %v3897_v33 = vadd.f32 0.00028619796, %v3896_v47  ;;  %v13917_v39 = vrot.slane %v9962_v0, 1 }
 0x323   : > { %13915 = vst [vmem:[#allocation104_spill] sm:$0xff] %v10175_v18  ;;  %v10181_v21 = vsel %vm1132_vm2, %v1121_v56, %v13916_v51  ;;  %v13918_v19 = vrot.slane %v10114_v49, 1  ;;  %v3818_v16 = vmul.f32 %v3817_v45, %v10134_v50  ;;  %v3908_v4 = vadd.f32 0.001143296, %v3907_v17  ;;  %v13919_v56 = vld [vmem:[#allocation90_spill] sm:$0xff] }
 0x324   : > { %v2190_v36 = vadd.f32 %v9944_v23, %v2060_v10  ;;  %v3865_v59 = vadd.f32 1.1283791, %v3864_v62  ;;  %v3829_v51 = vmul.f32 %v3828_v31, %v10134_v50  ;;  %v3898_v47 = vmul.f32 %v3897_v33, %v10121_v1 }
 0x325   : > { %v1417_v61 = vsel %vm1355_vm3, %v13918_v19, %v13917_v39  ;;  %v2192_v60 = vadd.f32 %v2128_v15, %v13919_v56  ;;  %v6484_v43 = vpop.eup %6483  ;;  %v3786_v0 = vmul.f32 %v3785_v42, %v9986_v9  ;;  %v3909_v11 = vmul.f32 %v3908_v4, %v10121_v1  ;;  %v13920_v39 = vld [vmem:[#allocation100_spill] sm:$0xff] }
 0x326   : > { %v2256_v19 = vmul.f32 %v13691_v41, %v13890_v44  ;;  %v2258_v45 = vmul.f32 %v13691_v41, %v13920_v39  ;;  %v6486_v17 = vpop.eup %6485  ;;  %v3798_v23 = vmul.f32 %v6484_v43, %v10138_v2  ;;  %vm3802_vm0 = vweird.f32 %v10138_v2 }
 0x327   : > { %v3819_v10 = vadd.f32 0.0036580483, %v3818_v16  ;;  %v3830_v62 = vadd.f32 0.014752088, %v3829_v51  ;;  %v3806_v31 = vand.u32 2147483647, %v10138_v2  ;;  %v3878_v9 = vmul.f32 %v6486_v17, %v10149_v5 }
 0x328   : > { %v3808_v33 = vand.u32 2147483648, %v10138_v2  ;;  %v3910_v42 = vadd.f32 0.014752088, %v3909_v11  ;;  %v3799_v15 = vsub.f32 1.0, %v3798_v23  ;;  %v3866_v4 = vmul.f32 %v3865_v59, %v9989_v3 }
 0x329   : > { %v3831_v56 = vmul.f32 %v3830_v62, %v10134_v50  ;;  %v3899_v39 = vadd.f32 0.0036580483, %v3898_v47  ;;  %v3879_v41 = vsub.f32 1.0, %v3878_v9  ;;  %vm3882_vm1 = vweird.f32 %v10149_v5 }
 0x32a   : > { %v3888_v44 = vand.u32 2147483648, %v10149_v5  ;;  %v3911_v16 = vmul.f32 %v3910_v42, %v10121_v1  ;;  %v3800_v51 = vmul.f32 %v6484_v43, %v3799_v15  ;;  %vm3803_vm4 = vweird.f32 %v6484_v43 }
 0x32b   : > { %v3820_v27 = vmul.f32 %v3819_v10, %v10134_v50  ;;  %v3832_v38 = vadd.f32 0.112945676, %v3831_v56  ;;  %v3880_v46 = vmul.f32 %v6486_v17, %v3879_v41  ;;  %vm3883_vm5 = vweird.f32 %v6486_v17  ;;  %vm3804_vm7 = vmor %vm3802_vm0, %vm3803_vm4 }
 0x32c   : > { %v3886_v11 = vand.u32 2147483647, %v10149_v5  ;;  %v3912_v59 = vadd.f32 0.112945676, %v3911_v16  ;;  %v3801_v3 = vadd.f32 %v6484_v43, %v3800_v51  ;;  %vm3807_vm6 = vcmp.eq.f32.partialorder %v3806_v31, 8.507059e+37  ;;  %vm3884_vm8 = vmor %vm3882_vm1, %vm3883_vm5 }
 0x32d   : > { %v3833_v47 = vmul.f32 %v3832_v38, %v10134_v50  ;;  %v3900_v23 = vmul.f32 %v3899_v39, %v10121_v1  ;;  %v3809_v62 = vor.u32 1.1754944e-38, %v3808_v33  ;;  %v3881_v9 = vadd.f32 %v6486_v17, %v3880_v46 }
 0x32e   : > { %v3913_v42 = vmul.f32 %v3912_v59, %v10121_v1  ;;  %v2320_v10 = vadd.f32 %v2256_v19, %v2190_v36  ;;  %v3805_v15 = vsel %vm3804_vm7, %v6484_v43, %v3801_v3  ;;  %v3889_v41 = vor.u32 1.1754944e-38, %v3888_v44 }
 0x32f   : > { %v3821_v56 = vadd.f32 0.05243302, %v3820_v27  ;;  %v3834_v16 = vadd.f32 0.4994258, %v3833_v47  ;;  %v3810_v31 = vsel %vm3807_vm6, %v3809_v62, %v3805_v15  ;;  %v3885_v51 = vsel %vm3884_vm8, %v6486_v17, %v3881_v9  ;;  %v13922_v17 = vld [vmem:[#allocation93_spill] sm:$0xff] }
 0x330   : > { %vm3887_vm9 = vcmp.eq.f32.partialorder %v3886_v11, 8.507059e+37  ;;  %v3914_v38 = vadd.f32 0.4994258, %v3913_v42  ;;  %v3811_v39 = vmul.f32 %v3810_v31, %v3786_v0  ;;  %v3901_v33 = vadd.f32 0.05243302, %v3900_v23  ;;  %v13923_v23 = vld [vmem:[#allocation133_spill] sm:$0xff] }
 0x331   : > { %v3890_v24 = vsel %vm3887_vm9, %v3889_v41, %v3885_v51  ;;  %v3835_v2 = vmul.f32 %v3834_v16, %v10134_v50  ;;  %v10223_v46 = vmul.f32 %v13910_v32, %v1417_v61  ;;  %v2322_v5 = vadd.f32 %v2258_v45, %v2192_v60  ;;  %v13924_v31 = vld [vmem:[#allocation97_spill] sm:$0xff] }
 0x332   : > { %v3891_v36 = vmul.f32 %v3890_v24, %v3866_v4  ;;  %v3915_v43 = vmul.f32 %v3914_v38, %v10121_v1  ;;  %v6173_v19 = vclamps-f32 %v3811_v39, 1.0  ;;  %v3822_v27 = vmul.f32 %v3821_v56, %v10134_v50 }
 0x333   : > { %13921 = vst [vmem:[#allocation76_spill] sm:$0xff] %v10223_v46  ;;  %v10227_v44 = vadd.f32 1.0, %v3835_v2  ;;  %v2450_v11 = vadd.f32 %v13922_v17, %v2320_v10  ;;  %v1563_v0 = vmul.f32 %v13643_v35, %v10175_v18  ;;  %v1885_v59 = vmul.f32 %v13876_v6, %v10175_v18  ;;  %v776_v2 = vpop.f32.mrf.mxu0  ;;  %v13961_v18 = vld [vmem:[#allocation116_spill] sm:$0xff] }
 0x334   : > { %v6175_v3 = vclamps-f32 %v3891_v36, 1.0  ;;  %v10234_v61 = vadd.f32 1.0, %v3915_v43  ;;  %v5398_v24 = vadd.f32 1.0, %v6173_v19  ;;  %v3902_v60 = vmul.f32 %v3901_v33, %v10121_v1 }
 0x335   : > { %6487 = vrcp.f32 %v10227_v44  ;;  %v2516_v45 = vmul.f32 %v9903_v25, %v10050_v30  ;;  %v2712_v4 = vmul.f32 0.5, %v9958_v48  ;;  %v2452_v62 = vadd.f32 %v13923_v23, %v2322_v5 }
 0x336   : > { %v5400_v47 = vadd.f32 1.0, %v6175_v3  ;;  %6489 = vrcp.f32 %v10234_v61  ;;  %v1759_v9 = vmul.f32 %v7230_v22, %v10223_v46  ;;  %v5462_v42 = vmul.f32 %v5398_v24, %v10117_v13 }
 0x337   : > { %v3823_v10 = vadd.f32 0.18741608, %v3822_v27  ;;  %v2580_v15 = vadd.f32 %v2516_v45, %v2450_v11  ;;  %v1693_v41 = vadd.f32 %v10164_v34, %v1563_v0  ;;  %v1949_v56 = vadd.f32 %v1885_v59, %v9921_v7  ;;  %v875_v59 = vpop.f32.mrf.mxu1 }
 0x338   : > { %v5464_v16 = vmul.f32 %v5400_v47, %v2712_v4  ;;  %v2518_v48 = vmul.f32 %v9903_v25, %v13924_v31  ;;  %v10252_v51 = vmul.f32 %v13822_v12, %v10147_v58  ;;  %v2014_v38 = vmul.f32 %v13865_v53, %v9968_v29 }
 0x339   : > { %v10258_v13 = vmul.f32 %v7379_v55, %v9968_v29  ;;  %v3903_v39 = vadd.f32 0.18741608, %v3902_v60  ;;  %v10262_v34 = vadd.f32 %v10160_v54, %v10153_v20  ;;  %v2015_v7 = vmul.f32 %v7255_v52, %v10114_v49 }
 0x33a   : > { %13925 = vst [vmem:[#allocation80_spill] sm:$0xff] %v10252_v51  ;;  %v5514_v25 = vpack.c.bf16 %v5464_v16, %v5462_v42  ;;  %v2582_v33 = vadd.f32 %v2518_v48, %v2452_v62  ;;  %v10267_v36 = vadd.f32 %v2014_v38, %v10169_v8  ;;  %v10271_v43 = vmul.f32 %v13822_v12, %v10181_v21  ;;  %v13933_v48 = vld [vmem:[#allocation32_spill] sm:$0xff] }
 0x33b   : > { %13926 = vst [vmem:[#allocation65_spill] sm:$0xff] %v10258_v13  ;;  %v6488_v58 = vpop.eup %6487  ;;  %v3824_v5 = vmul.f32 %v3823_v10, %v10134_v50  ;;  %v2650_v19 = vadd.f32 %v13555_v28, %v2580_v15  ;;  %v10275_v54 = vadd.f32 %v1759_v9, %v1693_v41  ;;  %v10277_v27 = vadd.f32 %v2015_v7, %v1949_v56  ;;  %v13931_v10 = vld [vmem:[#allocation30_spill] sm:$0xff] }
 0x33c   : > { %13927 = vst [vmem:[#allocation83_spill] sm:$0xff] %v10267_v36  ;;  %v6490_v20 = vpop.eup %6489  ;;  %v10281_v17 = vmul.f32 %v13564_v63, %v10114_v49  ;;  %5704 = vmatmul.bf16.gmra.mxu2 %v5514_v25  ;;  %v3838_v8 = vmul.f32 %v6488_v58, %v10227_v44  ;;  %v10286_v21 = vmul.f32 %v13802_v14, %v9997_v26  ;;  %v10289_v50 = vmul.f32 0.5, %v10072_v40  ;;  %v13969_v49 = vld [vmem:[#allocation36_spill] sm:$0xff] }
 0x33d   : > { %13928 = vst [vmem:[#allocation47_spill] sm:$0xff] %v10271_v43  ;;  %v3904_v11 = vmul.f32 %v3903_v39, %v10121_v1  ;;  %v3918_v0 = vmul.f32 %v6490_v20, %v10234_v61  ;;  %v2711_v3 = vmul.f32 0.5, %v10088_v37  ;;  %v10296_v60 = vmul.f32 %v13830_v57, %v10050_v30  ;;  %v13935_v39 = vld [vmem:[#allocation146_spill] sm:$0xff] }
 0x33e   : > { %13929 = vst [vmem:[#allocation87_spill] sm:$0xff] %v10277_v27  ;;  %v3839_v24 = vsub.f32 1.0, %v3838_v8  ;;  %v2652_v45 = vadd.f32 %v13555_v28, %v2582_v33  ;;  %v3825_v4 = vadd.f32 1.1283791, %v3824_v5  ;;  %v3848_v26 = vand.u32 2147483648, %v10227_v44  ;;  %v13966_v43 = vld [vmem:[#allocation134_spill] sm:$0xff] }
 0x33f   : > { %13930 = vst [vmem:[#allocation141_spill] sm:$0xff] %v10281_v17  ;;  %v3919_v47 = vsub.f32 1.0, %v3918_v0  ;;  %v10300_v40 = vmul.f32 0.5, %v2650_v19  ;;  %vm3843_vm10 = vweird.f32 %v6488_v58  ;;  %v3846_v1 = vand.u32 2147483647, %v10227_v44 }
 0x340   : > { %v3840_v23 = vmul.f32 %v6488_v58, %v3839_v24  ;;  %v3928_v62 = vand.u32 2147483648, %v10234_v61  ;;  %v3905_v37 = vadd.f32 1.1283791, %v3904_v11  ;;  %vm3923_vm11 = vweird.f32 %v6490_v20 }
 0x341   : > { %v3920_v9 = vmul.f32 %v6490_v20, %v3919_v47  ;;  %v3926_v30 = vand.u32 2147483647, %v10234_v61  ;;  %vm3842_vm12 = vweird.f32 %v10227_v44  ;;  %v10307_v15 = vadd.f32 %v776_v2, %v13931_v10  ;;  %v778_v44 = vpop.f32.mrf.mxu0  ;;  %v13936_v2 = vld [vmem:[#allocation75_spill] sm:$0xff] }
 0x342   : > { %v3841_v42 = vadd.f32 %v6488_v58, %v3840_v23  ;;  %v10309_v41 = vmul.f32 0.5, %v2652_v45  ;;  %vm3844_vm13 = vmor %vm3842_vm12, %vm3843_vm10  ;;  %v3849_v56 = vor.u32 1.1754944e-38, %v3848_v26  ;;  %vm3922_vm14 = vweird.f32 %v10234_v61 }
 0x343   : > { %13932 = vst [vmem:[#allocation147_spill] sm:$0xff] %v10307_v15  ;;  %v3921_v16 = vadd.f32 %v6490_v20, %v3920_v9  ;;  %v10313_v38 = vadd.f32 %v875_v59, %v13933_v48  ;;  %v3826_v7 = vmul.f32 %v3825_v4, %v13935_v39  ;;  %vm3847_vm15 = vcmp.eq.f32.partialorder %v3846_v1, 8.507059e+37  ;;  %vm3924_vm0 = vmor %vm3922_vm14, %vm3923_vm11  ;;  %v877_v1 = vpop.f32.mrf.mxu1 }
 0x344   : > { %v3845_v25 = vsel %vm3844_vm13, %v6488_v58, %v3841_v42  ;;  %v3929_v33 = vor.u32 1.1754944e-38, %v3928_v62  ;;  %v3906_v8 = vmul.f32 %v3905_v37, %v13936_v2  ;;  %vm3927_vm1 = vcmp.eq.f32.partialorder %v3926_v30, 8.507059e+37  ;;  %v13937_v58 = vld [vmem:[#allocation37_spill] sm:$0xff]  ;;  %v13942_v42 = vld [vmem:[#allocation38_spill] sm:$0xff] }
 0x345   : > { %13934 = vst [vmem:[#allocation78_spill] sm:$0xff] %v10313_v38  ;;  %v3850_v5 = vsel %vm3847_vm15, %v3849_v56, %v3845_v25  ;;  %v3925_v11 = vsel %vm3924_vm0, %v6490_v20, %v3921_v16  ;;  %v10318_v61 = vmul.f32 0.70710677, %v2650_v19  ;;  %v10323_v4 = vmul.f32 %v13937_v58, %v10307_v15 }
 0x346   : > { %v3851_v0 = vmul.f32 %v3850_v5, %v3826_v7  ;;  %v3930_v24 = vsel %vm3927_vm1, %v3929_v33, %v3925_v11  ;;  %v10326_v23 = vadd.f32 %v778_v44, %v13931_v10  ;;  %v10330_v20 = vmul.f32 %v13865_v53, %v10307_v15  ;;  %v13945_v33 = vld [vmem:[#allocation105_spill] sm:$0xff]  ;;  %v13947_v5 = vld [vmem:[#allocation58_spill] sm:$0xff] }
 0x347   : > { %v3931_v59 = vmul.f32 %v3930_v24, %v3906_v8  ;;  %13938 = vst [vmem:[#allocation99_spill] sm:$0xff] %v10323_v4  ;;  %v10334_v19 = vmul.f32 %v7379_v55, %v10307_v15  ;;  %v10340_v56 = vmul.f32 %v13942_v42, %v10313_v38  ;;  %v10342_v16 = vmul.f32 0.70710677, %v2652_v45  ;;  %v13960_v4 = vld [vmem:[#allocation73_spill] sm:$0xff] }
 0x348   : > { %13939 = vst [vmem:[#allocation113_spill] sm:$0xff] %v10326_v23  ;;  %v6174_v62 = vclamps-f32 %v3851_v0, 1.0  ;;  %v10345_v7 = vadd.f32 %v877_v1, %v13933_v48  ;;  %v3934_v25 = vmul.f32 %v10318_v61, %v10318_v61  ;;  %v13946_v44 = vrot.slane %v13945_v33, 1  ;;  %v13951_v33 = vld [vmem:[#allocation81_spill] sm:$0xff] }
 0x349   : > { %13940 = vst [vmem:[#allocation106_spill] sm:$0xff] %v10330_v20  ;;  %v6176_v9 = vclamps-f32 %v3931_v59, 1.0  ;;  %v13948_v2 = vrot.slane %v13947_v5, 1  ;;  %v4014_v45 = vmul.f32 %v10342_v16, %v10342_v16  ;;  %v13950_v59 = vld [vmem:[#allocation42_spill] sm:$0xff]  ;;  %v1867_v5 = vmul.f32 %v13876_v6, %v13951_v33 }
 0x34a   : > { %13941 = vst [vmem:[#allocation84_spill] sm:$0xff] %v10334_v19  ;;  %v5399_v39 = vadd.f32 1.0, %v6174_v62  ;;  %v1549_v1 = vmul.f32 %v13643_v35, %v13950_v59  ;;  %v10363_v30 = vmin.f32 %v3934_v25, 16.0  ;;  %v13954_v25 = vld [vmem:[#allocation69_spill] sm:$0xff] }
 0x34b   : > { %13943 = vst [vmem:[#allocation139_spill] sm:$0xff] %v10340_v56  ;;  %v10355_v11 = vsel %vm1355_vm3, %v13948_v2, %v13946_v44  ;;  %v5401_v0 = vadd.f32 1.0, %v6176_v9  ;;  %v10368_v2 = vmin.f32 %v4014_v45, 16.0  ;;  %v13952_v9 = vld [vmem:[#allocation103_spill] sm:$0xff]  ;;  %v2129_v20 = vmul.f32 %v13802_v14, %v13954_v25 }
 0x34c   : > { %13944 = vst [vmem:[#allocation88_spill] sm:$0xff] %v10345_v7  ;;  %v5463_v62 = vmul.f32 %v5399_v39, %v2711_v3  ;;  %v1679_v26 = vadd.f32 %v13952_v9, %v1549_v1  ;;  %v1745_v24 = vmul.f32 %v7230_v22, %v10355_v11  ;;  %v3936_v47 = vmul.f32 2.1237322e-06, %v10363_v30  ;;  %v13953_v39 = vld [vmem:[#allocation64_spill] sm:$0xff] }
 0x34d   : > { %v5465_v44 = vmul.f32 %v5401_v0, %v10289_v50  ;;  %v3947_v3 = vmul.f32 3.8918573e-05, %v10363_v30  ;;  %v1931_v37 = vadd.f32 %v1867_v5, %v13953_v39  ;;  %v4016_v33 = vmul.f32 2.1237322e-06, %v10368_v2  ;;  %v13958_v5 = vld [vmem:[#allocation125_spill] sm:$0xff] }
 0x34e   : > { %v4027_v50 = vmul.f32 3.8918573e-05, %v10368_v2  ;;  %v10380_v0 = vadd.f32 %v1745_v24, %v1679_v26  ;;  %v13956_v45 = vrot.slane %v10307_v15, 1  ;;  %v13957_v1 = vrot.slane %v10326_v23, 1 }
 0x34f   : > { %v5515_v27 = vpack.c.bf16 %v5465_v44, %v5463_v62  ;;  %v3937_v56 = vadd.f32 0.00028619796, %v3936_v47  ;;  %v3948_v19 = vadd.f32 0.001143296, %v3947_v3  ;;  %v2061_v39 = vadd.f32 %v13958_v5, %v1931_v37  ;;  %v13959_v44 = vld [vmem:[#allocation53_spill] sm:$0xff] }
 0x350   : > { %13955 = vst [vmem:[#allocation129_spill] sm:$0xff] %v10380_v0  ;;  %v1418_v9 = vsel %vm1355_vm3, %v13957_v1, %v13956_v45  ;;  %v4017_v25 = vadd.f32 0.00028619796, %v4016_v33  ;;  %v4028_v62 = vadd.f32 0.001143296, %v4027_v50  ;;  %v2193_v36 = vadd.f32 %v2129_v20, %v13959_v44  ;;  %v13962_v37 = vld [vmem:[#allocation89_spill] sm:$0xff] }
 0x351   : > { %5793 = vmatmul.bf16.gmra.mxu3 %v5515_v27  ;;  %v2257_v26 = vmul.f32 %v13960_v4, %v13950_v59  ;;  %v3938_v24 = vmul.f32 %v3937_v56, %v10363_v30  ;;  %v3949_v17 = vmul.f32 %v3948_v19, %v10363_v30  ;;  %v2191_v46 = vadd.f32 %v10286_v21, %v2061_v39  ;;  %v13963_v20 = vld [vmem:[#allocation121_spill] sm:$0xff]  ;;  %v13964_v21 = vld [vmem:[#allocation124_spill] sm:$0xff] }
 0x352   : > { %v2259_v47 = vmul.f32 %v13960_v4, %v13961_v18  ;;  %v4018_v3 = vmul.f32 %v4017_v25, %v10368_v2  ;;  %v4029_v27 = vmul.f32 %v4028_v62, %v10368_v2  ;;  %v2517_v33 = vmul.f32 %v13962_v37, %v10355_v11  ;;  %v13968_v62 = vld [vmem:[#allocation68_spill] sm:$0xff] }
 0x353   : > { %v2519_v50 = vmul.f32 %v13962_v37, %v13963_v20  ;;  %v3939_v45 = vadd.f32 0.0036580483, %v3938_v24  ;;  %v3950_v1 = vadd.f32 0.014752088, %v3949_v17  ;;  %v2321_v56 = vadd.f32 %v2257_v26, %v2191_v46  ;;  %v13970_v17 = vld [vmem:[#allocation82_spill] sm:$0xff]  ;;  %v13973_v37 = vld [vmem:[#allocation41_spill] sm:$0xff] }
 0x354   : > { %v2323_v5 = vadd.f32 %v2259_v47, %v2193_v36  ;;  %v4019_v19 = vadd.f32 0.0036580483, %v4018_v3  ;;  %v4030_v44 = vadd.f32 0.014752088, %v4029_v27  ;;  %v13965_v39 = vrot.slane %v13964_v21, 1  ;;  %v13971_v36 = vld [vmem:[#allocation110_spill] sm:$0xff] }
 0x355   : > { %v13967_v18 = vrot.slane %v13966_v43, 1  ;;  %v1552_v13 = vmul.f32 %v13969_v49, %v13968_v62  ;;  %v3940_v51 = vmul.f32 %v3939_v45, %v10363_v30  ;;  %v3951_v24 = vmul.f32 %v3950_v1, %v10363_v30  ;;  %v13972_v43 = vld [vmem:[#allocation91_spill] sm:$0xff] }
 0x356   : > { %v2451_v46 = vadd.f32 %v13970_v17, %v2321_v56  ;;  %v2453_v26 = vadd.f32 %v13971_v36, %v2323_v5  ;;  %v4020_v47 = vmul.f32 %v4019_v19, %v10368_v2  ;;  %v4031_v3 = vmul.f32 %v4030_v44, %v10368_v2  ;;  %v13975_v56 = vld [vmem:[#allocation92_spill] sm:$0xff]  ;;  %v13976_v17 = vld [vmem:[#allocation43_spill] sm:$0xff]  ;;  %v13977_v36 = vld [vmem:[#allocation86_spill] sm:$0xff] }
 0x357   : > { %v10409_v25 = vsel %vm1355_vm3, %v13967_v18, %v13965_v39  ;;  %v1682_v27 = vadd.f32 %v13972_v43, %v1552_v13  ;;  %v3941_v39 = vadd.f32 0.05243302, %v3940_v51  ;;  %v3952_v18 = vadd.f32 0.112945676, %v3951_v24 }
 0x358   : > { %v1748_v21 = vmul.f32 %v13973_v37, %v10409_v25  ;;  %v2581_v29 = vadd.f32 %v2517_v33, %v2451_v46  ;;  %v2583_v0 = vadd.f32 %v2519_v50, %v2453_v26  ;;  %v4021_v45 = vadd.f32 0.05243302, %v4020_v47  ;;  %v13982_v26 = vld [vmem:[#allocation55_spill] sm:$0xff] }
 0x359   : > { %v4032_v4 = vadd.f32 0.112945676, %v4031_v3  ;;  %v1870_v5 = vmul.f32 %v13976_v17, %v13975_v56  ;;  %v3942_v19 = vmul.f32 %v3941_v39, %v10363_v30  ;;  %v3953_v44 = vmul.f32 %v3952_v18, %v10363_v30  ;;  %v13986_v56 = vld [vmem:[#allocation109_spill] sm:$0xff] }
 0x35a   : > { %v10422_v1 = vadd.f32 %v1748_v21, %v1682_v27  ;;  %v10429_v13 = vadd.f32 %v13977_v36, %v2581_v29  ;;  %v10432_v43 = vadd.f32 %v13977_v36, %v2583_v0  ;;  %v13979_v51 = vrot.slane %v10326_v23, 7 }
 0x35b   : > { %v13980_v33 = vrot.slane %v10307_v15, 7  ;;  %v4022_v24 = vmul.f32 %v4021_v45, %v10368_v2  ;;  %v4033_v46 = vmul.f32 %v4032_v4, %v10368_v2  ;;  %v1934_v47 = vadd.f32 %v1870_v5, %v13982_v26 }
 0x35c   : > { %13974 = vst [vmem:[#allocation94_spill] sm:$0xff] %v10422_v1  ;;  %v10447_v29 = vmul.f32 %v7255_v52, %v10313_v38  ;;  %v10450_v0 = vmul.f32 %v13910_v32, %v1418_v9  ;;  %v3943_v3 = vadd.f32 0.18741608, %v3942_v19  ;;  %v3954_v27 = vadd.f32 0.4994258, %v3953_v44 }
 0x35d   : > { %13978 = vst [vmem:[#allocation90_spill] sm:$0xff] %v10432_v43  ;;  %v10440_v50 = vsel %vm1132_vm2, %v13980_v33, %v13979_v51  ;;  %v4023_v21 = vadd.f32 0.18741608, %v4022_v24  ;;  %v4034_v39 = vadd.f32 0.4994258, %v4033_v46  ;;  %v2064_v45 = vadd.f32 %v13986_v56, %v1934_v47 }
 0x35e   : > { %13981 = vst [vmem:[#allocation100_spill] sm:$0xff] %v10440_v50  ;;  %v10453_v18 = vmul.f32 0.70710677, %v10429_v13  ;;  %v1566_v4 = vmul.f32 %v13969_v49, %v10440_v50  ;;  %v3955_v51 = vmul.f32 %v3954_v27, %v10363_v30  ;;  %v10461_v33 = vmul.f32 0.70710677, %v10432_v43 }
 0x35f   : > { %13983 = vst [vmem:[#allocation93_spill] sm:$0xff] %v10447_v29  ;;  %v1888_v9 = vmul.f32 %v13976_v17, %v10440_v50  ;;  %v3944_v19 = vmul.f32 %v3943_v3, %v10363_v30  ;;  %v4035_v44 = vmul.f32 %v4034_v39, %v10368_v2  ;;  %v1632_v46 = vmul.f32 %v13937_v58, %v10326_v23 }
 0x360   : > { %13984 = vst [vmem:[#allocation133_spill] sm:$0xff] %v10450_v0  ;;  %v3974_v24 = vmul.f32 %v10453_v18, %v10453_v18  ;;  %v10472_v47 = vadd.f32 1.0, %v3955_v51  ;;  %v4024_v27 = vmul.f32 %v4023_v21, %v10368_v2  ;;  %v10477_v56 = vmul.f32 %v13865_v53, %v10326_v23 }
 0x361   : > { %13985 = vst [vmem:[#allocation97_spill] sm:$0xff] %v10453_v18  ;;  %v10479_v5 = vadd.f32 1.0, %v4035_v44  ;;  %v4054_v3 = vmul.f32 %v10461_v33, %v10461_v33  ;;  %v13988_v39 = vrot.slane %v10307_v15, 7  ;;  %v13989_v29 = vrot.slane %v10326_v23, 7 }
 0x362   : > { %13987 = vst [vmem:[#allocation146_spill] sm:$0xff] %v10461_v33  ;;  %v10481_v30 = vmin.f32 %v3974_v24, 16.0  ;;  %v10493_v2 = vadd.f32 %v1632_v46, %v1566_v4  ;;  %v13990_v21 = vrot.slane %v10313_v38, 1  ;;  %v13991_v44 = vrot.slane %v10345_v7, 1 }
 0x363   : > { %v10491_v51 = vsel %vm1132_vm2, %v13989_v29, %v13988_v39  ;;  %6491 = vrcp.f32 %v10472_v47  ;;  %v10504_v26 = vmul.f32 %v13973_v37, %v10450_v0  ;;  %v10507_v50 = vadd.f32 %v1888_v9, %v10262_v34 }
 0x364   : > { %v1419_v24 = vsel %vm1355_vm3, %v13991_v44, %v13990_v21  ;;  %v3945_v29 = vadd.f32 1.1283791, %v3944_v19  ;;  %6493 = vrcp.f32 %v10479_v5  ;;  %v13992_v4 = vrot.slane %v10345_v7, 7 }
 0x365   : > { %v13993_v46 = vrot.slane %v10313_v38, 7  ;;  %v4025_v21 = vadd.f32 1.1283791, %v4024_v27  ;;  %v3976_v44 = vmul.f32 2.1237322e-06, %v10481_v30  ;;  %v2132_v15 = vmul.f32 %v13830_v57, %v13924_v31  ;;  %v13997_v27 = vld [vmem:[#allocation52_spill] sm:$0xff] }
 0x366   : > { %v10522_v34 = vmul.f32 %v13910_v32, %v1419_v24  ;;  %v3987_v9 = vmul.f32 3.8918573e-05, %v10481_v30  ;;  %v10525_v19 = vmin.f32 %v4054_v3, 16.0  ;;  %v2194_v1 = vadd.f32 %v10296_v60, %v2064_v45 }
 0x367   : > { %v10516_v39 = vsel %vm1132_vm2, %v13993_v46, %v13992_v4  ;;  %v3966_v36 = vand.u32 2147483647, %v10472_v47  ;;  %v3977_v17 = vadd.f32 0.00028619796, %v3976_v44  ;;  %v13996_v4 = vld [vmem:[#allocation115_spill] sm:$0xff]  ;;  %v2260_v37 = vmul.f32 %v13997_v27, %v13968_v62 }
 0x368   : > { %13994 = vst [vmem:[#allocation75_spill] sm:$0xff] %v10516_v39  ;;  %v2196_v46 = vadd.f32 %v2132_v15, %v13996_v4  ;;  %v3946_v49 = vmul.f32 %v3945_v29, %v10318_v61  ;;  %v3988_v31 = vadd.f32 0.001143296, %v3987_v9  ;;  %v4056_v24 = vmul.f32 2.1237322e-06, %v10525_v19  ;;  %v14002_v9 = vld [vmem:[#allocation71_spill] sm:$0xff] }
 0x369   : > { %13995 = vst [vmem:[#allocation38_spill] sm:$0xff] %v10522_v34  ;;  %v4067_v32 = vmul.f32 3.8918573e-05, %v10525_v19  ;;  %v6492_v20 = vpop.eup %6491  ;;  %vm3962_vm4 = vweird.f32 %v10472_v47  ;;  %v3968_v60 = vand.u32 2147483648, %v10472_v47  ;;  %v4026_v45 = vmul.f32 %v4025_v21, %v10342_v16 }
 0x36a   : > { %v3978_v3 = vmul.f32 %v3977_v17, %v10481_v30  ;;  %v6494_v15 = vpop.eup %6493  ;;  %v3958_v44 = vmul.f32 %v6492_v20, %v10472_v47  ;;  %vm4042_vm5 = vweird.f32 %v10479_v5  ;;  %v3989_v61 = vmul.f32 %v3988_v31, %v10481_v30 }
 0x36b   : > { %v4057_v29 = vadd.f32 0.00028619796, %v4056_v24  ;;  %vm10542_vm6 = vcmp.eq.f32.partialorder %v3966_v36, 8.507059e+37  ;;  %v4038_v4 = vmul.f32 %v6494_v15, %v10479_v5  ;;  %v4068_v59 = vadd.f32 0.001143296, %v4067_v32  ;;  %v14000_v24 = vld [vmem:[#allocation72_spill] sm:$0xff] }
 0x36c   : > { %v3979_v62 = vadd.f32 0.0036580483, %v3978_v3  ;;  %v3959_v53 = vsub.f32 1.0, %v3958_v44  ;;  %v4046_v16 = vand.u32 2147483647, %v10479_v5  ;;  %v4048_v48 = vand.u32 2147483648, %v10479_v5 }
 0x36d   : > { %v3990_v17 = vadd.f32 0.014752088, %v3989_v61  ;;  %v4058_v21 = vmul.f32 %v4057_v29, %v10525_v19  ;;  %v4039_v33 = vsub.f32 1.0, %v4038_v4  ;;  %v4069_v31 = vmul.f32 %v4068_v59, %v10525_v19  ;;  %v10568_v5 = vld [vmem:[#allocation11 + $0x10] ss:$0 sm:$0xff] }
 0x36e   : > { %v2262_v36 = vmul.f32 %v13997_v27, %v14000_v24  ;;  %v3960_v58 = vmul.f32 %v6492_v20, %v3959_v53  ;;  %vm3963_vm7 = vweird.f32 %v6492_v20  ;;  %v3980_v18 = vmul.f32 %v3979_v62, %v10481_v30 }
 0x36f   : > { %v3991_v32 = vmul.f32 %v3990_v17, %v10481_v30  ;;  %v4040_v3 = vmul.f32 %v6494_v15, %v4039_v33  ;;  %vm4043_vm8 = vweird.f32 %v6494_v15  ;;  %v4059_v44 = vadd.f32 0.0036580483, %v4058_v21  ;;  %vm3964_vm9 = vmor %vm3962_vm4, %vm3963_vm7  ;;  %v14001_v21 = vld [vmem:[#allocation128_spill] sm:$0xff] }
 0x370   : > { %v4070_v61 = vadd.f32 0.014752088, %v4069_v31  ;;  %v3961_v10 = vadd.f32 %v6492_v20, %v3960_v58  ;;  %v3969_v29 = vor.u32 1.1754944e-38, %v3968_v60  ;;  %v2324_v43 = vadd.f32 %v2260_v37, %v2194_v1  ;;  %vm4044_vm11 = vmor %vm4042_vm5, %vm4043_vm8 }
 0x371   : > { %v3992_v4 = vadd.f32 0.112945676, %v3991_v32  ;;  %v4041_v59 = vadd.f32 %v6494_v15, %v4040_v3  ;;  %vm4047_vm10 = vcmp.eq.f32.partialorder %v4046_v16, 8.507059e+37  ;;  %v4049_v24 = vor.u32 1.1754944e-38, %v4048_v48 }
 0x372   : > { %v4071_v53 = vmul.f32 %v4070_v61, %v10525_v19  ;;  %v3965_v27 = vsel %vm3964_vm9, %v6492_v20, %v3961_v10  ;;  %v3981_v62 = vadd.f32 0.05243302, %v3980_v18  ;;  %v2326_v17 = vadd.f32 %v2262_v36, %v2196_v46 }
 0x373   : > { %v3993_v33 = vmul.f32 %v3992_v4, %v10481_v30  ;;  %v3970_v58 = vsel %vm10542_vm6, %v3969_v29, %v3965_v27  ;;  %v4045_v37 = vsel %vm4044_vm11, %v6494_v15, %v4041_v59  ;;  %v4060_v1 = vmul.f32 %v4059_v44, %v10525_v19  ;;  %v14003_v29 = vld [vmem:[#allocation117_spill] sm:$0xff] }
 0x374   : > { %v4072_v47 = vadd.f32 0.112945676, %v4071_v53  ;;  %v3971_v60 = vmul.f32 %v3970_v58, %v3946_v49  ;;  %v4050_v16 = vsel %vm4047_vm10, %v4049_v24, %v4045_v37  ;;  %v2454_v31 = vadd.f32 %v14001_v21, %v2324_v43 }
 0x375   : > { %v3994_v48 = vadd.f32 0.4994258, %v3993_v33  ;;  %v1889_v10 = vmul.f32 %v13876_v6, %v10516_v39  ;;  %v4051_v20 = vmul.f32 %v4050_v16, %v4026_v45  ;;  %v2520_v46 = vmul.f32 %v10568_v5, %v10409_v25 }
 0x376   : > { %v4073_v18 = vmul.f32 %v4072_v47, %v10525_v19  ;;  %v6177_v27 = vclamps-f32 %v3971_v60, 1.0  ;;  %v3982_v15 = vmul.f32 %v3981_v62, %v10481_v30  ;;  %v2456_v36 = vadd.f32 %v14002_v9, %v2326_v17 }
 0x377   : > { %v3995_v49 = vmul.f32 %v3994_v48, %v10481_v30  ;;  %v1567_v43 = vmul.f32 %v13643_v35, %v10516_v39  ;;  %v6179_v32 = vclamps-f32 %v4051_v20, 1.0  ;;  %v4061_v3 = vadd.f32 0.05243302, %v4060_v1 }
 0x378   : > { %v4074_v45 = vadd.f32 0.4994258, %v4073_v18  ;;  %v5402_v44 = vadd.f32 1.0, %v6177_v27  ;;  %v2522_v4 = vmul.f32 %v10568_v5, %v14003_v29  ;;  %v2584_v59 = vadd.f32 %v2520_v46, %v2454_v31 }
 0x379   : > { %v10577_v61 = vadd.f32 1.0, %v3995_v49  ;;  %v1633_v24 = vmul.f32 %v13942_v42, %v10345_v7  ;;  %v1953_v53 = vadd.f32 %v1889_v10, %v10275_v54  ;;  %v5404_v62 = vadd.f32 1.0, %v6179_v32 }
 0x37a   : > { %v4075_v33 = vmul.f32 %v4074_v45, %v10525_v19  ;;  %v5466_v17 = vmul.f32 %v5402_v44, %v10300_v40  ;;  %v3983_v58 = vadd.f32 0.18741608, %v3982_v15  ;;  %v2586_v37 = vadd.f32 %v2522_v4, %v2456_v36 }
 0x37b   : > { %6495 = vrcp.f32 %v10577_v61  ;;  %v2019_v1 = vmul.f32 %v7255_v52, %v10345_v7  ;;  %v5468_v47 = vmul.f32 %v5404_v62, %v10309_v41  ;;  %v4062_v60 = vmul.f32 %v4061_v3, %v10525_v19 }
 0x37c   : > { %v10591_v16 = vadd.f32 1.0, %v4075_v33  ;;  %v2082_v54 = vadd.f32 %v10477_v56, %v10507_v50  ;;  %v14004_v48 = vrot.slane %v10313_v38, 7  ;;  %v14005_v40 = vrot.slane %v10345_v7, 7 }
 0x37d   : > { %v1763_v31 = vmul.f32 %v7230_v22, %v10522_v34  ;;  %v2654_v10 = vadd.f32 %v13555_v28, %v2584_v59  ;;  %v1697_v41 = vadd.f32 %v1633_v24, %v1567_v43  ;;  %v2083_v20 = vadd.f32 %v2019_v1, %v1953_v53  ;;  %v781_v43 = vpop.f32.mrf.mxu0 }
 0x37e   : > { %v1196_v21 = vsel %vm1132_vm2, %v14005_v40, %v14004_v48  ;;  %v5516_v18 = vpack.c.bf16 %v5468_v47, %v5466_v17  ;;  %6497 = vrcp.f32 %v10591_v16  ;;  %v10607_v50 = vmul.f32 %v13564_v63, %v10313_v38  ;;  %v14013_v17 = vld [vmem:[#allocation90_spill] sm:$0xff] }
 0x37f   : > { %v2148_v56 = vmul.f32 %v13830_v57, %v10450_v0  ;;  %v3984_v46 = vmul.f32 %v3983_v58, %v10481_v30  ;;  %v2656_v27 = vadd.f32 %v13555_v28, %v2586_v37  ;;  %v10615_v15 = vmul.f32 %v13822_v12, %v10491_v51 }
 0x380   : > { %14006 = vst [vmem:[#allocation105_spill] sm:$0xff] %v10607_v50  ;;  %v10619_v49 = vmul.f32 %v7379_v55, %v10326_v23  ;;  %v2149_v9 = vmul.f32 %v13802_v14, %v10522_v34  ;;  %5709 = vmatmul.bf16.gmra.mxu2 %v5516_v18  ;;  %v4063_v36 = vadd.f32 0.18741608, %v4062_v60  ;;  %v10625_v30 = vadd.f32 %v10504_v26, %v10493_v2  ;;  %v14040_v50 = vld [vmem:[#allocation77_spill] sm:$0xff] }
 0x381   : > { %14007 = vst [vmem:[#allocation58_spill] sm:$0xff] %v10615_v15  ;;  %v6496_v32 = vpop.eup %6495  ;;  %v10627_v3 = vadd.f32 %v2148_v56, %v2082_v54  ;;  %v10630_v51 = vmul.f32 %v13822_v12, %v1196_v21  ;;  %v10632_v45 = vmul.f32 0.70710677, %v2654_v10  ;;  %v10634_v44 = vadd.f32 %v1763_v31, %v1697_v41  ;;  %v14014_v31 = vld [vmem:[#allocation30_spill] sm:$0xff]  ;;  %v14016_v41 = vld [vmem:[#allocation97_spill] sm:$0xff] }
 0x382   : > { %14008 = vst [vmem:[#allocation29_spill] sm:$0xff] %v10619_v49  ;;  %v10636_v4 = vadd.f32 %v2149_v9, %v2083_v20  ;;  %v10640_v59 = vmul.f32 %v13564_v63, %v10345_v7  ;;  %v3998_v24 = vmul.f32 %v6496_v32, %v10577_v61  ;;  %v10645_v26 = vmul.f32 %v13802_v14, %v10355_v11  ;;  %v10773_v7 = vld [vmem:[#allocation11 + $0x18] ss:$0 sm:$0xff] }
 0x383   : > { %14009 = vst [vmem:[#allocation81_spill] sm:$0xff] %v10627_v3  ;;  %v10648_v2 = vmul.f32 0.5, %v10429_v13  ;;  %v3985_v53 = vadd.f32 1.1283791, %v3984_v46  ;;  %v10650_v62 = vmul.f32 0.70710677, %v2656_v27  ;;  %v4064_v1 = vmul.f32 %v4063_v36, %v10525_v19  ;;  %v880_v13 = vpop.f32.mrf.mxu1 }
 0x384   : > { %14010 = vst [vmem:[#allocation103_spill] sm:$0xff] %v10630_v51  ;;  %v6498_v33 = vpop.eup %6497  ;;  %v10653_v58 = vmul.f32 0.5, %v14013_v17  ;;  %v3999_v37 = vsub.f32 1.0, %v3998_v24  ;;  %v10658_v47 = vmul.f32 %v13830_v57, %v10409_v25  ;;  %v4008_v11 = vand.u32 2147483648, %v10577_v61  ;;  %v14047_v51 = vld [vmem:[#allocation114_spill] sm:$0xff] }
 0x385   : > { %14011 = vst [vmem:[#allocation64_spill] sm:$0xff] %v10636_v4  ;;  %v4078_v60 = vmul.f32 %v6498_v33, %v10591_v16  ;;  %v10662_v54 = vmul.f32 0.5, %v2654_v10  ;;  %v4094_v48 = vmul.f32 %v10632_v45, %v10632_v45  ;;  %vm4003_vm12 = vweird.f32 %v6496_v32 }
 0x386   : > { %14012 = vst [vmem:[#allocation69_spill] sm:$0xff] %v10640_v59  ;;  %v4000_v40 = vmul.f32 %v6496_v32, %v3999_v37  ;;  %v4006_v21 = vand.u32 2147483647, %v10577_v61  ;;  %v10668_v19 = vadd.f32 %v781_v43, %v14014_v31  ;;  %v3986_v25 = vmul.f32 %v3985_v53, %v14016_v41  ;;  %v783_v53 = vpop.f32.mrf.mxu0  ;;  %v14017_v41 = vld [vmem:[#allocation37_spill] sm:$0xff] }
 0x387   : > { %v4079_v20 = vsub.f32 1.0, %v4078_v60  ;;  %v10671_v18 = vmul.f32 0.5, %v2656_v27  ;;  %v4174_v56 = vmul.f32 %v10650_v62, %v10650_v62  ;;  %vm4002_vm13 = vweird.f32 %v10577_v61  ;;  %14048 = vst [vmem:[#allocation109_spill] sm:$0xff] %v10773_v7 }
 0x388   : > { %14015 = vst [vmem:[#allocation125_spill] sm:$0xff] %v10668_v19  ;;  %v4001_v10 = vadd.f32 %v6496_v32, %v4000_v40  ;;  %v4065_v46 = vadd.f32 1.1283791, %v4064_v1  ;;  %v4088_v9 = vand.u32 2147483648, %v10591_v16  ;;  %vm4004_vm14 = vmor %vm4002_vm13, %vm4003_vm12  ;;  %v4009_v36 = vor.u32 1.1754944e-38, %v4008_v11 }
 0x389   : > { %v4080_v24 = vmul.f32 %v6498_v33, %v4079_v20  ;;  %vm4083_vm15 = vweird.f32 %v6498_v33  ;;  %v4086_v43 = vand.u32 2147483647, %v10591_v16  ;;  %vm4007_vm0 = vcmp.eq.f32.partialorder %v4006_v21, 8.507059e+37 }
 0x38a   : > { %v4005_v17 = vsel %vm4004_vm14, %v6496_v32, %v4001_v10  ;;  %v10679_v37 = vmin.f32 %v4094_v48, 16.0  ;;  %vm4082_vm1 = vweird.f32 %v10591_v16  ;;  %v4089_v11 = vor.u32 1.1754944e-38, %v4088_v9  ;;  %v14019_v32 = vld [vmem:[#allocation32_spill] sm:$0xff]  ;;  %v14021_v10 = vld [vmem:[#allocation146_spill] sm:$0xff] }
 0x38b   : > { %v4010_v60 = vsel %vm4007_vm0, %v4009_v36, %v4005_v17  ;;  %v4081_v40 = vadd.f32 %v6498_v33, %v4080_v24  ;;  %vm4084_vm4 = vmor %vm4082_vm1, %vm4083_vm15  ;;  %v10685_v20 = vmul.f32 %v14017_v41, %v10668_v19  ;;  %v10688_v21 = vadd.f32 %v880_v13, %v14019_v32 }
 0x38c   : > { %v4011_v1 = vmul.f32 %v4010_v60, %v3986_v25  ;;  %v4066_v27 = vmul.f32 %v4065_v46, %v14021_v10  ;;  %vm4087_vm5 = vcmp.eq.f32.partialorder %v4086_v43, 8.507059e+37  ;;  %v10692_v36 = vadd.f32 %v783_v53, %v14014_v31  ;;  %v14023_v60 = vld [vmem:[#allocation44_spill] sm:$0xff] }
 0x38d   : > { %14018 = vst [vmem:[#allocation53_spill] sm:$0xff] %v10685_v20  ;;  %v4085_v48 = vsel %vm4084_vm4, %v6498_v33, %v4081_v40  ;;  %v4096_v25 = vmul.f32 2.1237322e-06, %v10679_v37  ;;  %v4107_v9 = vmul.f32 3.8918573e-05, %v10679_v37  ;;  %v10698_v61 = vmul.f32 %v14023_v60, %v10668_v19  ;;  %v882_v33 = vpop.f32.mrf.mxu1  ;;  %v14026_v40 = vld [vmem:[#allocation131_spill] sm:$0xff] }
 0x38e   : > { %14020 = vst [vmem:[#allocation116_spill] sm:$0xff] %v10688_v21  ;;  %v6178_v16 = vclamps-f32 %v4011_v1, 1.0  ;;  %v4090_v24 = vsel %vm4087_vm5, %v4089_v11, %v4085_v48  ;;  %v10702_v13 = vmul.f32 %v7379_v55, %v10668_v19  ;;  %v10704_v46 = vmin.f32 %v4174_v56, 16.0  ;;  %v14028_v11 = vld [vmem:[#allocation61_spill] sm:$0xff]  ;;  %v14030_v48 = vld [vmem:[#allocation95_spill] sm:$0xff]  ;;  %v14034_v20 = vld [vmem:[#allocation130_spill] sm:$0xff] }
 0x38f   : > { %14022 = vst [vmem:[#allocation89_spill] sm:$0xff] %v10692_v36  ;;  %v4091_v17 = vmul.f32 %v4090_v24, %v4066_v27  ;;  %v14027_v1 = vrot.slane %v14026_v40, 1  ;;  %v14029_v10 = vrot.slane %v14028_v11, 1  ;;  %v1553_v24 = vmul.f32 %v13643_v35, %v14030_v48 }
 0x390   : > { %14024 = vst [vmem:[#allocation124_spill] sm:$0xff] %v10698_v61  ;;  %v5403_v43 = vadd.f32 1.0, %v6178_v16  ;;  %v10720_v56 = vmul.f32 %v13942_v42, %v10688_v21  ;;  %v10724_v16 = vmul.f32 %v7255_v52, %v10688_v21  ;;  %v10728_v11 = vadd.f32 %v882_v33, %v14019_v32 }
 0x391   : > { %14025 = vst [vmem:[#allocation134_spill] sm:$0xff] %v10702_v13  ;;  %v10713_v27 = vsel %vm1355_vm3, %v14029_v10, %v14027_v1  ;;  %v6180_v61 = vclamps-f32 %v4091_v17, 1.0  ;;  %v4097_v1 = vadd.f32 0.00028619796, %v4096_v25  ;;  %v4108_v10 = vadd.f32 0.001143296, %v4107_v9 }
 0x392   : > { %14031 = vst [vmem:[#allocation82_spill] sm:$0xff] %v10720_v56  ;;  %v5467_v17 = vmul.f32 %v5403_v43, %v10648_v2  ;;  %v4176_v4 = vmul.f32 2.1237322e-06, %v10704_v46  ;;  %v4187_v13 = vmul.f32 3.8918573e-05, %v10704_v46  ;;  %v1683_v40 = vadd.f32 %v14034_v20, %v1553_v24 }
 0x393   : > { %14032 = vst [vmem:[#allocation110_spill] sm:$0xff] %v10724_v16  ;;  %v5405_v53 = vadd.f32 1.0, %v6180_v61  ;;  %v4098_v3 = vmul.f32 %v4097_v1, %v10679_v37  ;;  %v4109_v16 = vmul.f32 %v4108_v10, %v10679_v37  ;;  %v1749_v61 = vmul.f32 %v7230_v22, %v10713_v27  ;;  %v14038_v10 = vld [vmem:[#allocation42_spill] sm:$0xff] }
 0x394   : > { %14033 = vst [vmem:[#allocation91_spill] sm:$0xff] %v10728_v11  ;;  %v4177_v34 = vadd.f32 0.00028619796, %v4176_v4  ;;  %v4188_v25 = vadd.f32 0.001143296, %v4187_v13  ;;  %v14035_v2 = vrot.slane %v10692_v36, 7  ;;  %v1871_v20 = vmul.f32 %v13876_v6, %v14038_v10 }
 0x395   : > { %v5469_v33 = vmul.f32 %v5405_v53, %v10653_v58  ;;  %v14036_v9 = vrot.slane %v10668_v19, 7  ;;  %v4099_v1 = vadd.f32 0.0036580483, %v4098_v3  ;;  %v4110_v56 = vadd.f32 0.014752088, %v4109_v16  ;;  %v14046_v10 = vld [vmem:[#allocation62_spill] sm:$0xff] }
 0x396   : > { %v4178_v4 = vmul.f32 %v4177_v34, %v10704_v46  ;;  %v4189_v58 = vmul.f32 %v4188_v25, %v10704_v46  ;;  %v10752_v13 = vadd.f32 %v1749_v61, %v1683_v40  ;;  %v1935_v39 = vadd.f32 %v1871_v20, %v14040_v50  ;;  %v14044_v25 = vld [vmem:[#allocation73_spill] sm:$0xff] }
 0x397   : > { %v10746_v43 = vsel %vm1132_vm2, %v14036_v9, %v14035_v2  ;;  %v5517_v24 = vpack.c.bf16 %v5469_v33, %v5467_v17  ;;  %v4100_v53 = vmul.f32 %v4099_v1, %v10679_v37  ;;  %v4111_v59 = vmul.f32 %v4110_v56, %v10679_v37  ;;  %v14041_v2 = vld [vmem:[#allocation121_spill] sm:$0xff]  ;;  %v14045_v1 = vld [vmem:[#allocation119_spill] sm:$0xff] }
 0x398   : > { %14037 = vst [vmem:[#allocation92_spill] sm:$0xff] %v10746_v43  ;;  %v2133_v3 = vmul.f32 %v13802_v14, %v14041_v2  ;;  %v14042_v16 = vrot.slane %v10668_v19, 1  ;;  %v14043_v17 = vrot.slane %v10692_v36, 1  ;;  %v4179_v33 = vadd.f32 0.0036580483, %v4178_v4 }
 0x399   : > { %14039 = vst [vmem:[#allocation55_spill] sm:$0xff] %v10752_v13  ;;  %5798 = vmatmul.bf16.gmra.mxu3 %v5517_v24  ;;  %v4190_v40 = vadd.f32 0.014752088, %v4189_v58  ;;  %v2261_v61 = vmul.f32 %v14044_v25, %v14030_v48  ;;  %v4101_v9 = vadd.f32 0.05243302, %v4100_v53  ;;  %v2065_v50 = vadd.f32 %v14045_v1, %v1935_v39  ;;  %v14049_v53 = vld [vmem:[#allocation135_spill] sm:$0xff] }
 0x39a   : > { %v1420_v34 = vsel %vm1355_vm3, %v14043_v17, %v14042_v16  ;;  %v4112_v56 = vadd.f32 0.112945676, %v4111_v59  ;;  %v2197_v20 = vadd.f32 %v2133_v3, %v14046_v10  ;;  %v4180_v24 = vmul.f32 %v4179_v33, %v10704_v46  ;;  %v14055_v13 = vld [vmem:[#allocation36_spill] sm:$0xff] }
 0x39b   : > { %v4191_v2 = vmul.f32 %v4190_v40, %v10704_v46  ;;  %v2263_v38 = vmul.f32 %v14044_v25, %v14047_v51  ;;  %v2521_v4 = vmul.f32 %v10773_v7, %v10713_v27  ;;  %v4102_v58 = vmul.f32 %v4101_v9, %v10679_v37  ;;  %v14050_v40 = vld [vmem:[#allocation118_spill] sm:$0xff]  ;;  %v14052_v51 = vld [vmem:[#allocation123_spill] sm:$0xff]  ;;  %v14060_v25 = vld [vmem:[#allocation68_spill] sm:$0xff] }
 0x39c   : > { %v4113_v59 = vmul.f32 %v4112_v56, %v10679_v37  ;;  %v2195_v39 = vadd.f32 %v10645_v26, %v2065_v50  ;;  %v2523_v3 = vmul.f32 %v10773_v7, %v14049_v53  ;;  %v4181_v16 = vadd.f32 0.05243302, %v4180_v24  ;;  %v14054_v56 = vld [vmem:[#allocation126_spill] sm:$0xff] }
 0x39d   : > { %v4192_v17 = vadd.f32 0.112945676, %v4191_v2  ;;  %v2327_v33 = vadd.f32 %v2263_v38, %v2197_v20  ;;  %v14051_v1 = vrot.slane %v14050_v40, 1  ;;  %v14053_v10 = vrot.slane %v14052_v51, 1  ;;  %v14056_v2 = vld [vmem:[#allocation56_spill] sm:$0xff]  ;;  %v14057_v20 = vld [vmem:[#allocation41_spill] sm:$0xff] }
 0x39e   : > { %v4103_v49 = vadd.f32 0.18741608, %v4102_v58  ;;  %v4114_v9 = vadd.f32 0.4994258, %v4113_v59  ;;  %v2325_v23 = vadd.f32 %v2261_v61, %v2195_v39  ;;  %v1556_v26 = vmul.f32 %v14055_v13, %v14054_v56  ;;  %v14059_v59 = vld [vmem:[#allocation67_spill] sm:$0xff] }
 0x39f   : > { %v10788_v0 = vsel %vm1355_vm3, %v14053_v10, %v14051_v1  ;;  %v4182_v50 = vmul.f32 %v4181_v16, %v10704_v46  ;;  %v4193_v24 = vmul.f32 %v4192_v17, %v10704_v46  ;;  %v2457_v38 = vadd.f32 %v14056_v2, %v2327_v33  ;;  %v14058_v10 = vld [vmem:[#allocation127_spill] sm:$0xff] }
 0x3a0   : > { %v1752_v40 = vmul.f32 %v14057_v20, %v10788_v0  ;;  %v4104_v51 = vmul.f32 %v4103_v49, %v10679_v37  ;;  %v4115_v1 = vmul.f32 %v4114_v9, %v10679_v37  ;;  %v2455_v58 = vadd.f32 %v14058_v10, %v2325_v23  ;;  %v14061_v16 = vld [vmem:[#allocation43_spill] sm:$0xff]  ;;  %v14065_v9 = vld [vmem:[#allocation86_spill] sm:$0xff] }
 0x3a1   : > { %v1686_v61 = vadd.f32 %v14059_v59, %v1556_v26  ;;  %v4183_v39 = vadd.f32 0.18741608, %v4182_v50  ;;  %v4194_v15 = vadd.f32 0.4994258, %v4193_v24  ;;  %v2587_v7 = vadd.f32 %v2523_v3, %v2457_v38  ;;  %v14068_v24 = vld [vmem:[#allocation35_spill] sm:$0xff] }
 0x3a2   : > { %v1874_v53 = vmul.f32 %v14061_v16, %v14060_v25  ;;  %v1636_v17 = vmul.f32 %v14017_v41, %v10692_v36  ;;  %v10805_v33 = vadd.f32 1.0, %v4115_v1  ;;  %v2585_v2 = vadd.f32 %v2521_v4, %v2455_v58  ;;  %v14067_v25 = vld [vmem:[#allocation33_spill] sm:$0xff] }
 0x3a3   : > { %v10807_v48 = vadd.f32 %v1752_v40, %v1686_v61  ;;  %v14063_v49 = vrot.slane %v10668_v19, 7  ;;  %v14064_v23 = vrot.slane %v10692_v36, 7  ;;  %v4195_v3 = vmul.f32 %v4194_v15, %v10704_v46 }
 0x3a4   : > { %v10817_v26 = vadd.f32 %v14065_v9, %v2587_v7  ;;  %v1938_v50 = vadd.f32 %v1874_v53, %v14067_v25  ;;  %v10821_v38 = vmul.f32 %v14068_v24, %v1420_v34  ;;  %v1570_v4 = vmul.f32 %v14055_v13, %v10746_v43 }
 0x3a5   : > { %14062 = vst [vmem:[#allocation115_spill] sm:$0xff] %v10807_v48  ;;  %v1197_v37 = vsel %vm1132_vm2, %v14064_v23, %v14063_v49  ;;  %6499 = vrcp.f32 %v10805_v33  ;;  %v4184_v40 = vmul.f32 %v4183_v39, %v10704_v46  ;;  %v1892_v1 = vmul.f32 %v14061_v16, %v10746_v43  ;;  %v14073_v46 = vld [vmem:[#allocation120_spill] sm:$0xff] }
 0x3a6   : > { %14066 = vst [vmem:[#allocation72_spill] sm:$0xff] %v10817_v26  ;;  %v4105_v10 = vadd.f32 1.1283791, %v4104_v51  ;;  %v10829_v15 = vadd.f32 1.0, %v4195_v3  ;;  %v10832_v7 = vadd.f32 %v14065_v9, %v2585_v2  ;;  %v10835_v53 = vmul.f32 %v13822_v12, %v1197_v37 }
 0x3a7   : > { %14069 = vst [vmem:[#allocation128_spill] sm:$0xff] %v10821_v38  ;;  %v10839_v34 = vmul.f32 %v14023_v60, %v10692_v36  ;;  %v10842_v58 = vmul.f32 0.70710677, %v10817_v26  ;;  %v2068_v59 = vadd.f32 %v14073_v46, %v1938_v50  ;;  %v4126_v51 = vand.u32 2147483647, %v10805_v33 }
 0x3a8   : > { %14070 = vst [vmem:[#allocation71_spill] sm:$0xff] %v10832_v7  ;;  %v4128_v39 = vand.u32 2147483648, %v10805_v33  ;;  %6501 = vrcp.f32 %v10829_v15  ;;  %v10849_v2 = vadd.f32 %v1636_v17, %v1570_v4  ;;  %v4185_v23 = vadd.f32 1.1283791, %v4184_v40 }
 0x3a9   : > { %14071 = vst [vmem:[#allocation117_spill] sm:$0xff] %v10835_v53  ;;  %v10853_v37 = vmul.f32 0.70710677, %v10832_v7  ;;  %v10857_v3 = vmul.f32 %v14057_v20, %v10821_v38  ;;  %v10860_v25 = vadd.f32 %v1892_v1, %v10625_v30  ;;  %v4106_v50 = vmul.f32 %v4105_v10, %v10632_v45 }
 0x3aa   : > { %14072 = vst [vmem:[#allocation90_spill] sm:$0xff] %v10842_v58  ;;  %v4214_v46 = vmul.f32 %v10842_v58, %v10842_v58  ;;  %vm4122_vm6 = vweird.f32 %v10805_v33  ;;  %v4206_v4 = vand.u32 2147483647, %v10829_v15  ;;  %v4208_v40 = vand.u32 2147483648, %v10829_v15 }
 0x3ab   : > { %14074 = vst [vmem:[#allocation97_spill] sm:$0xff] %v10853_v37  ;;  %v6500_v17 = vpop.eup %6499  ;;  %v4134_v49 = vmul.f32 %v10853_v37, %v10853_v37  ;;  %vm10871_vm7 = vcmp.eq.f32.partialorder %v4126_v51, 8.507059e+37  ;;  %v4129_v45 = vor.u32 1.1754944e-38, %v4128_v39  ;;  %v4186_v10 = vmul.f32 %v4185_v23, %v10650_v62 }
 0x3ac   : > { %v4118_v61 = vmul.f32 %v6500_v17, %v10805_v33  ;;  %v10875_v1 = vmin.f32 %v4214_v46, 16.0  ;;  %vm4202_vm8 = vweird.f32 %v10829_v15  ;;  %v2136_v19 = vmul.f32 %v13830_v57, %v14003_v29 }
 0x3ad   : > { %v10879_v43 = vmin.f32 %v4134_v49, 16.0  ;;  %v2198_v20 = vadd.f32 %v10658_v47, %v2068_v59  ;;  %vm10887_vm9 = vcmp.eq.f32.partialorder %v4206_v4, 8.507059e+37  ;;  %v4209_v62 = vor.u32 1.1754944e-38, %v4208_v40  ;;  %v14079_v47 = vld [vmem:[#allocation52_spill] sm:$0xff]  ;;  %v14080_v40 = vld [vmem:[#allocation74_spill] sm:$0xff] }
 0x3ae   : > { %v6502_v48 = vpop.eup %6501  ;;  %v4119_v9 = vsub.f32 1.0, %v4118_v61  ;;  %v4216_v16 = vmul.f32 2.1237322e-06, %v10875_v1  ;;  %v4227_v51 = vmul.f32 3.8918573e-05, %v10875_v1  ;;  %vm4123_vm10 = vweird.f32 %v6500_v17 }
 0x3af   : > { %v4198_v39 = vmul.f32 %v6502_v48, %v10829_v15  ;;  %v4136_v49 = vmul.f32 2.1237322e-06, %v10879_v43  ;;  %v4147_v23 = vmul.f32 3.8918573e-05, %v10879_v43  ;;  %v2264_v59 = vmul.f32 %v14079_v47, %v14054_v56  ;;  %vm4124_vm11 = vmor %vm4122_vm6, %vm4123_vm10 }
 0x3b0   : > { %v4120_v29 = vmul.f32 %v6500_v17, %v4119_v9  ;;  %v4217_v61 = vadd.f32 0.00028619796, %v4216_v16  ;;  %v4228_v60 = vadd.f32 0.001143296, %v4227_v51  ;;  %v2266_v7 = vmul.f32 %v14079_v47, %v14080_v40 }
 0x3b1   : > { %v4199_v41 = vsub.f32 1.0, %v4198_v39  ;;  %v4137_v58 = vadd.f32 0.00028619796, %v4136_v49  ;;  %v4148_v37 = vadd.f32 0.001143296, %v4147_v23  ;;  %vm4203_vm12 = vweird.f32 %v6502_v48 }
 0x3b2   : > { %v4121_v32 = vadd.f32 %v6500_v17, %v4120_v29  ;;  %v4218_v4 = vmul.f32 %v4217_v61, %v10875_v1  ;;  %v4229_v31 = vmul.f32 %v4228_v60, %v10875_v1  ;;  %v14081_v29 = vld [vmem:[#allocation107_spill] sm:$0xff]  ;;  %vm4204_vm13 = vmor %vm4202_vm8, %vm4203_vm12  ;;  %v2328_v33 = vadd.f32 %v2264_v59, %v2198_v20 }
 0x3b3   : > { %v4200_v9 = vmul.f32 %v6502_v48, %v4199_v41  ;;  %v4138_v16 = vmul.f32 %v4137_v58, %v10879_v43  ;;  %v4149_v51 = vmul.f32 %v4148_v37, %v10879_v43  ;;  %v2200_v56 = vadd.f32 %v2136_v19, %v14081_v29 }
 0x3b4   : > { %v4125_v39 = vsel %vm4124_vm11, %v6500_v17, %v4121_v32  ;;  %v4219_v49 = vadd.f32 0.0036580483, %v4218_v4  ;;  %v4230_v23 = vadd.f32 0.014752088, %v4229_v31  ;;  %v2152_v17 = vmul.f32 %v13830_v57, %v10821_v38  ;;  %v14087_v4 = vld [vmem:[#allocation142_spill] sm:$0xff] }
 0x3b5   : > { %v4130_v60 = vsel %vm10871_vm7, %v4129_v45, %v4125_v39  ;;  %v4201_v61 = vadd.f32 %v6502_v48, %v4200_v9  ;;  %v4139_v26 = vadd.f32 0.0036580483, %v4138_v16  ;;  %v4150_v40 = vadd.f32 0.014752088, %v4149_v51  ;;  %v14088_v16 = vld [vmem:[#allocation112_spill] sm:$0xff] }
 0x3b6   : > { %v4131_v47 = vmul.f32 %v4130_v60, %v4106_v50  ;;  %v4231_v41 = vmul.f32 %v4230_v23, %v10875_v1  ;;  %v2330_v58 = vadd.f32 %v2266_v7, %v2200_v56  ;;  %v4220_v19 = vmul.f32 %v4219_v49, %v10875_v1 }
 0x3b7   : > { %v4205_v37 = vsel %vm4204_vm13, %v6502_v48, %v4201_v61  ;;  %v4140_v32 = vmul.f32 %v4139_v26, %v10879_v43  ;;  %v4151_v31 = vmul.f32 %v4150_v40, %v10879_v43  ;;  %v14082_v45 = vrot.slane %v10728_v11, 7  ;;  %v14089_v40 = vld [vmem:[#allocation138_spill] sm:$0xff] }
 0x3b8   : > { %v6181_v30 = vclamps-f32 %v4131_v47, 1.0  ;;  %v4210_v50 = vsel %vm10887_vm9, %v4209_v62, %v4205_v37  ;;  %v4232_v15 = vadd.f32 0.112945676, %v4231_v41  ;;  %v14083_v20 = vrot.slane %v10688_v21, 7 }
 0x3b9   : > { %v14086_v26 = vmov %v14082_v45  ;;  %v4211_v47 = vmul.f32 %v4210_v50, %v4186_v10  ;;  %v4152_v59 = vadd.f32 0.112945676, %v4151_v31  ;;  %v2458_v9 = vadd.f32 %v14087_v4, %v2328_v33 }
 0x3ba   : > { %v10922_v48 = vsel %vm1132_vm2, %v14083_v20, %v14082_v45  ;;  %v14085_v56 = vmov %v14083_v20  ;;  %v5406_v46 = vadd.f32 1.0, %v6181_v30  ;;  %v4233_v62 = vmul.f32 %v4232_v15, %v10875_v1 }
 0x3bb   : > { %14084 = vst [vmem:[#allocation146_spill] sm:$0xff] %v10922_v48  ;;  %v1198_v7 = vsel %vm1132_vm2, %v14086_v26, %v14085_v56  ;;  %v2460_v51 = vadd.f32 %v14088_v16, %v2330_v58  ;;  %v6183_v39 = vclamps-f32 %v4211_v47, 1.0  ;;  %v4141_v49 = vadd.f32 0.05243302, %v4140_v32 }
 0x3bc   : > { %v4153_v23 = vmul.f32 %v4152_v59, %v10879_v43  ;;  %v4221_v29 = vadd.f32 0.05243302, %v4220_v19  ;;  %v1893_v60 = vmul.f32 %v13876_v6, %v10922_v48  ;;  %v4234_v61 = vadd.f32 0.4994258, %v4233_v62  ;;  %v5675_v59 = vpop.f32.mrf.mxu2 }
 0x3bd   : > { %v2524_v10 = vmul.f32 %v10568_v5, %v10788_v0  ;;  %v2526_v41 = vmul.f32 %v10568_v5, %v14089_v40  ;;  %v14090_v37 = vrot.slane %v10688_v21, 1  ;;  %v14091_v33 = vrot.slane %v10728_v11, 1 }
 0x3be   : > { %v5408_v32 = vadd.f32 1.0, %v6183_v39  ;;  %v5470_v31 = vmul.f32 %v5406_v46, %v10662_v54  ;;  %v4154_v19 = vadd.f32 0.4994258, %v4153_v23  ;;  %v2086_v30 = vadd.f32 %v10839_v34, %v10860_v25  ;;  %v10957_v54 = vld [vmem:[%s12911_s8] ss:$0 sm:$0xff] }
 0x3bf   : > { %v1421_v58 = vsel %vm1355_vm3, %v14091_v33, %v14090_v37  ;;  %v4235_v50 = vmul.f32 %v4234_v61, %v10875_v1  ;;  %v2588_v15 = vadd.f32 %v2524_v10, %v2458_v9  ;;  %v2590_v45 = vadd.f32 %v2526_v41, %v2460_v51  ;;  %v786_v10 = vpop.f32.mrf.mxu0 }
 0x3c0   : > { %v5472_v5 = vmul.f32 %v5408_v32, %v10671_v18  ;;  %v4142_v20 = vmul.f32 %v4141_v49, %v10879_v43  ;;  %v4155_v56 = vmul.f32 %v4154_v19, %v10879_v43  ;;  %v4222_v26 = vmul.f32 %v4221_v29, %v10875_v1 }
 0x3c1   : > { %v10960_v47 = vmul.f32 %v14068_v24, %v1421_v58  ;;  %v1571_v34 = vmul.f32 %v13643_v35, %v10922_v48  ;;  %v1957_v25 = vadd.f32 %v1893_v60, %v10634_v44  ;;  %v10965_v18 = vadd.f32 1.0, %v4235_v50  ;;  %v14110_v48 = vld [vmem:[#allocation90_spill] sm:$0xff] }
 0x3c2   : > { %v10968_v46 = vmul.f32 %v13822_v12, %v1198_v7  ;;  %v1637_v62 = vmul.f32 %v13942_v42, %v10728_v11  ;;  %v5518_v4 = vpack.c.bf16 %v5472_v5, %v5470_v31  ;;  %v10972_v9 = vadd.f32 1.0, %v4155_v56 }
 0x3c3   : > { %14092 = vst [vmem:[#allocation131_spill] sm:$0xff] %v10960_v47  ;;  %v2023_v16 = vmul.f32 %v7255_v52, %v10728_v11  ;;  %6503 = vrcp.f32 %v10965_v18  ;;  %v2658_v51 = vadd.f32 %v13555_v28, %v2588_v15  ;;  %v2660_v44 = vadd.f32 %v13555_v28, %v2590_v45 }
 0x3c4   : > { %14093 = vst [vmem:[#allocation61_spill] sm:$0xff] %v10968_v46  ;;  %5714 = vmatmul.bf16.gmra.mxu2 %v5518_v4  ;;  %v4143_v39 = vadd.f32 0.18741608, %v4142_v20  ;;  %6505 = vrcp.f32 %v10972_v9  ;;  %v4223_v7 = vadd.f32 0.18741608, %v4222_v26  ;;  %v5676_v49 = vadd.f32 %v10957_v54, %v5675_v59  ;;  %v14101_v26 = vld [vmem:[#allocation72_spill] sm:$0xff] }
 0x3c5   : > { %v10983_v23 = vmul.f32 %v13564_v63, %v10688_v21  ;;  %v1701_v29 = vadd.f32 %v1637_v62, %v1571_v34  ;;  %v1767_v60 = vmul.f32 %v7230_v22, %v10960_v47  ;;  %v2087_v61 = vadd.f32 %v2023_v16, %v1957_v25  ;;  %v14102_v59 = vld [vmem:[#allocation71_spill] sm:$0xff]  ;;  %v14103_v16 = vld [vmem:[#allocation30_spill] sm:$0xff] }
 0x3c6   : > { %v10989_v41 = vmul.f32 %v14055_v13, %v10835_v53  ;;  %v10993_v37 = vadd.f32 %v10857_v3, %v10849_v2  ;;  %v10995_v33 = vadd.f32 %v2152_v17, %v2086_v30  ;;  %v10999_v58 = vmul.f32 %v7379_v55, %v10692_v36  ;;  %v5764_v2 = vpop.f32.mrf.mxu3  ;;  %v14136_v36 = vld [vmem:[#allocation145_spill] sm:$0xff] }
 0x3c7   : > { %14094 = vst [vmem:[#allocation130_spill] sm:$0xff] %v10983_v23  ;;  %v11003_v32 = vmul.f32 %v13643_v35, %v10968_v46  ;;  %v2153_v31 = vmul.f32 %v13802_v14, %v10960_v47  ;;  %v11009_v19 = vmul.f32 %v13564_v63, %v10728_v11  ;;  %v11011_v3 = vmul.f32 0.70710677, %v2658_v51  ;;  %v14109_v23 = vld [vmem:[#allocation97_spill] sm:$0xff] }
 0x3c8   : > { %14095 = vst [vmem:[#allocation42_spill] sm:$0xff] %v10989_v41  ;;  %v4144_v17 = vmul.f32 %v4143_v39, %v10879_v43  ;;  %v4224_v30 = vmul.f32 %v4223_v7, %v10875_v1  ;;  %v5765_v50 = vadd.f32 %v5764_v2, %v5676_v49  ;;  %v11015_v15 = vmul.f32 0.70710677, %v2660_v44  ;;  %v885_v7 = vpop.f32.mrf.mxu1  ;;  %v14124_v41 = vld [vmem:[#allocation135_spill] sm:$0xff] }
 0x3c9   : > { %14096 = vst [vmem:[#allocation77_spill] sm:$0xff] %v10995_v33  ;;  %v6504_v45 = vpop.eup %6503  ;;  %v11017_v5 = vadd.f32 %v1767_v60, %v1701_v29  ;;  %v11019_v20 = vadd.f32 %v2153_v31, %v2087_v61  ;;  %v11023_v56 = vmul.f32 %v13802_v14, %v10713_v27  ;;  %v11026_v34 = vmul.f32 0.5, %v14101_v26  ;;  %v14104_v26 = vld [vmem:[#allocation63_spill] sm:$0xff] }
 0x3ca   : > { %14097 = vst [vmem:[#allocation121_spill] sm:$0xff] %v10999_v58  ;;  %v6506_v25 = vpop.eup %6505  ;;  %v11029_v43 = vmul.f32 0.5, %v14102_v59  ;;  %v4238_v1 = vmul.f32 %v6504_v45, %v10965_v18  ;;  %v11039_v62 = vmul.f32 %v13830_v57, %v10788_v0  ;;  %v11041_v27 = vmul.f32 0.5, %v2658_v51  ;;  %v14106_v59 = vld [vmem:[#allocation143_spill] sm:$0xff] }
 0x3cb   : > { %14098 = vst [vmem:[#allocation119_spill] sm:$0xff] %v11003_v32  ;;  %v4158_v4 = vmul.f32 %v6506_v25, %v10972_v9  ;;  %v11045_v39 = vadd.f32 %v786_v10, %v14103_v16  ;;  %v11047_v49 = vmul.f32 0.5, %v2660_v44  ;;  %v4254_v29 = vmul.f32 %v11011_v3, %v11011_v3 }
 0x3cc   : > { %14099 = vst [vmem:[#allocation62_spill] sm:$0xff] %v11009_v19  ;;  %v4145_v60 = vadd.f32 1.1283791, %v4144_v17  ;;  %v4225_v61 = vadd.f32 1.1283791, %v4224_v30  ;;  %v4239_v31 = vsub.f32 1.0, %v4238_v1  ;;  %v4334_v0 = vmul.f32 %v11015_v15, %v11015_v15 }
 0x3cd   : > { %14100 = vst [vmem:[#allocation114_spill] sm:$0xff] %v11019_v20  ;;  %v4159_v2 = vsub.f32 1.0, %v4158_v4  ;;  %v4246_v51 = vand.u32 2147483647, %v10965_v18  ;;  %v14105_v10 = vrot.slane %v14104_v26, 1  ;;  %v14107_v20 = vrot.slane %v14106_v59, 1  ;;  %v788_v26 = vpop.f32.mrf.mxu0 }
 0x3ce   : > { %5844 = vst [vmem:[%s11034_s26] sm:$0xff] %v5765_v50  ;;  %v4248_v50 = vand.u32 2147483648, %v10965_v18  ;;  %v4168_v17 = vand.u32 2147483648, %v10972_v9  ;;  %v4240_v30 = vmul.f32 %v6504_v45, %v4239_v31  ;;  %vm4243_vm14 = vweird.f32 %v6504_v45  ;;  %v14108_v1 = vld [vmem:[#allocation32_spill] sm:$0xff] }
 0x3cf   : > { %v11061_v44 = vsel %vm1355_vm3, %v14107_v20, %v14105_v10  ;;  %v11065_v33 = vadd.f32 %v885_v7, %v14108_v1  ;;  %v4160_v4 = vmul.f32 %v6506_v25, %v4159_v2  ;;  %vm4163_vm15 = vweird.f32 %v6506_v25 }
 0x3d0   : > { %v4166_v47 = vand.u32 2147483647, %v10972_v9  ;;  %v4146_v59 = vmul.f32 %v4145_v60, %v14109_v23  ;;  %v4226_v46 = vmul.f32 %v4225_v61, %v14110_v48  ;;  %v4241_v20 = vadd.f32 %v6504_v45, %v4240_v30  ;;  %v5677_v23 = vpop.f32.mrf.mxu2 }
 0x3d1   : > { %vm4242_vm0 = vweird.f32 %v10965_v18  ;;  %v4161_v10 = vadd.f32 %v6506_v25, %v4160_v4  ;;  %vm4162_vm1 = vweird.f32 %v10972_v9  ;;  %vm4247_vm5 = vcmp.eq.f32.partialorder %v4246_v51, 8.507059e+37  ;;  %v14111_v18 = vld [vmem:[#allocation37_spill] sm:$0xff]  ;;  %v14113_v51 = vld [vmem:[#allocation44_spill] sm:$0xff] }
 0x3d2   : > { %vm4244_vm4 = vmor %vm4242_vm0, %vm4243_vm14  ;;  %v4249_v7 = vor.u32 1.1754944e-38, %v4248_v50  ;;  %v4169_v31 = vor.u32 1.1754944e-38, %v4168_v17  ;;  %v11075_v19 = vadd.f32 %v788_v26, %v14103_v16  ;;  %vm4167_vm7 = vcmp.eq.f32.partialorder %v4166_v47, 8.507059e+37 }
 0x3d3   : > { %vm4164_vm6 = vmor %vm4162_vm1, %vm4163_vm15  ;;  %v4245_v2 = vsel %vm4244_vm4, %v6504_v45, %v4241_v20  ;;  %v11079_v61 = vmul.f32 %v14111_v18, %v11045_v39  ;;  %v11083_v50 = vmul.f32 %v14113_v51, %v11045_v39  ;;  %v11087_v45 = vmul.f32 %v7379_v55, %v11045_v39 }
 0x3d4   : > { %v4165_v60 = vsel %vm4164_vm6, %v6506_v25, %v4161_v10  ;;  %v4250_v48 = vsel %vm4247_vm5, %v4249_v7, %v4245_v2  ;;  %v887_v25 = vpop.f32.mrf.mxu1  ;;  %v5678_v47 = vadd.f32 %v10957_v54, %v5677_v23  ;;  %v11091_v26 = vmin.f32 %v4254_v29, 16.0 }
 0x3d5   : > { %14112 = vst [vmem:[#allocation118_spill] sm:$0xff] %v11079_v61  ;;  %v4170_v9 = vsel %vm4167_vm7, %v4169_v31, %v4165_v60  ;;  %v4251_v30 = vmul.f32 %v4250_v48, %v4226_v46  ;;  %v1126_v46 = vrot.slane %v11075_v19, 7  ;;  %v11095_v7 = vmin.f32 %v4334_v0, 16.0  ;;  %v14118_v60 = vld [vmem:[#allocation60_spill] sm:$0xff] }
 0x3d6   : > { %14114 = vst [vmem:[#allocation123_spill] sm:$0xff] %v11083_v50  ;;  %v4171_v17 = vmul.f32 %v4170_v9, %v4146_v59  ;;  %v11099_v2 = vmul.f32 %v13942_v42, %v11065_v33  ;;  %v11103_v59 = vmul.f32 %v7255_v52, %v11065_v33  ;;  %v1557_v29 = vmul.f32 %v13643_v35, %v14118_v60 }
 0x3d7   : > { %14115 = vst [vmem:[#allocation56_spill] sm:$0xff] %v11087_v45  ;;  %v6184_v20 = vclamps-f32 %v4251_v30, 1.0  ;;  %v11109_v48 = vmul.f32 %v13564_v63, %v11065_v33  ;;  %v11113_v9 = vadd.f32 %v887_v25, %v14108_v1  ;;  %v5766_v30 = vpop.f32.mrf.mxu3  ;;  %v4256_v4 = vmul.f32 2.1237322e-06, %v11091_v26 }
 0x3d8   : > { %v6182_v31 = vclamps-f32 %v4171_v17, 1.0  ;;  %14116 = vst [vmem:[#allocation127_spill] sm:$0xff] %v11099_v2  ;;  %v5767_v10 = vadd.f32 %v5766_v30, %v5678_v47  ;;  %v4267_v32 = vmul.f32 3.8918573e-05, %v11091_v26  ;;  %v4336_v0 = vmul.f32 2.1237322e-06, %v11095_v7 }
 0x3d9   : > { %14117 = vst [vmem:[#allocation67_spill] sm:$0xff] %v11103_v59  ;;  %v5409_v23 = vadd.f32 1.0, %v6184_v20  ;;  %v14120_v20 = vrot.slane %v11045_v39, 7  ;;  %v4347_v25 = vmul.f32 3.8918573e-05, %v11095_v7  ;;  %v14122_v30 = vld [vmem:[#allocation85_spill] sm:$0xff] }
 0x3da   : > { %14119 = vst [vmem:[#allocation68_spill] sm:$0xff] %v11109_v48  ;;  %v5407_v17 = vadd.f32 1.0, %v6182_v31  ;;  %v4257_v47 = vadd.f32 0.00028619796, %v4256_v4  ;;  %v4268_v31 = vadd.f32 0.001143296, %v4267_v32  ;;  %v1687_v45 = vadd.f32 %v14122_v30, %v1557_v29 }
 0x3db   : > { %v5473_v59 = vmul.f32 %v5409_v23, %v11026_v34  ;;  %v11122_v50 = vsel %vm1132_vm2, %v14120_v20, %v1126_v46  ;;  %5845 = vst [vmem:[%s11034_s26 + $0x8] sm:$0xff] %v5767_v10  ;;  %v4337_v21 = vadd.f32 0.00028619796, %v4336_v0  ;;  %v4348_v11 = vadd.f32 0.001143296, %v4347_v25  ;;  %v14123_v23 = vld [vmem:[#allocation95_spill] sm:$0xff] }
 0x3dc   : > { %14121 = vst [vmem:[#allocation33_spill] sm:$0xff] %v11122_v50  ;;  %v5471_v48 = vmul.f32 %v5407_v17, %v11029_v43  ;;  %v1753_v34 = vmul.f32 %v7230_v22, %v11061_v44  ;;  %v1875_v20 = vmul.f32 %v13876_v6, %v14123_v23  ;;  %v4258_v38 = vmul.f32 %v4257_v47, %v11091_v26  ;;  %v14126_v29 = vld [vmem:[#allocation129_spill] sm:$0xff]  ;;  %v14128_v47 = vld [vmem:[#allocation122_spill] sm:$0xff] }
 0x3dd   : > { %v4269_v53 = vmul.f32 %v4268_v31, %v11091_v26  ;;  %v2137_v43 = vmul.f32 %v13802_v14, %v14124_v41  ;;  %v4338_v32 = vmul.f32 %v4337_v21, %v11095_v7  ;;  %v4349_v4 = vmul.f32 %v4348_v11, %v11095_v7  ;;  %v14129_v23 = vld [vmem:[#allocation50_spill] sm:$0xff]  ;;  %v14130_v11 = vld [vmem:[#allocation73_spill] sm:$0xff] }
 0x3de   : > { %v5519_v58 = vpack.c.bf16 %v5473_v59, %v5471_v48  ;;  %v11139_v10 = vadd.f32 %v1753_v34, %v1687_v45  ;;  %v1939_v0 = vadd.f32 %v1875_v20, %v14126_v29  ;;  %v14127_v17 = vrot.slane %v11045_v39, 7  ;;  %v14131_v20 = vld [vmem:[#allocation137_spill] sm:$0xff] }
 0x3df   : > { %v4259_v48 = vadd.f32 0.0036580483, %v4258_v38  ;;  %v4270_v25 = vadd.f32 0.014752088, %v4269_v53  ;;  %v2201_v31 = vadd.f32 %v2137_v43, %v14128_v47  ;;  %v4339_v30 = vadd.f32 0.0036580483, %v4338_v32 }
 0x3e0   : > { %14125 = vst [vmem:[#allocation35_spill] sm:$0xff] %v11139_v10  ;;  %5803 = vmatmul.bf16.gmra.mxu3 %v5519_v58  ;;  %v1199_v59 = vsel %vm1132_vm2, %v1126_v46, %v14127_v17  ;;  %v4350_v41 = vadd.f32 0.014752088, %v4349_v4  ;;  %v2069_v21 = vadd.f32 %v14129_v23, %v1939_v0  ;;  %v2265_v45 = vmul.f32 %v14130_v11, %v14118_v60  ;;  %v14132_v46 = vld [vmem:[#allocation109_spill] sm:$0xff]  ;;  %v14133_v4 = vld [vmem:[#allocation148_spill] sm:$0xff]  ;;  %v14143_v60 = vld [vmem:[#allocation126_spill] sm:$0xff] }
 0x3e1   : > { %v4260_v34 = vmul.f32 %v4259_v48, %v11091_v26  ;;  %v4271_v58 = vmul.f32 %v4270_v25, %v11091_v26  ;;  %v2267_v29 = vmul.f32 %v14130_v11, %v14131_v20  ;;  %v2525_v38 = vmul.f32 %v14132_v46, %v11061_v44  ;;  %v14134_v23 = vld [vmem:[#allocation49_spill] sm:$0xff] }
 0x3e2   : > { %v4340_v53 = vmul.f32 %v4339_v30, %v11095_v7  ;;  %v4351_v43 = vmul.f32 %v4350_v41, %v11095_v7  ;;  %v2199_v32 = vadd.f32 %v11023_v56, %v2069_v21  ;;  %v2527_v0 = vmul.f32 %v14132_v46, %v14133_v4  ;;  %v14138_v41 = vld [vmem:[#allocation80_spill] sm:$0xff] }
 0x3e3   : > { %v4261_v17 = vadd.f32 0.05243302, %v4260_v34  ;;  %v4272_v47 = vadd.f32 0.112945676, %v4271_v58  ;;  %v2331_v48 = vadd.f32 %v2267_v29, %v2201_v31  ;;  %v14135_v25 = vrot.slane %v14134_v23, 1  ;;  %v14139_v58 = vld [vmem:[#allocation136_spill] sm:$0xff] }
 0x3e4   : > { %v14137_v10 = vrot.slane %v14136_v36, 1  ;;  %v4341_v2 = vadd.f32 0.05243302, %v4340_v53  ;;  %v4352_v30 = vadd.f32 0.112945676, %v4351_v43  ;;  %v2329_v11 = vadd.f32 %v2265_v45, %v2199_v32  ;;  %v14140_v29 = vld [vmem:[#allocation41_spill] sm:$0xff] }
 0x3e5   : > { %v1560_v56 = vmul.f32 %v14055_v13, %v14138_v41  ;;  %v4262_v21 = vmul.f32 %v4261_v17, %v11091_v26  ;;  %v4273_v34 = vmul.f32 %v4272_v47, %v11091_v26  ;;  %v2461_v31 = vadd.f32 %v14139_v58, %v2331_v48  ;;  %v14141_v23 = vld [vmem:[#allocation48_spill] sm:$0xff]  ;;  %v14142_v43 = vld [vmem:[#allocation66_spill] sm:$0xff]  ;;  %v14144_v17 = vld [vmem:[#allocation43_spill] sm:$0xff] }
 0x3e6   : > { %v11167_v20 = vsel %vm1355_vm3, %v14137_v10, %v14135_v25  ;;  %v4342_v36 = vmul.f32 %v4341_v2, %v11095_v7  ;;  %v4353_v10 = vmul.f32 %v4352_v30, %v11095_v7  ;;  %v2459_v53 = vadd.f32 %v14141_v23, %v2329_v11 }
 0x3e7   : > { %v1756_v46 = vmul.f32 %v14140_v29, %v11167_v20  ;;  %v1690_v45 = vadd.f32 %v14142_v43, %v1560_v56  ;;  %v4263_v32 = vadd.f32 0.18741608, %v4262_v21  ;;  %v4274_v25 = vadd.f32 0.4994258, %v4273_v34  ;;  %v14149_v56 = vld [vmem:[#allocation86_spill] sm:$0xff] }
 0x3e8   : > { %v2591_v4 = vadd.f32 %v2527_v0, %v2461_v31  ;;  %v1878_v61 = vmul.f32 %v14144_v17, %v14143_v60  ;;  %v4343_v47 = vadd.f32 0.18741608, %v4342_v36  ;;  %v4354_v1 = vadd.f32 0.4994258, %v4353_v10 }
 0x3e9   : > { %v2589_v48 = vadd.f32 %v2525_v38, %v2459_v53  ;;  %v11182_v58 = vadd.f32 %v1756_v46, %v1690_v45  ;;  %v11185_v28 = vmul.f32 %v13822_v12, %v1199_v59  ;;  %v14146_v2 = vrot.slane %v11075_v19, 1 }
 0x3ea   : > { %v14147_v11 = vrot.slane %v11045_v39, 1  ;;  %v4275_v0 = vmul.f32 %v4274_v25, %v11091_v26  ;;  %v11197_v60 = vadd.f32 %v14149_v56, %v2591_v4  ;;  %v4264_v34 = vmul.f32 %v4263_v32, %v11091_v26  ;;  %v14152_v39 = vld [vmem:[#allocation94_spill] sm:$0xff] }
 0x3eb   : > { %14145 = vst [vmem:[#allocation120_spill] sm:$0xff] %v11185_v28  ;;  %v14151_v21 = vmov %v14146_v2  ;;  %v4355_v31 = vmul.f32 %v4354_v1, %v11095_v7  ;;  %v11208_v46 = vadd.f32 %v14149_v56, %v2589_v48  ;;  %v1574_v36 = vmul.f32 %v14055_v13, %v11122_v50 }
 0x3ec   : > { %v11193_v30 = vsel %vm1355_vm3, %v14147_v11, %v14146_v2  ;;  %v14150_v38 = vmov %v14147_v11  ;;  %v1896_v4 = vmul.f32 %v14144_v17, %v11122_v50  ;;  %v11214_v10 = vadd.f32 1.0, %v4275_v0 }
 0x3ed   : > { %14148 = vst [vmem:[#allocation74_spill] sm:$0xff] %v11193_v30  ;;  %v1422_v59 = vsel %vm1355_vm3, %v14151_v21, %v14150_v38  ;;  %v1942_v23 = vadd.f32 %v1878_v61, %v14152_v39  ;;  %v4344_v53 = vmul.f32 %v4343_v47, %v11095_v7  ;;  %v11218_v43 = vadd.f32 1.0, %v4355_v31  ;;  %v14158_v21 = vld [vmem:[#allocation96_spill] sm:$0xff] }
 0x3ee   : > { %v11221_v26 = vmul.f32 0.70710677, %v11208_v46  ;;  %v11224_v1 = vmul.f32 0.70710677, %v11197_v60  ;;  %v1640_v45 = vmul.f32 %v14111_v18, %v11075_v19  ;;  %v11230_v32 = vmul.f32 %v14113_v51, %v11075_v19 }
 0x3ef   : > { %v11234_v61 = vmul.f32 %v7379_v55, %v11075_v19  ;;  %6507 = vrcp.f32 %v11214_v10  ;;  %v11238_v7 = vmul.f32 %v14068_v24, %v1422_v59  ;;  %v11242_v25 = vmul.f32 %v14140_v29, %v11193_v30 }
 0x3f0   : > { %v4265_v47 = vadd.f32 1.1283791, %v4264_v34  ;;  %6509 = vrcp.f32 %v11218_v43  ;;  %v11247_v18 = vmul.f32 %v14055_v13, %v11185_v28  ;;  %v11249_v48 = vadd.f32 %v1640_v45, %v1574_v36 }
 0x3f1   : > { %14153 = vst [vmem:[#allocation107_spill] sm:$0xff] %v11234_v61  ;;  %v11253_v19 = vmul.f32 %v14144_v17, %v11185_v28  ;;  %v4294_v2 = vmul.f32 %v11221_v26, %v11221_v26  ;;  %v11258_v11 = vadd.f32 %v1896_v4, %v10993_v37  ;;  %v4345_v0 = vadd.f32 1.1283791, %v4344_v53 }
 0x3f2   : > { %14154 = vst [vmem:[#allocation142_spill] sm:$0xff] %v11238_v7  ;;  %v4374_v38 = vmul.f32 %v11224_v1, %v11224_v1  ;;  %v2072_v59 = vadd.f32 %v14158_v21, %v1942_v23  ;;  %v11265_v34 = vmul.f32 %v13830_v57, %v11193_v30  ;;  %v4266_v45 = vmul.f32 %v4265_v47, %v11011_v3 }
 0x3f3   : > { %14155 = vst [vmem:[#allocation112_spill] sm:$0xff] %v11242_v25  ;;  %v11269_v39 = vmin.f32 %v4294_v2, 16.0  ;;  %v4286_v37 = vand.u32 2147483647, %v11214_v10  ;;  %vm4282_vm8 = vweird.f32 %v11214_v10  ;;  %v4288_v21 = vand.u32 2147483648, %v11214_v10 }
 0x3f4   : > { %14156 = vst [vmem:[#allocation138_spill] sm:$0xff] %v11249_v48  ;;  %v11273_v4 = vmin.f32 %v4374_v38, 16.0  ;;  %v11276_v53 = vadd.f32 %v11039_v62, %v2072_v59  ;;  %v4346_v3 = vmul.f32 %v4345_v0, %v11015_v15  ;;  %v4366_v59 = vand.u32 2147483647, %v11218_v43 }
 0x3f5   : > { %14157 = vst [vmem:[#allocation72_spill] sm:$0xff] %v11253_v19  ;;  %v6508_v23 = vpop.eup %6507  ;;  %v4296_v31 = vmul.f32 2.1237322e-06, %v11269_v39  ;;  %v4307_v36 = vmul.f32 3.8918573e-05, %v11269_v39  ;;  %vm4362_vm9 = vweird.f32 %v11218_v43  ;;  %v4368_v13 = vand.u32 2147483648, %v11218_v43 }
 0x3f6   : > { %14159 = vst [vmem:[#allocation71_spill] sm:$0xff] %v11265_v34  ;;  %v6510_v2 = vpop.eup %6509  ;;  %v4278_v34 = vmul.f32 %v6508_v23, %v11214_v10  ;;  %v4376_v47 = vmul.f32 2.1237322e-06, %v11273_v4  ;;  %v4387_v38 = vmul.f32 3.8918573e-05, %v11273_v4  ;;  %vm4283_vm10 = vweird.f32 %v6508_v23 }
 0x3f7   : > { %v4358_v62 = vmul.f32 %v6510_v2, %v11218_v43  ;;  %v4297_v19 = vadd.f32 0.00028619796, %v4296_v31  ;;  %v4308_v61 = vadd.f32 0.001143296, %v4307_v36  ;;  %vm4363_vm11 = vweird.f32 %v6510_v2  ;;  %vm4284_vm13 = vmor %vm4282_vm8, %vm4283_vm10 }
 0x3f8   : > { %v4279_v30 = vsub.f32 1.0, %v4278_v34  ;;  %v4377_v50 = vadd.f32 0.00028619796, %v4376_v47  ;;  %v4388_v28 = vadd.f32 0.001143296, %v4387_v38  ;;  %vm4287_vm12 = vcmp.eq.f32.partialorder %v4286_v37, 8.507059e+37  ;;  %vm4364_vm15 = vmor %vm4362_vm9, %vm4363_vm11 }
 0x3f9   : > { %v4359_v56 = vsub.f32 1.0, %v4358_v62  ;;  %v4298_v15 = vmul.f32 %v4297_v19, %v11269_v39  ;;  %v4309_v0 = vmul.f32 %v4308_v61, %v11269_v39  ;;  %v4289_v19 = vor.u32 1.1754944e-38, %v4288_v21 }
 0x3fa   : > { %v4280_v48 = vmul.f32 %v6508_v23, %v4279_v30  ;;  %v4378_v25 = vmul.f32 %v4377_v50, %v11273_v4  ;;  %v4389_v55 = vmul.f32 %v4388_v28, %v11273_v4  ;;  %vm4367_vm14 = vcmp.eq.f32.partialorder %v4366_v59, 8.507059e+37 }
 0x3fb   : > { %v4360_v31 = vmul.f32 %v6510_v2, %v4359_v56  ;;  %v4299_v34 = vadd.f32 0.0036580483, %v4298_v15  ;;  %v4310_v36 = vadd.f32 0.014752088, %v4309_v0  ;;  %v4369_v28 = vor.u32 1.1754944e-38, %v4368_v13 }
 0x3fc   : > { %v4281_v29 = vadd.f32 %v6508_v23, %v4280_v48  ;;  %v4379_v47 = vadd.f32 0.0036580483, %v4378_v25  ;;  %v4390_v38 = vadd.f32 0.014752088, %v4389_v55  ;;  %v1641_v37 = vmul.f32 %v13942_v42, %v11113_v9 }
 0x3fd   : > { %v4361_v62 = vadd.f32 %v6510_v2, %v4360_v31  ;;  %v4311_v30 = vmul.f32 %v4310_v36, %v11269_v39  ;;  %v4300_v50 = vmul.f32 %v4299_v34, %v11269_v39  ;;  %v2140_v13 = vmul.f32 %v13830_v57, %v14089_v40  ;;  %v14161_v36 = vld [vmem:[#allocation98_spill] sm:$0xff] }
 0x3fe   : > { %v4285_v61 = vsel %vm4284_vm13, %v6508_v23, %v4281_v29  ;;  %v4391_v56 = vmul.f32 %v4390_v38, %v11273_v4  ;;  %v4380_v10 = vmul.f32 %v4379_v47, %v11273_v4  ;;  %v14160_v23 = vld [vmem:[#allocation52_spill] sm:$0xff]  ;;  %v2027_v42 = vmul.f32 %v7255_v52, %v11113_v9 }
 0x3ff   : > { %v4290_v48 = vsel %vm4287_vm12, %v4289_v19, %v4285_v61  ;;  %v4365_v25 = vsel %vm4364_vm15, %v6510_v2, %v4361_v62  ;;  %v4312_v55 = vadd.f32 0.112945676, %v4311_v30  ;;  %v2268_v0 = vmul.f32 %v14160_v23, %v14138_v41 }
 0x400   : > { %v4291_v21 = vmul.f32 %v4290_v48, %v4266_v45  ;;  %v4370_v59 = vsel %vm4367_vm14, %v4369_v28, %v4365_v25  ;;  %v4392_v15 = vadd.f32 0.112945676, %v4391_v56  ;;  %v4301_v2 = vadd.f32 0.05243302, %v4300_v50  ;;  %v14165_v28 = vld [vmem:[#allocation51_spill] sm:$0xff] }
 0x401   : > { %v4371_v29 = vmul.f32 %v4370_v59, %v4346_v3  ;;  %v4313_v43 = vmul.f32 %v4312_v55, %v11269_v39  ;;  %v2270_v47 = vmul.f32 %v14160_v23, %v14161_v36  ;;  %v4381_v38 = vadd.f32 0.05243302, %v4380_v10 }
 0x402   : > { %v6185_v31 = vclamps-f32 %v4291_v21, 1.0  ;;  %v4393_v34 = vmul.f32 %v4392_v15, %v11273_v4  ;;  %v14162_v19 = vrot.slane %v11113_v9, 7  ;;  %v14163_v40 = vrot.slane %v11065_v33, 7  ;;  %v791_v21 = vpop.f32.mrf.mxu0 }
 0x403   : > { %v6187_v45 = vclamps-f32 %v4371_v29, 1.0  ;;  %v4314_v3 = vadd.f32 0.4994258, %v4313_v43  ;;  %v2204_v50 = vadd.f32 %v2140_v13, %v14165_v28  ;;  %v2332_v59 = vadd.f32 %v2268_v0, %v11276_v53 }
 0x404   : > { %v11320_v62 = vsel %vm1132_vm2, %v14163_v40, %v14162_v19  ;;  %v5410_v30 = vadd.f32 1.0, %v6185_v31  ;;  %v4394_v61 = vadd.f32 0.4994258, %v4393_v34  ;;  %v14166_v56 = vmov %v14163_v40 }
 0x405   : > { %14164 = vst [vmem:[#allocation30_spill] sm:$0xff] %v11320_v62  ;;  %v14167_v48 = vmov %v14162_v19  ;;  %v5412_v55 = vadd.f32 1.0, %v6187_v45  ;;  %v4315_v10 = vmul.f32 %v4314_v3, %v11269_v39  ;;  %v4302_v29 = vmul.f32 %v4301_v2, %v11269_v39 }
 0x406   : > { %v1200_v25 = vsel %vm1132_vm2, %v14167_v48, %v14166_v56  ;;  %v5474_v15 = vmul.f32 %v5410_v30, %v11041_v27  ;;  %v4395_v43 = vmul.f32 %v4394_v61, %v11273_v4  ;;  %v2334_v13 = vadd.f32 %v2270_v47, %v2204_v50  ;;  %v14174_v30 = vld [vmem:[#allocation111_spill] sm:$0xff]  ;;  %v14175_v56 = vld [vmem:[#allocation65_spill] sm:$0xff] }
 0x407   : > { %v1897_v31 = vmul.f32 %v13876_v6, %v11320_v62  ;;  %v5476_v34 = vmul.f32 %v5412_v55, %v11047_v49  ;;  %v11337_v36 = vadd.f32 1.0, %v4315_v10  ;;  %v4382_v45 = vmul.f32 %v4381_v38, %v11273_v4  ;;  %v5680_v10 = vpop.f32.mrf.mxu2 }
 0x408   : > { %v11341_v3 = vmul.f32 %v13822_v12, %v1200_v25  ;;  %v14169_v53 = vrot.slane %v11065_v33, 1  ;;  %v14170_v27 = vrot.slane %v11113_v9, 1  ;;  %v1575_v2 = vmul.f32 %v13643_v35, %v11320_v62 }
 0x409   : > { %v11351_v47 = vadd.f32 1.0, %v4395_v43  ;;  %v5520_v40 = vpack.c.bf16 %v5476_v34, %v5474_v15  ;;  %6511 = vrcp.f32 %v11337_v36  ;;  %v2462_v61 = vadd.f32 %v14174_v30, %v2332_v59  ;;  %v11373_v15 = vld [vmem:[#allocation11 + $0x10] ss:$0 sm:$0xff]  ;;  %v14179_v43 = vld [vmem:[#allocation101_spill] sm:$0xff]  ;;  %v14182_v34 = vld [vmem:[#allocation58_spill] sm:$0xff] }
 0x40a   : > { %14168 = vst [vmem:[#allocation63_spill] sm:$0xff] %v11341_v3  ;;  %v1423_v0 = vsel %vm1355_vm3, %v14170_v27, %v14169_v53  ;;  %v14171_v49 = vmov %v14170_v27  ;;  %v14172_v19 = vmov %v14169_v53  ;;  %v11365_v28 = vadd.f32 %v11230_v32, %v11258_v11 }
 0x40b   : > { %v11359_v38 = vsel %vm1355_vm3, %v14172_v19, %v14171_v49  ;;  %v4303_v50 = vadd.f32 0.18741608, %v4302_v29  ;;  %6513 = vrcp.f32 %v11351_v47  ;;  %v2464_v48 = vadd.f32 %v14175_v56, %v2334_v13  ;;  %5719 = vmatmul.bf16.gmra.mxu2 %v5520_v40 }
 0x40c   : > { %14173 = vst [vmem:[#allocation143_spill] sm:$0xff] %v11359_v38  ;;  %v11370_v33 = vmul.f32 %v14068_v24, %v1423_v0  ;;  %v1961_v25 = vadd.f32 %v1897_v31, %v11017_v5  ;;  %v4383_v55 = vadd.f32 0.18741608, %v4382_v45  ;;  %v2528_v59 = vmul.f32 %v11373_v15, %v11167_v20 }
 0x40d   : > { %v11379_v32 = vmul.f32 %v13643_v35, %v11341_v3  ;;  %v11381_v11 = vadd.f32 %v1641_v37, %v1575_v2  ;;  %v11385_v29 = vmul.f32 %v7230_v22, %v11359_v38  ;;  %v2530_v5 = vmul.f32 %v11373_v15, %v14179_v43  ;;  %v793_v2 = vpop.f32.mrf.mxu0 }
 0x40e   : > { %14176 = vst [vmem:[#allocation97_spill] sm:$0xff] %v11370_v33  ;;  %v11391_v13 = vmul.f32 %v13876_v6, %v11341_v3  ;;  %v11395_v31 = vmul.f32 %v13802_v14, %v11359_v38  ;;  %v1886_v45 = vmul.f32 %v14144_v17, %v14182_v34  ;;  %v2592_v37 = vadd.f32 %v2528_v59, %v2462_v61  ;;  %v5769_v61 = vpop.f32.mrf.mxu3 }
 0x40f   : > { %14177 = vst [vmem:[#allocation90_spill] sm:$0xff] %v11381_v11  ;;  %v11401_v53 = vmul.f32 %v13564_v63, %v11113_v9  ;;  %v4304_v27 = vmul.f32 %v4303_v50, %v11269_v39  ;;  %v5681_v0 = vadd.f32 %v10957_v54, %v5680_v10  ;;  %v2594_v49 = vadd.f32 %v2530_v5, %v2464_v48  ;;  %v6512_v19 = vpop.eup %6511 }
 0x410   : > { %14178 = vst [vmem:[#allocation37_spill] sm:$0xff] %v11385_v29  ;;  %v11405_v40 = vadd.f32 %v2027_v42, %v1961_v25  ;;  %v11409_v30 = vmul.f32 %v13802_v14, %v11061_v44  ;;  %v11412_v56 = vmul.f32 0.5, %v11197_v60  ;;  %v4384_v9 = vmul.f32 %v4383_v55, %v11273_v4  ;;  %v14186_v4 = vld [vmem:[#allocation59_spill] sm:$0xff]  ;;  %v14226_v29 = vld [vmem:[#allocation102_spill] sm:$0xff] }
 0x411   : > { %14180 = vst [vmem:[#allocation44_spill] sm:$0xff] %v11391_v13  ;;  %v6514_v59 = vpop.eup %6513  ;;  %v11416_v39 = vmul.f32 0.5, %v11208_v46  ;;  %v4318_v50 = vmul.f32 %v6512_v19, %v11337_v36  ;;  %v5770_v48 = vadd.f32 %v5769_v61, %v5681_v0  ;;  %v11421_v42 = vmul.f32 %v13830_v57, %v11167_v20  ;;  %v890_v0 = vpop.f32.mrf.mxu1  ;;  %v14187_v13 = vld [vmem:[#allocation32_spill] sm:$0xff] }
 0x412   : > { %14181 = vst [vmem:[#allocation85_spill] sm:$0xff] %v11395_v31  ;;  %v4398_v44 = vmul.f32 %v6514_v59, %v11351_v47  ;;  %v11425_v60 = vadd.f32 %v793_v2, %v14103_v16  ;;  %v11428_v25 = vadd.f32 %v1886_v45, %v11182_v58  ;;  %v11431_v55 = vadd.f32 %v14186_v4, %v2592_v37 }
 0x413   : > { %14183 = vst [vmem:[#allocation95_spill] sm:$0xff] %v11401_v53  ;;  %v4305_v46 = vadd.f32 1.1283791, %v4304_v27  ;;  %v4319_v10 = vsub.f32 1.0, %v4318_v50  ;;  %v792_v5 = vadd.f32 %v791_v21, %v14103_v16  ;;  %v11436_v20 = vadd.f32 %v14186_v4, %v2594_v49 }
 0x414   : > { %14184 = vst [vmem:[#allocation135_spill] sm:$0xff] %v11405_v40  ;;  %v4328_v61 = vand.u32 2147483648, %v11337_v36  ;;  %v4385_v31 = vadd.f32 1.1283791, %v4384_v9  ;;  %v4399_v2 = vsub.f32 1.0, %v4398_v44  ;;  %v11440_v40 = vadd.f32 %v890_v0, %v14187_v13 }
 0x415   : > { %14185 = vst [vmem:[#allocation129_spill] sm:$0xff] %v11428_v25  ;;  %v4320_v58 = vmul.f32 %v6512_v19, %v4319_v10  ;;  %vm4323_vm0 = vweird.f32 %v6512_v19  ;;  %v4326_v45 = vand.u32 2147483647, %v11337_v36  ;;  %v4408_v37 = vand.u32 2147483648, %v11351_v47 }
 0x416   : > { %5846 = vst [vmem:[%s11034_s26 + $0x10] sm:$0xff] %v5770_v48  ;;  %v4400_v27 = vmul.f32 %v6514_v59, %v4399_v2  ;;  %vm4403_vm1 = vweird.f32 %v6514_v59  ;;  %v4406_v16 = vand.u32 2147483647, %v11351_v47  ;;  %v1128_v21 = vrot.slane %v11425_v60, 7 }
 0x417   : > { %v4306_v49 = vmul.f32 %v4305_v46, %v11221_v26  ;;  %v4321_v50 = vadd.f32 %v6512_v19, %v4320_v58  ;;  %vm4322_vm4 = vweird.f32 %v11337_v36  ;;  %v1092_v9 = vrot.slane %v792_v5, 7  ;;  %v14188_v58 = vld [vmem:[#allocation118_spill] sm:$0xff] }
 0x418   : > { %vm4324_vm5 = vmor %vm4322_vm4, %vm4323_vm0  ;;  %v4329_v48 = vor.u32 1.1754944e-38, %v4328_v61  ;;  %v4386_v44 = vmul.f32 %v4385_v31, %v11224_v1  ;;  %v4401_v10 = vadd.f32 %v6514_v59, %v4400_v27  ;;  %vm4402_vm6 = vweird.f32 %v11351_v47 }
 0x419   : > { %v4325_v0 = vsel %vm4324_vm5, %v6512_v19, %v4321_v50  ;;  %vm4327_vm7 = vcmp.eq.f32.partialorder %v4326_v45, 8.507059e+37  ;;  %vm4404_vm8 = vmor %vm4402_vm6, %vm4403_vm1  ;;  %v4409_v2 = vor.u32 1.1754944e-38, %v4408_v37  ;;  %v1351_v38 = vrot.slane %v11425_v60, 1 }
 0x41a   : > { %v4330_v53 = vsel %vm4327_vm7, %v4329_v48, %v4325_v0  ;;  %v4405_v62 = vsel %vm4404_vm8, %v6514_v59, %v4401_v10  ;;  %vm4407_vm9 = vcmp.eq.f32.partialorder %v4406_v16, 8.507059e+37  ;;  %v1201_v26 = vsel %vm1132_vm2, %v1128_v21, %v1092_v9  ;;  %v892_v0 = vpop.f32.mrf.mxu1 }
 0x41b   : > { %v4331_v36 = vmul.f32 %v4330_v53, %v4306_v49  ;;  %v4410_v46 = vsel %vm4407_vm9, %v4409_v2, %v4405_v62  ;;  %v1315_v61 = vrot.slane %v792_v5, 1  ;;  %v11454_v1 = vmul.f32 0.5, %v11431_v55  ;;  %v14189_v62 = vld [vmem:[#allocation41_spill] sm:$0xff]  ;;  %v14190_v49 = vld [vmem:[#allocation54_spill] sm:$0xff] }
 0x41c   : > { %v4411_v31 = vmul.f32 %v4410_v46, %v4386_v44  ;;  %v2028_v47 = vmul.f32 %v14113_v51, %v792_v5  ;;  %v1165_v19 = vsel %vm1132_vm2, %v1092_v9, %v1128_v21  ;;  %v1702_v45 = vadd.f32 %v14188_v58, %v11247_v18 }
 0x41d   : > { %v6186_v59 = vclamps-f32 %v4331_v36, 1.0  ;;  %v1275_v37 = vmul.f32 %v13822_v12, %v1201_v26  ;;  %v1424_v53 = vsel %vm1355_vm3, %v1351_v38, %v1315_v61  ;;  %v1770_v27 = vmul.f32 %v14189_v62, %v11238_v7  ;;  %v14196_v36 = vld [vmem:[#allocation112_spill] sm:$0xff] }
 0x41e   : > { %v6188_v16 = vclamps-f32 %v4411_v31, 1.0  ;;  %v11467_v50 = vmul.f32 %v14190_v49, %v792_v5  ;;  %v11473_v18 = vmul.f32 %v7255_v52, %v11440_v40  ;;  %v11477_v44 = vmul.f32 %v13564_v63, %v11440_v40  ;;  %v5682_v31 = vpop.f32.mrf.mxu2  ;;  %v14227_v52 = vld [vmem:[#allocation99_spill] sm:$0xff] }
 0x41f   : > { %v5411_v9 = vadd.f32 1.0, %v6186_v59  ;;  %v1900_v10 = vmul.f32 %v14144_v17, %v1165_v19  ;;  %v11482_v5 = vsel %vm1355_vm3, %v1315_v61, %v1351_v38  ;;  %v11485_v26 = vmul.f32 %v14068_v24, %v1424_v53  ;;  %v14197_v59 = vld [vmem:[#allocation138_spill] sm:$0xff]  ;;  %v14198_v61 = vld [vmem:[#allocation31_spill] sm:$0xff] }
 0x420   : > { %14191 = vst [vmem:[#allocation122_spill] sm:$0xff] %v11467_v50  ;;  %v5413_v2 = vadd.f32 1.0, %v6188_v16  ;;  %v1832_v46 = vadd.f32 %v14196_v36, %v1702_v45  ;;  %v1834_v21 = vadd.f32 %v1770_v27, %v14197_v59  ;;  %v1898_v48 = vmul.f32 %v14144_v17, %v1275_v37 }
 0x421   : > { %14192 = vst [vmem:[#allocation50_spill] sm:$0xff] %v11473_v18  ;;  %v5475_v58 = vmul.f32 %v5411_v9, %v11416_v39  ;;  %v2030_v38 = vmul.f32 %v14113_v51, %v11425_v60  ;;  %v11498_v53 = vmul.f32 %v14160_v23, %v14198_v61  ;;  %v11501_v45 = vadd.f32 %v892_v0, %v14187_v13  ;;  %v5771_v13 = vpop.f32.mrf.mxu3  ;;  %v14213_v18 = vld [vmem:[#allocation55_spill] sm:$0xff] }
 0x422   : > { %14193 = vst [vmem:[#allocation137_spill] sm:$0xff] %v11477_v44  ;;  %v2156_v44 = vmul.f32 %v13830_v57, %v11238_v7  ;;  %v5477_v16 = vmul.f32 %v5413_v2, %v11412_v56  ;;  %v1964_v39 = vadd.f32 %v1900_v10, %v1834_v21  ;;  %v11505_v27 = vmul.f32 %v13830_v57, %v11482_v5  ;;  %v11573_v7 = vld [vmem:[#allocation11 + $0x18] ss:$0 sm:$0xff] }
 0x423   : > { %14194 = vst [vmem:[#allocation109_spill] sm:$0xff] %v11482_v5  ;;  %v2286_v9 = vmul.f32 %v14160_v23, %v1165_v19  ;;  %v5683_v36 = vadd.f32 %v10957_v54, %v5682_v31  ;;  %v2160_v51 = vmul.f32 %v13830_v57, %v11485_v26  ;;  %v11513_v59 = vmul.f32 %v14160_v23, %v1275_v37 }
 0x424   : > { %14195 = vst [vmem:[#allocation49_spill] sm:$0xff] %v11485_v26  ;;  %v5521_v56 = vpack.c.bf16 %v5477_v16, %v5475_v58  ;;  %v2220_v2 = vadd.f32 %v2156_v44, %v11365_v28  ;;  %v1962_v21 = vadd.f32 %v1898_v48, %v1832_v46  ;;  %v11516_v0 = vmul.f32 0.70710677, %v11431_v55  ;;  %v14201_v58 = vld [vmem:[#allocation79_spill] sm:$0xff]  ;;  %v14203_v44 = vld [vmem:[#allocation140_spill] sm:$0xff] }
 0x425   : > { %14199 = vst [vmem:[#allocation145_spill] sm:$0xff] %v11501_v45  ;;  %v5772_v10 = vadd.f32 %v5771_v13, %v5683_v36  ;;  %v11519_v19 = vmul.f32 0.70710677, %v11436_v20  ;;  %v2416_v54 = vmul.f32 %v14190_v49, %v11425_v60  ;;  %v14202_v28 = vrot.slane %v14201_v58, 1  ;;  %v14205_v46 = vld [vmem:[#allocation47_spill] sm:$0xff]  ;;  %v14206_v58 = vld [vmem:[#allocation70_spill] sm:$0xff] }
 0x426   : > { %14200 = vst [vmem:[#allocation80_spill] sm:$0xff] %v11513_v59  ;;  %5808 = vmatmul.bf16.gmra.mxu3 %v5521_v56  ;;  %v14204_v37 = vrot.slane %v14203_v44, 1  ;;  %v1561_v55 = vmul.f32 %v13643_v35, %v14205_v46  ;;  %v2094_v16 = vadd.f32 %v2030_v38, %v1964_v39  ;;  %v2350_v36 = vadd.f32 %v2286_v9, %v2220_v2  ;;  %v14208_v9 = vld [vmem:[#allocation148_spill] sm:$0xff] }
 0x427   : > { %5847 = vst [vmem:[%s11034_s26 + $0x18] sm:$0xff] %v5772_v10  ;;  %v4414_v56 = vmul.f32 %v11516_v0, %v11516_v0  ;;  %v4494_v60 = vmul.f32 %v11519_v19, %v11519_v19  ;;  %v2092_v49 = vadd.f32 %v2028_v47, %v1962_v21  ;;  %v2141_v2 = vmul.f32 %v13802_v14, %v14208_v9  ;;  %v14214_v47 = vld [vmem:[#allocation104_spill] sm:$0xff]  ;;  %v14215_v21 = vld [vmem:[#allocation73_spill] sm:$0xff] }
 0x428   : > { %v11530_v48 = vsel %vm1355_vm3, %v14204_v37, %v14202_v28  ;;  %v1691_v44 = vadd.f32 %v14206_v58, %v1561_v55  ;;  %v14207_v37 = vld [vmem:[#allocation60_spill] sm:$0xff]  ;;  %v14209_v10 = vrot.slane %v11501_v45, 7  ;;  %v14210_v13 = vrot.slane %v11440_v40, 7 }
 0x429   : > { %v1757_v28 = vmul.f32 %v7230_v22, %v11530_v48  ;;  %v1879_v31 = vmul.f32 %v13876_v6, %v14207_v37  ;;  %v11545_v38 = vmin.f32 %v4414_v56, 16.0  ;;  %v11547_v39 = vmin.f32 %v4494_v60, 16.0  ;;  %v14216_v59 = vld [vmem:[#allocation132_spill] sm:$0xff] }
 0x42a   : > { %v11557_v55 = vsel %vm1132_vm2, %v14210_v13, %v14209_v10  ;;  %v2271_v56 = vmul.f32 %v14215_v21, %v14214_v47  ;;  %v2205_v5 = vadd.f32 %v2141_v2, %v14216_v59  ;;  %v2224_v26 = vadd.f32 %v2160_v51, %v2094_v16  ;;  %v14217_v13 = vld [vmem:[#allocation144_spill] sm:$0xff]  ;;  %v14219_v51 = vld [vmem:[#allocation113_spill] sm:$0xff]  ;;  %v14221_v2 = vld [vmem:[#allocation147_spill] sm:$0xff] }
 0x42b   : > { %14211 = vst [vmem:[#allocation136_spill] sm:$0xff] %v11557_v55  ;;  %v11559_v58 = vadd.f32 %v1757_v28, %v1691_v44  ;;  %v1943_v37 = vadd.f32 %v1879_v31, %v14213_v18  ;;  %v4416_v60 = vmul.f32 2.1237322e-06, %v11545_v38  ;;  %v4427_v50 = vmul.f32 3.8918573e-05, %v11545_v38 }
 0x42c   : > { %v4496_v9 = vmul.f32 2.1237322e-06, %v11547_v39  ;;  %v4507_v63 = vmul.f32 3.8918573e-05, %v11547_v39  ;;  %v2269_v44 = vmul.f32 %v14215_v21, %v14205_v46  ;;  %v2335_v47 = vadd.f32 %v2271_v56, %v2205_v5 }
 0x42d   : > { %14212 = vst [vmem:[#allocation48_spill] sm:$0xff] %v11559_v58  ;;  %v2073_v10 = vadd.f32 %v14217_v13, %v1943_v37  ;;  %v4417_v18 = vadd.f32 0.00028619796, %v4416_v60  ;;  %v4428_v31 = vadd.f32 0.001143296, %v4427_v50  ;;  %v14218_v58 = vld [vmem:[#allocation76_spill] sm:$0xff]  ;;  %v2529_v13 = vmul.f32 %v11573_v7, %v11530_v48 }
 0x42e   : > { %v4497_v28 = vadd.f32 0.00028619796, %v4496_v9  ;;  %v4508_v61 = vadd.f32 0.001143296, %v4507_v63  ;;  %v2531_v59 = vmul.f32 %v11573_v7, %v14218_v58  ;;  %v14220_v16 = vrot.slane %v14219_v51, 1 }
 0x42f   : > { %v2203_v3 = vadd.f32 %v11409_v30, %v2073_v10  ;;  %v14222_v25 = vrot.slane %v14221_v2, 1  ;;  %v4418_v50 = vmul.f32 %v4417_v18, %v11545_v38  ;;  %v4429_v5 = vmul.f32 %v4428_v31, %v11545_v38  ;;  %v14224_v30 = vld [vmem:[#allocation141_spill] sm:$0xff]  ;;  %v14225_v10 = vld [vmem:[#allocation36_spill] sm:$0xff] }
 0x430   : > { %v4498_v63 = vmul.f32 %v4497_v28, %v11547_v39  ;;  %v2465_v56 = vadd.f32 %v14224_v30, %v2335_v47  ;;  %v4509_v60 = vmul.f32 %v4508_v61, %v11547_v39  ;;  %v1564_v51 = vmul.f32 %v14225_v10, %v14182_v34  ;;  %v14228_v30 = vld [vmem:[#allocation86_spill] sm:$0xff] }
 0x431   : > { %v11583_v37 = vsel %vm1355_vm3, %v14222_v25, %v14220_v16  ;;  %v2333_v9 = vadd.f32 %v2269_v44, %v2203_v3  ;;  %v4419_v2 = vadd.f32 0.0036580483, %v4418_v50  ;;  %v4430_v25 = vadd.f32 0.014752088, %v4429_v5 }
 0x432   : > { %14223 = vst [vmem:[#allocation66_spill] sm:$0xff] %v11583_v37  ;;  %v4499_v16 = vadd.f32 0.0036580483, %v4498_v63  ;;  %v2595_v11 = vadd.f32 %v2531_v59, %v2465_v56  ;;  %v4510_v18 = vadd.f32 0.014752088, %v4509_v60  ;;  %v1694_v28 = vadd.f32 %v14227_v52, %v1564_v51 }
 0x433   : > { %v2463_v31 = vadd.f32 %v14226_v29, %v2333_v9  ;;  %v1760_v47 = vmul.f32 %v14189_v62, %v11583_v37  ;;  %v4420_v3 = vmul.f32 %v4419_v2, %v11545_v38  ;;  %v4431_v61 = vmul.f32 %v4430_v25, %v11545_v38 }
 0x434   : > { %v4500_v44 = vmul.f32 %v4499_v16, %v11547_v39  ;;  %v11602_v10 = vadd.f32 %v14228_v30, %v2595_v11  ;;  %v4511_v50 = vmul.f32 %v4510_v18, %v11547_v39  ;;  %v1882_v52 = vmul.f32 %v14144_v17, %v14138_v41 }
 0x435   : > { %v2593_v59 = vadd.f32 %v2529_v13, %v2463_v31  ;;  %v11605_v5 = vadd.f32 %v1760_v47, %v1694_v28  ;;  %v11609_v29 = vadd.f32 %v2416_v54, %v2350_v36  ;;  %v4421_v63 = vadd.f32 0.05243302, %v4420_v3  ;;  %v14234_v31 = vld [vmem:[#allocation115_spill] sm:$0xff] }
 0x436   : > { %v4432_v56 = vadd.f32 0.112945676, %v4431_v61  ;;  %v4501_v60 = vadd.f32 0.05243302, %v4500_v44  ;;  %v11612_v9 = vadd.f32 %v11505_v27, %v2092_v49  ;;  %v4512_v51 = vadd.f32 0.112945676, %v4511_v50 }
 0x437   : > { %14229 = vst [vmem:[#allocation126_spill] sm:$0xff] %v11605_v5  ;;  %v11615_v11 = vadd.f32 %v14228_v30, %v2593_v59  ;;  %v11618_v2 = vmul.f32 0.70710677, %v11602_v10  ;;  %v14232_v13 = vrot.slane %v11440_v40, 7  ;;  %v14233_v25 = vrot.slane %v11501_v45, 7 }
 0x438   : > { %14230 = vst [vmem:[#allocation94_spill] sm:$0xff] %v11609_v29  ;;  %v4422_v54 = vmul.f32 %v4421_v63, %v11545_v38  ;;  %v4433_v36 = vmul.f32 %v4432_v56, %v11545_v38  ;;  %v4502_v49 = vmul.f32 %v4501_v60, %v11547_v39  ;;  %v4513_v27 = vmul.f32 %v4512_v51, %v11547_v39 }
 0x439   : > { %14231 = vst [vmem:[#allocation96_spill] sm:$0xff] %v11612_v9  ;;  %v1202_v41 = vsel %vm1132_vm2, %v14233_v25, %v14232_v13  ;;  %v11631_v16 = vmul.f32 0.70710677, %v11615_v11  ;;  %v4534_v18 = vmul.f32 %v11618_v2, %v11618_v2  ;;  %v1946_v28 = vadd.f32 %v1882_v52, %v14234_v31 }
 0x43a   : > { %v14235_v47 = vrot.slane %v11501_v45, 1  ;;  %v14236_v3 = vrot.slane %v11440_v40, 1  ;;  %v4423_v44 = vadd.f32 0.18741608, %v4422_v54  ;;  %v4434_v50 = vadd.f32 0.4994258, %v4433_v36 }
 0x43b   : > { %v4503_v59 = vadd.f32 0.18741608, %v4502_v49  ;;  %v4514_v51 = vadd.f32 0.4994258, %v4513_v27  ;;  %v4454_v52 = vmul.f32 %v11631_v16, %v11631_v16  ;;  %v11652_v13 = vmin.f32 %v4534_v18, 16.0 }
 0x43c   : > { %v11642_v61 = vsel %vm1355_vm3, %v14236_v3, %v14235_v47  ;;  %v14238_v63 = vmov %v14236_v3  ;;  %v14239_v56 = vmov %v14235_v47  ;;  %v11655_v25 = vadd.f32 %v11498_v53, %v2224_v26  ;;  %v14241_v47 = vld [vmem:[#allocation149_spill] sm:$0xff] }
 0x43d   : > { %14237 = vst [vmem:[#allocation98_spill] sm:$0xff] %v11642_v61  ;;  %v1425_v60 = vsel %vm1355_vm3, %v14239_v56, %v14238_v63  ;;  %v4424_v54 = vmul.f32 %v4423_v44, %v11545_v38  ;;  %v4435_v36 = vmul.f32 %v4434_v50, %v11545_v38  ;;  %v4504_v40 = vmul.f32 %v4503_v59, %v11547_v39  ;;  %v14243_v38 = vld [vmem:[#allocation127_spill] sm:$0xff] }
 0x43e   : > { %14240 = vst [vmem:[#allocation51_spill] sm:$0xff] %v11655_v25  ;;  %v11661_v49 = vmul.f32 %v13822_v12, %v1202_v41  ;;  %v4515_v31 = vmul.f32 %v4514_v51, %v11547_v39  ;;  %v11664_v27 = vmin.f32 %v4454_v52, 16.0  ;;  %v2076_v3 = vadd.f32 %v14241_v47, %v1946_v28 }
 0x43f   : > { %v11668_v18 = vmul.f32 %v14068_v24, %v1425_v60  ;;  %v4425_v26 = vadd.f32 1.1283791, %v4424_v54  ;;  %v11670_v53 = vadd.f32 1.0, %v4435_v36  ;;  %v4536_v44 = vmul.f32 2.1237322e-06, %v11652_v13  ;;  %v14244_v54 = vld [vmem:[#allocation83_spill] sm:$0xff] }
 0x440   : > { %v11675_v50 = vadd.f32 %v14243_v38, %v11379_v32  ;;  %v11677_v12 = vadd.f32 1.0, %v4515_v31  ;;  %v4456_v39 = vmul.f32 2.1237322e-06, %v11664_v27  ;;  %v4467_v41 = vmul.f32 3.8918573e-05, %v11664_v27 }
 0x441   : > { %14242 = vst [vmem:[#allocation111_spill] sm:$0xff] %v11668_v18  ;;  %6515 = vrcp.f32 %v11670_v53  ;;  %v4505_v28 = vadd.f32 1.1283791, %v4504_v40  ;;  %v4547_v24 = vmul.f32 3.8918573e-05, %v11652_v13  ;;  %v2144_v59 = vmul.f32 %v13830_v57, %v14179_v43  ;;  %v14250_v18 = vld [vmem:[#allocation84_spill] sm:$0xff] }
 0x442   : > { %v11687_v63 = vmul.f32 %v7230_v22, %v11370_v33  ;;  %v4448_v32 = vand.u32 2147483648, %v11670_v53  ;;  %6517 = vrcp.f32 %v11677_v12  ;;  %v2206_v56 = vadd.f32 %v11421_v42, %v2076_v3 }
 0x443   : > { %v11693_v60 = vmul.f32 %v4425_v26, %v11516_v0  ;;  %v4528_v51 = vand.u32 2147483648, %v11677_v12  ;;  %v4457_v52 = vadd.f32 0.00028619796, %v4456_v39  ;;  %v2208_v36 = vadd.f32 %v2144_v59, %v14244_v54 }
 0x444   : > { %v4446_v43 = vand.u32 2147483647, %v11670_v53  ;;  %v4468_v40 = vadd.f32 0.001143296, %v4467_v41  ;;  %v4537_v31 = vadd.f32 0.00028619796, %v4536_v44  ;;  %v2272_v47 = vmul.f32 %v14160_v23, %v14182_v34 }
 0x445   : > { %v11701_v38 = vmul.f32 %v4505_v28, %v11519_v19  ;;  %v4526_v42 = vand.u32 2147483647, %v11677_v12  ;;  %v4458_v0 = vmul.f32 %v4457_v52, %v11664_v27  ;;  %v4548_v3 = vadd.f32 0.001143296, %v4547_v24  ;;  %v14245_v41 = vld [vmem:[#allocation100_spill] sm:$0xff] }
 0x446   : > { %vm4442_vm2 = vweird.f32 %v11670_v53  ;;  %v4449_v26 = vor.u32 1.1754944e-38, %v4448_v32  ;;  %v4469_v39 = vmul.f32 %v4468_v40, %v11664_v27  ;;  %v4538_v59 = vmul.f32 %v4537_v31, %v11652_v13 }
 0x447   : > { %v2274_v44 = vmul.f32 %v14160_v23, %v14245_v41  ;;  %v6516_v54 = vpop.eup %6515  ;;  %vm4522_vm10 = vweird.f32 %v11677_v12  ;;  %v4529_v34 = vor.u32 1.1754944e-38, %v4528_v51  ;;  %v4459_v19 = vadd.f32 0.0036580483, %v4458_v0 }
 0x448   : > { %v4549_v28 = vmul.f32 %v4548_v3, %v11652_v13  ;;  %v2336_v25 = vadd.f32 %v2272_v47, %v2206_v56  ;;  %v6518_v52 = vpop.eup %6517  ;;  %v4438_v24 = vmul.f32 %v6516_v54, %v11670_v53  ;;  %vm11713_vm11 = vcmp.eq.f32.partialorder %v4446_v43, 8.507059e+37 }
 0x449   : > { %v4470_v40 = vadd.f32 0.014752088, %v4469_v39  ;;  %v4539_v31 = vadd.f32 0.0036580483, %v4538_v59  ;;  %v2532_v41 = vmul.f32 %v11373_v15, %v11583_v37  ;;  %vm4443_vm12 = vweird.f32 %v6516_v54  ;;  %v14251_v37 = vld [vmem:[#allocation29_spill] sm:$0xff] }
 0x44a   : > { %v4518_v9 = vmul.f32 %v6518_v52, %v11677_v12  ;;  %vm11720_vm13 = vcmp.eq.f32.partialorder %v4526_v42, 8.507059e+37  ;;  %v4460_v56 = vmul.f32 %v4459_v19, %v11664_v27  ;;  %v4550_v47 = vadd.f32 0.014752088, %v4549_v28  ;;  %vm4444_vm15 = vmor %vm4442_vm2, %vm4443_vm12 }
 0x44b   : > { %v4439_v0 = vsub.f32 1.0, %v4438_v24  ;;  %v4471_v43 = vmul.f32 %v4470_v40, %v11664_v27  ;;  %v4540_v3 = vmul.f32 %v4539_v31, %v11652_v13  ;;  %v2338_v39 = vadd.f32 %v2274_v44, %v2208_v36  ;;  %v14252_v36 = vld [vmem:[#allocation133_spill] sm:$0xff] }
 0x44c   : > { %v4519_v59 = vsub.f32 1.0, %v4518_v9  ;;  %v4461_v29 = vadd.f32 0.05243302, %v4460_v56  ;;  %v4551_v5 = vmul.f32 %v4550_v47, %v11652_v13  ;;  %v2466_v61 = vadd.f32 %v14250_v18, %v2336_v25 }
 0x44d   : > { %v4440_v23 = vmul.f32 %v6516_v54, %v4439_v0  ;;  %v4472_v42 = vadd.f32 0.112945676, %v4471_v43  ;;  %v4541_v57 = vadd.f32 0.05243302, %v4540_v3  ;;  %v2468_v62 = vadd.f32 %v14251_v37, %v2338_v39 }
 0x44e   : > { %v4520_v17 = vmul.f32 %v6518_v52, %v4519_v59  ;;  %vm4523_vm14 = vweird.f32 %v6518_v52  ;;  %v4462_v19 = vmul.f32 %v4461_v29, %v11664_v27  ;;  %v4552_v28 = vadd.f32 0.112945676, %v4551_v5 }
 0x44f   : > { %v4441_v24 = vadd.f32 %v6516_v54, %v4440_v23  ;;  %v4473_v40 = vmul.f32 %v4472_v42, %v11664_v27  ;;  %v4542_v9 = vmul.f32 %v4541_v57, %v11652_v13  ;;  %v2534_v44 = vmul.f32 %v11373_v15, %v14252_v36  ;;  %vm4524_vm0 = vmor %vm4522_vm10, %vm4523_vm14 }
 0x450   : > { %v4521_v25 = vadd.f32 %v6518_v52, %v4520_v17  ;;  %v4463_v18 = vadd.f32 0.18741608, %v4462_v19  ;;  %v4553_v37 = vmul.f32 %v4552_v28, %v11652_v13  ;;  %v2596_v31 = vadd.f32 %v2532_v41, %v2466_v61  ;;  %v5774_v41 = vpop.f32.mrf.mxu3 }
 0x451   : > { %v4445_v56 = vsel %vm4444_vm15, %v6516_v54, %v4441_v24  ;;  %v4474_v23 = vadd.f32 0.4994258, %v4473_v40  ;;  %v4543_v5 = vadd.f32 0.18741608, %v4542_v9  ;;  %v2598_v29 = vadd.f32 %v2534_v44, %v2468_v62  ;;  %v5685_v54 = vpop.f32.mrf.mxu2 }
 0x452   : > { %v4450_v57 = vsel %vm11713_vm11, %v4449_v26, %v4445_v56  ;;  %v4525_v47 = vsel %vm4524_vm0, %v6518_v52, %v4521_v25  ;;  %v4464_v0 = vmul.f32 %v4463_v18, %v11664_v27  ;;  %v4554_v53 = vadd.f32 0.4994258, %v4553_v37 }
 0x453   : > { %v4451_v17 = vmul.f32 %v4450_v57, %v11693_v60  ;;  %v4530_v43 = vsel %vm11720_vm13, %v4529_v34, %v4525_v47  ;;  %v4475_v61 = vmul.f32 %v4474_v23, %v11664_v27  ;;  %v4544_v12 = vmul.f32 %v4543_v5, %v11652_v13  ;;  %v11758_v60 = vld [vmem:[%s12911_s8] ss:$0 sm:$0xff]  ;;  %v14255_v23 = vld [vmem:[#allocation88_spill] sm:$0xff] }
 0x454   : > { %v11751_v62 = vmul.f32 %v13876_v6, %v11661_v49  ;;  %v4531_v26 = vmul.f32 %v4530_v43, %v11701_v38  ;;  %v4555_v52 = vmul.f32 %v4554_v53, %v11652_v13  ;;  %v5686_v34 = vadd.f32 %v11758_v60, %v5685_v54  ;;  %v14259_v53 = vld [vmem:[#allocation103_spill] sm:$0xff] }
 0x455   : > { %v11763_v27 = vmul.f32 %v13876_v6, %v11557_v55  ;;  %v6189_v32 = vclamps-f32 %v4451_v17, 1.0  ;;  %v4465_v51 = vadd.f32 1.1283791, %v4464_v0  ;;  %v11765_v3 = vadd.f32 1.0, %v4475_v61 }
 0x456   : > { %14253 = vst [vmem:[#allocation65_spill] sm:$0xff] %v11751_v62  ;;  %v6191_v39 = vclamps-f32 %v4531_v26, 1.0  ;;  %v4545_v38 = vadd.f32 1.1283791, %v4544_v12  ;;  %v11767_v59 = vadd.f32 1.0, %v4555_v52  ;;  %v5775_v13 = vadd.f32 %v5774_v41, %v5686_v34 }
 0x457   : > { %14254 = vst [vmem:[#allocation101_spill] sm:$0xff] %v11763_v27  ;;  %v5414_v42 = vadd.f32 1.0, %v6189_v32  ;;  %6519 = vrcp.f32 %v11765_v3  ;;  %v11771_v19 = vadd.f32 %v14186_v4, %v2596_v31  ;;  %v11774_v28 = vadd.f32 %v14186_v4, %v2598_v29  ;;  %v14257_v29 = vld [vmem:[#allocation78_spill] sm:$0xff] }
 0x458   : > { %v2728_v24 = vmul.f32 0.5, %v11436_v20  ;;  %v5416_v40 = vadd.f32 1.0, %v6191_v39  ;;  %v11779_v9 = vmul.f32 %v13802_v14, %v11530_v48  ;;  %6521 = vrcp.f32 %v11767_v59  ;;  %5848 = vst [vmem:[%s11034_s26 + $0x20] sm:$0xff] %v5775_v13  ;;  %v5776_v12 = vpop.f32.mrf.mxu3 }
 0x459   : > { %v5478_v36 = vmul.f32 %v5414_v42, %v11454_v1  ;;  %v11785_v44 = vmul.f32 0.5, %v11615_v11  ;;  %v11788_v25 = vmul.f32 0.5, %v11602_v10  ;;  %v4488_v18 = vand.u32 2147483648, %v11765_v3  ;;  %v5687_v1 = vpop.f32.mrf.mxu2 }
 0x45a   : > { %v5480_v37 = vmul.f32 %v5416_v40, %v2728_v24  ;;  %v11792_v20 = vmul.f32 %v4465_v51, %v11631_v16  ;;  %v4486_v48 = vand.u32 2147483647, %v11765_v3  ;;  %v11796_v31 = vmul.f32 %v4545_v38, %v11618_v2  ;;  %v14262_v51 = vld [vmem:[#allocation139_spill] sm:$0xff] }
 0x45b   : > { %v4566_v56 = vand.u32 2147483647, %v11767_v59  ;;  %v11800_v11 = vmul.f32 0.70710677, %v11771_v19  ;;  %v11803_v10 = vmul.f32 0.70710677, %v11774_v28  ;;  %vm4482_vm1 = vweird.f32 %v11765_v3 }
 0x45c   : > { %v14256_v5 = vrot.slane %v14255_v23, 1  ;;  %v14258_v57 = vrot.slane %v14257_v29, 1  ;;  %v5522_v47 = vpack.c.bf16 %v5480_v37, %v5478_v36  ;;  %v4568_v2 = vand.u32 2147483648, %v11767_v59  ;;  %v14265_v37 = vld [vmem:[#allocation35_spill] sm:$0xff] }
 0x45d   : > { %v5688_v0 = vadd.f32 %v11758_v60, %v5687_v1  ;;  %v1565_v17 = vmul.f32 %v13643_v35, %v14259_v53  ;;  %v6520_v43 = vpop.eup %6519  ;;  %v4489_v61 = vor.u32 1.1754944e-38, %v4488_v18  ;;  %vm4562_vm4 = vweird.f32 %v11767_v59 }
 0x45e   : > { %v11811_v16 = vsel %vm1355_vm3, %v14258_v57, %v14256_v5  ;;  %v4574_v54 = vmul.f32 %v11800_v11, %v11800_v11  ;;  %v4654_v41 = vmul.f32 %v11803_v10, %v11803_v10  ;;  %v1883_v26 = vmul.f32 %v13876_v6, %v14205_v46  ;;  %v6522_v52 = vpop.eup %6521  ;;  %5724 = vmatmul.bf16.gmra.mxu2 %v5522_v47 }
 0x45f   : > { %v4478_v34 = vmul.f32 %v6520_v43, %v11765_v3  ;;  %vm11826_vm5 = vcmp.eq.f32.partialorder %v4486_v48, 8.507059e+37  ;;  %v5777_v32 = vadd.f32 %v5776_v12, %v5688_v0  ;;  %v1695_v39 = vadd.f32 %v14262_v51, %v1565_v17  ;;  %v14266_v17 = vld [vmem:[#allocation108_spill] sm:$0xff] }
 0x460   : > { %v1761_v38 = vmul.f32 %v7230_v22, %v11811_v16  ;;  %v4558_v13 = vmul.f32 %v6522_v52, %v11767_v59  ;;  %vm11834_vm6 = vcmp.eq.f32.partialorder %v4566_v56, 8.507059e+37  ;;  %v11838_v46 = vmin.f32 %v4574_v54, 16.0 }
 0x461   : > { %v11840_v24 = vmin.f32 %v4654_v41, 16.0  ;;  %v4479_v40 = vsub.f32 1.0, %v4478_v34  ;;  %v4569_v36 = vor.u32 1.1754944e-38, %v4568_v2  ;;  %5849 = vst [vmem:[%s11034_s26 + $0x28] sm:$0xff] %v5777_v32  ;;  %v1947_v48 = vadd.f32 %v1883_v26, %v14265_v37  ;;  %v14267_v37 = vld [vmem:[#allocation87_spill] sm:$0xff] }
 0x462   : > { %v11843_v18 = vadd.f32 %v1761_v38, %v1695_v39  ;;  %vm4483_vm7 = vweird.f32 %v6520_v43  ;;  %v4559_v1 = vsub.f32 1.0, %v4558_v13  ;;  %v4576_v23 = vmul.f32 2.1237322e-06, %v11838_v46 }
 0x463   : > { %v4587_v56 = vmul.f32 3.8918573e-05, %v11838_v46  ;;  %v4480_v5 = vmul.f32 %v6520_v43, %v4479_v40  ;;  %vm4563_vm8 = vweird.f32 %v6522_v52  ;;  %v4656_v29 = vmul.f32 2.1237322e-06, %v11840_v24  ;;  %vm4484_vm9 = vmor %vm4482_vm1, %vm4483_vm7 }
 0x464   : > { %v4667_v57 = vmul.f32 3.8918573e-05, %v11840_v24  ;;  %v4560_v47 = vmul.f32 %v6522_v52, %v4559_v1  ;;  %v4577_v0 = vadd.f32 0.00028619796, %v4576_v23  ;;  %v2077_v12 = vadd.f32 %v14266_v17, %v1947_v48  ;;  %vm4564_vm2 = vmor %vm4562_vm4, %vm4563_vm8 }
 0x465   : > { %v4588_v2 = vadd.f32 0.001143296, %v4587_v56  ;;  %v4481_v54 = vadd.f32 %v6520_v43, %v4480_v5  ;;  %v4657_v41 = vadd.f32 0.00028619796, %v4656_v29  ;;  %v2145_v34 = vmul.f32 %v13802_v14, %v14218_v58 }
 0x466   : > { %v4668_v26 = vadd.f32 0.001143296, %v4667_v57  ;;  %v4561_v32 = vadd.f32 %v6522_v52, %v4560_v47  ;;  %v4578_v51 = vmul.f32 %v4577_v0, %v11838_v46  ;;  %v2207_v38 = vadd.f32 %v11779_v9, %v2077_v12 }
 0x467   : > { %v4589_v39 = vmul.f32 %v4588_v2, %v11838_v46  ;;  %v4485_v13 = vsel %vm4484_vm9, %v6520_v43, %v4481_v54  ;;  %v4658_v40 = vmul.f32 %v4657_v41, %v11840_v24  ;;  %v2209_v48 = vadd.f32 %v2145_v34, %v14267_v37 }
 0x468   : > { %v4669_v58 = vmul.f32 %v4668_v26, %v11840_v24  ;;  %v4490_v3 = vsel %vm11826_vm5, %v4489_v61, %v4485_v13  ;;  %v4565_v1 = vsel %vm4564_vm2, %v6522_v52, %v4561_v32  ;;  %v4579_v23 = vadd.f32 0.0036580483, %v4578_v51 }
 0x469   : > { %v4590_v56 = vadd.f32 0.014752088, %v4589_v39  ;;  %v4491_v5 = vmul.f32 %v4490_v3, %v11792_v20  ;;  %v4570_v9 = vsel %vm11834_vm6, %v4569_v36, %v4565_v1  ;;  %v4659_v43 = vadd.f32 0.0036580483, %v4658_v40  ;;  %v14268_v20 = vld [vmem:[#allocation75_spill] sm:$0xff]  ;;  %v14269_v39 = vld [vmem:[#allocation105_spill] sm:$0xff] }
 0x46a   : > { %v4670_v59 = vadd.f32 0.014752088, %v4669_v58  ;;  %v4571_v29 = vmul.f32 %v4570_v9, %v11796_v31  ;;  %v4580_v57 = vmul.f32 %v4579_v23, %v11838_v46  ;;  %v2273_v35 = vmul.f32 %v14215_v21, %v14259_v53  ;;  %v14270_v3 = vld [vmem:[#allocation69_spill] sm:$0xff] }
 0x46b   : > { %v4591_v47 = vmul.f32 %v4590_v56, %v11838_v46  ;;  %v6190_v61 = vclamps-f32 %v4491_v5, 1.0  ;;  %v4660_v52 = vmul.f32 %v4659_v43, %v11840_v24  ;;  %v2275_v42 = vmul.f32 %v14215_v21, %v14268_v20  ;;  %v14271_v5 = vld [vmem:[#allocation45_spill] sm:$0xff] }
 0x46c   : > { %v4671_v0 = vmul.f32 %v4670_v59, %v11840_v24  ;;  %v6192_v36 = vclamps-f32 %v4571_v29, 1.0  ;;  %v4581_v2 = vadd.f32 0.05243302, %v4580_v57  ;;  %v2337_v12 = vadd.f32 %v2273_v35, %v2207_v38 }
 0x46d   : > { %v4592_v17 = vadd.f32 0.112945676, %v4591_v47  ;;  %v5415_v31 = vadd.f32 1.0, %v6190_v61  ;;  %v4661_v54 = vadd.f32 0.05243302, %v4660_v52  ;;  %v2339_v26 = vadd.f32 %v2275_v42, %v2209_v48  ;;  %v14274_v61 = vld [vmem:[#allocation37_spill] sm:$0xff] }
 0x46e   : > { %v4672_v41 = vadd.f32 0.112945676, %v4671_v0  ;;  %v5417_v34 = vadd.f32 1.0, %v6192_v36  ;;  %v4582_v32 = vmul.f32 %v4581_v2, %v11838_v46  ;;  %v2467_v13 = vadd.f32 %v14269_v39, %v2337_v12  ;;  %v14275_v36 = vld [vmem:[#allocation90_spill] sm:$0xff]  ;;  %v14283_v39 = vld [vmem:[#allocation53_spill] sm:$0xff] }
 0x46f   : > { %v4593_v51 = vmul.f32 %v4592_v17, %v11838_v46  ;;  %v5479_v40 = vmul.f32 %v5415_v31, %v11785_v44  ;;  %v4662_v58 = vmul.f32 %v4661_v54, %v11840_v24  ;;  %v2469_v1 = vadd.f32 %v14270_v3, %v2339_v26  ;;  %v14273_v44 = vld [vmem:[#allocation38_spill] sm:$0xff] }
 0x470   : > { %v4673_v37 = vmul.f32 %v4672_v41, %v11840_v24  ;;  %v5481_v38 = vmul.f32 %v5417_v34, %v11788_v25  ;;  %v4583_v23 = vadd.f32 0.18741608, %v4582_v32  ;;  %v2533_v48 = vmul.f32 %v11573_v7, %v11811_v16  ;;  %v14280_v41 = vld [vmem:[#allocation125_spill] sm:$0xff] }
 0x471   : > { %v4594_v56 = vadd.f32 0.4994258, %v4593_v51  ;;  %v11891_v9 = vmul.f32 %v14271_v5, %v11501_v45  ;;  %v4663_v43 = vadd.f32 0.18741608, %v4662_v58  ;;  %v2535_v29 = vmul.f32 %v11573_v7, %v14273_v44  ;;  %v14282_v51 = vld [vmem:[#allocation42_spill] sm:$0xff]  ;;  %v14285_v58 = vld [vmem:[#allocation43_spill] sm:$0xff] }
 0x472   : > { %v4674_v59 = vadd.f32 0.4994258, %v4673_v37  ;;  %v5523_v57 = vpack.c.bf16 %v5481_v38, %v5479_v40  ;;  %v4584_v47 = vmul.f32 %v4583_v23, %v11838_v46  ;;  %v2597_v25 = vadd.f32 %v2533_v48, %v2467_v13  ;;  %v14284_v40 = vld [vmem:[#allocation117_spill] sm:$0xff]  ;;  %v14289_v44 = vld [vmem:[#allocation66_spill] sm:$0xff] }
 0x473   : > { %14272 = vst [vmem:[#allocation58_spill] sm:$0xff] %v11891_v9  ;;  %v4595_v35 = vmul.f32 %v4594_v56, %v11838_v46  ;;  %v11899_v52 = vadd.f32 %v14274_v61, %v11675_v50  ;;  %v4664_v0 = vmul.f32 %v4663_v43, %v11840_v24  ;;  %v2599_v42 = vadd.f32 %v2535_v29, %v2469_v1  ;;  %v14286_v56 = vld [vmem:[#allocation41_spill] sm:$0xff]  ;;  %v14288_v43 = vld [vmem:[#allocation106_spill] sm:$0xff] }
 0x474   : > { %v4675_v20 = vmul.f32 %v4674_v59, %v11840_v24  ;;  %v11905_v2 = vadd.f32 %v11687_v63, %v14275_v36  ;;  %v11909_v17 = vmul.f32 %v13802_v14, %v11370_v33  ;;  %v11913_v46 = vmul.f32 %v13876_v6, %v14259_v53  ;;  %5813 = vmatmul.bf16.gmra.mxu3 %v5523_v57  ;;  %v14278_v63 = vld [vmem:[#allocation89_spill] sm:$0xff]  ;;  %v14290_v29 = vld [vmem:[#allocation46_spill] sm:$0xff]  ;;  %v14302_v33 = vld [vmem:[#allocation91_spill] sm:$0xff] }
 0x475   : > { %v11915_v50 = vadd.f32 1.0, %v4595_v35  ;;  %v11920_v24 = vadd.f32 %v14228_v30, %v2597_v25  ;;  %v11923_v31 = vadd.f32 %v14228_v30, %v2599_v42  ;;  %v14279_v54 = vrot.slane %v14278_v63, 1  ;;  %v14287_v5 = vld [vmem:[#allocation129_spill] sm:$0xff]  ;;  %v14292_v63 = vld [vmem:[#allocation52_spill] sm:$0xff] }
 0x476   : > { %14276 = vst [vmem:[#allocation59_spill] sm:$0xff] %v11905_v2  ;;  %v11917_v12 = vadd.f32 1.0, %v4675_v20  ;;  %v14281_v26 = vrot.slane %v14280_v41, 1  ;;  %v4585_v53 = vadd.f32 1.1283791, %v4584_v47  ;;  %v1698_v13 = vadd.f32 %v14283_v39, %v14282_v51  ;;  %v14301_v45 = vld [vmem:[#allocation121_spill] sm:$0xff] }
 0x477   : > { %14277 = vst [vmem:[#allocation32_spill] sm:$0xff] %v11909_v17  ;;  %6523 = vrcp.f32 %v11915_v50  ;;  %v4665_v32 = vadd.f32 1.1283791, %v4664_v0  ;;  %v11938_v37 = vmul.f32 %v14285_v58, %v14284_v40  ;;  %v11941_v3 = vmul.f32 0.5, %v11771_v19  ;;  %v14304_v2 = vld [vmem:[#allocation116_spill] sm:$0xff] }
 0x478   : > { %v11931_v34 = vsel %vm1355_vm3, %v14281_v26, %v14279_v54  ;;  %v4608_v1 = vand.u32 2147483648, %v11915_v50  ;;  %6525 = vrcp.f32 %v11917_v12  ;;  %v11946_v38 = vmul.f32 0.5, %v11774_v28  ;;  %v14293_v26 = vld [vmem:[#allocation92_spill] sm:$0xff] }
 0x479   : > { %v4688_v23 = vand.u32 2147483648, %v11917_v12  ;;  %v1764_v48 = vmul.f32 %v14286_v56, %v11931_v34  ;;  %v2080_v59 = vadd.f32 %v14288_v43, %v14287_v5  ;;  %v2146_v57 = vmul.f32 %v14290_v29, %v14289_v44  ;;  %v14299_v43 = vld [vmem:[#allocation81_spill] sm:$0xff] }
 0x47a   : > { %v4606_v19 = vand.u32 2147483647, %v11915_v50  ;;  %v11957_v47 = vmul.f32 0.70710677, %v11920_v24  ;;  %v11960_v35 = vmul.f32 0.70710677, %v11923_v31  ;;  %v4586_v28 = vmul.f32 %v4585_v53, %v11800_v11 }
 0x47b   : > { %v11964_v25 = vmul.f32 %v4665_v32, %v11803_v10  ;;  %v4686_v61 = vand.u32 2147483647, %v11917_v12  ;;  %v11967_v0 = vadd.f32 %v1764_v48, %v1698_v13  ;;  %vm4602_vm10 = vweird.f32 %v11915_v50 }
 0x47c   : > { %v4609_v20 = vor.u32 1.1754944e-38, %v4608_v1  ;;  %v4614_v42 = vmul.f32 %v11957_v47, %v11957_v47  ;;  %v4694_v36 = vmul.f32 %v11960_v35, %v11960_v35  ;;  %v2276_v54 = vmul.f32 %v14292_v63, %v14284_v40  ;;  %v14296_v1 = vld [vmem:[#allocation128_spill] sm:$0xff] }
 0x47d   : > { %14291 = vst [vmem:[#allocation118_spill] sm:$0xff] %v11967_v0  ;;  %v6524_v11 = vpop.eup %6523  ;;  %vm4682_vm11 = vweird.f32 %v11917_v12  ;;  %v4689_v10 = vor.u32 1.1754944e-38, %v4688_v23  ;;  %v2210_v41 = vadd.f32 %v2146_v57, %v2080_v59  ;;  %v2278_v53 = vmul.f32 %v14292_v63, %v14293_v26  ;;  %v14300_v26 = vld [vmem:[#allocation134_spill] sm:$0xff] }
 0x47e   : > { %v2536_v32 = vmul.f32 %v11373_v15, %v11931_v34  ;;  %v6526_v51 = vpop.eup %6525  ;;  %v4598_v39 = vmul.f32 %v6524_v11, %v11915_v50  ;;  %vm11982_vm12 = vcmp.eq.f32.partialorder %v4606_v19, 8.507059e+37  ;;  %v11986_v58 = vmin.f32 %v4614_v42, 16.0 }
 0x47f   : > { %v11988_v40 = vmin.f32 %v4694_v36, 16.0  ;;  %v2538_v23 = vmul.f32 %v11373_v15, %v14296_v1  ;;  %vm4603_vm13 = vweird.f32 %v6524_v11  ;;  %v4678_v56 = vmul.f32 %v6526_v51, %v11917_v12 }
 0x480   : > { %vm11993_vm14 = vcmp.eq.f32.partialorder %v4686_v61, 8.507059e+37  ;;  %v2340_v5 = vadd.f32 %v2276_v54, %v2210_v41  ;;  %v2342_v59 = vadd.f32 %v2278_v53, %v14299_v43  ;;  %v4599_v44 = vsub.f32 1.0, %v4598_v39  ;;  %vm4604_vm0 = vmor %vm4602_vm10, %vm4603_vm13 }
 0x481   : > { %vm4683_vm15 = vweird.f32 %v6526_v51  ;;  %v4616_v57 = vmul.f32 2.1237322e-06, %v11986_v58  ;;  %v4627_v19 = vmul.f32 3.8918573e-05, %v11986_v58  ;;  %v4679_v42 = vsub.f32 1.0, %v4678_v56 }
 0x482   : > { %v4696_v36 = vmul.f32 2.1237322e-06, %v11988_v40  ;;  %v4707_v15 = vmul.f32 3.8918573e-05, %v11988_v40  ;;  %v2470_v1 = vadd.f32 %v14300_v26, %v2340_v5  ;;  %v4600_v61 = vmul.f32 %v6524_v11, %v4599_v44  ;;  %vm4684_vm1 = vmor %vm4682_vm11, %vm4683_vm15 }
 0x483   : > { %v4617_v9 = vadd.f32 0.00028619796, %v4616_v57  ;;  %v4628_v0 = vadd.f32 0.001143296, %v4627_v19  ;;  %v2472_v54 = vadd.f32 %v14301_v45, %v2342_v59  ;;  %v4680_v41 = vmul.f32 %v6526_v51, %v4679_v42 }
 0x484   : > { %v4697_v53 = vadd.f32 0.00028619796, %v4696_v36  ;;  %v4708_v39 = vadd.f32 0.001143296, %v4707_v15  ;;  %v2600_v43 = vadd.f32 %v2536_v32, %v2470_v1  ;;  %v4601_v55 = vadd.f32 %v6524_v11, %v4600_v61  ;;  %v14307_v36 = vld [vmem:[#allocation82_spill] sm:$0xff] }
 0x485   : > { %v4618_v17 = vmul.f32 %v4617_v9, %v11986_v58  ;;  %v4629_v56 = vmul.f32 %v4628_v0, %v11986_v58  ;;  %v14303_v27 = vrot.slane %v14302_v33, 1  ;;  %v14305_v62 = vrot.slane %v14304_v2, 1 }
 0x486   : > { %v4681_v45 = vadd.f32 %v6526_v51, %v4680_v41  ;;  %v4698_v32 = vmul.f32 %v4697_v53, %v11988_v40  ;;  %v4709_v59 = vmul.f32 %v4708_v39, %v11988_v40  ;;  %v2602_v9 = vadd.f32 %v2538_v23, %v2472_v54 }
 0x487   : > { %v12012_v5 = vsel %vm1355_vm3, %v14305_v62, %v14303_v27  ;;  %v4605_v44 = vsel %vm4604_vm0, %v6524_v11, %v4601_v55  ;;  %v4619_v33 = vadd.f32 0.0036580483, %v4618_v17  ;;  %v4630_v2 = vadd.f32 0.014752088, %v4629_v56 }
 0x488   : > { %v12023_v8 = vadd.f32 %v14186_v4, %v2600_v43  ;;  %v4610_v62 = vsel %vm11982_vm12, %v4609_v20, %v4605_v44  ;;  %v4685_v27 = vsel %vm4684_vm1, %v6526_v51, %v4681_v45  ;;  %v4699_v50 = vadd.f32 0.0036580483, %v4698_v32 }
 0x489   : > { %v4710_v0 = vadd.f32 0.014752088, %v4709_v59  ;;  %v4611_v57 = vmul.f32 %v4610_v62, %v4586_v28  ;;  %v4690_v23 = vsel %vm11993_vm14, %v4689_v10, %v4685_v27  ;;  %v4620_v55 = vmul.f32 %v4619_v33, %v11986_v58  ;;  %v14306_v28 = vld [vmem:[#allocation119_spill] sm:$0xff] }
 0x48a   : > { %v4631_v12 = vmul.f32 %v4630_v2, %v11986_v58  ;;  %v4691_v17 = vmul.f32 %v4690_v23, %v11964_v25  ;;  %v4700_v11 = vmul.f32 %v4699_v50, %v11988_v40  ;;  %v12035_v13 = vadd.f32 %v14186_v4, %v2602_v9  ;;  %v5690_v50 = vpop.f32.mrf.mxu2 }
 0x48b   : > { %v4711_v19 = vmul.f32 %v4710_v0, %v11988_v40  ;;  %v6193_v20 = vclamps-f32 %v4611_v57, 1.0  ;;  %v4621_v51 = vadd.f32 0.05243302, %v4620_v55  ;;  %v1699_v48 = vadd.f32 %v14307_v36, %v14306_v28  ;;  %v5779_v0 = vpop.f32.mrf.mxu3 }
 0x48c   : > { %v4632_v42 = vadd.f32 0.112945676, %v4631_v12  ;;  %v6195_v10 = vclamps-f32 %v4691_v17, 1.0  ;;  %v4701_v15 = vadd.f32 0.05243302, %v4700_v11  ;;  %v1765_v1 = vmul.f32 %v7230_v22, %v12012_v5  ;;  %v14308_v17 = vld [vmem:[#allocation48_spill] sm:$0xff] }
 0x48d   : > { %v4712_v26 = vadd.f32 0.112945676, %v4711_v19  ;;  %v5418_v25 = vadd.f32 1.0, %v6193_v20  ;;  %v4622_v61 = vmul.f32 %v4621_v51, %v11986_v58  ;;  %v12044_v41 = vmul.f32 0.70710677, %v12023_v8 }
 0x48e   : > { %v4633_v54 = vmul.f32 %v4632_v42, %v11986_v58  ;;  %v5420_v53 = vadd.f32 1.0, %v6195_v10  ;;  %v4702_v39 = vmul.f32 %v4701_v15, %v11988_v40  ;;  %v12049_v56 = vmul.f32 0.70710677, %v12035_v13  ;;  %v14310_v10 = vld [vmem:[#allocation111_spill] sm:$0xff] }
 0x48f   : > { %v4713_v43 = vmul.f32 %v4712_v26, %v11988_v40  ;;  %v5482_v45 = vmul.f32 %v5418_v25, %v11941_v3  ;;  %v4623_v32 = vadd.f32 0.18741608, %v4622_v61  ;;  %v4734_v59 = vmul.f32 %v12044_v41, %v12044_v41  ;;  %v14311_v26 = vld [vmem:[#allocation126_spill] sm:$0xff]  ;;  %v14312_v25 = vld [vmem:[#allocation61_spill] sm:$0xff] }
 0x490   : > { %v4634_v22 = vadd.f32 0.4994258, %v4633_v54  ;;  %v5484_v9 = vmul.f32 %v5420_v53, %v11946_v38  ;;  %v4703_v44 = vadd.f32 0.18741608, %v4702_v39  ;;  %v4814_v2 = vmul.f32 %v12049_v56, %v12049_v56 }
 0x491   : > { %v4714_v33 = vadd.f32 0.4994258, %v4713_v43  ;;  %v4624_v62 = vmul.f32 %v4623_v32, %v11986_v58  ;;  %v12059_v57 = vmin.f32 %v4734_v59, 16.0  ;;  %v12061_v3 = vadd.f32 %v1765_v1, %v1699_v48 }
 0x492   : > { %v4635_v27 = vmul.f32 %v4634_v22, %v11986_v58  ;;  %v5524_v23 = vpack.c.bf16 %v5484_v9, %v5482_v45  ;;  %v4704_v55 = vmul.f32 %v4703_v44, %v11988_v40  ;;  %v5691_v12 = vadd.f32 %v11758_v60, %v5690_v50  ;;  %v14313_v22 = vld [vmem:[#allocation93_spill] sm:$0xff] }
 0x493   : > { %v4715_v38 = vmul.f32 %v4714_v33, %v11988_v40  ;;  %v1951_v11 = vadd.f32 %v11913_v46, %v14308_v17  ;;  %v4625_v19 = vadd.f32 1.1283791, %v4624_v62  ;;  %v4736_v58 = vmul.f32 2.1237322e-06, %v12059_v57  ;;  %v14309_v40 = vld [vmem:[#allocation98_spill] sm:$0xff]  ;;  %v5692_v33 = vpop.f32.mrf.mxu2 }
 0x494   : > { %v12068_v20 = vadd.f32 1.0, %v4635_v27  ;;  %5729 = vmatmul.bf16.gmra.mxu2 %v5524_v23  ;;  %v5780_v42 = vadd.f32 %v5779_v0, %v5691_v12  ;;  %v4747_v28 = vmul.f32 3.8918573e-05, %v12059_v57  ;;  %v12074_v36 = vmin.f32 %v4814_v2, 16.0  ;;  %v5781_v23 = vpop.f32.mrf.mxu3 }
 0x495   : > { %v12071_v51 = vadd.f32 1.0, %v4715_v38  ;;  %v12078_v48 = vmul.f32 %v13802_v14, %v14309_v40  ;;  %v12082_v46 = vmul.f32 %v13802_v14, %v14310_v10  ;;  %v4705_v15 = vadd.f32 1.1283791, %v4704_v55 }
 0x496   : > { %6527 = vrcp.f32 %v12068_v20  ;;  %v12087_v1 = vadd.f32 %v11938_v37, %v14311_v26  ;;  %v12091_v61 = vmul.f32 %v13876_v6, %v14312_v25  ;;  %v4648_v54 = vand.u32 2147483648, %v12068_v20  ;;  %5850 = vst [vmem:[%s11034_s26 + $0x30] sm:$0xff] %v5780_v42 }
 0x497   : > { %6529 = vrcp.f32 %v12071_v51  ;;  %v2147_v53 = vmul.f32 %v13802_v14, %v11811_v16  ;;  %v12099_v39 = vmul.f32 %v4625_v19, %v11957_v47  ;;  %v4728_v43 = vand.u32 2147483648, %v12071_v51 }
 0x498   : > { %v4737_v45 = vadd.f32 0.00028619796, %v4736_v58  ;;  %v4646_v37 = vand.u32 2147483647, %v12068_v20  ;;  %v4748_v32 = vadd.f32 0.001143296, %v4747_v28  ;;  %v2081_v59 = vadd.f32 %v14313_v22, %v1951_v11 }
 0x499   : > { %v4816_v6 = vmul.f32 2.1237322e-06, %v12074_v36  ;;  %v12106_v9 = vmul.f32 %v4705_v15, %v11960_v35  ;;  %v4726_v44 = vand.u32 2147483647, %v12071_v51  ;;  %v4827_v47 = vmul.f32 3.8918573e-05, %v12074_v36 }
 0x49a   : > { %v4738_v16 = vmul.f32 %v4737_v45, %v12059_v57  ;;  %vm4642_vm3 = vweird.f32 %v12068_v20  ;;  %v4649_v2 = vor.u32 1.1754944e-38, %v4648_v54  ;;  %v5693_v62 = vadd.f32 %v11758_v60, %v5692_v33 }
 0x49b   : > { %v4749_v27 = vmul.f32 %v4748_v32, %v12059_v57  ;;  %v4817_v50 = vadd.f32 0.00028619796, %v4816_v6  ;;  %vm4722_vm4 = vweird.f32 %v12071_v51  ;;  %v4729_v35 = vor.u32 1.1754944e-38, %v4728_v43  ;;  %v14318_v32 = vld [vmem:[#allocation146_spill] sm:$0xff] }
 0x49c   : > { %v6528_v0 = vpop.eup %6527  ;;  %v4739_v55 = vadd.f32 0.0036580483, %v4738_v16  ;;  %v4828_v38 = vadd.f32 0.001143296, %v4827_v47  ;;  %v2277_v12 = vmul.f32 %v14215_v21, %v14312_v25  ;;  %vm12118_vm5 = vcmp.eq.f32.partialorder %v4646_v37, 8.507059e+37 }
 0x49d   : > { %v6530_v17 = vpop.eup %6529  ;;  %v4638_v11 = vmul.f32 %v6528_v0, %v12068_v20  ;;  %v5782_v58 = vadd.f32 %v5781_v23, %v5693_v62  ;;  %v4750_v42 = vadd.f32 0.014752088, %v4749_v27  ;;  %v2211_v28 = vadd.f32 %v2147_v53, %v2081_v59  ;;  %v14319_v62 = vld [vmem:[#allocation64_spill] sm:$0xff] }
 0x49e   : > { %vm4643_vm6 = vweird.f32 %v6528_v0  ;;  %v4718_v15 = vmul.f32 %v6530_v17, %v12071_v51  ;;  %vm12123_vm7 = vcmp.eq.f32.partialorder %v4726_v44, 8.507059e+37  ;;  %v4740_v54 = vmul.f32 %v4739_v55, %v12059_v57 }
 0x49f   : > { %v4818_v25 = vmul.f32 %v4817_v50, %v12074_v36  ;;  %v4639_v43 = vsub.f32 1.0, %v4638_v11  ;;  %5851 = vst [vmem:[%s11034_s26 + $0x38] sm:$0xff] %v5782_v58  ;;  %v4751_v45 = vmul.f32 %v4750_v42, %v12059_v57  ;;  %v4829_v37 = vmul.f32 %v4828_v38, %v12074_v36  ;;  %v14320_v42 = vld [vmem:[#allocation130_spill] sm:$0xff]  ;;  %vm4644_vm9 = vmor %vm4642_vm3, %vm4643_vm6 }
 0x4a0   : > { %v2279_v53 = vmul.f32 %v14215_v21, %v14318_v32  ;;  %v4719_v6 = vsub.f32 1.0, %v4718_v15  ;;  %v4741_v22 = vadd.f32 0.05243302, %v4740_v54  ;;  %v2341_v44 = vadd.f32 %v2277_v12, %v2211_v28 }
 0x4a1   : > { %v4819_v59 = vadd.f32 0.0036580483, %v4818_v25  ;;  %v4640_v33 = vmul.f32 %v6528_v0, %v4639_v43  ;;  %v4752_v16 = vadd.f32 0.112945676, %v4751_v45  ;;  %v4830_v47 = vadd.f32 0.014752088, %v4829_v37 }
 0x4a2   : > { %v2343_v27 = vadd.f32 %v2279_v53, %v14319_v62  ;;  %v4720_v23 = vmul.f32 %v6530_v17, %v4719_v6  ;;  %vm4723_vm8 = vweird.f32 %v6530_v17  ;;  %v4742_v50 = vmul.f32 %v4741_v22, %v12059_v57  ;;  %v14321_v25 = vld [vmem:[#allocation62_spill] sm:$0xff] }
 0x4a3   : > { %v4820_v55 = vmul.f32 %v4819_v59, %v12074_v36  ;;  %v4641_v11 = vadd.f32 %v6528_v0, %v4640_v33  ;;  %v4753_v38 = vmul.f32 %v4752_v16, %v12059_v57  ;;  %v4831_v58 = vmul.f32 %v4830_v47, %v12074_v36  ;;  %vm4724_vm2 = vmor %vm4722_vm4, %vm4723_vm8  ;;  %v14322_v59 = vld [vmem:[#allocation131_spill] sm:$0xff] }
 0x4a4   : > { %v2471_v15 = vadd.f32 %v14320_v42, %v2341_v44  ;;  %v4721_v12 = vadd.f32 %v6530_v17, %v4720_v23  ;;  %v4743_v28 = vadd.f32 0.18741608, %v4742_v50  ;;  %v2473_v43 = vadd.f32 %v14321_v25, %v2343_v27  ;;  %v14323_v25 = vld [vmem:[#allocation124_spill] sm:$0xff] }
 0x4a5   : > { %v4821_v54 = vadd.f32 0.05243302, %v4820_v55  ;;  %v4645_v45 = vsel %vm4644_vm9, %v6528_v0, %v4641_v11  ;;  %v4754_v37 = vadd.f32 0.4994258, %v4753_v38  ;;  %v4832_v32 = vadd.f32 0.112945676, %v4831_v58 }
 0x4a6   : > { %v2537_v53 = vmul.f32 %v11573_v7, %v12012_v5  ;;  %v4650_v6 = vsel %vm12118_vm5, %v4649_v2, %v4645_v45  ;;  %v4725_v22 = vsel %vm4724_vm2, %v6530_v17, %v4721_v12  ;;  %v2539_v44 = vmul.f32 %v11573_v7, %v14322_v59  ;;  %v14326_v59 = vld [vmem:[#allocation120_spill] sm:$0xff] }
 0x4a7   : > { %v4822_v20 = vmul.f32 %v4821_v54, %v12074_v36  ;;  %v4651_v33 = vmul.f32 %v4650_v6, %v12099_v39  ;;  %v4730_v51 = vsel %vm12123_vm7, %v4729_v35, %v4725_v22  ;;  %v4755_v0 = vmul.f32 %v4754_v37, %v12059_v57 }
 0x4a8   : > { %v4833_v16 = vmul.f32 %v4832_v32, %v12074_v36  ;;  %v4731_v47 = vmul.f32 %v4730_v51, %v12106_v9  ;;  %v4744_v19 = vmul.f32 %v4743_v28, %v12059_v57  ;;  %v2601_v17 = vadd.f32 %v2537_v53, %v2471_v15 }
 0x4a9   : > { %v4823_v2 = vadd.f32 0.18741608, %v4822_v20  ;;  %v6194_v62 = vclamps-f32 %v4651_v33, 1.0  ;;  %v12160_v27 = vadd.f32 1.0, %v4755_v0  ;;  %v2603_v7 = vadd.f32 %v2539_v44, %v2473_v43  ;;  %v14327_v0 = vld [vmem:[#allocation33_spill] sm:$0xff] }
 0x4aa   : > { %v4834_v23 = vadd.f32 0.4994258, %v4833_v16  ;;  %v12164_v39 = vadd.f32 %v12091_v61, %v11843_v18  ;;  %v2731_v35 = vmul.f32 0.5, %v11920_v24  ;;  %v6196_v26 = vclamps-f32 %v4731_v47, 1.0 }
 0x4ab   : > { %v4824_v50 = vmul.f32 %v4823_v2, %v12074_v36  ;;  %v2733_v9 = vmul.f32 0.5, %v11923_v31  ;;  %v5419_v55 = vadd.f32 1.0, %v6194_v62  ;;  %6531 = vrcp.f32 %v12160_v27  ;;  %v12222_v2 = vld [vmem:[#allocation11 + $0x10] ss:$0 sm:$0xff] }
 0x4ac   : > { %v12171_v57 = vadd.f32 %v14228_v30, %v2601_v17  ;;  %v5421_v11 = vadd.f32 1.0, %v6196_v26  ;;  %v2150_v38 = vmul.f32 %v14290_v29, %v11931_v34  ;;  %v4745_v58 = vadd.f32 1.1283791, %v4744_v19  ;;  %v14328_v17 = vld [vmem:[#allocation74_spill] sm:$0xff]  ;;  %v14329_v26 = vld [vmem:[#allocation77_spill] sm:$0xff] }
 0x4ad   : > { %v4835_v18 = vmul.f32 %v4834_v23, %v12074_v36  ;;  %v5483_v61 = vmul.f32 %v5419_v55, %v2731_v35  ;;  %v4768_v24 = vand.u32 2147483648, %v12160_v27  ;;  %v4825_v42 = vadd.f32 1.1283791, %v4824_v50 }
 0x4ae   : > { %v12178_v15 = vadd.f32 %v14228_v30, %v2603_v7  ;;  %v5485_v31 = vmul.f32 %v5421_v11, %v2733_v9  ;;  %v12181_v12 = vmul.f32 0.5, %v12023_v8  ;;  %v4766_v28 = vand.u32 2147483647, %v12160_v27 }
 0x4af   : > { %v12184_v54 = vadd.f32 1.0, %v4835_v18  ;;  %v12187_v34 = vmul.f32 0.5, %v12035_v13  ;;  %v12190_v29 = vmul.f32 0.70710677, %v12171_v57  ;;  %v2084_v43 = vadd.f32 %v14323_v25, %v12087_v1  ;;  %v14331_v18 = vld [vmem:[#allocation142_spill] sm:$0xff] }
 0x4b0   : > { %v12193_v36 = vmul.f32 0.70710677, %v12178_v15  ;;  %v5525_v45 = vpack.c.bf16 %v5485_v31, %v5483_v61  ;;  %v4746_v8 = vmul.f32 %v4745_v58, %v12044_v41  ;;  %vm4762_vm10 = vweird.f32 %v12160_v27 }
 0x4b1   : > { %6533 = vrcp.f32 %v12184_v54  ;;  %v6532_v37 = vpop.eup %6531  ;;  %v4769_v32 = vor.u32 1.1754944e-38, %v4768_v24  ;;  %v12201_v13 = vmul.f32 %v4825_v42, %v12049_v56  ;;  %v4774_v53 = vmul.f32 %v12190_v29, %v12190_v29 }
 0x4b2   : > { %v4854_v6 = vmul.f32 %v12193_v36, %v12193_v36  ;;  %5818 = vmatmul.bf16.gmra.mxu3 %v5525_v45  ;;  %v4758_v1 = vmul.f32 %v6532_v37, %v12160_v27  ;;  %vm12208_vm11 = vcmp.eq.f32.partialorder %v4766_v28, 8.507059e+37  ;;  %v4846_v22 = vand.u32 2147483647, %v12184_v54  ;;  %v14332_v45 = vld [vmem:[#allocation107_spill] sm:$0xff] }
 0x4b3   : > { %v2214_v20 = vadd.f32 %v2150_v38, %v2084_v43  ;;  %v2280_v56 = vmul.f32 %v14292_v63, %v14326_v59  ;;  %v4848_v44 = vand.u32 2147483648, %v12184_v54  ;;  %v12216_v33 = vmin.f32 %v4774_v53, 16.0  ;;  %v14330_v38 = vld [vmem:[#allocation56_spill] sm:$0xff] }
 0x4b4   : > { %v12218_v51 = vmin.f32 %v4854_v6, 16.0  ;;  %v2282_v16 = vmul.f32 %v14292_v63, %v14327_v0  ;;  %v4759_v47 = vsub.f32 1.0, %v4758_v1  ;;  %vm4763_vm12 = vweird.f32 %v6532_v37 }
 0x4b5   : > { %v2344_v19 = vadd.f32 %v2280_v56, %v2214_v20  ;;  %v2540_v62 = vmul.f32 %v12222_v2, %v14328_v17  ;;  %vm4842_vm13 = vweird.f32 %v12184_v54  ;;  %v4776_v23 = vmul.f32 2.1237322e-06, %v12216_v33  ;;  %vm4764_vm15 = vmor %vm4762_vm10, %vm4763_vm12 }
 0x4b6   : > { %v4787_v7 = vmul.f32 3.8918573e-05, %v12216_v33  ;;  %v4856_v35 = vmul.f32 2.1237322e-06, %v12218_v51  ;;  %v2346_v50 = vadd.f32 %v2282_v16, %v14329_v26  ;;  %v4760_v55 = vmul.f32 %v6532_v37, %v4759_v47 }
 0x4b7   : > { %v6534_v9 = vpop.eup %6533  ;;  %v4867_v11 = vmul.f32 3.8918573e-05, %v12218_v51  ;;  %v2474_v58 = vadd.f32 %v14330_v38, %v2344_v19  ;;  %v2542_v61 = vmul.f32 %v12222_v2, %v14331_v18  ;;  %v4777_v42 = vadd.f32 0.00028619796, %v4776_v23 }
 0x4b8   : > { %v4838_v24 = vmul.f32 %v6534_v9, %v12184_v54  ;;  %vm4843_vm14 = vweird.f32 %v6534_v9  ;;  %v4788_v31 = vadd.f32 0.001143296, %v4787_v7  ;;  %v4761_v28 = vadd.f32 %v6532_v37, %v4760_v55 }
 0x4b9   : > { %v4857_v25 = vadd.f32 0.00028619796, %v4856_v35  ;;  %v4868_v43 = vadd.f32 0.001143296, %v4867_v11  ;;  %v2476_v53 = vadd.f32 %v14332_v45, %v2346_v50  ;;  %v4778_v1 = vmul.f32 %v4777_v42, %v12216_v33  ;;  %vm4844_vm0 = vmor %vm4842_vm13, %vm4843_vm14 }
 0x4ba   : > { %v4839_v6 = vsub.f32 1.0, %v4838_v24  ;;  %v4789_v20 = vmul.f32 %v4788_v31, %v12216_v33  ;;  %v2604_v59 = vadd.f32 %v2540_v62, %v2474_v58  ;;  %v4765_v56 = vsel %vm4764_vm15, %v6532_v37, %v4761_v28 }
 0x4bb   : > { %v4858_v0 = vmul.f32 %v4857_v25, %v12218_v51  ;;  %v4869_v16 = vmul.f32 %v4868_v43, %v12218_v51  ;;  %v2606_v47 = vadd.f32 %v2542_v61, %v2476_v53  ;;  %v4770_v19 = vsel %vm12208_vm11, %v4769_v32, %v4765_v56  ;;  %v14333_v53 = vld [vmem:[#allocation110_spill] sm:$0xff] }
 0x4bc   : > { %v4840_v17 = vmul.f32 %v6534_v9, %v4839_v6  ;;  %v4779_v23 = vadd.f32 0.0036580483, %v4778_v1  ;;  %v4790_v7 = vadd.f32 0.014752088, %v4789_v20  ;;  %v4771_v27 = vmul.f32 %v4770_v19, %v4746_v8 }
 0x4bd   : > { %v4849_v35 = vor.u32 1.1754944e-38, %v4848_v44  ;;  %v4859_v26 = vadd.f32 0.0036580483, %v4858_v0  ;;  %v4870_v50 = vadd.f32 0.014752088, %v4869_v16  ;;  %v12249_v62 = vadd.f32 %v14186_v4, %v2604_v59 }
 0x4be   : > { %v4841_v55 = vadd.f32 %v6534_v9, %v4840_v17  ;;  %v4780_v11 = vmul.f32 %v4779_v23, %v12216_v33  ;;  %v4791_v37 = vmul.f32 %v4790_v7, %v12216_v33  ;;  %v6197_v38 = vclamps-f32 %v4771_v27, 1.0  ;;  %v5695_v7 = vpop.f32.mrf.mxu2 }
 0x4bf   : > { %v4860_v32 = vmul.f32 %v4859_v26, %v12218_v51  ;;  %v4871_v8 = vmul.f32 %v4870_v50, %v12218_v51  ;;  %v12257_v41 = vadd.f32 %v14186_v4, %v2606_v47  ;;  %vm4847_vm1 = vcmp.eq.f32.partialorder %v4846_v22, 8.507059e+37 }
 0x4c0   : > { %v4845_v44 = vsel %vm4844_vm0, %v6534_v9, %v4841_v55  ;;  %v4781_v58 = vadd.f32 0.05243302, %v4780_v11  ;;  %v4792_v18 = vadd.f32 0.112945676, %v4791_v37  ;;  %v5422_v24 = vadd.f32 1.0, %v6197_v38 }
 0x4c1   : > { %v4850_v61 = vsel %vm4847_vm1, %v4849_v35, %v4845_v44  ;;  %v4861_v42 = vadd.f32 0.05243302, %v4860_v32  ;;  %v4872_v31 = vadd.f32 0.112945676, %v4871_v8  ;;  %v12263_v43 = vmul.f32 0.70710677, %v12249_v62 }
 0x4c2   : > { %v4851_v28 = vmul.f32 %v4850_v61, %v12201_v13  ;;  %v4782_v54 = vmul.f32 %v4781_v58, %v12216_v33  ;;  %v4793_v25 = vmul.f32 %v4792_v18, %v12216_v33  ;;  %v12268_v22 = vmul.f32 0.70710677, %v12257_v41  ;;  %v14334_v58 = vld [vmem:[#allocation65_spill] sm:$0xff]  ;;  %v14335_v61 = vld [vmem:[#allocation59_spill] sm:$0xff] }
 0x4c3   : > { %v4862_v45 = vmul.f32 %v4861_v42, %v12218_v51  ;;  %v4873_v9 = vmul.f32 %v4872_v31, %v12218_v51  ;;  %v2085_v6 = vadd.f32 %v14333_v53, %v12164_v39  ;;  %v4894_v59 = vmul.f32 %v12263_v43, %v12263_v43  ;;  %v5784_v39 = vpop.f32.mrf.mxu3 }
 0x4c4   : > { %v6199_v1 = vclamps-f32 %v4851_v28, 1.0  ;;  %v4783_v20 = vadd.f32 0.18741608, %v4782_v54  ;;  %v4794_v13 = vadd.f32 0.4994258, %v4793_v25  ;;  %v5486_v56 = vmul.f32 %v5422_v24, %v12181_v12  ;;  %v14336_v24 = vld [vmem:[#allocation101_spill] sm:$0xff] }
 0x4c5   : > { %v4863_v0 = vadd.f32 0.18741608, %v4862_v45  ;;  %v4874_v16 = vadd.f32 0.4994258, %v4873_v9  ;;  %v4974_v47 = vmul.f32 %v12268_v22, %v12268_v22  ;;  %v12279_v27 = vmin.f32 %v4894_v59, 16.0 }
 0x4c6   : > { %v5424_v19 = vadd.f32 1.0, %v6199_v1  ;;  %v4784_v17 = vmul.f32 %v4783_v20, %v12216_v33  ;;  %v4795_v23 = vmul.f32 %v4794_v13, %v12216_v33  ;;  %v5696_v12 = vadd.f32 %v11758_v60, %v5695_v7  ;;  %v5697_v1 = vpop.f32.mrf.mxu2  ;;  %v14338_v7 = vld [vmem:[#allocation30_spill] sm:$0xff] }
 0x4c7   : > { %v4864_v35 = vmul.f32 %v4863_v0, %v12218_v51  ;;  %v4875_v26 = vmul.f32 %v4874_v16, %v12218_v51  ;;  %v12284_v50 = vmin.f32 %v4974_v47, 16.0  ;;  %v4896_v33 = vmul.f32 2.1237322e-06, %v12279_v27 }
 0x4c8   : > { %v5488_v55 = vmul.f32 %v5424_v19, %v12187_v34  ;;  %v4785_v11 = vadd.f32 1.1283791, %v4784_v17  ;;  %v12287_v37 = vadd.f32 1.0, %v4795_v23  ;;  %v5785_v8 = vadd.f32 %v5784_v39, %v5696_v12 }
 0x4c9   : > { %v4865_v38 = vadd.f32 1.1283791, %v4864_v35  ;;  %v12290_v32 = vadd.f32 1.0, %v4875_v26  ;;  %v4907_v44 = vmul.f32 3.8918573e-05, %v12279_v27  ;;  %v12295_v51 = vmul.f32 %v14215_v21, %v11661_v49 }
 0x4ca   : > { %v5526_v60 = vpack.c.bf16 %v5488_v55, %v5486_v56  ;;  %v2151_v34 = vmul.f32 %v13802_v14, %v12012_v5  ;;  %6535 = vrcp.f32 %v12287_v37  ;;  %v12302_v18 = vadd.f32 %v14334_v58, %v11899_v52  ;;  %5852 = vst [vmem:[%s11034_s26 + $0x40] sm:$0xff] %v5785_v8  ;;  %v14337_v56 = vld [vmem:[#allocation63_spill] sm:$0xff] }
 0x4cb   : > { %v12306_v42 = vadd.f32 %v14336_v24, %v14335_v61  ;;  %v4808_v31 = vand.u32 2147483648, %v12287_v37  ;;  %6537 = vrcp.f32 %v12290_v32  ;;  %v12312_v49 = vmul.f32 %v4785_v11, %v12190_v29  ;;  %v5786_v19 = vpop.f32.mrf.mxu3 }
 0x4cc   : > { %5734 = vmatmul.bf16.gmra.mxu2 %v5526_v60  ;;  %v4888_v14 = vand.u32 2147483648, %v12290_v32  ;;  %v4897_v5 = vadd.f32 0.00028619796, %v4896_v33  ;;  %v2215_v28 = vadd.f32 %v2151_v34, %v2085_v6  ;;  %v4806_v52 = vand.u32 2147483647, %v12287_v37 }
 0x4cd   : > { %v12317_v54 = vmul.f32 %v4865_v38, %v12193_v36  ;;  %v4908_v25 = vadd.f32 0.001143296, %v4907_v44  ;;  %v4976_v45 = vmul.f32 2.1237322e-06, %v12284_v50  ;;  %v4809_v9 = vor.u32 1.1754944e-38, %v4808_v31 }
 0x4ce   : > { %v4886_v53 = vand.u32 2147483647, %v12290_v32  ;;  %v4898_v20 = vmul.f32 %v4897_v5, %v12279_v27  ;;  %v4987_v29 = vmul.f32 3.8918573e-05, %v12284_v50  ;;  %vm4802_vm3 = vweird.f32 %v12287_v37  ;;  %v12327_v6 = vld [vmem:[%s12911_s8] ss:$0 sm:$0xff] }
 0x4cf   : > { %v5698_v36 = vadd.f32 %v12327_v6, %v5697_v1  ;;  %v4909_v13 = vmul.f32 %v4908_v25, %v12279_v27  ;;  %v4977_v59 = vadd.f32 0.00028619796, %v4976_v45  ;;  %v2281_v0 = vmul.f32 %v14215_v21, %v14337_v56  ;;  %v14343_v5 = vld [vmem:[#allocation114_spill] sm:$0xff]  ;;  %v14344_v1 = vld [vmem:[#allocation68_spill] sm:$0xff] }
 0x4d0   : > { %v6536_v16 = vpop.eup %6535  ;;  %vm4882_vm4 = vweird.f32 %v12290_v32  ;;  %v4889_v47 = vor.u32 1.1754944e-38, %v4888_v14  ;;  %v4899_v17 = vadd.f32 0.0036580483, %v4898_v20  ;;  %v4988_v23 = vadd.f32 0.001143296, %v4987_v29 }
 0x4d1   : > { %v2283_v39 = vmul.f32 %v14215_v21, %v14338_v7  ;;  %v6538_v35 = vpop.eup %6537  ;;  %v4798_v26 = vmul.f32 %v6536_v16, %v12287_v37  ;;  %vm4803_vm5 = vweird.f32 %v6536_v16  ;;  %vm12337_vm6 = vcmp.eq.f32.partialorder %v4806_v52, 8.507059e+37 }
 0x4d2   : > { %v5787_v55 = vadd.f32 %v5786_v19, %v5698_v36  ;;  %v4910_v11 = vadd.f32 0.014752088, %v4909_v13  ;;  %v4878_v33 = vmul.f32 %v6538_v35, %v12290_v32  ;;  %vm4883_vm7 = vweird.f32 %v6538_v35  ;;  %vm4804_vm9 = vmor %vm4802_vm3, %vm4803_vm5 }
 0x4d3   : > { %vm12342_vm8 = vcmp.eq.f32.partialorder %v4886_v53, 8.507059e+37  ;;  %v4900_v8 = vmul.f32 %v4899_v17, %v12279_v27  ;;  %v4978_v44 = vmul.f32 %v4977_v59, %v12284_v50  ;;  %v4799_v60 = vsub.f32 1.0, %v4798_v26  ;;  %v14345_v59 = vld [vmem:[#allocation95_spill] sm:$0xff]  ;;  %v12358_v17 = vld [vmem:[#allocation11 + $0x18] ss:$0 sm:$0xff]  ;;  %vm4884_vm2 = vmor %vm4882_vm4, %vm4883_vm7 }
 0x4d4   : > { %5853 = vst [vmem:[%s11034_s26 + $0x48] sm:$0xff] %v5787_v55  ;;  %v4911_v34 = vmul.f32 %v4910_v11, %v12279_v27  ;;  %v4989_v58 = vmul.f32 %v4988_v23, %v12284_v50  ;;  %v2345_v61 = vadd.f32 %v2281_v0, %v2215_v28  ;;  %v4879_v24 = vsub.f32 1.0, %v4878_v33  ;;  %v14346_v23 = vld [vmem:[#allocation143_spill] sm:$0xff]  ;;  %v14347_v11 = vld [vmem:[#allocation97_spill] sm:$0xff] }
 0x4d5   : > { %v4901_v31 = vadd.f32 0.05243302, %v4900_v8  ;;  %v4979_v14 = vadd.f32 0.0036580483, %v4978_v44  ;;  %v2347_v52 = vadd.f32 %v2283_v39, %v14343_v5  ;;  %v4800_v25 = vmul.f32 %v6536_v16, %v4799_v60  ;;  %v14348_v5 = vld [vmem:[#allocation135_spill] sm:$0xff] }
 0x4d6   : > { %v4912_v45 = vadd.f32 0.112945676, %v4911_v34  ;;  %v4990_v53 = vadd.f32 0.014752088, %v4989_v58  ;;  %v2475_v20 = vadd.f32 %v14344_v1, %v2345_v61  ;;  %v4880_v29 = vmul.f32 %v6538_v35, %v4879_v24 }
 0x4d7   : > { %v4902_v36 = vmul.f32 %v4901_v31, %v12279_v27  ;;  %v4980_v13 = vmul.f32 %v4979_v14, %v12284_v50  ;;  %v2477_v56 = vadd.f32 %v14345_v59, %v2347_v52  ;;  %v4801_v19 = vadd.f32 %v6536_v16, %v4800_v25  ;;  %v14349_v52 = vld [vmem:[#allocation32_spill] sm:$0xff] }
 0x4d8   : > { %v4913_v28 = vmul.f32 %v4912_v45, %v12279_v27  ;;  %v4991_v0 = vmul.f32 %v4990_v53, %v12284_v50  ;;  %v2541_v7 = vmul.f32 %v12358_v17, %v14346_v23  ;;  %v4881_v39 = vadd.f32 %v6538_v35, %v4880_v29  ;;  %v14352_v23 = vld [vmem:[#allocation145_spill] sm:$0xff] }
 0x4d9   : > { %v4903_v26 = vadd.f32 0.18741608, %v4902_v36  ;;  %v4981_v55 = vadd.f32 0.05243302, %v4980_v13  ;;  %v2543_v33 = vmul.f32 %v12358_v17, %v14347_v11  ;;  %v4805_v8 = vsel %vm4804_vm9, %v6536_v16, %v4801_v19 }
 0x4da   : > { %v4914_v44 = vadd.f32 0.4994258, %v4913_v28  ;;  %v4992_v60 = vadd.f32 0.112945676, %v4991_v0  ;;  %v2605_v34 = vadd.f32 %v2541_v7, %v2475_v20  ;;  %v4810_v58 = vsel %vm12337_vm6, %v4809_v9, %v4805_v8  ;;  %v14351_v20 = vld [vmem:[#allocation31_spill] sm:$0xff]  ;;  %v14353_v7 = vld [vmem:[#allocation57_spill] sm:$0xff] }
 0x4db   : > { %v4885_v61 = vsel %vm4884_vm2, %v6538_v35, %v4881_v39  ;;  %v4982_v37 = vmul.f32 %v4981_v55, %v12284_v50  ;;  %v2607_v24 = vadd.f32 %v2543_v33, %v2477_v56  ;;  %v4811_v31 = vmul.f32 %v4810_v58, %v12312_v49  ;;  %v14355_v58 = vld [vmem:[#allocation72_spill] sm:$0xff] }
 0x4dc   : > { %v4890_v14 = vsel %vm12342_vm8, %v4889_v47, %v4885_v61  ;;  %v4915_v16 = vmul.f32 %v4914_v44, %v12279_v27  ;;  %v4993_v32 = vmul.f32 %v4992_v60, %v12284_v50  ;;  %v2221_v25 = vadd.f32 %v14349_v52, %v14348_v5  ;;  %v14350_v47 = vld [vmem:[#allocation136_spill] sm:$0xff]  ;;  %v14356_v5 = vld [vmem:[#allocation123_spill] sm:$0xff] }
 0x4dd   : > { %v4891_v45 = vmul.f32 %v4890_v14, %v12317_v54  ;;  %v4904_v9 = vmul.f32 %v4903_v26, %v12279_v27  ;;  %v4983_v35 = vadd.f32 0.18741608, %v4982_v37  ;;  %v6198_v12 = vclamps-f32 %v4811_v31, 1.0 }
 0x4de   : > { %v12382_v53 = vadd.f32 1.0, %v4915_v16  ;;  %v4994_v1 = vadd.f32 0.4994258, %v4993_v32  ;;  %v12385_v49 = vadd.f32 %v14228_v30, %v2605_v34  ;;  %v2287_v38 = vmul.f32 %v14215_v21, %v14350_v47  ;;  %v14354_v34 = vld [vmem:[#allocation118_spill] sm:$0xff] }
 0x4df   : > { %v12391_v29 = vmul.f32 %v14215_v21, %v14351_v20  ;;  %v6200_v36 = vclamps-f32 %v4891_v45, 1.0  ;;  %v4984_v54 = vmul.f32 %v4983_v35, %v12284_v50  ;;  %v2735_v27 = vmul.f32 0.5, %v12171_v57  ;;  %v14359_v35 = vld [vmem:[#allocation49_spill] sm:$0xff] }
 0x4e0   : > { %v5423_v13 = vadd.f32 1.0, %v6198_v12  ;;  %6539 = vrcp.f32 %v12382_v53  ;;  %v12397_v59 = vadd.f32 %v14228_v30, %v2607_v24  ;;  %v2737_v56 = vmul.f32 0.5, %v12178_v15  ;;  %v14360_v20 = vld [vmem:[#allocation109_spill] sm:$0xff] }
 0x4e1   : > { %v5425_v19 = vadd.f32 1.0, %v6200_v36  ;;  %v4905_v28 = vadd.f32 1.1283791, %v4904_v9  ;;  %v4995_v0 = vmul.f32 %v4994_v1, %v12284_v50  ;;  %v12403_v39 = vmul.f32 %v14353_v7, %v14352_v23 }
 0x4e2   : > { %v5487_v26 = vmul.f32 %v5423_v13, %v2735_v27  ;;  %v4928_v55 = vand.u32 2147483648, %v12382_v53  ;;  %v12407_v57 = vmul.f32 0.70710677, %v12385_v49  ;;  %v4926_v33 = vand.u32 2147483647, %v12382_v53  ;;  %v14361_v13 = vld [vmem:[#allocation71_spill] sm:$0xff] }
 0x4e3   : > { %v5489_v11 = vmul.f32 %v5425_v19, %v2737_v56  ;;  %v4985_v8 = vadd.f32 1.1283791, %v4984_v54  ;;  %v12410_v44 = vadd.f32 1.0, %v4995_v0  ;;  %v12412_v15 = vadd.f32 %v2287_v38, %v2221_v25  ;;  %v14362_v56 = vld [vmem:[#allocation94_spill] sm:$0xff] }
 0x4e4   : > { %v12415_v50 = vmul.f32 0.70710677, %v12397_v59  ;;  %v4934_v60 = vmul.f32 %v12407_v57, %v12407_v57  ;;  %v1958_v61 = vadd.f32 %v14355_v58, %v14354_v34  ;;  %v4906_v24 = vmul.f32 %v4905_v28, %v12263_v43 }
 0x4e5   : > { %v5527_v37 = vpack.c.bf16 %v5489_v11, %v5487_v26  ;;  %vm4922_vm10 = vweird.f32 %v12382_v53  ;;  %6541 = vrcp.f32 %v12410_v44  ;;  %v4929_v14 = vor.u32 1.1754944e-38, %v4928_v55 }
 0x4e6   : > { %v6540_v31 = vpop.eup %6539  ;;  %v12424_v16 = vmin.f32 %v4934_v60, 16.0  ;;  %v5014_v32 = vmul.f32 %v12415_v50, %v12415_v50  ;;  %v2088_v52 = vadd.f32 %v14356_v5, %v1958_v61  ;;  %vm12430_vm11 = vcmp.eq.f32.partialorder %v4926_v33, 8.507059e+37  ;;  %v14363_v33 = vld [vmem:[#allocation80_spill] sm:$0xff] }
 0x4e7   : > { %5823 = vmatmul.bf16.gmra.mxu3 %v5527_v37  ;;  %v4918_v25 = vmul.f32 %v6540_v31, %v12382_v53  ;;  %v12435_v43 = vmul.f32 %v4985_v8, %v12268_v22  ;;  %v5006_v9 = vand.u32 2147483647, %v12410_v44  ;;  %v2546_v12 = vmul.f32 %v12222_v2, %v14359_v35 }
 0x4e8   : > { %v4936_v1 = vmul.f32 2.1237322e-06, %v12424_v16  ;;  %v4947_v47 = vmul.f32 3.8918573e-05, %v12424_v16  ;;  %v12442_v38 = vmin.f32 %v5014_v32, 16.0  ;;  %v2544_v36 = vmul.f32 %v12222_v2, %v14360_v20 }
 0x4e9   : > { %v4919_v54 = vsub.f32 1.0, %v4918_v25  ;;  %v5008_v27 = vand.u32 2147483648, %v12410_v44  ;;  %v2218_v22 = vadd.f32 %v14361_v13, %v2088_v52  ;;  %v2610_v19 = vadd.f32 %v2546_v12, %v14362_v56  ;;  %v14366_v25 = vld [vmem:[#allocation122_spill] sm:$0xff] }
 0x4ea   : > { %vm5002_vm12 = vweird.f32 %v12410_v44  ;;  %v4937_v28 = vadd.f32 0.00028619796, %v4936_v1  ;;  %v4948_v0 = vadd.f32 0.001143296, %v4947_v47  ;;  %v5016_v23 = vmul.f32 2.1237322e-06, %v12442_v38 }
 0x4eb   : > { %v6542_v26 = vpop.eup %6541  ;;  %v4920_v55 = vmul.f32 %v6540_v31, %v4919_v54  ;;  %vm4923_vm13 = vweird.f32 %v6540_v31  ;;  %v5027_v11 = vmul.f32 3.8918573e-05, %v12442_v38  ;;  %v2348_v8 = vadd.f32 %v14363_v33, %v2218_v22 }
 0x4ec   : > { %v4998_v60 = vmul.f32 %v6542_v26, %v12410_v44  ;;  %vm12454_vm14 = vcmp.eq.f32.partialorder %v5006_v9, 8.507059e+37  ;;  %v4938_v58 = vmul.f32 %v4937_v28, %v12424_v16  ;;  %v4949_v61 = vmul.f32 %v4948_v0, %v12424_v16  ;;  %vm4924_vm15 = vmor %vm4922_vm10, %vm4923_vm13 }
 0x4ed   : > { %v12461_v37 = vadd.f32 %v14186_v4, %v2610_v19  ;;  %v4921_v32 = vadd.f32 %v6540_v31, %v4920_v55  ;;  %v5017_v5 = vadd.f32 0.00028619796, %v5016_v23  ;;  %v5028_v52 = vadd.f32 0.001143296, %v5027_v11 }
 0x4ee   : > { %v2478_v35 = vadd.f32 %v14366_v25, %v2348_v8  ;;  %v4999_v12 = vsub.f32 1.0, %v4998_v60  ;;  %vm5003_vm0 = vweird.f32 %v6542_v26  ;;  %v4939_v9 = vadd.f32 0.0036580483, %v4938_v58 }
 0x4ef   : > { %v4950_v1 = vadd.f32 0.014752088, %v4949_v61  ;;  %v4925_v47 = vsel %vm4924_vm15, %v6540_v31, %v4921_v32  ;;  %v5018_v20 = vmul.f32 %v5017_v5, %v12442_v38  ;;  %v5029_v54 = vmul.f32 %v5028_v52, %v12442_v38  ;;  %vm5004_vm1 = vmor %vm5002_vm12, %vm5003_vm0 }
 0x4f0   : > { %v2608_v13 = vadd.f32 %v2544_v36, %v2478_v35  ;;  %v4930_v22 = vsel %vm12430_vm11, %v4929_v14, %v4925_v47  ;;  %v5000_v56 = vmul.f32 %v6542_v26, %v4999_v12  ;;  %v4940_v19 = vmul.f32 %v4939_v9, %v12424_v16 }
 0x4f1   : > { %v4951_v28 = vmul.f32 %v4950_v1, %v12424_v16  ;;  %v4931_v53 = vmul.f32 %v4930_v22, %v4906_v24  ;;  %v5019_v0 = vadd.f32 0.0036580483, %v5018_v20  ;;  %v5030_v23 = vadd.f32 0.014752088, %v5029_v54 }
 0x4f2   : > { %v12473_v55 = vadd.f32 %v14186_v4, %v2608_v13  ;;  %v5001_v31 = vadd.f32 %v6542_v26, %v5000_v56  ;;  %v5009_v11 = vor.u32 1.1754944e-38, %v5008_v27  ;;  %v4941_v33 = vadd.f32 0.05243302, %v4940_v19 }
 0x4f3   : > { %v4952_v8 = vadd.f32 0.112945676, %v4951_v28  ;;  %v6201_v60 = vclamps-f32 %v4931_v53, 1.0  ;;  %v5020_v14 = vmul.f32 %v5019_v0, %v12442_v38  ;;  %v5031_v45 = vmul.f32 %v5030_v23, %v12442_v38 }
 0x4f4   : > { %v12481_v24 = vmul.f32 0.70710677, %v12461_v37  ;;  %v5005_v36 = vsel %vm5004_vm1, %v6542_v26, %v5001_v31  ;;  %v4942_v58 = vmul.f32 %v4941_v33, %v12424_v16  ;;  %v12486_v27 = vmul.f32 0.70710677, %v12473_v55  ;;  %v5700_v31 = vpop.f32.mrf.mxu2 }
 0x4f5   : > { %v4953_v61 = vmul.f32 %v4952_v8, %v12424_v16  ;;  %v5010_v32 = vsel %vm12454_vm14, %v5009_v11, %v5005_v36  ;;  %v5426_v44 = vadd.f32 1.0, %v6201_v60  ;;  %v5021_v5 = vadd.f32 0.05243302, %v5020_v14  ;;  %v5789_v11 = vpop.f32.mrf.mxu3 }
 0x4f6   : > { %v5032_v52 = vadd.f32 0.112945676, %v5031_v45  ;;  %v5011_v25 = vmul.f32 %v5010_v32, %v12435_v43  ;;  %v4943_v35 = vadd.f32 0.18741608, %v4942_v58  ;;  %v5054_v26 = vmul.f32 %v12486_v27, %v12486_v27  ;;  %v14368_v32 = vld [vmem:[#allocation67_spill] sm:$0xff] }
 0x4f7   : > { %v4954_v12 = vadd.f32 0.4994258, %v4953_v61  ;;  %v2738_v9 = vmul.f32 0.5, %v12249_v62  ;;  %v5022_v1 = vmul.f32 %v5021_v5, %v12442_v38  ;;  %v5134_v34 = vmul.f32 %v12481_v24, %v12481_v24  ;;  %v14367_v62 = vld [vmem:[#allocation44_spill] sm:$0xff] }
 0x4f8   : > { %v5033_v47 = vmul.f32 %v5032_v52, %v12442_v38  ;;  %v6203_v20 = vclamps-f32 %v5011_v25, 1.0  ;;  %v4944_v54 = vmul.f32 %v4943_v35, %v12424_v16  ;;  %v12500_v43 = vmin.f32 %v5054_v26, 16.0  ;;  %v14369_v35 = vld [vmem:[#allocation50_spill] sm:$0xff] }
 0x4f9   : > { %v4955_v13 = vmul.f32 %v4954_v12, %v12424_v16  ;;  %v2740_v22 = vmul.f32 0.5, %v12257_v41  ;;  %v5023_v56 = vadd.f32 0.18741608, %v5022_v1  ;;  %v1959_v28 = vadd.f32 %v14367_v62, %v12061_v3 }
 0x4fa   : > { %v5034_v19 = vadd.f32 0.4994258, %v5033_v47  ;;  %v5428_v53 = vadd.f32 1.0, %v6203_v20  ;;  %v5490_v0 = vmul.f32 %v5426_v44, %v2738_v9  ;;  %v5056_v33 = vmul.f32 2.1237322e-06, %v12500_v43 }
 0x4fb   : > { %v12505_v23 = vadd.f32 1.0, %v4955_v13  ;;  %v5024_v8 = vmul.f32 %v5023_v56, %v12442_v38  ;;  %v5701_v60 = vadd.f32 %v12327_v6, %v5700_v31  ;;  %v5067_v41 = vmul.f32 3.8918573e-05, %v12500_v43 }
 0x4fc   : > { %v5035_v16 = vmul.f32 %v5034_v19, %v12442_v38  ;;  %v5492_v14 = vmul.f32 %v5428_v53, %v2740_v22  ;;  %v4945_v45 = vadd.f32 1.1283791, %v4944_v54  ;;  %v12513_v3 = vmin.f32 %v5134_v34, 16.0  ;;  %v5702_v22 = vpop.f32.mrf.mxu2  ;;  %v14370_v19 = vld [vmem:[#allocation85_spill] sm:$0xff] }
 0x4fd   : > { %6543 = vrcp.f32 %v12505_v23  ;;  %v4968_v36 = vand.u32 2147483648, %v12505_v23  ;;  %v5025_v58 = vadd.f32 1.1283791, %v5024_v8  ;;  %v2089_v44 = vadd.f32 %v14368_v32, %v1959_v28 }
 0x4fe   : > { %v12516_v61 = vadd.f32 1.0, %v5035_v16  ;;  %v5528_v5 = vpack.c.bf16 %v5492_v14, %v5490_v0  ;;  %v5790_v38 = vadd.f32 %v5789_v11, %v5701_v60  ;;  %v5057_v52 = vadd.f32 0.00028619796, %v5056_v33 }
 0x4ff   : > { %v5068_v25 = vadd.f32 0.001143296, %v5067_v41  ;;  %v12521_v12 = vadd.f32 %v14369_v35, %v12302_v18  ;;  %v2481_v26 = vadd.f32 %v12403_v39, %v12412_v15  ;;  %v4966_v9 = vand.u32 2147483647, %v12505_v23 }
 0x500   : > { %6545 = vrcp.f32 %v12516_v61  ;;  %5739 = vmatmul.bf16.gmra.mxu2 %v5528_v5  ;;  %v4946_v1 = vmul.f32 %v4945_v45, %v12407_v57  ;;  %5854 = vst [vmem:[%s11034_s26 + $0x50] sm:$0xff] %v5790_v38  ;;  %v5058_v47 = vmul.f32 %v5057_v52, %v12500_v43  ;;  %v2545_v34 = vmul.f32 %v12358_v17, %v14309_v40 }
 0x501   : > { %vm4962_vm3 = vweird.f32 %v12505_v23  ;;  %v4969_v18 = vor.u32 1.1754944e-38, %v4968_v36  ;;  %v5069_v20 = vmul.f32 %v5068_v25, %v12500_v43  ;;  %v5136_v39 = vmul.f32 2.1237322e-06, %v12513_v3  ;;  %v14375_v25 = vld [vmem:[#allocation137_spill] sm:$0xff] }
 0x502   : > { %v5147_v15 = vmul.f32 3.8918573e-05, %v12513_v3  ;;  %v12537_v13 = vmul.f32 %v5025_v58, %v12415_v50  ;;  %v5046_v57 = vand.u32 2147483647, %v12516_v61  ;;  %v5059_v56 = vadd.f32 0.0036580483, %v5058_v47  ;;  %v5791_v50 = vpop.f32.mrf.mxu3 }
 0x503   : > { %v6544_v54 = vpop.eup %6543  ;;  %v2219_v62 = vadd.f32 %v14370_v19, %v2089_v44  ;;  %vm12542_vm4 = vcmp.eq.f32.partialorder %v4966_v9, 8.507059e+37  ;;  %v5048_v53 = vand.u32 2147483648, %v12516_v61  ;;  %v5703_v0 = vadd.f32 %v12327_v6, %v5702_v22 }
 0x504   : > { %v4958_v40 = vmul.f32 %v6544_v54, %v12505_v23  ;;  %v5070_v31 = vadd.f32 0.014752088, %v5069_v20  ;;  %vm5042_vm5 = vweird.f32 %v12516_v61  ;;  %v5060_v11 = vmul.f32 %v5059_v56, %v12500_v43 }
 0x505   : > { %v5137_v33 = vadd.f32 0.00028619796, %v5136_v39  ;;  %v5148_v8 = vadd.f32 0.001143296, %v5147_v15  ;;  %v2349_v16 = vadd.f32 %v12295_v51, %v2219_v62  ;;  %v5792_v14 = vadd.f32 %v5791_v50, %v5703_v0 }
 0x506   : > { %v6546_v60 = vpop.eup %6545  ;;  %v4959_v41 = vsub.f32 1.0, %v4958_v40  ;;  %v5071_v45 = vmul.f32 %v5070_v31, %v12500_v43  ;;  %v2547_v36 = vmul.f32 %v12358_v17, %v14310_v10  ;;  %vm4963_vm6 = vweird.f32 %v6544_v54 }
 0x507   : > { %v5038_v58 = vmul.f32 %v6546_v60, %v12516_v61  ;;  %vm12555_vm7 = vcmp.eq.f32.partialorder %v5046_v57, 8.507059e+37  ;;  %v5061_v44 = vadd.f32 0.05243302, %v5060_v11  ;;  %v5138_v5 = vmul.f32 %v5137_v33, %v12513_v3  ;;  %5855 = vst [vmem:[%s11034_s26 + $0x58] sm:$0xff] %v5792_v14  ;;  %vm4964_vm8 = vmor %vm4962_vm3, %vm4963_vm6 }
 0x508   : > { %v4960_v38 = vmul.f32 %v6544_v54, %v4959_v41  ;;  %v5072_v51 = vadd.f32 0.112945676, %v5071_v45  ;;  %v5149_v52 = vmul.f32 %v5148_v8, %v12513_v3  ;;  %v2479_v35 = vadd.f32 %v14375_v25, %v2349_v16 }
 0x509   : > { %v5039_v9 = vsub.f32 1.0, %v5038_v58  ;;  %v5062_v10 = vmul.f32 %v5061_v44, %v12500_v43  ;;  %v5139_v47 = vadd.f32 0.0036580483, %v5138_v5  ;;  %v2611_v20 = vadd.f32 %v2547_v36, %v2481_v26 }
 0x50a   : > { %v4961_v39 = vadd.f32 %v6544_v54, %v4960_v38  ;;  %v5073_v15 = vmul.f32 %v5072_v51, %v12500_v43  ;;  %v5150_v57 = vadd.f32 0.014752088, %v5149_v52  ;;  %v2609_v22 = vadd.f32 %v2545_v34, %v2479_v35 }
 0x50b   : > { %v5040_v56 = vmul.f32 %v6546_v60, %v5039_v9  ;;  %vm5043_vm9 = vweird.f32 %v6546_v60  ;;  %v5063_v19 = vadd.f32 0.18741608, %v5062_v10  ;;  %v5140_v62 = vmul.f32 %v5139_v47, %v12513_v3 }
 0x50c   : > { %v4965_v40 = vsel %vm4964_vm8, %v6544_v54, %v4961_v39  ;;  %v5074_v0 = vadd.f32 0.4994258, %v5073_v15  ;;  %v5151_v31 = vmul.f32 %v5150_v57, %v12513_v3  ;;  %v12571_v26 = vadd.f32 %v14228_v30, %v2609_v22  ;;  %vm5044_vm2 = vmor %vm5042_vm5, %vm5043_vm9 }
 0x50d   : > { %v4970_v50 = vsel %vm12542_vm4, %v4969_v18, %v4965_v40  ;;  %v5041_v34 = vadd.f32 %v6546_v60, %v5040_v56  ;;  %v5141_v11 = vadd.f32 0.05243302, %v5140_v62  ;;  %v12576_v23 = vadd.f32 %v14228_v30, %v2611_v20 }
 0x50e   : > { %v4971_v33 = vmul.f32 %v4970_v50, %v4946_v1  ;;  %v5049_v8 = vor.u32 1.1754944e-38, %v5048_v53  ;;  %v5075_v54 = vmul.f32 %v5074_v0, %v12500_v43  ;;  %v5152_v16 = vadd.f32 0.112945676, %v5151_v31  ;;  %v14376_v53 = vld [vmem:[#allocation58_spill] sm:$0xff]  ;;  %v14378_v31 = vld [vmem:[#allocation96_spill] sm:$0xff] }
 0x50f   : > { %v5045_v41 = vsel %vm5044_vm2, %v6546_v60, %v5041_v34  ;;  %v5064_v14 = vmul.f32 %v5063_v19, %v12500_v43  ;;  %v5142_v45 = vmul.f32 %v5141_v11, %v12513_v3  ;;  %v12584_v18 = vmul.f32 0.70710677, %v12571_v26 }
 0x510   : > { %v6202_v28 = vclamps-f32 %v4971_v33, 1.0  ;;  %v5050_v36 = vsel %vm12555_vm7, %v5049_v8, %v5045_v41  ;;  %v12588_v1 = vadd.f32 1.0, %v5075_v54  ;;  %v5153_v61 = vmul.f32 %v5152_v16, %v12513_v3  ;;  %v14381_v54 = vld [vmem:[#allocation54_spill] sm:$0xff] }
 0x511   : > { %v12593_v58 = vadd.f32 %v14376_v53, %v12306_v42  ;;  %v5051_v60 = vmul.f32 %v5050_v36, %v12537_v13  ;;  %v5143_v43 = vadd.f32 0.18741608, %v5142_v45  ;;  %v12597_v44 = vmul.f32 0.70710677, %v12576_v23 }
 0x512   : > { %v12601_v5 = vadd.f32 %v12078_v48, %v12521_v12  ;;  %v2739_v32 = vmul.f32 0.5, %v12385_v49  ;;  %v5427_v38 = vadd.f32 1.0, %v6202_v28  ;;  %6547 = vrcp.f32 %v12588_v1  ;;  %v14382_v28 = vld [vmem:[#allocation34_spill] sm:$0xff] }
 0x513   : > { %v6204_v51 = vclamps-f32 %v5051_v60, 1.0  ;;  %v5065_v52 = vadd.f32 1.1283791, %v5064_v14  ;;  %v5144_v42 = vmul.f32 %v5143_v43, %v12513_v3  ;;  %v5154_v25 = vadd.f32 0.4994258, %v5153_v61 }
 0x514   : > { %v2741_v13 = vmul.f32 0.5, %v12397_v59  ;;  %v5086_v35 = vand.u32 2147483647, %v12588_v1  ;;  %v5094_v9 = vmul.f32 %v12584_v18, %v12584_v18  ;;  %v5174_v48 = vmul.f32 %v12597_v44, %v12597_v44  ;;  %v14377_v59 = vld [vmem:[#allocation39_spill] sm:$0xff] }
 0x515   : > { %v5429_v12 = vadd.f32 1.0, %v6204_v51  ;;  %v5491_v49 = vmul.f32 %v5427_v38, %v2739_v32  ;;  %v5088_v10 = vand.u32 2147483648, %v12588_v1  ;;  %v5155_v47 = vmul.f32 %v5154_v25, %v12513_v3  ;;  %v14383_v25 = vld [vmem:[#allocation51_spill] sm:$0xff] }
 0x516   : > { %v5145_v20 = vadd.f32 1.1283791, %v5144_v42  ;;  %v12614_v39 = vmin.f32 %v5094_v9, 16.0  ;;  %v12616_v15 = vmin.f32 %v5174_v48, 16.0  ;;  %v2288_v57 = vmul.f32 %v14292_v63, %v14377_v59 }
 0x517   : > { %v5493_v22 = vmul.f32 %v5429_v12, %v2741_v13  ;;  %v5066_v56 = vmul.f32 %v5065_v52, %v12486_v27  ;;  %vm5082_vm10 = vweird.f32 %v12588_v1  ;;  %v12622_v19 = vadd.f32 1.0, %v5155_v47 }
 0x518   : > { %v6548_v62 = vpop.eup %6547  ;;  %v5096_v40 = vmul.f32 2.1237322e-06, %v12614_v39  ;;  %v5107_v3 = vmul.f32 3.8918573e-05, %v12614_v39  ;;  %v5176_v0 = vmul.f32 2.1237322e-06, %v12616_v15  ;;  %v2352_v50 = vadd.f32 %v2288_v57, %v14378_v31 }
 0x519   : > { %v5529_v34 = vpack.c.bf16 %v5493_v22, %v5491_v49  ;;  %v5078_v11 = vmul.f32 %v6548_v62, %v12588_v1  ;;  %vm12629_vm11 = vcmp.eq.f32.partialorder %v5086_v35, 8.507059e+37  ;;  %6549 = vrcp.f32 %v12622_v19  ;;  %v14384_v49 = vld [vmem:[#allocation40_spill] sm:$0xff] }
 0x51a   : > { %v5089_v27 = vor.u32 1.1754944e-38, %v5088_v10  ;;  %v12635_v33 = vmul.f32 %v5145_v20, %v12481_v24  ;;  %v5097_v8 = vadd.f32 0.00028619796, %v5096_v40  ;;  %v2418_v16 = vmul.f32 0.0, %v14381_v54 }
 0x51b   : > { %5828 = vmatmul.bf16.gmra.mxu3 %v5529_v34  ;;  %v5079_v41 = vsub.f32 1.0, %v5078_v11  ;;  %v5108_v14 = vadd.f32 0.001143296, %v5107_v3  ;;  %v5177_v45 = vadd.f32 0.00028619796, %v5176_v0  ;;  %v2548_v36 = vmul.f32 %v12222_v2, %v14382_v28 }
 0x51c   : > { %vm5083_vm12 = vweird.f32 %v6548_v62  ;;  %v5098_v61 = vmul.f32 %v5097_v8, %v12614_v39  ;;  %v5187_v53 = vmul.f32 3.8918573e-05, %v12616_v15  ;;  %v2482_v60 = vadd.f32 %v2418_v16, %v2352_v50 }
 0x51d   : > { %v5080_v43 = vmul.f32 %v6548_v62, %v5079_v41  ;;  %v5166_v24 = vand.u32 2147483647, %v12622_v19  ;;  %v5109_v32 = vmul.f32 %v5108_v14, %v12614_v39  ;;  %v5178_v38 = vmul.f32 %v5177_v45, %v12616_v15  ;;  %vm5084_vm14 = vmor %vm5082_vm10, %vm5083_vm12 }
 0x51e   : > { %vm5162_vm13 = vweird.f32 %v12622_v19  ;;  %v5168_v51 = vand.u32 2147483648, %v12622_v19  ;;  %v5099_v52 = vadd.f32 0.0036580483, %v5098_v61  ;;  %v5188_v42 = vadd.f32 0.001143296, %v5187_v53 }
 0x51f   : > { %v2484_v13 = vadd.f32 %v2418_v16, %v14383_v25  ;;  %v6550_v35 = vpop.eup %6549  ;;  %v5081_v9 = vadd.f32 %v6548_v62, %v5080_v43  ;;  %v5110_v48 = vadd.f32 0.014752088, %v5109_v32  ;;  %v5179_v12 = vadd.f32 0.0036580483, %v5178_v38 }
 0x520   : > { %v2550_v10 = vmul.f32 %v12222_v2, %v14384_v49  ;;  %v5158_v47 = vmul.f32 %v6550_v35, %v12622_v19  ;;  %v5100_v20 = vmul.f32 %v5099_v52, %v12614_v39  ;;  %v5189_v57 = vmul.f32 %v5188_v42, %v12616_v15 }
 0x521   : > { %v2612_v22 = vadd.f32 %v2548_v36, %v2482_v60  ;;  %v5085_v40 = vsel %vm5084_vm14, %v6548_v62, %v5081_v9  ;;  %vm5163_vm15 = vweird.f32 %v6550_v35  ;;  %v5111_v3 = vmul.f32 %v5110_v48, %v12614_v39 }
 0x522   : > { %v5180_v0 = vmul.f32 %v5179_v12, %v12616_v15  ;;  %v5090_v2 = vsel %vm12629_vm11, %v5089_v27, %v5085_v40  ;;  %v5159_v31 = vsub.f32 1.0, %v5158_v47  ;;  %v5101_v50 = vadd.f32 0.05243302, %v5100_v20  ;;  %vm5164_vm1 = vmor %vm5162_vm13, %vm5163_vm15  ;;  %v5705_v47 = vpop.f32.mrf.mxu2  ;;  %v5794_v20 = vpop.f32.mrf.mxu3 }
 0x523   : > { %v5190_v1 = vadd.f32 0.014752088, %v5189_v57  ;;  %v5091_v34 = vmul.f32 %v5090_v2, %v5066_v56  ;;  %v5112_v11 = vadd.f32 0.112945676, %v5111_v3  ;;  %v2614_v54 = vadd.f32 %v2550_v10, %v2484_v13 }
 0x524   : > { %v5181_v8 = vadd.f32 0.05243302, %v5180_v0  ;;  %v5160_v16 = vmul.f32 %v6550_v35, %v5159_v31  ;;  %v5102_v41 = vmul.f32 %v5101_v50, %v12614_v39  ;;  %v12663_v14 = vadd.f32 %v14186_v4, %v2612_v22 }
 0x525   : > { %v5191_v62 = vmul.f32 %v5190_v1, %v12616_v15  ;;  %v6205_v45 = vclamps-f32 %v5091_v34, 1.0  ;;  %vm12665_vm0 = vcmp.eq.f32.partialorder %v5166_v24, 8.507059e+37  ;;  %v5113_v63 = vmul.f32 %v5112_v11, %v12614_v39 }
 0x526   : > { %v5182_v56 = vmul.f32 %v5181_v8, %v12616_v15  ;;  %v5161_v27 = vadd.f32 %v6550_v35, %v5160_v16  ;;  %v5169_v61 = vor.u32 1.1754944e-38, %v5168_v51  ;;  %v5103_v53 = vadd.f32 0.18741608, %v5102_v41 }
 0x527   : > { %v5192_v60 = vadd.f32 0.112945676, %v5191_v62  ;;  %v5114_v43 = vadd.f32 0.4994258, %v5113_v63  ;;  %v12675_v38 = vadd.f32 %v14186_v4, %v2614_v54  ;;  %v2289_v24 = vmul.f32 %v14215_v21, %v14377_v59 }
 0x528   : > { %v5183_v32 = vadd.f32 0.18741608, %v5182_v56  ;;  %v5165_v52 = vsel %vm5164_vm1, %v6550_v35, %v5161_v27  ;;  %v5430_v42 = vadd.f32 1.0, %v6205_v45  ;;  %v12681_v51 = vmul.f32 0.70710677, %v12663_v14 }
 0x529   : > { %v5193_v25 = vmul.f32 %v5192_v60, %v12616_v15  ;;  %v5170_v13 = vsel %vm12665_vm0, %v5169_v61, %v5165_v52  ;;  %v5104_v19 = vmul.f32 %v5103_v53, %v12614_v39  ;;  %v5115_v9 = vmul.f32 %v5114_v43, %v12614_v39 }
 0x52a   : > { %v5184_v4 = vmul.f32 %v5183_v32, %v12616_v15  ;;  %v2225_v48 = vadd.f32 %v12082_v46, %v12593_v58  ;;  %v2744_v21 = vmul.f32 0.5, %v12461_v37  ;;  %v5171_v59 = vmul.f32 %v5170_v13, %v12635_v33 }
 0x52b   : > { %v5194_v35 = vadd.f32 0.4994258, %v5193_v25  ;;  %v2742_v12 = vmul.f32 0.5, %v12473_v55  ;;  %v12693_v10 = vadd.f32 1.0, %v5115_v9  ;;  %v12696_v57 = vmul.f32 0.70710677, %v12675_v38 }
 0x52c   : > { %v5214_v39 = vmul.f32 %v12681_v51, %v12681_v51  ;;  %v6207_v22 = vclamps-f32 %v5171_v59, 1.0  ;;  %v5706_v37 = vadd.f32 %v12327_v6, %v5705_v47  ;;  %v2353_v58 = vadd.f32 %v2289_v24, %v12601_v5  ;;  %v5796_v24 = vpop.f32.mrf.mxu3 }
 0x52d   : > { %v5195_v46 = vmul.f32 %v5194_v35, %v12616_v15  ;;  %v5494_v33 = vmul.f32 %v5430_v42, %v2742_v12  ;;  %v5105_v55 = vadd.f32 1.1283791, %v5104_v19  ;;  %6551 = vrcp.f32 %v12693_v10 }
 0x52e   : > { %v5185_v40 = vadd.f32 1.1283791, %v5184_v4  ;;  %v5432_v3 = vadd.f32 1.0, %v6207_v22  ;;  %v5128_v0 = vand.u32 2147483648, %v12693_v10  ;;  %v5795_v31 = vadd.f32 %v5794_v20, %v5706_v37 }
 0x52f   : > { %v12705_v2 = vadd.f32 1.0, %v5195_v46  ;;  %v2355_v50 = vadd.f32 %v12391_v29, %v2225_v48  ;;  %v12708_v1 = vmin.f32 %v5214_v39, 16.0  ;;  %v5294_v15 = vmul.f32 %v12696_v57, %v12696_v57 }
 0x530   : > { %v5496_v34 = vmul.f32 %v5432_v3, %v2744_v21  ;;  %v5126_v5 = vand.u32 2147483647, %v12693_v10  ;;  %5856 = vst [vmem:[%s11034_s26 + $0x60] sm:$0xff] %v5795_v31  ;;  %v2419_v11 = vmul.f32 0.0, %v14353_v7  ;;  %v5106_v8 = vmul.f32 %v5105_v55, %v12584_v18  ;;  %v5707_v7 = vpop.f32.mrf.mxu2 }
 0x531   : > { %6553 = vrcp.f32 %v12705_v2  ;;  %v5216_v54 = vmul.f32 2.1237322e-06, %v12708_v1  ;;  %v5227_v16 = vmul.f32 3.8918573e-05, %v12708_v1  ;;  %v12719_v29 = vmin.f32 %v5294_v15, 16.0 }
 0x532   : > { %v5530_v41 = vpack.c.bf16 %v5496_v34, %v5494_v33  ;;  %vm5122_vm3 = vweird.f32 %v12693_v10  ;;  %v5129_v62 = vor.u32 1.1754944e-38, %v5128_v0  ;;  %v12723_v45 = vmul.f32 %v5185_v40, %v12597_v44 }
 0x533   : > { %v2483_v36 = vadd.f32 %v2419_v11, %v2353_v58  ;;  %v6552_v63 = vpop.eup %6551  ;;  %v5206_v56 = vand.u32 2147483647, %v12705_v2  ;;  %v5217_v27 = vadd.f32 0.00028619796, %v5216_v54  ;;  %v5228_v18 = vadd.f32 0.001143296, %v5227_v16 }
 0x534   : > { %v2549_v61 = vmul.f32 %v12358_v17, %v14382_v28  ;;  %5744 = vmatmul.bf16.gmra.mxu2 %v5530_v41  ;;  %v5118_v53 = vmul.f32 %v6552_v63, %v12693_v10  ;;  %vm12729_vm4 = vcmp.eq.f32.partialorder %v5126_v5, 8.507059e+37  ;;  %v5708_v44 = vadd.f32 %v12327_v6, %v5707_v7 }
 0x535   : > { %v5296_v43 = vmul.f32 2.1237322e-06, %v12719_v29  ;;  %v2485_v32 = vadd.f32 %v2419_v11, %v2355_v50  ;;  %v5218_v52 = vmul.f32 %v5217_v27, %v12708_v1  ;;  %v5229_v42 = vmul.f32 %v5228_v18, %v12708_v1 }
 0x536   : > { %v5307_v28 = vmul.f32 3.8918573e-05, %v12719_v29  ;;  %v2551_v25 = vmul.f32 %v12358_v17, %v14384_v49  ;;  %v5119_v19 = vsub.f32 1.0, %v5118_v53  ;;  %v5797_v9 = vadd.f32 %v5796_v24, %v5708_v44 }
 0x537   : > { %v6554_v13 = vpop.eup %6553  ;;  %v5297_v4 = vadd.f32 0.00028619796, %v5296_v43  ;;  %v2613_v48 = vadd.f32 %v2549_v61, %v2483_v36  ;;  %vm5123_vm5 = vweird.f32 %v6552_v63  ;;  %v5219_v21 = vadd.f32 0.0036580483, %v5218_v52 }
 0x538   : > { %v5198_v6 = vmul.f32 %v6554_v13, %v12705_v2  ;;  %v5230_v59 = vadd.f32 0.014752088, %v5229_v42  ;;  %v5120_v35 = vmul.f32 %v6552_v63, %v5119_v19  ;;  %5857 = vst [vmem:[%s11034_s26 + $0x68] sm:$0xff] %v5797_v9  ;;  %v5308_v47 = vadd.f32 0.001143296, %v5307_v28  ;;  %vm5124_vm6 = vmor %vm5122_vm3, %vm5123_vm5 }
 0x539   : > { %v5298_v12 = vmul.f32 %v5297_v4, %v12719_v29  ;;  %v2615_v20 = vadd.f32 %v2551_v25, %v2485_v32  ;;  %v5208_v22 = vand.u32 2147483648, %v12705_v2  ;;  %v5220_v17 = vmul.f32 %v5219_v21, %v12708_v1 }
 0x53a   : > { %v5199_v39 = vsub.f32 1.0, %v5198_v6  ;;  %v5231_v49 = vmul.f32 %v5230_v59, %v12708_v1  ;;  %v5121_v46 = vadd.f32 %v6552_v63, %v5120_v35  ;;  %v5309_v58 = vmul.f32 %v5308_v47, %v12719_v29 }
 0x53b   : > { %v5299_v37 = vadd.f32 0.0036580483, %v5298_v12  ;;  %v12748_v33 = vadd.f32 %v14228_v30, %v2613_v48  ;;  %vm5203_vm7 = vweird.f32 %v6554_v13  ;;  %v12754_v3 = vadd.f32 %v14228_v30, %v2615_v20 }
 0x53c   : > { %v5200_v55 = vmul.f32 %v6554_v13, %v5199_v39  ;;  %v5232_v40 = vadd.f32 0.112945676, %v5231_v49  ;;  %v5125_v0 = vsel %vm5124_vm6, %v6552_v63, %v5121_v46  ;;  %vm5202_vm8 = vweird.f32 %v12705_v2 }
 0x53d   : > { %v5221_v31 = vadd.f32 0.05243302, %v5220_v17  ;;  %v5310_v50 = vadd.f32 0.014752088, %v5309_v58  ;;  %v5130_v15 = vsel %vm12729_vm4, %v5129_v62, %v5125_v0  ;;  %v5300_v10 = vmul.f32 %v5299_v37, %v12719_v29  ;;  %vm5204_vm9 = vmor %vm5202_vm8, %vm5203_vm7 }
 0x53e   : > { %v5201_v34 = vadd.f32 %v6554_v13, %v5200_v55  ;;  %v5233_v5 = vmul.f32 %v5232_v40, %v12708_v1  ;;  %v5131_v11 = vmul.f32 %v5130_v15, %v5106_v8  ;;  %v5209_v54 = vor.u32 1.1754944e-38, %v5208_v22 }
 0x53f   : > { %v5311_v16 = vmul.f32 %v5310_v50, %v12719_v29  ;;  %v12763_v30 = vmul.f32 0.70710677, %v12748_v33  ;;  %vm5207_vm2 = vcmp.eq.f32.partialorder %v5206_v56, 8.507059e+37  ;;  %v12766_v36 = vmul.f32 0.70710677, %v12754_v3 }
 0x540   : > { %v5205_v41 = vsel %vm5204_vm9, %v6554_v13, %v5201_v34  ;;  %v5234_v2 = vadd.f32 0.4994258, %v5233_v5  ;;  %v6206_v62 = vclamps-f32 %v5131_v11, 1.0  ;;  %v5222_v7 = vmul.f32 %v5221_v31, %v12708_v1 }
 0x541   : > { %v5210_v63 = vsel %vm5207_vm2, %v5209_v54, %v5205_v41  ;;  %v5312_v27 = vadd.f32 0.112945676, %v5311_v16  ;;  %v5301_v61 = vadd.f32 0.05243302, %v5300_v10  ;;  %v5254_v53 = vmul.f32 %v12763_v30, %v12763_v30 }
 0x542   : > { %v5211_v8 = vmul.f32 %v5210_v63, %v12723_v45  ;;  %v5235_v18 = vmul.f32 %v5234_v2, %v12708_v1  ;;  %v5431_v60 = vadd.f32 1.0, %v6206_v62  ;;  %v5334_v44 = vmul.f32 %v12766_v36, %v12766_v36 }
 0x543   : > { %v5313_v56 = vmul.f32 %v5312_v27, %v12719_v29  ;;  %v2743_v43 = vmul.f32 0.5, %v12571_v26  ;;  %v12777_v52 = vmin.f32 %v5254_v53, 16.0  ;;  %v2745_v45 = vmul.f32 0.5, %v12576_v23 }
 0x544   : > { %v6208_v32 = vclamps-f32 %v5211_v8, 1.0  ;;  %v5236_v24 = vadd.f32 1.0, %v5235_v18  ;;  %v5223_v42 = vadd.f32 0.18741608, %v5222_v7  ;;  %v12780_v25 = vmin.f32 %v5334_v44, 16.0 }
 0x545   : > { %v5314_v28 = vadd.f32 0.4994258, %v5313_v56  ;;  %v5495_v19 = vmul.f32 %v5431_v60, %v2743_v43  ;;  %v5302_v9 = vmul.f32 %v5301_v61, %v12719_v29  ;;  %v5256_v26 = vmul.f32 2.1237322e-06, %v12777_v52 }
 0x546   : > { %v5433_v13 = vadd.f32 1.0, %v6208_v32  ;;  %6555 = vrcp.f32 %v5236_v24  ;;  %v5267_v6 = vmul.f32 3.8918573e-05, %v12777_v52  ;;  %v5336_v21 = vmul.f32 2.1237322e-06, %v12780_v25 }
 0x547   : > { %v5315_v4 = vmul.f32 %v5314_v28, %v12719_v29  ;;  %v5224_v23 = vmul.f32 %v5223_v42, %v12708_v1  ;;  %v5303_v12 = vadd.f32 0.18741608, %v5302_v9  ;;  %v5257_v47 = vadd.f32 0.00028619796, %v5256_v26 }
 0x548   : > { %v5497_v48 = vmul.f32 %v5433_v13, %v2745_v45  ;;  %v5268_v20 = vadd.f32 0.001143296, %v5267_v6  ;;  %v5337_v39 = vadd.f32 0.00028619796, %v5336_v21  ;;  %v5347_v46 = vmul.f32 3.8918573e-05, %v12780_v25 }
 0x549   : > { %v12788_v59 = vadd.f32 1.0, %v5315_v4  ;;  %v5258_v17 = vmul.f32 %v5257_v47, %v12777_v52  ;;  %v5225_v37 = vadd.f32 1.1283791, %v5224_v23  ;;  %v5304_v1 = vmul.f32 %v5303_v12, %v12719_v29 }
 0x54a   : > { %v5531_v35 = vpack.c.bf16 %v5497_v48, %v5495_v19  ;;  %v5269_v49 = vmul.f32 %v5268_v20, %v12777_v52  ;;  %v5338_v31 = vmul.f32 %v5337_v39, %v12780_v25  ;;  %v5348_v50 = vadd.f32 0.001143296, %v5347_v46  ;;  %v581_v46 = vld [vmem:[%s7084_s23 + $0x8] sm:$0xff] }
 0x54b   : > { %6557 = vrcp.f32 %v12788_v59  ;;  %v5259_v0 = vadd.f32 0.0036580483, %v5258_v17  ;;  %v5246_v15 = vand.u32 2147483647, %v5236_v24  ;;  %v5248_v34 = vand.u32 2147483648, %v5236_v24  ;;  %v5799_v17 = vpop.f32.mrf.mxu3 }
 0x54c   : > { %v6556_v22 = vpop.eup %6555  ;;  %5833 = vmatmul.bf16.gmra.mxu3 %v5531_v35  ;;  %v5270_v55 = vadd.f32 0.014752088, %v5269_v49  ;;  %v5226_v11 = vmul.f32 %v5225_v37, %v12681_v51  ;;  %v5349_v16 = vmul.f32 %v5348_v50, %v12780_v25  ;;  %vm5242_vm11 = vweird.f32 %v5236_v24  ;;  %v580_v49 = vld [vmem:[%s7084_s23] sm:$0xff]  ;;  %s6772_s23 = sshra.s32 %s5894_s13, 4  ;;  %s6773_s23 = int_to_ptr.hbm [resolvable:$true] %s6772_s23 }
 0x54d   : > { %v5238_v58 = vmul.f32 %v6556_v22, %v5236_v24  ;;  %vm5243_vm10 = vweird.f32 %v6556_v22  ;;  %v5305_v41 = vadd.f32 1.1283791, %v5304_v1  ;;  %v5260_v63 = vmul.f32 %v5259_v0, %v12777_v52  ;;  %s6774_s15 = scalar_lea.hbm %s6773_s23, 256  ;;  %p6779_p8 = scmp.lt.s32.totalorder %s6773_s23, %s14390_s21 }
 0x54e   : > { %v5271_v5 = vmul.f32 %v5270_v55, %v12777_v52  ;;  %v5339_v7 = vadd.f32 0.0036580483, %v5338_v31  ;;  %v5350_v27 = vadd.f32 0.014752088, %v5349_v16  ;;  %vm5244_vm12 = vmor %vm5242_vm11, %vm5243_vm10  ;;  %vm5247_vm13 = vcmp.eq.f32.partialorder %v5246_v15, 8.507059e+37  ;;  %p6775_p1 = scmp.ne.s32.totalorder %s6773_s23, %s6774_s15  ;;  %p6780_p10 = scmp.lt.s32.totalorder %s6778_s29, %s6774_s15 }
 0x54f   : > { %v5239_v40 = vsub.f32 1.0, %v5238_v58  ;;  %v5249_v8 = vor.u32 1.1754944e-38, %v5248_v34  ;;  %v5326_v53 = vand.u32 2147483647, %v12788_v59  ;;  %v5328_v60 = vand.u32 2147483648, %v12788_v59 }
 0x550   : > { %v5272_v2 = vadd.f32 0.112945676, %v5271_v5  ;;  %v5351_v56 = vmul.f32 %v5350_v27, %v12780_v25  ;;  %v5261_v45 = vadd.f32 0.05243302, %v5260_v63  ;;  %v5340_v42 = vmul.f32 %v5339_v7, %v12780_v25  ;;  %v12818_v58 = vld [vmem:[%s12911_s8] ss:$0 sm:$0xff]  ;;  %p6776_p2 = pnand %p6775_p1, %p6996_p5  ;;  %p6781_p11 = por %p6780_p10, %p6779_p8 }
 0x551   : > { %v6558_v10 = vpop.eup %6557  ;;  %v5240_v54 = vmul.f32 %v6556_v22, %v5239_v40  ;;  %vm5322_vm15 = vweird.f32 %v12788_v59  ;;  %v5329_v4 = vor.u32 1.1754944e-38, %v5328_v60  ;;  %v5306_v26 = vmul.f32 %v5305_v41, %v12696_v57 }
 0x552   : > { %v5318_v29 = vmul.f32 %v6558_v10, %v12788_v59  ;;  %v5273_v51 = vmul.f32 %v5272_v2, %v12777_v52  ;;  %vm5323_vm14 = vweird.f32 %v6558_v10  ;;  %v5352_v28 = vadd.f32 0.112945676, %v5351_v56  ;;  %p6777_p4 = pneg %p6776_p2 }
 0x553   : > { %v5241_v62 = vadd.f32 %v6556_v22, %v5240_v54  ;;  %vm5324_vm0 = vmor %vm5322_vm15, %vm5323_vm14  ;;  %vm5327_vm1 = vcmp.eq.f32.partialorder %v5326_v53, 8.507059e+37  ;;  %v5262_v35 = vmul.f32 %v5261_v45, %v12777_v52  ;;  %v5341_v12 = vadd.f32 0.05243302, %v5340_v42  ;;  %v5801_v2 = vpop.f32.mrf.mxu3 }
 0x554   : > { %v5319_v18 = vsub.f32 1.0, %v5318_v29  ;;  %v5274_v32 = vadd.f32 0.4994258, %v5273_v51  ;;  %v5353_v48 = vmul.f32 %v5352_v28, %v12780_v25  ;;  %v2746_v39 = vmul.f32 0.5, %v12663_v14  ;;  %p6782_p12 = pnand %p6781_p11, %p6777_p4 }
 0x555   : > { %v5245_v61 = vsel %vm5244_vm12, %v6556_v22, %v5241_v62  ;;  %v5710_v22 = vpop.f32.mrf.mxu2  ;;  %v599_v55 = vpack.c.bf16 %v581_v46, %v580_v49  ;;  %v2748_v40 = vmul.f32 0.5, %v12675_v38  ;;  %v5263_v0 = vadd.f32 0.18741608, %v5262_v35 }
 0x556   : > { %v5250_v44 = vsel %vm5247_vm13, %v5249_v8, %v5245_v61  ;;  %v5320_v43 = vmul.f32 %v6558_v10, %v5319_v18  ;;  %v5275_v19 = vmul.f32 %v5274_v32, %v12777_v52  ;;  %v5354_v47 = vadd.f32 0.4994258, %v5353_v48 }
 0x557   : > { %v5251_v24 = vmul.f32 %v5250_v44, %v5226_v11  ;;  %v5711_v1 = vadd.f32 %v12818_v58, %v5710_v22  ;;  %v5342_v14 = vmul.f32 %v5341_v12, %v12780_v25  ;;  %795 = vmatmul.bf16.gmra.mxu0 %v599_v55  ;;  %894 = vmatmul.bf16.gmra.mxu1 %v599_v55 }
 0x558   : > { %v5321_v13 = vadd.f32 %v6558_v10, %v5320_v43  ;;  %v5276_v21 = vadd.f32 1.0, %v5275_v19  ;;  %v5355_v57 = vmul.f32 %v5354_v47, %v12780_v25  ;;  %v5264_v11 = vmul.f32 %v5263_v0, %v12777_v52 }
 0x559   : > { %v6209_v9 = vclamps-f32 %v5251_v24, 1.0  ;;  %v5800_v34 = vadd.f32 %v5799_v17, %v5711_v1  ;;  %v5343_v41 = vadd.f32 0.18741608, %v5342_v14  ;;  %v2747_v47 = vmul.f32 0.5, %v12748_v33 }
 0x55a   : > { %v5325_v6 = vsel %vm5324_vm0, %v6558_v10, %v5321_v13  ;;  %6559 = vrcp.f32 %v5276_v21  ;;  %v5356_v15 = vadd.f32 1.0, %v5355_v57  ;;  %v5288_v62 = vand.u32 2147483648, %v5276_v21 }
 0x55b   : > { %v5330_v23 = vsel %vm5327_vm1, %v5329_v4, %v5325_v6  ;;  %v5434_v20 = vadd.f32 1.0, %v6209_v9  ;;  %5858 = vst [vmem:[%s11034_s26 + $0x70] sm:$0xff] %v5800_v34  ;;  %v5265_v7 = vadd.f32 1.1283791, %v5264_v11  ;;  %v5286_v8 = vand.u32 2147483647, %v5276_v21  ;;  %v5804_v19 = vpop.f32.mrf.mxu3 }
 0x55c   : > { %v5331_v59 = vmul.f32 %v5330_v23, %v5306_v26  ;;  %6561 = vrcp.f32 %v5356_v15  ;;  %v5344_v51 = vmul.f32 %v5343_v41, %v12780_v25  ;;  %vm5282_vm4 = vweird.f32 %v5276_v21 }
 0x55d   : > { %v5498_v50 = vmul.f32 %v5434_v20, %v2746_v39  ;;  %v5712_v38 = vpop.f32.mrf.mxu2  ;;  %v5289_v60 = vor.u32 1.1754944e-38, %v5288_v62  ;;  %v5266_v56 = vmul.f32 %v5265_v7, %v12763_v30  ;;  %vm5287_vm6 = vcmp.eq.f32.partialorder %v5286_v8, 8.507059e+37 }
 0x55e   : > { %v6211_v37 = vclamps-f32 %v5331_v59, 1.0  ;;  %v5713_v63 = vadd.f32 %v12818_v58, %v5712_v38  ;;  %v5345_v24 = vadd.f32 1.1283791, %v5344_v51  ;;  %v5368_v45 = vand.u32 2147483648, %v5356_v15 }
 0x55f   : > { %v5366_v25 = vand.u32 2147483647, %v5356_v15  ;;  %vm5362_vm8 = vweird.f32 %v5356_v15  ;;  %v2749_v17 = vmul.f32 0.5, %v12754_v3 }
 0x560   : > { %v5436_v31 = vadd.f32 1.0, %v6211_v37  ;;  %v6560_v5 = vpop.eup %6559  ;;  %v5802_v61 = vadd.f32 %v5801_v2, %v5713_v63  ;;  %v5369_v30 = vor.u32 1.1754944e-38, %v5368_v45  ;;  %v5346_v6 = vmul.f32 %v5345_v24, %v12766_v36 }
 0x561   : > { %v5278_v54 = vmul.f32 %v6560_v5, %v5276_v21  ;;  %vm5283_vm3 = vweird.f32 %v6560_v5  ;;  %vm5367_vm2 = vcmp.eq.f32.partialorder %v5366_v25, 8.507059e+37 }
 0x562   : > { %v5500_v10 = vmul.f32 %v5436_v31, %v2748_v40  ;;  %v6562_v18 = vpop.eup %6561  ;;  %vm5284_vm5 = vmor %vm5282_vm4, %vm5283_vm3  ;;  %5859 = vst [vmem:[%s11034_s26 + $0x78] sm:$0xff] %v5802_v61 }
 0x563   : > { %v5279_v29 = vsub.f32 1.0, %v5278_v54  ;;  %v5358_v53 = vmul.f32 %v6562_v18, %v5356_v15  ;;  %vm5363_vm7 = vweird.f32 %v6562_v18  ;;  %v5806_v39 = vpop.f32.mrf.mxu3 }
 0x564   : > { %v5532_v16 = vpack.c.bf16 %v5500_v10, %v5498_v50  ;;  %vm5364_vm9 = vmor %vm5362_vm8, %vm5363_vm7 }
 0x565   : > { %v5280_v27 = vmul.f32 %v6560_v5, %v5279_v29  ;;  %v5359_v43 = vsub.f32 1.0, %v5358_v53  ;;  %v5715_v13 = vpop.f32.mrf.mxu2 }
 0x566   : > { %5749 = vmatmul.bf16.gmra.mxu2 %v5532_v16  ;;  %v5716_v9 = vadd.f32 %v12818_v58, %v5715_v13 }
 0x567   : > { %v5281_v52 = vadd.f32 %v6560_v5, %v5280_v27  ;;  %v5360_v28 = vmul.f32 %v6562_v18, %v5359_v43 }
 0x568   : > { %v5805_v26 = vadd.f32 %v5804_v19, %v5716_v9 }
 0x569   : > { %v5285_v44 = vsel %vm5284_vm5, %v6560_v5, %v5281_v52  ;;  %v5361_v48 = vadd.f32 %v6562_v18, %v5360_v28 }
 0x56a   : > { %v5290_v32 = vsel %vm5287_vm6, %v5289_v60, %v5285_v44  ;;  %5860 = vst [vmem:[%s11034_s26 + $0x80] sm:$0xff] %v5805_v26 }
 0x56b   : > { %v5291_v42 = vmul.f32 %v5290_v32, %v5266_v56  ;;  %v5365_v21 = vsel %vm5364_vm9, %v6562_v18, %v5361_v48  ;;  %v5809_v55 = vpop.f32.mrf.mxu3 }
 0x56c   : > { %v5370_v23 = vsel %vm5367_vm2, %v5369_v30, %v5365_v21 }
 0x56d   : > { %v6210_v4 = vclamps-f32 %v5291_v42, 1.0  ;;  %v5371_v35 = vmul.f32 %v5370_v23, %v5346_v6  ;;  %v5717_v20 = vpop.f32.mrf.mxu2 }
 0x56e   : > { %v5718_v22 = vadd.f32 %v12818_v58, %v5717_v20 }
 0x56f   : > { %v5435_v12 = vadd.f32 1.0, %v6210_v4  ;;  %v6212_v59 = vclamps-f32 %v5371_v35, 1.0 }
 0x570   : > { %v5807_v46 = vadd.f32 %v5806_v39, %v5718_v22 }
 0x571   : > { %v5437_v49 = vadd.f32 1.0, %v6212_v59  ;;  %v5499_v36 = vmul.f32 %v5435_v12, %v2747_v47 }
 0x572   : > { %5861 = vst [vmem:[%s11034_s26 + $0x88] sm:$0xff] %v5807_v46 }
 0x573   : > { %v5501_v37 = vmul.f32 %v5437_v49, %v2749_v17  ;;  %v5811_v14 = vpop.f32.mrf.mxu3 }
 0x575   : > { %v5533_v57 = vpack.c.bf16 %v5501_v37, %v5499_v36  ;;  %v5720_v1 = vpop.f32.mrf.mxu2 }
 0x576   : > { %v5721_v33 = vadd.f32 %v12818_v58, %v5720_v1 }
 0x577   : > { %5838 = vmatmul.bf16.gmra.mxu3 %v5533_v57 }
 0x578   : > { %v5810_v40 = vadd.f32 %v5809_v55, %v5721_v33 }
 0x57a   : > { %5862 = vst [vmem:[%s11034_s26 + $0x90] sm:$0xff] %v5810_v40 }
 0x57b   : > { %v5814_v15 = vpop.f32.mrf.mxu3 }
 0x57d   : > { %v5722_v0 = vpop.f32.mrf.mxu2 }
 0x57e   : > { %v5723_v3 = vadd.f32 %v12818_v58, %v5722_v0 }
 0x580   : > { %v5812_v31 = vadd.f32 %v5811_v14, %v5723_v3 }
 0x582   : > { %5863 = vst [vmem:[%s11034_s26 + $0x98] sm:$0xff] %v5812_v31 }
 0x583   : > { %v5816_v11 = vpop.f32.mrf.mxu3 }
 0x585   : > { %v5725_v50 = vpop.f32.mrf.mxu2 }
 0x586   : > { %v5726_v34 = vadd.f32 %v12818_v58, %v5725_v50 }
 0x588   : > { %v5815_v5 = vadd.f32 %v5814_v15, %v5726_v34 }
 0x58a   : > { %5864 = vst [vmem:[%s11034_s26 + $0xa0] sm:$0xff] %v5815_v5 }
 0x58b   : > { %v5819_v29 = vpop.f32.mrf.mxu3 }
 0x58d   : > { %v5727_v10 = vpop.f32.mrf.mxu2 }
 0x58e   : > { %v5728_v54 = vadd.f32 %v12818_v58, %v5727_v10 }
 0x590   : > { %v5817_v16 = vadd.f32 %v5816_v11, %v5728_v54 }
 0x592   : > { %5865 = vst [vmem:[%s11034_s26 + $0xa8] sm:$0xff] %v5817_v16 }
 0x593   : > { %v5821_v63 = vpop.f32.mrf.mxu3 }
 0x595   : > { %v5730_v41 = vpop.f32.mrf.mxu2 }
 0x596   : > { %v5731_v38 = vadd.f32 %v12818_v58, %v5730_v41 }
 0x598   : > { %v5820_v2 = vadd.f32 %v5819_v29, %v5731_v38 }
 0x59a   : > { %5866 = vst [vmem:[%s11034_s26 + $0xb0] sm:$0xff] %v5820_v2 }
 0x59b   : > { %v5824_v18 = vpop.f32.mrf.mxu3 }
 0x59d   : > { %v5732_v62 = vpop.f32.mrf.mxu2 }
 0x59e   : > { %v5733_v7 = vadd.f32 %v12818_v58, %v5732_v62 }
 0x5a0   : > { %v5822_v27 = vadd.f32 %v5821_v63, %v5733_v7 }
 0x5a2   : > { %5867 = vst [vmem:[%s11034_s26 + $0xb8] sm:$0xff] %v5822_v27 }
 0x5a3   : > { %v5826_v53 = vpop.f32.mrf.mxu3 }
 0x5a5   : > { %v5735_v8 = vpop.f32.mrf.mxu2 }
 0x5a6   : > { %v5736_v51 = vadd.f32 %v12818_v58, %v5735_v8 }
 0x5a8   : > { %v5825_v61 = vadd.f32 %v5824_v18, %v5736_v51 }
 0x5aa   : > { %5868 = vst [vmem:[%s11034_s26 + $0xc0] sm:$0xff] %v5825_v61 }
 0x5ab   : > { %v5829_v43 = vpop.f32.mrf.mxu3 }
 0x5ad   : > { %v5737_v52 = vpop.f32.mrf.mxu2 }
 0x5ae   : > { %v5738_v60 = vadd.f32 %v12818_v58, %v5737_v52 }
 0x5b0   : > { %v5827_v56 = vadd.f32 %v5826_v53, %v5738_v60 }
 0x5b2   : > { %5869 = vst [vmem:[%s11034_s26 + $0xc8] sm:$0xff] %v5827_v56 }
 0x5b3   : > { %v5831_v42 = vpop.f32.mrf.mxu3 }
 0x5b5   : > { %v5740_v44 = vpop.f32.mrf.mxu2 }
 0x5b6   : > { %v5741_v32 = vadd.f32 %v12818_v58, %v5740_v44 }
 0x5b8   : > { %v5830_v24 = vadd.f32 %v5829_v43, %v5741_v32 }
 0x5ba   : > { %5870 = vst [vmem:[%s11034_s26 + $0xd0] sm:$0xff] %v5830_v24 }
 0x5bd   : > { %v5742_v45 = vpop.f32.mrf.mxu2 }
 0x5be   : > { %v5743_v28 = vadd.f32 %v12818_v58, %v5742_v45 }
 0x5c0   : > { %v5832_v25 = vadd.f32 %v5831_v42, %v5743_v28 }
 0x5c2   : > { %5871 = vst [vmem:[%s11034_s26 + $0xd8] sm:$0xff] %v5832_v25 }
 0x5c5   : > { %v5745_v13 = vpop.f32.mrf.mxu2 }
 0x5c6   : > { %v5746_v19 = vadd.f32 %v12818_v58, %v5745_v13 }
 0x5cd   : > { %v5747_v48 = vpop.f32.mrf.mxu2 }
 0x5ce   : > { %v5748_v30 = vadd.f32 %v12818_v58, %v5747_v48 }
 0x5cf   : > { %v5834_v9 = vpop.f32.mrf.mxu3 }
 0x5d0   : > { %v5835_v4 = vadd.f32 %v5834_v9, %v5746_v19 }
 0x5d2   : > { %5872 = vst [vmem:[%s11034_s26 + $0xe0] sm:$0xff] %v5835_v4 }
 0x5d4   : > { %v796_v21 = vpop.f32.mrf.mxu0  ;;  %v895_v23 = vpop.f32.mrf.mxu1 }
 0x5d7   : > { %v5836_v26 = vpop.f32.mrf.mxu3 }
 0x5d8   : > { %v5837_v6 = vadd.f32 %v5836_v26, %v5748_v30 }
 0x5da   : > { %5873 = vst [vmem:[%s11034_s26 + $0xe8] sm:$0xff] %v5837_v6 }
 0x5dc   : > { %v798_v35 = vpop.f32.mrf.mxu0  ;;  %v897_v12 = vpop.f32.mrf.mxu1 }
 0x5e9   : > { %v5750_v47 = vpop.f32.mrf.mxu2 }
 0x5ea   : > { %v5751_v59 = vadd.f32 %v12818_v58, %v5750_v47 }
 0x5f1   : > { %v5752_v22 = vpop.f32.mrf.mxu2 }
 0x5f2   : > { %v5753_v17 = vadd.f32 %v12818_v58, %v5752_v22 }
 0x5fa   : > { %v5839_v20 = vpop.f32.mrf.mxu3 }
 0x5fb   : > { %v5840_v39 = vadd.f32 %v5839_v20, %v5751_v59 }
 0x5fd   : > { %5874 = vst [vmem:[%s11034_s26 + $0xf0] sm:$0xff] %v5840_v39 }
 0x602   : > { %v5841_v49 = vpop.f32.mrf.mxu3 }
 0x603   : > { %v5842_v36 = vadd.f32 %v5841_v49, %v5753_v17 }
 0x605   : > { %5875 = vst [vmem:[%s11034_s26 + $0xf8] sm:$0xff] %v5842_v36 }
 0x606   : > { %6785 = shalt.err (!%p6782_p12)
}
 0x607   : > { %s6864_s7 = smov 128   ;;  %s6865_s26 = smov 8  }
 0x608   : > { %6338 = dma.vmem_to_hbm [thread:$0]  (%p6996_p5), %s5892_s12, 4096, %s5894_s13, %s5877_s22, %s6864_s7, %s6864_s7, %s6865_s26  }
 0x609 PF: > { %s14392_s1 = sld [smem:[#allocation20_spill]] }
 0x60a   : > { %s14394_s25 = sld [smem:[#allocation24_spill]] }
 0x60f   : > { %s5908_s3 = sand.u32 1, %s14392_s1  }
 0x610   : > { %p14395_p13 = scmp.ge.s32.totalorder %s14394_s25, 2  ;;  %s5909_s30 = scalar_lea.sflag [#allocation5], %s5908_s3 }
 0x612   : > { %p6361_p0 = pnand %p14395_p13, %p6961_p6 }
 0x614   : > { %p6362_p3 = pneg %p6361_p0 }
 0x616   : > { %6827 = dma.done.wait (%p6362_p3), %s5909_s30, 4096  }
 0x617   : > { %6829 = vsyncadd (%p6362_p3), %s5909_s30, 4294963200  ;;  %s30_s14 = sadd.s32 1, %s14394_s25   ;;  %s14396_s28 = sld [smem:[#allocation21_spill]] }
 0x618   : > { %p27_p7 = scmp.ge.s32.totalorder %s30_s14, 4   ;;  %s14397_s11 = sld [smem:[#allocation28_spill]] }
 0x619   : > { %s14398_s12 = sld [smem:[#allocation23_spill]]  ;;  %s14400_s30 = smov %s6836_s10 }
 0x61a   : > { %s14399_s13 = sld [smem:[#allocation26_spill]]  ;;  %29 = sbr.rel (!%p27_p7) target bundleno = 16 (0x10), region = 142 }
 0x61d   : > { %s14401_s10 = smov %s14396_s28 }
 0x61f   :  { %5915 = vsyncpa [#allocation4], 1 }
 0x620   :  { %5917 = vsyncpa [#allocation4 + $0x1], 1 }
 0x621   :  { %5918 = vsyncpa [#allocation7], 1 }
 0x622   :  { %5920 = vsyncpa [#allocation7 + $0x1], 1 }
 0x623   :  { %5921 = vsyncpa [#allocation10], 1 }
 0x624   :  { %5922 = vsyncpa [#allocation13], 1 }
 0x625   :  { %5923 = vsyncpa [#allocation5], 1 }
 0x626   :  { %5925 = vsyncpa [#allocation5 + $0x1], 1 }

</bundles_post_ra>
